<compile_context>
chip_gen: v6e
topology: v6e:2x2x1
jax: 0.10.0
libtpu: 0.0.40
codegen_flags: <defaults>
</compile_context>

<pallas_src>
import functools
import numpy as np
import jax
import jax.numpy as jnp
from jax import lax
from jax.experimental import pallas as pl
from jax.experimental.pallas import tpu as pltpu


def _round_up(x, m):
    return (x + m - 1) // m * m


def _pick_th(H, Nb, Wr, acc_rows):
    """Largest divisor of H whose chunk (Nb*th*Wr rows) fits the row budget."""
    best = 1
    for d in range(1, H + 1):
        if H % d == 0 and Nb * d * Wr <= acc_rows:
            best = d
    return best


def _two_tensorcores():
    # Batch-parallel grid only pays on chips with 2 TensorCores (v7x).
    try:
        kind = jax.devices()[0].device_kind.lower()
        return ("v7" in kind) or ("7x" in kind)
    except Exception:
        return False


# ----------------------------------------------------------------------------
# Fused conv-chain Pallas kernel
# ----------------------------------------------------------------------------
# A "chain" is a sequence of 3x3 / pad=1 convolutions executed back-to-back on
# a feature map kept resident in two padded bf16 VMEM buffers.  The block's
# skip-adds are folded in as extra summed inputs; block outputs are emitted
# straight from the f32 accumulator (full width, cropped in the wrapper).
#
# Per chunk and conv step:
#   big  = (Nb, th+2, Wr, C) bf16 rows from the source buffer (one load)
#   lhs  = concat of the 3 dy row-slices along channels -> (M, 3C) bf16
#   y_dx = lhs @ Wcat[dx]  (K=3C MXU matmul, f32 accumulation), dx = 0,1,2
#   acc  = roll(y_0,+1) + y_1 + roll(y_2,M-1) + bias   (column taps via roll
#          of the f32 results; wrap garbage lands only in halo columns)
# The halo ring (top/bottom rows, columns 0 and W+1..Wr-1) of the buffers is
# kept exactly zero, which makes the roll-based taps equal to zero padding.
#
# steps: tuple of (relu, cout, out_idx, to_buffer, residual)
def _chain_kernel(*refs, Nb, H, W, C, Wr, th, steps, n_inputs, n_outputs):
    n_steps = len(steps)
    p = 0
    in_refs = refs[p:p + n_inputs]; p += n_inputs
    w_refs = refs[p:p + n_steps]; p += n_steps
    b_refs = refs[p:p + n_steps]; p += n_steps
    out_refs = refs[p:p + n_outputs]; p += n_outputs
    bufs = refs[p:p + 2]

    n_chunks = H // th
    M = Nb * th * Wr
    bdt = bufs[0].dtype

    # --- zero only the halo ring (interiors are always fully overwritten) ---
    zrow = jnp.zeros((Nb, 1, Wr, C), bdt)
    for bfr in bufs:
        bfr[:, 0:1, :, :] = zrow
        bfr[:, H + 1:H + 2, :, :] = zrow
    bufs[0][:, 1:1 + H, 0:1, :] = jnp.zeros((Nb, H, 1, C), bdt)
    bufs[0][:, 1:1 + H, 1 + W:Wr, :] = jnp.zeros((Nb, H, Wr - W - 1, C), bdt)

    # valid-image-column mask, built in-kernel (no HBM-borne mask array)
    wcol = lax.broadcasted_iota(jnp.int32, (1, 1, Wr, 1), 2)
    colmask = jnp.logical_and(wcol >= 1, wcol <= W).astype(jnp.float32)

    # --- skip-add of the block inputs, written chunk-wise into buffer 0 -----
    def xsum_body(ci, carry):
        h0 = ci * th
        if n_inputs == 1:
            s = in_refs[0][:, pl.ds(h0, th), :, :].astype(bdt)
        else:
            s = in_refs[0][:, pl.ds(h0, th), :, :].astype(jnp.float32)
            for r in in_refs[1:]:
                s = s + r[:, pl.ds(h0, th), :, :].astype(jnp.float32)
            s = s.astype(bdt)
        bufs[0][:, pl.ds(1 + h0, th), 1:1 + W, :] = s
        return carry

    if n_chunks == 1:
        xsum_body(0, 0)
    else:
        lax.fori_loop(0, n_chunks, xsum_body, 0)

    # --- conv chain ----------------------------------------------------------
    src = 0
    for si, (relu, cout, out_idx, to_buffer, residual) in enumerate(steps):
        dst = 1 - src
        w_ref = w_refs[si]
        b_ref = b_refs[si]
        src_buf = bufs[src]
        dst_buf = bufs[dst]

        def chunk_body(ci, carry, _src=src_buf, _dst=dst_buf, _w=w_ref,
                       _b=b_ref, _relu=relu, _cout=cout, _out_idx=out_idx,
                       _to_buffer=to_buffer, _residual=residual):
            h0 = ci * th
            big = _src[:, pl.ds(h0, th + 2), :, :]            # (Nb, th+2, Wr, C)
            b0 = big[:, 0:th].reshape(M, C)
            b1 = big[:, 1:th + 1].reshape(M, C)
            b2 = big[:, 2:th + 2].reshape(M, C)
            lhs = jnp.concatenate([b0, b1, b2], axis=1)       # (M, 3C) bf16
            y0 = jnp.dot(lhs, _w[0], preferred_element_type=jnp.float32)
            y1 = jnp.dot(lhs, _w[1], preferred_element_type=jnp.float32)
            y2 = jnp.dot(lhs, _w[2], preferred_element_type=jnp.float32)
            # horizontal taps: shift the f32 results by +-1 flattened row
            # (non-negative shifts only; M-1 == -1 mod M)
            acc = (pltpu.roll(y0, shift=1, axis=0) + y1
                   + pltpu.roll(y2, shift=M - 1, axis=0) + _b[...])
            if _residual:
                res = _dst[:, pl.ds(1 + h0, th), :, :].reshape(M, _cout)
                acc = acc + res.astype(jnp.float32)
            if _relu:
                acc = jnp.maximum(acc, 0.0)
            acc4 = acc.reshape(Nb, th, Wr, _cout)
            if _to_buffer:
                acc4 = acc4 * colmask     # keep buffer halo columns exactly 0
                _dst[:, pl.ds(1 + h0, th), :, :] = acc4.astype(bdt)
            if _out_idx is not None:
                o_ref = out_refs[_out_idx]
                o_ref[:, pl.ds(h0, th), :, :] = acc4.astype(o_ref.dtype)
            return carry

        if n_chunks == 1:
            chunk_body(0, 0)
        else:
            lax.fori_loop(0, n_chunks, chunk_body, 0)

        if to_buffer:
            src = dst


def run_chain(inputs, weights, biases, steps, out_dtypes, *, mid_ch,
              acc_rows=384, batch_grid=False):
    """Run one fused conv-chain kernel.

    inputs : list of (N, H, W, mid_ch) bf16 arrays, summed inside the kernel.
    weights: per step (3, 3*mid_ch, cout) bf16 (dx-major, dy/cin concatenated).
    biases : per step (1, cout) f32.
    Returns a tuple of outputs, each (N, H, W, cout) in out_idx order.
    """
    N, H, W, C = inputs[0].shape
    assert C == mid_ch
    for i, st in enumerate(steps):
        if st[4]:  # residual
            assert i >= 2 and steps[i - 1][3] and steps[i - 2][3], (
                "residual step must follow two buffered steps")

    Hp = H + 2
    Wr = _round_up(W + 2, 8)
    use_grid = batch_grid and N > 1
    Nb = 1 if use_grid else N
    th = _pick_th(H, Nb, Wr, acc_rows)

    out_info = sorted((st[2], st[1]) for st in steps if st[2] is not None)
    n_outputs = len(out_info)
    out_shape = tuple(jax.ShapeDtypeStruct((N, H, Wr, cout), out_dtypes[oi])
                      for oi, cout in out_info)

    kernel = functools.partial(
        _chain_kernel, Nb=Nb, H=H, W=W, C=C, Wr=Wr, th=th,
        steps=tuple(steps), n_inputs=len(inputs), n_outputs=n_outputs)

    scratch = [pltpu.VMEM((Nb, Hp, Wr, C), jnp.bfloat16),
               pltpu.VMEM((Nb, Hp, Wr, C), jnp.bfloat16)]

    # VMEM budget: resident/blocked args (x2 headroom) + scratch + slack.
    est = 0
    for a in list(inputs) + list(weights) + list(biases):
        est += a.size * a.dtype.itemsize
    for s in out_shape:
        est += int(np.prod(s.shape)) * jnp.dtype(s.dtype).itemsize
    est = 2 * est + 2 * (Nb * Hp * Wr * C * 2) + (4 << 20)
    vmem_limit = int(min(100 << 20, max(32 << 20, est)))

    if use_grid:
        in_specs = (
            [pl.BlockSpec((1, H, W, C), lambda n: (n, 0, 0, 0))] * len(inputs)
            + [pl.BlockSpec(w.shape, lambda n: (0, 0, 0)) for w in weights]
            + [pl.BlockSpec(b.shape, lambda n: (0, 0)) for b in biases])
        out_specs = tuple(pl.BlockSpec((1, H, Wr, cout), lambda n: (n, 0, 0, 0))
                          for _, cout in out_info)
        outs = pl.pallas_call(
            kernel,
            out_shape=out_shape,
            grid=(N,),
            in_specs=in_specs,
            out_specs=out_specs,
            scratch_shapes=scratch,
            compiler_params=pltpu.CompilerParams(
                dimension_semantics=("parallel",),
                vmem_limit_bytes=vmem_limit),
        )(*inputs, *weights, *biases)
    else:
        vmem = pl.BlockSpec(memory_space=pltpu.MemorySpace.VMEM)
        n_args = len(inputs) + 2 * len(steps)
        outs = pl.pallas_call(
            kernel,
            out_shape=out_shape,
            in_specs=[vmem] * n_args,
            out_specs=tuple([vmem] * n_outputs),
            scratch_shapes=scratch,
            compiler_params=pltpu.CompilerParams(vmem_limit_bytes=vmem_limit),
        )(*inputs, *weights, *biases)

    # width-halo crop done in XLA (kernel stores are lane/sublane aligned)
    return tuple(o[:, :, 1:1 + W, :] for o in outs)


# ----------------------------------------------------------------------------
# Fused lane-dense sigmoid kernel for the 5 final maps (single pallas_call)
# ----------------------------------------------------------------------------
def _sigmoid_kernel(x_ref, o_ref):
    o_ref[...] = jax.nn.sigmoid(x_ref[...])


def fused_sigmoid(maps):
    n = len(maps)
    x = jnp.stack(maps, axis=0)                        # (5, N, 1, H, W)
    flat = x.reshape(n * x.shape[1], -1)               # lane-dense (10, H*W)
    vmem = pl.BlockSpec(memory_space=pltpu.MemorySpace.VMEM)
    y = pl.pallas_call(
        _sigmoid_kernel,
        out_shape=jax.ShapeDtypeStruct(flat.shape, flat.dtype),
        in_specs=[vmem],
        out_specs=vmem,
    )(flat)
    y = y.reshape(x.shape)
    return [y[i] for i in range(n)]


# ----------------------------------------------------------------------------
# Plain-JAX glue: bilinear (align_corners=True) resize + stride-2 downsample
# TODO(synk): the bilinear up/resize and the stride-2 decimation stay as XLA
# glue between the fused kernels (small tensors, data-dependent layout).
# ----------------------------------------------------------------------------
def _bilinear_matrix(out_size, in_size):
    if in_size == 1:
        return jnp.ones((out_size, 1), jnp.float32)
    src = jnp.arange(out_size, dtype=jnp.float32) * (in_size - 1) / (out_size - 1)
    lo = jnp.clip(jnp.floor(src).astype(jnp.int32), 0, in_size - 2)
    frac = src - lo.astype(jnp.float32)
    M = jnp.zeros((out_size, in_size), jnp.float32)
    idx = jnp.arange(out_size)
    M = M.at[idx, lo].add(1.0 - frac)
    M = M.at[idx, lo + 1].add(frac)
    return M


def resize_bilinear(x, out_h, out_w):
    """x: (N,H,W,C) -> (N,out_h,out_w,C), align_corners=True."""
    _, H, W, _ = x.shape
    Mh = _bilinear_matrix(out_h, H)
    Mw = _bilinear_matrix(out_w, W)
    y = jnp.einsum('oh,nhwc->nowc', Mh, x)
    return jnp.einsum('pw,nowc->nopc', Mw, y)


# ----------------------------------------------------------------------------
# Parameters (deterministic kaiming-style, bf16 weights / f32 biases)
# ----------------------------------------------------------------------------
def _conv_w(key, cin, cout):
    w = jax.random.normal(key, (3, 3, cin, cout), jnp.float32)
    return (w * np.sqrt(2.0 / (9 * cin))).astype(jnp.bfloat16)


def _conv_b(cout):
    return jnp.zeros((1, cout), jnp.float32)


def _prep_wcat(w):
    """(3,3,cin,cout) HWIO -> (3, 3*cin, cout): dx outer, [dy,cin] concatenated."""
    kh, kw, cin, cout = w.shape
    return jnp.transpose(w, (1, 0, 2, 3)).reshape(kw, kh * cin, cout)


def _step(relu=True, cout=None, out_idx=None, to_buffer=True, residual=False):
    return (relu, cout, out_idx, to_buffer, residual)


# ----------------------------------------------------------------------------
# PCDEN model
# ----------------------------------------------------------------------------
class PCDENPallas:
    def __init__(self, key, in_ch=3, mid_ch=128, bottleneck_num=2):
        assert bottleneck_num >= 1
        self.in_ch = in_ch
        self.C = mid_ch
        self.nb = bottleneck_num
        self.batch_grid = _two_tensorcores()   # use both TCs on v7x
        keys = iter(jax.random.split(key, 128))
        nk = lambda: next(keys)
        C = mid_ch

        # TODO(synk): resnet50 backbone unavailable -> strided 3x3-conv stand-in
        # (stage = down2 + conv), fused with the following eside ConvModule.
        self.stage_w = [(_prep_wcat(_conv_w(nk(), C, C)),
                         _prep_wcat(_conv_w(nk(), C, C))) for _ in range(5)]
        self.stage_b = [(_conv_b(C), _conv_b(C)) for _ in range(5)]
        # TODO(synk): SPCM1/SPCM/SPCM5 + SDEM definitions unavailable ->
        # fuse-add + conv, then conv/conv/residual/ReLU stand-in (3 convs, fused).
        self.ss_w = [tuple(_prep_wcat(_conv_w(nk(), C, C)) for _ in range(3))
                     for _ in range(5)]
        self.ss_b = [tuple(_conv_b(C) for _ in range(3)) for _ in range(5)]
        # TODO(synk): AFFD definition unavailable -> add + fuse conv +
        # bottleneck convs stand-in, fused with the dside 3x3 head.  The
        # dside cout=1 is zero-padded to 128 so stores are lane-dense.
        self.dec_w, self.dec_b = [], []
        for _ in range(5):
            ws = [_prep_wcat(_conv_w(nk(), C, C)) for _ in range(1 + bottleneck_num)]
            bs = [_conv_b(C) for _ in range(1 + bottleneck_num)]
            dside = _conv_w(nk(), C, 1)
            dside = jnp.pad(dside, ((0, 0), (0, 0), (0, 0), (0, C - 1)))
            ws.append(_prep_wcat(dside))
            bs.append(_conv_b(C))
            self.dec_w.append(tuple(ws))
            self.dec_b.append(tuple(bs))

    # --- fused blocks --------------------------------------------------------
    def _stage(self, i, x):
        steps = (_step(relu=True, cout=self.C, out_idx=0, to_buffer=True),   # backbone conv
                 _step(relu=True, cout=self.C, out_idx=1, to_buffer=False))  # eside conv
        f, c = run_chain([x], self.stage_w[i], self.stage_b[i], steps,
                         out_dtypes=(jnp.bfloat16, jnp.bfloat16),
                         mid_ch=self.C, batch_grid=self.batch_grid)
        return f, c

    def _spcm_sdem(self, i, inputs):
        steps = (_step(relu=True, cout=self.C, to_buffer=True),              # SPCM conv
                 _step(relu=True, cout=self.C, to_buffer=True),              # SDEM conv a
                 _step(relu=True, cout=self.C, out_idx=0, to_buffer=False,
                       residual=True))                                        # SDEM conv b + skip
        (ca,) = run_chain(inputs, self.ss_w[i], self.ss_b[i], steps,
                          out_dtypes=(jnp.bfloat16,), mid_ch=self.C,
                          batch_grid=self.batch_grid)
        return ca

    def _affd_dside(self, i, inputs):
        steps = [_step(relu=True, cout=self.C, to_buffer=True)]               # AFFD fuse conv
        for k in range(self.nb):
            last = (k == self.nb - 1)
            steps.append(_step(relu=True, cout=self.C, to_buffer=True,
                               out_idx=0 if last else None))                  # bottlenecks
        steps.append(_step(relu=False, cout=self.C, out_idx=1,
                           to_buffer=False))                                  # dside head (padded)
        up, d = run_chain(inputs, self.dec_w[i], self.dec_b[i], tuple(steps),
                          out_dtypes=(jnp.bfloat16, jnp.float32),
                          mid_ch=self.C, batch_grid=self.batch_grid)
        return up, d[..., :1]                       # slice the real dside channel

    # --- forward -------------------------------------------------------------
    def __call__(self, x_nchw):
        N, Cin, H0, W0 = x_nchw.shape
        x = jnp.transpose(x_nchw, (0, 2, 3, 1)).astype(jnp.bfloat16)
        # zero-pad the input channels to mid_ch so every kernel works on
        # lane-dense 128-channel tiles (padded channels contribute nothing).
        x = jnp.pad(x, ((0, 0), (0, 0), (0, 0), (0, self.C - Cin)))

        up = lambda t: resize_bilinear(t, 2 * t.shape[1],
                                       2 * t.shape[2]).astype(jnp.bfloat16)
        dn = lambda t: t[:, ::2, ::2, :]

        # backbone stand-in + eside (strides 2..32), one fused kernel per stage
        f = x
        cs = []
        for i in range(5):
            f, c = self._stage(i, dn(f))
            cs.append(c)
        c1, c2, c3, c4, c5 = cs

        # SPCM + SDEM, one fused kernel per level (skip adds summed in-kernel)
        ca1 = self._spcm_sdem(0, [c1, up(c2)])
        ca2 = self._spcm_sdem(1, [dn(c1), c2, up(c3)])
        ca3 = self._spcm_sdem(2, [dn(c2), c3, up(c4)])
        ca4 = self._spcm_sdem(3, [dn(c3), c4, up(c5)])
        ca5 = self._spcm_sdem(4, [dn(c4), c5])

        # AFFD decoder + dside head, one fused kernel per level
        u5, d5 = self._affd_dside(4, [ca5])
        u4, d4 = self._affd_dside(3, [ca4, up(u5)])
        u3, d3 = self._affd_dside(2, [ca3, up(u4)])
        u2, d2 = self._affd_dside(1, [ca2, up(u3)])
        u1, d1 = self._affd_dside(0, [ca1, up(u2)])

        # final resize (align_corners=True) to the input resolution, NCHW out
        S = [jnp.transpose(resize_bilinear(d, H0, W0), (0, 3, 1, 2))
             for d in (d1, d2, d3, d4, d5)]

        # all five sigmoids in a single lane-dense Pallas call
        Sig = fused_sigmoid(S)
        return tuple(S) + tuple(Sig)


# ----------------------------------------------------------------------------
if __name__ == "__main__":
    key = jax.random.PRNGKey(0)
    k_param, k_in = jax.random.split(key)
    model = PCDENPallas(k_param, in_ch=3, mid_ch=128, bottleneck_num=2)

    # small NCHW input consistent with a 5-level stride-2 segmentation network
    x = jax.random.normal(k_in, (2, 3, 32, 32), jnp.float32)

    outs = model(x)
    outs = jax.block_until_ready(outs)

    assert len(outs) == 10
    for o in outs:
        assert o.shape == (2, 1, 32, 32)
        assert bool(jnp.all(jnp.isfinite(o)))
    print("KERNEL_OK")
</pallas_src>

<mosaic_0001>
module attributes {stable_mosaic.version = 11 : i64} {
  func.func @_chain_kernel(%arg0: memref<2x16x16x128xbf16, #tpu.memory_space<vmem>>, %arg1: memref<3x384x128xbf16, #tpu.memory_space<vmem>>, %arg2: memref<3x384x128xbf16, #tpu.memory_space<vmem>>, %arg3: memref<1x128xf32, #tpu.memory_space<vmem>>, %arg4: memref<1x128xf32, #tpu.memory_space<vmem>>, %arg5: memref<2x16x24x128xbf16, #tpu.memory_space<vmem>>, %arg6: memref<2x16x24x128xbf16, #tpu.memory_space<vmem>>, %arg7: memref<2x18x24x128xbf16, #tpu.memory_space<vmem>>, %arg8: memref<2x18x24x128xbf16, #tpu.memory_space<vmem>>) attributes {dimension_semantics = [], scalar_prefetch = 0 : i64, scratch_operands = 2 : i64, tpu.core_type = #tpu.core_type<tc>} {
    %cst = arith.constant 0.000000e+00 : bf16
    %0 = vector.broadcast %cst : bf16 to vector<2x1x24x128xbf16>
    %c0 = arith.constant 0 : index
    %c0_0 = arith.constant 0 : index
    %c0_1 = arith.constant 0 : index
    %c0_2 = arith.constant 0 : index
    %1 = vector.load %arg7[%c0, %c0_0, %c0_1, %c0_2] : memref<2x18x24x128xbf16, #tpu.memory_space<vmem>>, vector<2x1x24x128xbf16>
    tpu.vector_store %arg7[%c0, %c0_0, %c0_1, %c0_2], %0 {strides = array<i32>} : memref<2x18x24x128xbf16, #tpu.memory_space<vmem>>, vector<2x1x24x128xbf16>,
    %c0_3 = arith.constant 0 : index
    %c17 = arith.constant 17 : index
    %c0_4 = arith.constant 0 : index
    %c0_5 = arith.constant 0 : index
    %2 = vector.load %arg7[%c0_3, %c17, %c0_4, %c0_5] : memref<2x18x24x128xbf16, #tpu.memory_space<vmem>>, vector<2x1x24x128xbf16>
    tpu.vector_store %arg7[%c0_3, %c17, %c0_4, %c0_5], %0 {strides = array<i32>} : memref<2x18x24x128xbf16, #tpu.memory_space<vmem>>, vector<2x1x24x128xbf16>,
    %c0_6 = arith.constant 0 : index
    %c0_7 = arith.constant 0 : index
    %c0_8 = arith.constant 0 : index
    %c0_9 = arith.constant 0 : index
    %3 = vector.load %arg8[%c0_6, %c0_7, %c0_8, %c0_9] : memref<2x18x24x128xbf16, #tpu.memory_space<vmem>>, vector<2x1x24x128xbf16>
    tpu.vector_store %arg8[%c0_6, %c0_7, %c0_8, %c0_9], %0 {strides = array<i32>} : memref<2x18x24x128xbf16, #tpu.memory_space<vmem>>, vector<2x1x24x128xbf16>,
    %c0_10 = arith.constant 0 : index
    %c17_11 = arith.constant 17 : index
    %c0_12 = arith.constant 0 : index
    %c0_13 = arith.constant 0 : index
    %4 = vector.load %arg8[%c0_10, %c17_11, %c0_12, %c0_13] : memref<2x18x24x128xbf16, #tpu.memory_space<vmem>>, vector<2x1x24x128xbf16>
    tpu.vector_store %arg8[%c0_10, %c17_11, %c0_12, %c0_13], %0 {strides = array<i32>} : memref<2x18x24x128xbf16, #tpu.memory_space<vmem>>, vector<2x1x24x128xbf16>,
    %cst_14 = arith.constant 0.000000e+00 : bf16
    %5 = vector.broadcast %cst_14 : bf16 to vector<2x16x1x128xbf16>
    %c0_15 = arith.constant 0 : index
    %c1 = arith.constant 1 : index
    %c0_16 = arith.constant 0 : index
    %c0_17 = arith.constant 0 : index
    %6 = vector.load %arg7[%c0_15, %c1, %c0_16, %c0_17] : memref<2x18x24x128xbf16, #tpu.memory_space<vmem>>, vector<2x16x1x128xbf16>
    tpu.vector_store %arg7[%c0_15, %c1, %c0_16, %c0_17], %5 {strides = array<i32>} : memref<2x18x24x128xbf16, #tpu.memory_space<vmem>>, vector<2x16x1x128xbf16>,
    %cst_18 = arith.constant 0.000000e+00 : bf16
    %7 = vector.broadcast %cst_18 : bf16 to vector<2x16x7x128xbf16>
    %c0_19 = arith.constant 0 : index
    %c1_20 = arith.constant 1 : index
    %c17_21 = arith.constant 17 : index
    %c0_22 = arith.constant 0 : index
    %8 = vector.load %arg7[%c0_19, %c1_20, %c17_21, %c0_22] : memref<2x18x24x128xbf16, #tpu.memory_space<vmem>>, vector<2x16x7x128xbf16>
    tpu.vector_store %arg7[%c0_19, %c1_20, %c17_21, %c0_22], %7 {strides = array<i32>} : memref<2x18x24x128xbf16, #tpu.memory_space<vmem>>, vector<2x16x7x128xbf16>,
    %9 = tpu.iota {dimensions = array<i32: 2>} : vector<1x1x24x1xi32>
    %c1_i32 = arith.constant 1 : i32
    %10 = vector.broadcast %c1_i32 : i32 to vector<1x1x24x1xi32>
    %11 = arith.cmpi sge, %9, %10 : vector<1x1x24x1xi32>
    %c16_i32 = arith.constant 16 : i32
    %12 = vector.broadcast %c16_i32 : i32 to vector<1x1x24x1xi32>
    %13 = arith.cmpi sle, %9, %12 : vector<1x1x24x1xi32>
    %14 = arith.andi %11, %13 : vector<1x1x24x1xi1>
    %15 = arith.extui %14 : vector<1x1x24x1xi1> to vector<1x1x24x1xi32>
    %16 = arith.sitofp %15 : vector<1x1x24x1xi32> to vector<1x1x24x1xf32>
    %c0_i32 = arith.constant 0 : i32
    %c2_i32 = arith.constant 2 : i32
    %17 = arith.addi %c0_i32, %c2_i32 : i32
    %c1_i32_23 = arith.constant 1 : i32
    scf.for %arg9 = %c0_i32 to %17 step %c1_i32_23  : i32 {
      %c8_i32 = arith.constant 8 : i32
      %20 = arith.muli %arg9, %c8_i32 : i32
      %c0_33 = arith.constant 0 : index
      %21 = arith.index_cast %20 : i32 to index
      %c0_34 = arith.constant 0 : index
      %c0_35 = arith.constant 0 : index
      %22 = vector.load %arg0[%c0_33, %21, %c0_34, %c0_35] : memref<2x16x16x128xbf16, #tpu.memory_space<vmem>>, vector<2x8x16x128xbf16>
      %c1_i32_36 = arith.constant 1 : i32
      %23 = arith.addi %c1_i32_36, %20 : i32
      %c0_37 = arith.constant 0 : index
      %24 = arith.index_cast %23 : i32 to index
      %c1_38 = arith.constant 1 : index
      %c0_39 = arith.constant 0 : index
      %25 = vector.load %arg7[%c0_37, %24, %c1_38, %c0_39] : memref<2x18x24x128xbf16, #tpu.memory_space<vmem>>, vector<2x8x16x128xbf16>
      tpu.vector_store %arg7[%c0_37, %24, %c1_38, %c0_39], %22 {strides = array<i32>} : memref<2x18x24x128xbf16, #tpu.memory_space<vmem>>, vector<2x8x16x128xbf16>,
    }
    %c2_i32_24 = arith.constant 2 : i32
    %c0_i32_25 = arith.constant 0 : i32
    %c2_i32_26 = arith.constant 2 : i32
    %18 = arith.addi %c0_i32_25, %c2_i32_26 : i32
    %c1_i32_27 = arith.constant 1 : i32
    scf.for %arg9 = %c0_i32_25 to %18 step %c1_i32_27  : i32 {
      %c8_i32 = arith.constant 8 : i32
      %20 = arith.muli %arg9, %c8_i32 : i32
      %c0_33 = arith.constant 0 : index
      %21 = arith.index_cast %20 : i32 to index
      %c0_34 = arith.constant 0 : index
      %c0_35 = arith.constant 0 : index
      %22 = vector.load %arg7[%c0_33, %21, %c0_34, %c0_35] : memref<2x18x24x128xbf16, #tpu.memory_space<vmem>>, vector<2x10x24x128xbf16>
      %23 = vector.extract_strided_slice %22 {offsets = [0, 0, 0, 0], sizes = [2, 8, 24, 128], strides = [1, 1, 1, 1]} : vector<2x10x24x128xbf16> to vector<2x8x24x128xbf16>
      %24 = vector.shape_cast %23 : vector<2x8x24x128xbf16> to vector<384x128xbf16>
      %25 = vector.extract_strided_slice %22 {offsets = [0, 1, 0, 0], sizes = [2, 8, 24, 128], strides = [1, 1, 1, 1]} : vector<2x10x24x128xbf16> to vector<2x8x24x128xbf16>
      %26 = vector.shape_cast %25 : vector<2x8x24x128xbf16> to vector<384x128xbf16>
      %27 = vector.extract_strided_slice %22 {offsets = [0, 2, 0, 0], sizes = [2, 8, 24, 128], strides = [1, 1, 1, 1]} : vector<2x10x24x128xbf16> to vector<2x8x24x128xbf16>
      %28 = vector.shape_cast %27 : vector<2x8x24x128xbf16> to vector<384x128xbf16>
      %29 = tpu.concatenate %24, %26, %28 in 1 : vector<384x128xbf16>, vector<384x128xbf16>, vector<384x128xbf16> -> vector<384x384xbf16>
      %c0_36 = arith.constant 0 : index
      %c0_37 = arith.constant 0 : index
      %c0_38 = arith.constant 0 : index
      %30 = vector.load %arg1[%c0_36, %c0_37, %c0_38] : memref<3x384x128xbf16, #tpu.memory_space<vmem>>, vector<1x384x128xbf16>
      %31 = vector.shape_cast %30 : vector<1x384x128xbf16> to vector<384x128xbf16>
      %cst_39 = arith.constant dense<0.000000e+00> : vector<384x128xf32>
      %32 = tpu.matmul %29, %31, %cst_39 {dimension_numbers = #tpu.dot_dimension_numbers<[1], [0], [0], [1], [0, 0, 1, 1], [], []>} : vector<384x384xbf16>, vector<384x128xbf16>, vector<384x128xf32> -> vector<384x128xf32>
      %c1_40 = arith.constant 1 : index
      %c0_41 = arith.constant 0 : index
      %c0_42 = arith.constant 0 : index
      %33 = vector.load %arg1[%c1_40, %c0_41, %c0_42] : memref<3x384x128xbf16, #tpu.memory_space<vmem>>, vector<1x384x128xbf16>
      %34 = vector.shape_cast %33 : vector<1x384x128xbf16> to vector<384x128xbf16>
      %cst_43 = arith.constant dense<0.000000e+00> : vector<384x128xf32>
      %35 = tpu.matmul %29, %34, %cst_43 {dimension_numbers = #tpu.dot_dimension_numbers<[1], [0], [0], [1], [0, 0, 1, 1], [], []>} : vector<384x384xbf16>, vector<384x128xbf16>, vector<384x128xf32> -> vector<384x128xf32>
      %c2 = arith.constant 2 : index
      %c0_44 = arith.constant 0 : index
      %c0_45 = arith.constant 0 : index
      %36 = vector.load %arg1[%c2, %c0_44, %c0_45] : memref<3x384x128xbf16, #tpu.memory_space<vmem>>, vector<1x384x128xbf16>
      %37 = vector.shape_cast %36 : vector<1x384x128xbf16> to vector<384x128xbf16>
      %cst_46 = arith.constant dense<0.000000e+00> : vector<384x128xf32>
      %38 = tpu.matmul %29, %37, %cst_46 {dimension_numbers = #tpu.dot_dimension_numbers<[1], [0], [0], [1], [0, 0, 1, 1], [], []>} : vector<384x384xbf16>, vector<384x128xbf16>, vector<384x128xf32> -> vector<384x128xf32>
      %c1_i32_47 = arith.constant 1 : i32
      %39 = tpu.dynamic_rotate %32 by %c1_i32_47 dim 0 : vector<384x128xf32>, i32 -> vector<384x128xf32>
      %40 = arith.addf %39, %35 : vector<384x128xf32>
      %c383_i32 = arith.constant 383 : i32
      %41 = tpu.dynamic_rotate %38 by %c383_i32 dim 0 : vector<384x128xf32>, i32 -> vector<384x128xf32>
      %42 = arith.addf %40, %41 : vector<384x128xf32>
      %c0_48 = arith.constant 0 : index
      %c0_49 = arith.constant 0 : index
      %43 = vector.load %arg3[%c0_48, %c0_49] : memref<1x128xf32, #tpu.memory_space<vmem>>, vector<1x128xf32>
      %44 = vector.broadcast %43 : vector<1x128xf32> to vector<384x128xf32>
      %45 = arith.addf %42, %44 : vector<384x128xf32>
      %cst_50 = arith.constant 0.000000e+00 : f32
      %46 = vector.broadcast %cst_50 : f32 to vector<384x128xf32>
      %47 = arith.maximumf %45, %46 : vector<384x128xf32>
      %48 = vector.shape_cast %47 : vector<384x128xf32> to vector<2x8x24x128xf32>
      %49 = vector.broadcast %16 : vector<1x1x24x1xf32> to vector<2x8x24x128xf32>
      %50 = arith.mulf %48, %49 : vector<2x8x24x128xf32>
      %51 = arith.truncf %50 : vector<2x8x24x128xf32> to vector<2x8x24x128xbf16>
      %c1_i32_51 = arith.constant 1 : i32
      %52 = arith.addi %c1_i32_51, %20 : i32
      %c0_52 = arith.constant 0 : index
      %53 = arith.index_cast %52 : i32 to index
      %c0_53 = arith.constant 0 : index
      %c0_54 = arith.constant 0 : index
      %54 = vector.load %arg8[%c0_52, %53, %c0_53, %c0_54] : memref<2x18x24x128xbf16, #tpu.memory_space<vmem>>, vector<2x8x24x128xbf16>
      tpu.vector_store %arg8[%c0_52, %53, %c0_53, %c0_54], %51 {strides = array<i32>} : memref<2x18x24x128xbf16, #tpu.memory_space<vmem>>, vector<2x8x24x128xbf16>,
      %55 = arith.truncf %50 : vector<2x8x24x128xf32> to vector<2x8x24x128xbf16>
      %c0_55 = arith.constant 0 : index
      %56 = arith.index_cast %20 : i32 to index
      %c0_56 = arith.constant 0 : index
      %c0_57 = arith.constant 0 : index
      %57 = vector.load %arg5[%c0_55, %56, %c0_56, %c0_57] : memref<2x16x24x128xbf16, #tpu.memory_space<vmem>>, vector<2x8x24x128xbf16>
      tpu.vector_store %arg5[%c0_55, %56, %c0_56, %c0_57], %55 {strides = array<i32>} : memref<2x16x24x128xbf16, #tpu.memory_space<vmem>>, vector<2x8x24x128xbf16>,
    }
    %c2_i32_28 = arith.constant 2 : i32
    %c0_i32_29 = arith.constant 0 : i32
    %c2_i32_30 = arith.constant 2 : i32
    %19 = arith.addi %c0_i32_29, %c2_i32_30 : i32
    %c1_i32_31 = arith.constant 1 : i32
    scf.for %arg9 = %c0_i32_29 to %19 step %c1_i32_31  : i32 {
      %c8_i32 = arith.constant 8 : i32
      %20 = arith.muli %arg9, %c8_i32 : i32
      %c0_33 = arith.constant 0 : index
      %21 = arith.index_cast %20 : i32 to index
      %c0_34 = arith.constant 0 : index
      %c0_35 = arith.constant 0 : index
      %22 = vector.load %arg8[%c0_33, %21, %c0_34, %c0_35] : memref<2x18x24x128xbf16, #tpu.memory_space<vmem>>, vector<2x10x24x128xbf16>
      %23 = vector.extract_strided_slice %22 {offsets = [0, 0, 0, 0], sizes = [2, 8, 24, 128], strides = [1, 1, 1, 1]} : vector<2x10x24x128xbf16> to vector<2x8x24x128xbf16>
      %24 = vector.shape_cast %23 : vector<2x8x24x128xbf16> to vector<384x128xbf16>
      %25 = vector.extract_strided_slice %22 {offsets = [0, 1, 0, 0], sizes = [2, 8, 24, 128], strides = [1, 1, 1, 1]} : vector<2x10x24x128xbf16> to vector<2x8x24x128xbf16>
      %26 = vector.shape_cast %25 : vector<2x8x24x128xbf16> to vector<384x128xbf16>
      %27 = vector.extract_strided_slice %22 {offsets = [0, 2, 0, 0], sizes = [2, 8, 24, 128], strides = [1, 1, 1, 1]} : vector<2x10x24x128xbf16> to vector<2x8x24x128xbf16>
      %28 = vector.shape_cast %27 : vector<2x8x24x128xbf16> to vector<384x128xbf16>
      %29 = tpu.concatenate %24, %26, %28 in 1 : vector<384x128xbf16>, vector<384x128xbf16>, vector<384x128xbf16> -> vector<384x384xbf16>
      %c0_36 = arith.constant 0 : index
      %c0_37 = arith.constant 0 : index
      %c0_38 = arith.constant 0 : index
      %30 = vector.load %arg2[%c0_36, %c0_37, %c0_38] : memref<3x384x128xbf16, #tpu.memory_space<vmem>>, vector<1x384x128xbf16>
      %31 = vector.shape_cast %30 : vector<1x384x128xbf16> to vector<384x128xbf16>
      %cst_39 = arith.constant dense<0.000000e+00> : vector<384x128xf32>
      %32 = tpu.matmul %29, %31, %cst_39 {dimension_numbers = #tpu.dot_dimension_numbers<[1], [0], [0], [1], [0, 0, 1, 1], [], []>} : vector<384x384xbf16>, vector<384x128xbf16>, vector<384x128xf32> -> vector<384x128xf32>
      %c1_40 = arith.constant 1 : index
      %c0_41 = arith.constant 0 : index
      %c0_42 = arith.constant 0 : index
      %33 = vector.load %arg2[%c1_40, %c0_41, %c0_42] : memref<3x384x128xbf16, #tpu.memory_space<vmem>>, vector<1x384x128xbf16>
      %34 = vector.shape_cast %33 : vector<1x384x128xbf16> to vector<384x128xbf16>
      %cst_43 = arith.constant dense<0.000000e+00> : vector<384x128xf32>
      %35 = tpu.matmul %29, %34, %cst_43 {dimension_numbers = #tpu.dot_dimension_numbers<[1], [0], [0], [1], [0, 0, 1, 1], [], []>} : vector<384x384xbf16>, vector<384x128xbf16>, vector<384x128xf32> -> vector<384x128xf32>
      %c2 = arith.constant 2 : index
      %c0_44 = arith.constant 0 : index
      %c0_45 = arith.constant 0 : index
      %36 = vector.load %arg2[%c2, %c0_44, %c0_45] : memref<3x384x128xbf16, #tpu.memory_space<vmem>>, vector<1x384x128xbf16>
      %37 = vector.shape_cast %36 : vector<1x384x128xbf16> to vector<384x128xbf16>
      %cst_46 = arith.constant dense<0.000000e+00> : vector<384x128xf32>
      %38 = tpu.matmul %29, %37, %cst_46 {dimension_numbers = #tpu.dot_dimension_numbers<[1], [0], [0], [1], [0, 0, 1, 1], [], []>} : vector<384x384xbf16>, vector<384x128xbf16>, vector<384x128xf32> -> vector<384x128xf32>
      %c1_i32_47 = arith.constant 1 : i32
      %39 = tpu.dynamic_rotate %32 by %c1_i32_47 dim 0 : vector<384x128xf32>, i32 -> vector<384x128xf32>
      %40 = arith.addf %39, %35 : vector<384x128xf32>
      %c383_i32 = arith.constant 383 : i32
      %41 = tpu.dynamic_rotate %38 by %c383_i32 dim 0 : vector<384x128xf32>, i32 -> vector<384x128xf32>
      %42 = arith.addf %40, %41 : vector<384x128xf32>
      %c0_48 = arith.constant 0 : index
      %c0_49 = arith.constant 0 : index
      %43 = vector.load %arg4[%c0_48, %c0_49] : memref<1x128xf32, #tpu.memory_space<vmem>>, vector<1x128xf32>
      %44 = vector.broadcast %43 : vector<1x128xf32> to vector<384x128xf32>
      %45 = arith.addf %42, %44 : vector<384x128xf32>
      %cst_50 = arith.constant 0.000000e+00 : f32
      %46 = vector.broadcast %cst_50 : f32 to vector<384x128xf32>
      %47 = arith.maximumf %45, %46 : vector<384x128xf32>
      %48 = vector.shape_cast %47 : vector<384x128xf32> to vector<2x8x24x128xf32>
      %49 = arith.truncf %48 : vector<2x8x24x128xf32> to vector<2x8x24x128xbf16>
      %c0_51 = arith.constant 0 : index
      %50 = arith.index_cast %20 : i32 to index
      %c0_52 = arith.constant 0 : index
      %c0_53 = arith.constant 0 : index
      %51 = vector.load %arg6[%c0_51, %50, %c0_52, %c0_53] : memref<2x16x24x128xbf16, #tpu.memory_space<vmem>>, vector<2x8x24x128xbf16>
      tpu.vector_store %arg6[%c0_51, %50, %c0_52, %c0_53], %49 {strides = array<i32>} : memref<2x16x24x128xbf16, #tpu.memory_space<vmem>>, vector<2x8x24x128xbf16>,
    }
    %c2_i32_32 = arith.constant 2 : i32
    return
  }
}

</mosaic_0001>

<bundles_post_ra>
// kernel: tpu_custom_call.1
= control target key start
LH: loop header
LB: loop body
LE: loop exit
PB: predicated region body
PF: predicated region fallthrough
CT: control target
= control target key end

     0   :  { %12 = vsyncpa [#allocation5], 0  ;;  %s12382_s0 = inlined_call_operand.hbm [shape: bf16[2,16,16,128], index: 0, kind: input, shape index: {}]   ;;  %s12383_s1 = inlined_call_operand.hbm [shape: bf16[3,384,128], index: 1, kind: input, shape index: {}]   ;;  %s12384_s2 = inlined_call_operand.hbm [shape: bf16[3,384,128], index: 2, kind: input, shape index: {}]   ;;  %s12385_s3 = inlined_call_operand.vmem [shape: f32[1,128], index: 3, kind: input, shape index: {}]   ;;  %s12386_s4 = inlined_call_operand.vmem [shape: f32[1,128], index: 4, kind: input, shape index: {}]   ;;  %s12387_s5 = inlined_call_operand.hbm [shape: bf16[2,16,24,128], index: 5, kind: output, shape index: {0}]   ;;  %s12388_s6 = inlined_call_operand.hbm [shape: bf16[2,16,24,128], index: 6, kind: output, shape index: {1}]  }
   0x1   :  { %13 = vsyncpa [#allocation8], 0 }
   0x2   :  { %14 = vsyncpa [#allocation6], 0 }
   0x3   :  { %15 = vsyncpa [#allocation12], 0  ;;  %s8757_s21 = smov [#allocation7]   ;;  %s8758_s23 = smov [#allocation4]  }
   0x4   :  { %s33_s22 = sshll.u32 %s8757_s21, 4  ;;  %s21_s24 = sshll.u32 %s8758_s23, 4  ;;  %s34_s22 = int_to_ptr.vmem [resolvable:$true] %s33_s22  ;;  %s22_s24 = int_to_ptr.vmem [resolvable:$true] %s21_s24 }
   0x5   :  { %s8633_s25 = scalar_lea.vmem %s34_s22, 9216  ;;  %p8638_p1 = scmp.lt.s32.totalorder %s34_s22, %s34_s22 }
   0x6   :  { %p8634_p0 = scmp.ne.s32.totalorder %s34_s22, %s8633_s25  ;;  %p8639_p2 = scmp.lt.s32.totalorder %s8633_s25, %s8633_s25 }
   0x8   :  { %p8640_p3 = por %p8639_p2, %p8638_p1 }
   0xa   :  { %p8641_p4 = pnand %p8640_p3, %p8634_p0 }
   0xc   :  { %8644 = shalt.err (!%p8641_p4)
}
   0xd   :  { %s8759_s26 = smov 64   ;;  %s8760_s27 = smov 4  }
   0xe   :  { %39 = dma.hbm_to_vmem [thread:$0]  %s12383_s1, 9216, %s34_s22, [#allocation8], %s8759_s26, %s8759_s26, %s8760_s27  }
   0xf   :  { %s8653_s30 = scalar_lea.vmem %s22_s24, 4096  ;;  %p8658_p6 = scmp.lt.s32.totalorder %s22_s24, %s22_s24 }
  0x10   :  { %p8654_p5 = scmp.ne.s32.totalorder %s22_s24, %s8653_s30  ;;  %p8659_p7 = scmp.lt.s32.totalorder %s8653_s30, %s8653_s30 }
  0x12   :  { %p8660_p8 = por %p8659_p7, %p8658_p6 }
  0x14   :  { %p8661_p9 = pnand %p8660_p8, %p8654_p5 }
  0x16   :  { %8664 = shalt.err (!%p8661_p9)
}
  0x17   :  { %27 = dma.hbm_to_vmem [thread:$0]  %s12382_s0, 4096, %s22_s24, [#allocation5], %s8759_s26, %s8759_s26, %s8760_s27  }
  0x18   :  { %s8761_s9 = smov [#allocation9]  }
  0x19   :  { %s45_s10 = sshll.u32 %s8761_s9, 4  ;;  %s46_s10 = int_to_ptr.vmem [resolvable:$true] %s45_s10 }
  0x1a   :  { %s8673_s11 = scalar_lea.vmem %s46_s10, 9216  ;;  %p8678_p11 = scmp.lt.s32.totalorder %s46_s10, %s46_s10 }
  0x1b   :  { %p8674_p10 = scmp.ne.s32.totalorder %s46_s10, %s8673_s11  ;;  %p8679_p12 = scmp.lt.s32.totalorder %s8673_s11, %s8673_s11 }
  0x1d   :  { %p8680_p13 = por %p8679_p12, %p8678_p11 }
  0x1f   :  { %p8681_p0 = pnand %p8680_p13, %p8674_p10 }
  0x21   :  { %8684 = shalt.err (!%p8681_p0)
}
  0x22   :  { %51 = dma.hbm_to_vmem [thread:$0]  %s12384_s2, 9216, %s46_s10, [#allocation8], %s8759_s26, %s8759_s26, %s8760_s27  }
  0x23   :  { %8737 = dma.done.wait [#allocation5], 4096  }
  0x24   :  { %8738 = vsyncadd [#allocation5], 4294963200 }
  0x25   :  { %8739 = dma.done.wait [#allocation8], 18432  }
  0x26   :  { %8740 = vsyncadd [#allocation8], 4294948864  ;;  %v291_v0 = vlaneseq  ;;  %v8762_v1 = vmov 0   ;;  %vm93_vm0 = vcmask 1040384   ;;  %vm94_vm1 = vsmask.f32 256 }
  0x27   :  { %66 = vst [vmem:[#allocation2] sm:$0xf] %v8762_v1  ;;  %67 = vst [vmem:[#allocation2 + $0x4] sm:$0xf] %v8762_v1  ;;  %v8763_v4 = vmov 0.0   ;;  %vm192_vm5 = vcmask 1043456  }
  0x28   :  { %68 = vst [vmem:[#allocation2 + $0x8] sm:$0xf] %v8762_v1  ;;  %69 = vst [vmem:[#allocation2 + $0xd8] sm:$0xf] %v8762_v1  ;;  %v8821_v2 = vshrl.u32 %v291_v0, 7  ;;  %s8968_s0 = smov 0  }
  0x29   :  { %70 = vst [vmem:[#allocation2 + $0xdc] sm:$0xf] %v8762_v1  ;;  %71 = vst [vmem:[#allocation2 + $0xe0] sm:$0xf] %v8762_v1  ;;  %v96_v8 = vld [vmem:[#allocation2 + $0xc] sm:$0x1] }
  0x2a   :  { %73 = vst [vmem:[#allocation2 + $0xcc] sm:$0xf] %v8762_v1  ;;  %74 = vst [vmem:[#allocation2 + $0xd0] sm:$0xf] %v8762_v1  ;;  %v294_v3 = vadd.s32 16, %v8821_v2  ;;  %vm295_vm2 = vcmp.ge.s32.totalorder %v8821_v2, 1 }
  0x2b   :  { %75 = vst [vmem:[#allocation2 + $0xd4] sm:$0xf] %v8762_v1  ;;  %76 = vst [vmem:[#allocation2 + $0x1a4] sm:$0xf] %v8762_v1  ;;  %v8825_v5 = vsel %vm295_vm2, 1.0, %v8763_v4 }
  0x2c   :  { %77 = vst [vmem:[#allocation2 + $0x1a8] sm:$0xf] %v8762_v1  ;;  %78 = vst [vmem:[#allocation2 + $0x1ac] sm:$0xf] %v8762_v1  ;;  %vm300_vm4 = vcmp.le.s32.totalorder %v294_v3, 16 }
  0x2d   :  { %79 = vst [vmem:[#allocation3] sm:$0xf] %v8762_v1  ;;  %80 = vst [vmem:[#allocation3 + $0x4] sm:$0xf] %v8762_v1  ;;  %v8832_v7 = vsel %vm300_vm4, 1.0, %v8763_v4 }
  0x2e   :  { %81 = vst [vmem:[#allocation3 + $0x8] sm:$0xf] %v8762_v1  ;;  %82 = vst [vmem:[#allocation3 + $0xd8] sm:$0xf] %v8762_v1  ;;  %v99_v9 = vld [vmem:[#allocation2 + $0x18] sm:$0x1] }
  0x2f   :  { %83 = vst [vmem:[#allocation3 + $0xdc] sm:$0xf] %v8762_v1  ;;  %84 = vst [vmem:[#allocation3 + $0xe0] sm:$0xf] %v8762_v1  ;;  %v102_v12 = vld [vmem:[#allocation2 + $0x24] sm:$0x1] }
  0x30   :  { %86 = vst [vmem:[#allocation3 + $0xcc] sm:$0xf] %v8762_v1  ;;  %87 = vst [vmem:[#allocation3 + $0xd0] sm:$0xf] %v8762_v1  ;;  %v105_v13 = vld [vmem:[#allocation2 + $0x30] sm:$0x1] }
  0x31   :  { %88 = vst [vmem:[#allocation3 + $0xd4] sm:$0xf] %v8762_v1  ;;  %89 = vst [vmem:[#allocation3 + $0x1a4] sm:$0xf] %v8762_v1  ;;  %v108_v16 = vld [vmem:[#allocation2 + $0x3c] sm:$0x1] }
  0x32   :  { %90 = vst [vmem:[#allocation3 + $0x1a8] sm:$0xf] %v8762_v1  ;;  %91 = vst [vmem:[#allocation3 + $0x1ac] sm:$0xf] %v8762_v1  ;;  %v111_v17 = vld [vmem:[#allocation2 + $0x48] sm:$0x1] }
  0x33   :  { %12432 = vst [vmem:[#allocation17_spill] sm:$0xff] %v8821_v2  ;;  %12433 = vst [vmem:[#allocation18_spill] sm:$0xff] %v8825_v5  ;;  %v114_v20 = vld [vmem:[#allocation2 + $0x54] sm:$0x1]  ;;  %v117_v21 = vld [vmem:[#allocation2 + $0x60] sm:$0x1] }
  0x34   :  { %vm8828_vm3 = vmand %vm93_vm0, %vm94_vm1  ;;  %12436 = vst [vmem:[#allocation19_spill] sm:$0xff] %v8832_v7  ;;  %vm193_vm6 = vsmask.f32 7938  ;;  %v120_v24 = vld [vmem:[#allocation2 + $0x6c] sm:$0x1] }
  0x35   :  { %v97_v10 = vsel %vm8828_vm3, 0, %v96_v8  ;;  %v100_v11 = vsel %vm8828_vm3, 0, %v99_v9  ;;  %v103_v14 = vsel %vm8828_vm3, 0, %v102_v12  ;;  %v106_v15 = vsel %vm8828_vm3, 0, %v105_v13  ;;  %v123_v25 = vld [vmem:[#allocation2 + $0x78] sm:$0x1]  ;;  %vm8892_vm7 = vmand %vm192_vm5, %vm193_vm6 }
  0x36   :  { %98 = vst [vmem:[#allocation2 + $0xc] sm:$0x1] %v97_v10  ;;  %101 = vst [vmem:[#allocation2 + $0x18] sm:$0x1] %v100_v11  ;;  %v109_v18 = vsel %vm8828_vm3, 0, %v108_v16  ;;  %v112_v19 = vsel %vm8828_vm3, 0, %v111_v17 }
  0x37   :  { %104 = vst [vmem:[#allocation2 + $0x24] sm:$0x1] %v103_v14  ;;  %107 = vst [vmem:[#allocation2 + $0x30] sm:$0x1] %v106_v15  ;;  %v115_v22 = vsel %vm8828_vm3, 0, %v114_v20  ;;  %v118_v23 = vsel %vm8828_vm3, 0, %v117_v21 }
  0x38   :  { %110 = vst [vmem:[#allocation2 + $0x3c] sm:$0x1] %v109_v18  ;;  %113 = vst [vmem:[#allocation2 + $0x48] sm:$0x1] %v112_v19  ;;  %v121_v26 = vsel %vm8828_vm3, 0, %v120_v24  ;;  %v124_v27 = vsel %vm8828_vm3, 0, %v123_v25 }
  0x39   :  { %116 = vst [vmem:[#allocation2 + $0x54] sm:$0x1] %v115_v22  ;;  %119 = vst [vmem:[#allocation2 + $0x60] sm:$0x1] %v118_v23  ;;  %v126_v28 = vld [vmem:[#allocation2 + $0x84] sm:$0x1] }
  0x3a   :  { %v129_v29 = vld [vmem:[#allocation2 + $0x90] sm:$0x1]  ;;  %122 = vst [vmem:[#allocation2 + $0x6c] sm:$0x1] %v121_v26  ;;  %125 = vst [vmem:[#allocation2 + $0x78] sm:$0x1] %v124_v27 }
  0x3b   :  { %v127_v30 = vsel %vm8828_vm3, 0, %v126_v28  ;;  %v130_v31 = vsel %vm8828_vm3, 0, %v129_v29  ;;  %v132_v32 = vld [vmem:[#allocation2 + $0x9c] sm:$0x1]  ;;  %v135_v33 = vld [vmem:[#allocation2 + $0xa8] sm:$0x1] }
  0x3c   :  { %128 = vst [vmem:[#allocation2 + $0x84] sm:$0x1] %v127_v30  ;;  %131 = vst [vmem:[#allocation2 + $0x90] sm:$0x1] %v130_v31  ;;  %v133_v34 = vsel %vm8828_vm3, 0, %v132_v32  ;;  %v136_v35 = vsel %vm8828_vm3, 0, %v135_v33 }
  0x3d   :  { %v138_v36 = vld [vmem:[#allocation2 + $0xb4] sm:$0x1]  ;;  %v141_v37 = vld [vmem:[#allocation2 + $0xc0] sm:$0x1]  ;;  %134 = vst [vmem:[#allocation2 + $0x9c] sm:$0x1] %v133_v34 }
  0x3e   :  { %137 = vst [vmem:[#allocation2 + $0xa8] sm:$0x1] %v136_v35  ;;  %v139_v38 = vsel %vm8828_vm3, 0, %v138_v36  ;;  %v142_v39 = vsel %vm8828_vm3, 0, %v141_v37  ;;  %v144_v40 = vld [vmem:[#allocation2 + $0xe4] sm:$0x1] }
  0x3f   :  { %v147_v41 = vld [vmem:[#allocation2 + $0xf0] sm:$0x1]  ;;  %140 = vst [vmem:[#allocation2 + $0xb4] sm:$0x1] %v139_v38  ;;  %143 = vst [vmem:[#allocation2 + $0xc0] sm:$0x1] %v142_v39 }
  0x40   :  { %v145_v42 = vsel %vm8828_vm3, 0, %v144_v40  ;;  %v148_v43 = vsel %vm8828_vm3, 0, %v147_v41  ;;  %v150_v44 = vld [vmem:[#allocation2 + $0xfc] sm:$0x1]  ;;  %v153_v45 = vld [vmem:[#allocation2 + $0x108] sm:$0x1] }
  0x41   :  { %146 = vst [vmem:[#allocation2 + $0xe4] sm:$0x1] %v145_v42  ;;  %149 = vst [vmem:[#allocation2 + $0xf0] sm:$0x1] %v148_v43  ;;  %v151_v46 = vsel %vm8828_vm3, 0, %v150_v44  ;;  %v154_v47 = vsel %vm8828_vm3, 0, %v153_v45 }
  0x42   :  { %v156_v48 = vld [vmem:[#allocation2 + $0x114] sm:$0x1]  ;;  %v159_v49 = vld [vmem:[#allocation2 + $0x120] sm:$0x1]  ;;  %152 = vst [vmem:[#allocation2 + $0xfc] sm:$0x1] %v151_v46 }
  0x43   :  { %155 = vst [vmem:[#allocation2 + $0x108] sm:$0x1] %v154_v47  ;;  %v157_v50 = vsel %vm8828_vm3, 0, %v156_v48  ;;  %v160_v51 = vsel %vm8828_vm3, 0, %v159_v49  ;;  %v162_v52 = vld [vmem:[#allocation2 + $0x12c] sm:$0x1] }
  0x44   :  { %v165_v53 = vld [vmem:[#allocation2 + $0x138] sm:$0x1]  ;;  %158 = vst [vmem:[#allocation2 + $0x114] sm:$0x1] %v157_v50  ;;  %161 = vst [vmem:[#allocation2 + $0x120] sm:$0x1] %v160_v51 }
  0x45   :  { %v163_v54 = vsel %vm8828_vm3, 0, %v162_v52  ;;  %v166_v55 = vsel %vm8828_vm3, 0, %v165_v53  ;;  %v168_v56 = vld [vmem:[#allocation2 + $0x144] sm:$0x1]  ;;  %v171_v57 = vld [vmem:[#allocation2 + $0x150] sm:$0x1] }
  0x46   :  { %164 = vst [vmem:[#allocation2 + $0x12c] sm:$0x1] %v163_v54  ;;  %167 = vst [vmem:[#allocation2 + $0x138] sm:$0x1] %v166_v55  ;;  %v169_v58 = vsel %vm8828_vm3, 0, %v168_v56  ;;  %v172_v59 = vsel %vm8828_vm3, 0, %v171_v57 }
  0x47   :  { %v174_v60 = vld [vmem:[#allocation2 + $0x15c] sm:$0x1]  ;;  %v177_v61 = vld [vmem:[#allocation2 + $0x168] sm:$0x1]  ;;  %170 = vst [vmem:[#allocation2 + $0x144] sm:$0x1] %v169_v58 }
  0x48   :  { %173 = vst [vmem:[#allocation2 + $0x150] sm:$0x1] %v172_v59  ;;  %v175_v62 = vsel %vm8828_vm3, 0, %v174_v60  ;;  %v178_v63 = vsel %vm8828_vm3, 0, %v177_v61  ;;  %v180_v0 = vld [vmem:[#allocation2 + $0x174] sm:$0x1] }
  0x49   :  { %v183_v1 = vld [vmem:[#allocation2 + $0x180] sm:$0x1]  ;;  %176 = vst [vmem:[#allocation2 + $0x15c] sm:$0x1] %v175_v62  ;;  %179 = vst [vmem:[#allocation2 + $0x168] sm:$0x1] %v178_v63 }
  0x4a   :  { %v181_v4 = vsel %vm8828_vm3, 0, %v180_v0  ;;  %v184_v8 = vsel %vm8828_vm3, 0, %v183_v1  ;;  %v186_v9 = vld [vmem:[#allocation2 + $0x18c] sm:$0x1]  ;;  %v189_v10 = vld [vmem:[#allocation2 + $0x198] sm:$0x1] }
  0x4b   :  { %182 = vst [vmem:[#allocation2 + $0x174] sm:$0x1] %v181_v4  ;;  %185 = vst [vmem:[#allocation2 + $0x180] sm:$0x1] %v184_v8  ;;  %v187_v11 = vsel %vm8828_vm3, 0, %v186_v9  ;;  %v190_v12 = vsel %vm8828_vm3, 0, %v189_v10 }
  0x4c   :  { %v195_v13 = vld [vmem:[#allocation2 + $0x14] sm:$0xf]  ;;  %v198_v14 = vld [vmem:[#allocation2 + $0x20] sm:$0xf]  ;;  %188 = vst [vmem:[#allocation2 + $0x18c] sm:$0x1] %v187_v11 }
  0x4d   :  { %191 = vst [vmem:[#allocation2 + $0x198] sm:$0x1] %v190_v12  ;;  %v196_v15 = vsel %vm8892_vm7, 0, %v195_v13  ;;  %v199_v16 = vsel %vm8892_vm7, 0, %v198_v14  ;;  %v201_v17 = vld [vmem:[#allocation2 + $0x2c] sm:$0xf] }
  0x4e   :  { %v204_v18 = vld [vmem:[#allocation2 + $0x38] sm:$0xf]  ;;  %197 = vst [vmem:[#allocation2 + $0x14] sm:$0xf] %v196_v15  ;;  %200 = vst [vmem:[#allocation2 + $0x20] sm:$0xf] %v199_v16 }
  0x4f   :  { %v202_v19 = vsel %vm8892_vm7, 0, %v201_v17  ;;  %v205_v20 = vsel %vm8892_vm7, 0, %v204_v18  ;;  %v207_v21 = vld [vmem:[#allocation2 + $0x44] sm:$0xf]  ;;  %v210_v22 = vld [vmem:[#allocation2 + $0x50] sm:$0xf] }
  0x50   :  { %203 = vst [vmem:[#allocation2 + $0x2c] sm:$0xf] %v202_v19  ;;  %206 = vst [vmem:[#allocation2 + $0x38] sm:$0xf] %v205_v20  ;;  %v208_v23 = vsel %vm8892_vm7, 0, %v207_v21  ;;  %v211_v24 = vsel %vm8892_vm7, 0, %v210_v22 }
  0x51   :  { %v213_v25 = vld [vmem:[#allocation2 + $0x5c] sm:$0xf]  ;;  %v216_v26 = vld [vmem:[#allocation2 + $0x68] sm:$0xf]  ;;  %209 = vst [vmem:[#allocation2 + $0x44] sm:$0xf] %v208_v23 }
  0x52   :  { %212 = vst [vmem:[#allocation2 + $0x50] sm:$0xf] %v211_v24  ;;  %v214_v27 = vsel %vm8892_vm7, 0, %v213_v25  ;;  %v217_v28 = vsel %vm8892_vm7, 0, %v216_v26  ;;  %v219_v29 = vld [vmem:[#allocation2 + $0x74] sm:$0xf] }
  0x53   :  { %v222_v30 = vld [vmem:[#allocation2 + $0x80] sm:$0xf]  ;;  %215 = vst [vmem:[#allocation2 + $0x5c] sm:$0xf] %v214_v27  ;;  %218 = vst [vmem:[#allocation2 + $0x68] sm:$0xf] %v217_v28 }
  0x54   :  { %v220_v31 = vsel %vm8892_vm7, 0, %v219_v29  ;;  %v223_v32 = vsel %vm8892_vm7, 0, %v222_v30  ;;  %v225_v33 = vld [vmem:[#allocation2 + $0x8c] sm:$0xf]  ;;  %v228_v34 = vld [vmem:[#allocation2 + $0x98] sm:$0xf] }
  0x55   :  { %221 = vst [vmem:[#allocation2 + $0x74] sm:$0xf] %v220_v31  ;;  %224 = vst [vmem:[#allocation2 + $0x80] sm:$0xf] %v223_v32  ;;  %v226_v35 = vsel %vm8892_vm7, 0, %v225_v33  ;;  %v229_v36 = vsel %vm8892_vm7, 0, %v228_v34 }
  0x56   :  { %v231_v37 = vld [vmem:[#allocation2 + $0xa4] sm:$0xf]  ;;  %v234_v38 = vld [vmem:[#allocation2 + $0xb0] sm:$0xf]  ;;  %227 = vst [vmem:[#allocation2 + $0x8c] sm:$0xf] %v226_v35 }
  0x57   :  { %230 = vst [vmem:[#allocation2 + $0x98] sm:$0xf] %v229_v36  ;;  %v232_v39 = vsel %vm8892_vm7, 0, %v231_v37  ;;  %v235_v40 = vsel %vm8892_vm7, 0, %v234_v38  ;;  %v237_v41 = vld [vmem:[#allocation2 + $0xbc] sm:$0xf] }
  0x58   :  { %v240_v42 = vld [vmem:[#allocation2 + $0xc8] sm:$0xf]  ;;  %233 = vst [vmem:[#allocation2 + $0xa4] sm:$0xf] %v232_v39  ;;  %236 = vst [vmem:[#allocation2 + $0xb0] sm:$0xf] %v235_v40 }
  0x59   :  { %v238_v43 = vsel %vm8892_vm7, 0, %v237_v41  ;;  %v241_v44 = vsel %vm8892_vm7, 0, %v240_v42  ;;  %v243_v45 = vld [vmem:[#allocation2 + $0xec] sm:$0xf]  ;;  %v246_v46 = vld [vmem:[#allocation2 + $0xf8] sm:$0xf] }
  0x5a   :  { %239 = vst [vmem:[#allocation2 + $0xbc] sm:$0xf] %v238_v43  ;;  %242 = vst [vmem:[#allocation2 + $0xc8] sm:$0xf] %v241_v44  ;;  %v244_v47 = vsel %vm8892_vm7, 0, %v243_v45  ;;  %v247_v48 = vsel %vm8892_vm7, 0, %v246_v46 }
  0x5b   :  { %v249_v49 = vld [vmem:[#allocation2 + $0x104] sm:$0xf]  ;;  %v252_v50 = vld [vmem:[#allocation2 + $0x110] sm:$0xf]  ;;  %245 = vst [vmem:[#allocation2 + $0xec] sm:$0xf] %v244_v47 }
  0x5c   :  { %248 = vst [vmem:[#allocation2 + $0xf8] sm:$0xf] %v247_v48  ;;  %v250_v51 = vsel %vm8892_vm7, 0, %v249_v49  ;;  %v253_v52 = vsel %vm8892_vm7, 0, %v252_v50  ;;  %v255_v53 = vld [vmem:[#allocation2 + $0x11c] sm:$0xf] }
  0x5d   :  { %v258_v54 = vld [vmem:[#allocation2 + $0x128] sm:$0xf]  ;;  %251 = vst [vmem:[#allocation2 + $0x104] sm:$0xf] %v250_v51  ;;  %254 = vst [vmem:[#allocation2 + $0x110] sm:$0xf] %v253_v52 }
  0x5e   :  { %v256_v55 = vsel %vm8892_vm7, 0, %v255_v53  ;;  %v259_v56 = vsel %vm8892_vm7, 0, %v258_v54  ;;  %v261_v57 = vld [vmem:[#allocation2 + $0x134] sm:$0xf]  ;;  %v264_v58 = vld [vmem:[#allocation2 + $0x140] sm:$0xf] }
  0x5f   :  { %257 = vst [vmem:[#allocation2 + $0x11c] sm:$0xf] %v256_v55  ;;  %260 = vst [vmem:[#allocation2 + $0x128] sm:$0xf] %v259_v56  ;;  %v262_v59 = vsel %vm8892_vm7, 0, %v261_v57  ;;  %v265_v60 = vsel %vm8892_vm7, 0, %v264_v58 }
  0x60   :  { %v267_v61 = vld [vmem:[#allocation2 + $0x14c] sm:$0xf]  ;;  %v270_v62 = vld [vmem:[#allocation2 + $0x158] sm:$0xf]  ;;  %263 = vst [vmem:[#allocation2 + $0x134] sm:$0xf] %v262_v59 }
  0x61   :  { %266 = vst [vmem:[#allocation2 + $0x140] sm:$0xf] %v265_v60  ;;  %v268_v63 = vsel %vm8892_vm7, 0, %v267_v61  ;;  %v271_v0 = vsel %vm8892_vm7, 0, %v270_v62  ;;  %v273_v1 = vld [vmem:[#allocation2 + $0x164] sm:$0xf] }
  0x62   :  { %v276_v4 = vld [vmem:[#allocation2 + $0x170] sm:$0xf]  ;;  %269 = vst [vmem:[#allocation2 + $0x14c] sm:$0xf] %v268_v63  ;;  %272 = vst [vmem:[#allocation2 + $0x158] sm:$0xf] %v271_v0 }
  0x63   :  { %v274_v8 = vsel %vm8892_vm7, 0, %v273_v1  ;;  %v277_v9 = vsel %vm8892_vm7, 0, %v276_v4  ;;  %v279_v10 = vld [vmem:[#allocation2 + $0x17c] sm:$0xf]  ;;  %v282_v11 = vld [vmem:[#allocation2 + $0x188] sm:$0xf] }
  0x64   :  { %275 = vst [vmem:[#allocation2 + $0x164] sm:$0xf] %v274_v8  ;;  %278 = vst [vmem:[#allocation2 + $0x170] sm:$0xf] %v277_v9  ;;  %v280_v12 = vsel %vm8892_vm7, 0, %v279_v10  ;;  %v283_v13 = vsel %vm8892_vm7, 0, %v282_v11 }
  0x65   :  { %v285_v14 = vld [vmem:[#allocation2 + $0x194] sm:$0xf]  ;;  %v288_v15 = vld [vmem:[#allocation2 + $0x1a0] sm:$0xf]  ;;  %281 = vst [vmem:[#allocation2 + $0x17c] sm:$0xf] %v280_v12 }
  0x66   :  { %284 = vst [vmem:[#allocation2 + $0x188] sm:$0xf] %v283_v13  ;;  %v286_v16 = vsel %vm8892_vm7, 0, %v285_v14  ;;  %v289_v17 = vsel %vm8892_vm7, 0, %v288_v15 }
  0x67   :  { %287 = vst [vmem:[#allocation2 + $0x194] sm:$0xf] %v286_v16  ;;  %290 = vst [vmem:[#allocation2 + $0x1a0] sm:$0xf] %v289_v17 }
  0x68 LB: > { %s7207_s2 = sshll.u32 %s8747_s0, 6  ;;  %s6717_s13 = smul.u32 96, %s8747_s0  ;;  %vm353_vm8 = vsmask.f32 4368  ;;  %s8747_s0 = sphi %s8968_s0, %s315_s0  }
  0x69   : > { %s8975_s14 = scalar_lea.vmem [#allocation4], %s7207_s2  ;;  %vm8987_vm9 = vmor %vm94_vm1, %vm353_vm8  ;;  %s315_s0 = sadd.s32 1, %s8747_s0  }
  0x6a   : > { %v320_v18 = vld [vmem:[%s8975_s14] sm:$0xf]  ;;  %v321_v19 = vld [vmem:[%s8975_s14 + $0x4] sm:$0xf]  ;;  %s8979_s15 = scalar_lea.vmem [#allocation2], %s6717_s13  ;;  %p312_p1 = scmp.ge.s32.totalorder %s315_s0, 2  }
  0x6b   : > { %v356_v20 = vshrl.u32 %v320_v18, 16  ;;  %v359_v21 = vshll.u32 %v320_v18, 16  ;;  %v364_v22 = vshrl.u32 %v321_v19, 16  ;;  %v367_v23 = vshll.u32 %v321_v19, 16  ;;  %v322_v26 = vld [vmem:[%s8975_s14 + $0x8] sm:$0xf] }
  0x6c   : > { %v373_v29 = vshrl.u32 %v322_v26, 16  ;;  %v323_v30 = vld [vmem:[%s8975_s14 + $0xc] sm:$0xf]  ;;  %v376_v32 = vshll.u32 %v322_v26, 16  ;;  %v324_v35 = vld [vmem:[%s8975_s14 + $0x10] sm:$0xf] }
  0x6d   : > { %v358_v27 = vrot.slane %v356_v20, 7  ;;  %v366_v28 = vrot.slane %v364_v22, 7  ;;  %v381_v33 = vshrl.u32 %v323_v30, 16  ;;  %v384_v34 = vshll.u32 %v323_v30, 16  ;;  %v325_v40 = vld [vmem:[%s8975_s14 + $0x14] sm:$0xf] }
  0x6e   : > { %v6718_v24 = vld [vmem:[%s8979_s15 + $0xc] sm:$0xf]  ;;  %v6721_v25 = vld [vmem:[%s8979_s15 + $0x14] sm:$0x1]  ;;  %v375_v41 = vrot.slane %v373_v29, 7  ;;  %v390_v44 = vshrl.u32 %v324_v35, 16 }
  0x6f   : > { %v361_v36 = vor.u32 %v359_v21, %v358_v27  ;;  %v362_v37 = vrot.slane %v358_v27, 4  ;;  %v369_v38 = vor.u32 %v367_v23, %v366_v28  ;;  %v371_v39 = vrot.slane %v366_v28, 4  ;;  %v6723_v42 = vld [vmem:[%s8979_s15 + $0x18] sm:$0xf]  ;;  %v6726_v49 = vld [vmem:[%s8979_s15 + $0x20] sm:$0x1] }
  0x70   : > { %v383_v43 = vrot.slane %v381_v33, 7  ;;  %v393_v45 = vshll.u32 %v324_v35, 16  ;;  %v398_v50 = vshrl.u32 %v325_v40, 16  ;;  %v326_v51 = vld [vmem:[%s8975_s14 + $0x18] sm:$0xf]  ;;  %v378_v52 = vor.u32 %v376_v32, %v375_v41  ;;  %s9196_s16 = smov (%p312_p1), 0  }
  0x71   : > { %v679_v46 = vsel %vm8892_vm7, %v361_v36, %v6718_v24  ;;  %v370_v47 = vsel %vm8987_vm9, %v362_v37, %v369_v38  ;;  %v683_v48 = vsel %vm8828_vm3, %v371_v39, %v6721_v25  ;;  %v379_v53 = vrot.slane %v375_v41, 4  ;;  %v327_v56 = vld [vmem:[%s8975_s14 + $0x1c] sm:$0xf]  ;;  %v328_v61 = vld [vmem:[%s8975_s14 + $0x20] sm:$0xf] }
  0x72   : > { %6719 = vst [vmem:[%s8979_s15 + $0xc] sm:$0xf] %v679_v46  ;;  %6720 = vst [vmem:[%s8979_s15 + $0x10] sm:$0xf] %v370_v47  ;;  %v386_v54 = vor.u32 %v384_v34, %v383_v43  ;;  %v388_v55 = vrot.slane %v383_v43, 4  ;;  %v392_v57 = vrot.slane %v390_v44, 7  ;;  %v686_v62 = vsel %vm8892_vm7, %v378_v52, %v6723_v42 }
  0x73   : > { %6722 = vst [vmem:[%s8979_s15 + $0x14] sm:$0x1] %v683_v48  ;;  %v400_v58 = vrot.slane %v398_v50, 7  ;;  %v401_v59 = vshll.u32 %v325_v40, 16  ;;  %v407_v60 = vshrl.u32 %v326_v51, 16  ;;  %v410_v8 = vshll.u32 %v326_v51, 16 }
  0x74   : > { %v387_v63 = vsel %vm8987_vm9, %v379_v53, %v386_v54  ;;  %v690_v0 = vsel %vm8828_vm3, %v388_v55, %v6726_v49  ;;  %v6728_v1 = vld [vmem:[%s8979_s15 + $0x24] sm:$0xf]  ;;  %v6731_v4 = vld [vmem:[%s8979_s15 + $0x2c] sm:$0x1]  ;;  %6724 = vst [vmem:[%s8979_s15 + $0x18] sm:$0xf] %v686_v62  ;;  %v395_v9 = vor.u32 %v393_v45, %v392_v57 }
  0x75   : > { %6725 = vst [vmem:[%s8979_s15 + $0x1c] sm:$0xf] %v387_v63  ;;  %6727 = vst [vmem:[%s8979_s15 + $0x20] sm:$0x1] %v690_v0  ;;  %v396_v10 = vrot.slane %v392_v57, 4  ;;  %v403_v11 = vor.u32 %v401_v59, %v400_v58  ;;  %v405_v12 = vrot.slane %v400_v58, 4 }
  0x76   : > { %v329_v13 = vld [vmem:[%s8975_s14 + $0x24] sm:$0xf]  ;;  %v409_v14 = vrot.slane %v407_v60, 7  ;;  %v415_v15 = vshrl.u32 %v327_v56, 16  ;;  %v418_v16 = vshll.u32 %v327_v56, 16  ;;  %v424_v17 = vshrl.u32 %v328_v61, 16 }
  0x77   : > { %v330_v18 = vld [vmem:[%s8975_s14 + $0x28] sm:$0xf]  ;;  %v693_v19 = vsel %vm8892_vm7, %v395_v9, %v6728_v1  ;;  %v404_v20 = vsel %vm8987_vm9, %v396_v10, %v403_v11  ;;  %v697_v21 = vsel %vm8828_vm3, %v405_v12, %v6731_v4  ;;  %v6733_v22 = vld [vmem:[%s8979_s15 + $0x30] sm:$0xf]  ;;  %v6736_v23 = vld [vmem:[%s8979_s15 + $0x38] sm:$0x1] }
  0x78   : > { %v427_v24 = vshll.u32 %v328_v61, 16  ;;  %6729 = vst [vmem:[%s8979_s15 + $0x24] sm:$0xf] %v693_v19  ;;  %6730 = vst [vmem:[%s8979_s15 + $0x28] sm:$0xf] %v404_v20  ;;  %v412_v25 = vor.u32 %v410_v8, %v409_v14  ;;  %v413_v26 = vrot.slane %v409_v14, 4 }
  0x79   : > { %6732 = vst [vmem:[%s8979_s15 + $0x2c] sm:$0x1] %v697_v21  ;;  %v417_v27 = vrot.slane %v415_v15, 7  ;;  %v426_v28 = vrot.slane %v424_v17, 7  ;;  %v331_v29 = vld [vmem:[%s8975_s14 + $0x2c] sm:$0xf] }
  0x7a   : > { %v6738_v30 = vld [vmem:[%s8979_s15 + $0x3c] sm:$0xf]  ;;  %v432_v32 = vshrl.u32 %v329_v13, 16  ;;  %v435_v33 = vshll.u32 %v329_v13, 16  ;;  %v441_v34 = vshrl.u32 %v330_v18, 16  ;;  %v444_v35 = vshll.u32 %v330_v18, 16 }
  0x7b   : > { %v700_v36 = vsel %vm8892_vm7, %v412_v25, %v6733_v22  ;;  %v420_v37 = vor.u32 %v418_v16, %v417_v27  ;;  %v422_v38 = vrot.slane %v417_v27, 4  ;;  %v429_v39 = vor.u32 %v427_v24, %v426_v28  ;;  %v332_v40 = vld [vmem:[%s8975_s14 + $0x30] sm:$0xf]  ;;  %v333_v45 = vld [vmem:[%s8975_s14 + $0x34] sm:$0xf] }
  0x7c   : > { %6734 = vst [vmem:[%s8979_s15 + $0x30] sm:$0xf] %v700_v36  ;;  %v430_v41 = vrot.slane %v426_v28, 4  ;;  %v434_v42 = vrot.slane %v432_v32, 7  ;;  %v443_v43 = vrot.slane %v441_v34, 7  ;;  %v449_v44 = vshrl.u32 %v331_v29, 16 }
  0x7d   : > { %v421_v46 = vsel %vm8987_vm9, %v413_v26, %v420_v37  ;;  %v704_v47 = vsel %vm8828_vm3, %v422_v38, %v6736_v23  ;;  %v707_v48 = vsel %vm8892_vm7, %v429_v39, %v6738_v30  ;;  %v6741_v49 = vld [vmem:[%s8979_s15 + $0x44] sm:$0x1]  ;;  %v6743_v50 = vld [vmem:[%s8979_s15 + $0x48] sm:$0xf]  ;;  %v452_v51 = vshll.u32 %v331_v29, 16 }
  0x7e   : > { %6735 = vst [vmem:[%s8979_s15 + $0x34] sm:$0xf] %v421_v46  ;;  %6737 = vst [vmem:[%s8979_s15 + $0x38] sm:$0x1] %v704_v47  ;;  %v437_v52 = vor.u32 %v435_v33, %v434_v42  ;;  %v439_v53 = vrot.slane %v434_v42, 4  ;;  %v446_v54 = vor.u32 %v444_v35, %v443_v43  ;;  %v447_v55 = vrot.slane %v443_v43, 4 }
  0x7f   : > { %6739 = vst [vmem:[%s8979_s15 + $0x3c] sm:$0xf] %v707_v48  ;;  %v334_v56 = vld [vmem:[%s8975_s14 + $0x38] sm:$0xf]  ;;  %v451_v57 = vrot.slane %v449_v44, 7  ;;  %v458_v58 = vshrl.u32 %v332_v40, 16 }
  0x80   : > { %v461_v59 = vshll.u32 %v332_v40, 16  ;;  %v466_v60 = vshrl.u32 %v333_v45, 16  ;;  %v335_v61 = vld [vmem:[%s8975_s14 + $0x3c] sm:$0xf]  ;;  %v438_v62 = vsel %vm8987_vm9, %v430_v41, %v437_v52  ;;  %v711_v63 = vsel %vm8828_vm3, %v439_v53, %v6741_v49  ;;  %v6746_v1 = vld [vmem:[%s8979_s15 + $0x50] sm:$0x1] }
  0x81   : > { %v714_v0 = vsel %vm8892_vm7, %v446_v54, %v6743_v50  ;;  %v6748_v4 = vld [vmem:[%s8979_s15 + $0x54] sm:$0xf]  ;;  %v469_v8 = vshll.u32 %v333_v45, 16  ;;  %6740 = vst [vmem:[%s8979_s15 + $0x40] sm:$0xf] %v438_v62  ;;  %v454_v9 = vor.u32 %v452_v51, %v451_v57  ;;  %v456_v10 = vrot.slane %v451_v57, 4 }
  0x82   : > { %6742 = vst [vmem:[%s8979_s15 + $0x44] sm:$0x1] %v711_v63  ;;  %6744 = vst [vmem:[%s8979_s15 + $0x48] sm:$0xf] %v714_v0  ;;  %v460_v11 = vrot.slane %v458_v58, 7  ;;  %v468_v12 = vrot.slane %v466_v60, 7 }
  0x83   : > { %v336_v13 = vld [vmem:[%s8975_s14 + $0x80] sm:$0xf]  ;;  %v475_v14 = vshrl.u32 %v334_v56, 16  ;;  %v478_v15 = vshll.u32 %v334_v56, 16  ;;  %v483_v16 = vshrl.u32 %v335_v61, 16  ;;  %v486_v17 = vshll.u32 %v335_v61, 16 }
  0x84   : > { %v337_v18 = vld [vmem:[%s8975_s14 + $0x84] sm:$0xf]  ;;  %v455_v19 = vsel %vm8987_vm9, %v447_v55, %v454_v9  ;;  %v718_v20 = vsel %vm8828_vm3, %v456_v10, %v6746_v1  ;;  %v463_v21 = vor.u32 %v461_v59, %v460_v11  ;;  %v464_v22 = vrot.slane %v460_v11, 4  ;;  %v6751_v23 = vld [vmem:[%s8979_s15 + $0x5c] sm:$0x1] }
  0x85   : > { %6745 = vst [vmem:[%s8979_s15 + $0x4c] sm:$0xf] %v455_v19  ;;  %6747 = vst [vmem:[%s8979_s15 + $0x50] sm:$0x1] %v718_v20  ;;  %v471_v24 = vor.u32 %v469_v8, %v468_v12  ;;  %v473_v25 = vrot.slane %v468_v12, 4  ;;  %v477_v26 = vrot.slane %v475_v14, 7 }
  0x86   : > { %v6753_v27 = vld [vmem:[%s8979_s15 + $0x60] sm:$0xf]  ;;  %v485_v28 = vrot.slane %v483_v16, 7  ;;  %v721_v29 = vsel %vm8892_vm7, %v463_v21, %v6748_v4  ;;  %v492_v30 = vshrl.u32 %v336_v13, 16  ;;  %v495_v32 = vshll.u32 %v336_v13, 16 }
  0x87   : > { %v500_v33 = vshrl.u32 %v337_v18, 16  ;;  %v338_v34 = vld [vmem:[%s8975_s14 + $0x88] sm:$0xf]  ;;  %6749 = vst [vmem:[%s8979_s15 + $0x54] sm:$0xf] %v721_v29  ;;  %v472_v35 = vsel %vm8987_vm9, %v464_v22, %v471_v24  ;;  %v725_v36 = vsel %vm8828_vm3, %v473_v25, %v6751_v23  ;;  %v480_v37 = vor.u32 %v478_v15, %v477_v26 }
  0x88   : > { %v481_v38 = vrot.slane %v477_v26, 4  ;;  %v6756_v39 = vld [vmem:[%s8979_s15 + $0x68] sm:$0x1]  ;;  %v6758_v40 = vld [vmem:[%s8979_s15 + $0xe4] sm:$0xf]  ;;  %v488_v41 = vor.u32 %v486_v17, %v485_v28  ;;  %v490_v42 = vrot.slane %v485_v28, 4 }
  0x89   : > { %6750 = vst [vmem:[%s8979_s15 + $0x58] sm:$0xf] %v472_v35  ;;  %6752 = vst [vmem:[%s8979_s15 + $0x5c] sm:$0x1] %v725_v36  ;;  %v494_v43 = vrot.slane %v492_v30, 7  ;;  %v502_v44 = vrot.slane %v500_v33, 7  ;;  %v728_v47 = vsel %vm8892_vm7, %v480_v37, %v6753_v27 }
  0x8a   : > { %v6761_v45 = vld [vmem:[%s8979_s15 + $0xec] sm:$0x1]  ;;  %v503_v48 = vshll.u32 %v337_v18, 16  ;;  %v509_v49 = vshrl.u32 %v338_v34, 16  ;;  %v512_v50 = vshll.u32 %v338_v34, 16  ;;  %v489_v52 = vsel %vm8987_vm9, %v481_v38, %v488_v41 }
  0x8b   : > { %v339_v46 = vld [vmem:[%s8975_s14 + $0x8c] sm:$0xf]  ;;  %v340_v51 = vld [vmem:[%s8975_s14 + $0x90] sm:$0xf]  ;;  %6754 = vst [vmem:[%s8979_s15 + $0x60] sm:$0xf] %v728_v47  ;;  %v732_v53 = vsel %vm8828_vm3, %v490_v42, %v6756_v39  ;;  %v497_v54 = vor.u32 %v495_v32, %v494_v43 }
  0x8c   : > { %v498_v55 = vrot.slane %v494_v43, 4  ;;  %v6763_v56 = vld [vmem:[%s8979_s15 + $0xf0] sm:$0xf]  ;;  %v341_v57 = vld [vmem:[%s8975_s14 + $0x94] sm:$0xf]  ;;  %v505_v58 = vor.u32 %v503_v48, %v502_v44  ;;  %v507_v59 = vrot.slane %v502_v44, 4 }
  0x8d   : > { %6755 = vst [vmem:[%s8979_s15 + $0x64] sm:$0xf] %v489_v52  ;;  %6757 = vst [vmem:[%s8979_s15 + $0x68] sm:$0x1] %v732_v53  ;;  %v511_v60 = vrot.slane %v509_v49, 7  ;;  %v517_v61 = vshrl.u32 %v339_v46, 16  ;;  %v735_v63 = vsel %vm8892_vm7, %v497_v54, %v6758_v40 }
  0x8e   : > { %v342_v62 = vld [vmem:[%s8975_s14 + $0x98] sm:$0xf]  ;;  %v520_v0 = vshll.u32 %v339_v46, 16  ;;  %v526_v1 = vshrl.u32 %v340_v51, 16  ;;  %v529_v4 = vshll.u32 %v340_v51, 16  ;;  %v506_v9 = vsel %vm8987_vm9, %v498_v55, %v505_v58 }
  0x8f   : > { %v343_v8 = vld [vmem:[%s8975_s14 + $0x9c] sm:$0xf]  ;;  %6759 = vst [vmem:[%s8979_s15 + $0xe4] sm:$0xf] %v735_v63  ;;  %v739_v10 = vsel %vm8828_vm3, %v507_v59, %v6761_v45  ;;  %v514_v11 = vor.u32 %v512_v50, %v511_v60  ;;  %v515_v12 = vrot.slane %v511_v60, 4  ;;  %v519_v14 = vrot.slane %v517_v61, 7 }
  0x90   : > { %v6766_v13 = vld [vmem:[%s8979_s15 + $0xf8] sm:$0x1]  ;;  %6760 = vst [vmem:[%s8979_s15 + $0xe8] sm:$0xf] %v506_v9  ;;  %6762 = vst [vmem:[%s8979_s15 + $0xec] sm:$0x1] %v739_v10 }
  0x91   : > { %v528_v15 = vrot.slane %v526_v1, 7  ;;  %v6768_v16 = vld [vmem:[%s8979_s15 + $0xfc] sm:$0xf]  ;;  %v534_v17 = vshrl.u32 %v341_v57, 16  ;;  %v537_v18 = vshll.u32 %v341_v57, 16  ;;  %v742_v19 = vsel %vm8892_vm7, %v514_v11, %v6763_v56 }
  0x92   : > { %v543_v20 = vshrl.u32 %v342_v62, 16  ;;  %v546_v21 = vshll.u32 %v342_v62, 16  ;;  %v551_v22 = vshrl.u32 %v343_v8, 16  ;;  %v344_v23 = vld [vmem:[%s8975_s14 + $0xa0] sm:$0xf]  ;;  %v522_v24 = vor.u32 %v520_v0, %v519_v14 }
  0x93   : > { %6764 = vst [vmem:[%s8979_s15 + $0xf0] sm:$0xf] %v742_v19  ;;  %v524_v25 = vrot.slane %v519_v14, 4  ;;  %v531_v26 = vor.u32 %v529_v4, %v528_v15  ;;  %v532_v27 = vrot.slane %v528_v15, 4  ;;  %v536_v28 = vrot.slane %v534_v17, 7 }
  0x94   : > { %v6771_v29 = vld [vmem:[%s8979_s15 + $0x104] sm:$0x1]  ;;  %v545_v30 = vrot.slane %v543_v20, 7  ;;  %v553_v32 = vrot.slane %v551_v22, 7  ;;  %v554_v33 = vshll.u32 %v343_v8, 16  ;;  %v523_v34 = vsel %vm8987_vm9, %v515_v12, %v522_v24 }
  0x95   : > { %v746_v35 = vsel %vm8828_vm3, %v524_v25, %v6766_v13  ;;  %v749_v36 = vsel %vm8892_vm7, %v531_v26, %v6768_v16  ;;  %v6773_v37 = vld [vmem:[%s8979_s15 + $0x108] sm:$0xf]  ;;  %v560_v38 = vshrl.u32 %v344_v23, 16  ;;  %v345_v39 = vld [vmem:[%s8975_s14 + $0xa4] sm:$0xf]  ;;  %v539_v40 = vor.u32 %v537_v18, %v536_v28 }
  0x96   : > { %6765 = vst [vmem:[%s8979_s15 + $0xf4] sm:$0xf] %v523_v34  ;;  %6767 = vst [vmem:[%s8979_s15 + $0xf8] sm:$0x1] %v746_v35  ;;  %v541_v41 = vrot.slane %v536_v28, 4  ;;  %v548_v42 = vor.u32 %v546_v21, %v545_v30  ;;  %v549_v43 = vrot.slane %v545_v30, 4  ;;  %v556_v46 = vor.u32 %v554_v33, %v553_v32 }
  0x97   : > { %6769 = vst [vmem:[%s8979_s15 + $0xfc] sm:$0xf] %v749_v36  ;;  %v6776_v44 = vld [vmem:[%s8979_s15 + $0x110] sm:$0x1]  ;;  %v6778_v45 = vld [vmem:[%s8979_s15 + $0x114] sm:$0xf]  ;;  %v540_v51 = vsel %vm8987_vm9, %v532_v27, %v539_v40 }
  0x98   : > { %v558_v47 = vrot.slane %v553_v32, 4  ;;  %v562_v48 = vrot.slane %v560_v38, 7  ;;  %v563_v49 = vshll.u32 %v344_v23, 16  ;;  %v346_v50 = vld [vmem:[%s8975_s14 + $0xa8] sm:$0xf]  ;;  %v753_v52 = vsel %vm8828_vm3, %v541_v41, %v6771_v29 }
  0x99   : > { %v756_v53 = vsel %vm8892_vm7, %v548_v42, %v6773_v37  ;;  %v568_v54 = vshrl.u32 %v345_v39, 16  ;;  %v347_v55 = vld [vmem:[%s8975_s14 + $0xac] sm:$0xf]  ;;  %v348_v56 = vld [vmem:[%s8975_s14 + $0xb0] sm:$0xf]  ;;  %v557_v57 = vsel %vm8987_vm9, %v549_v43, %v556_v46  ;;  %v571_v63 = vshll.u32 %v345_v39, 16 }
  0x9a   : > { %6770 = vst [vmem:[%s8979_s15 + $0x100] sm:$0xf] %v540_v51  ;;  %6772 = vst [vmem:[%s8979_s15 + $0x104] sm:$0x1] %v753_v52  ;;  %v760_v58 = vsel %vm8828_vm3, %v558_v47, %v6776_v44  ;;  %v565_v59 = vor.u32 %v563_v49, %v562_v48  ;;  %v566_v60 = vrot.slane %v562_v48, 4  ;;  %v577_v0 = vshrl.u32 %v346_v50, 16 }
  0x9b   : > { %6774 = vst [vmem:[%s8979_s15 + $0x108] sm:$0xf] %v756_v53  ;;  %v6781_v61 = vld [vmem:[%s8979_s15 + $0x11c] sm:$0x1]  ;;  %6775 = vst [vmem:[%s8979_s15 + $0x10c] sm:$0xf] %v557_v57 }
  0x9c   : > { %6777 = vst [vmem:[%s8979_s15 + $0x110] sm:$0x1] %v760_v58  ;;  %v570_v62 = vrot.slane %v568_v54, 7  ;;  %v580_v1 = vshll.u32 %v346_v50, 16  ;;  %v349_v4 = vld [vmem:[%s8975_s14 + $0xb4] sm:$0xf]  ;;  %v763_v8 = vsel %vm8892_vm7, %v565_v59, %v6778_v45 }
  0x9d   : > { %v6783_v9 = vld [vmem:[%s8979_s15 + $0x120] sm:$0xf]  ;;  %v585_v10 = vshrl.u32 %v347_v55, 16  ;;  %v588_v11 = vshll.u32 %v347_v55, 16  ;;  %v594_v12 = vshrl.u32 %v348_v56, 16  ;;  %v579_v15 = vrot.slane %v577_v0, 7 }
  0x9e   : > { %6779 = vst [vmem:[%s8979_s15 + $0x114] sm:$0xf] %v763_v8  ;;  %v573_v13 = vor.u32 %v571_v63, %v570_v62  ;;  %v575_v14 = vrot.slane %v570_v62, 4  ;;  %v6786_v16 = vld [vmem:[%s8979_s15 + $0x128] sm:$0x1]  ;;  %v597_v17 = vshll.u32 %v348_v56, 16 }
  0x9f   : > { %v587_v18 = vrot.slane %v585_v10, 7  ;;  %v596_v19 = vrot.slane %v594_v12, 7  ;;  %v602_v20 = vshrl.u32 %v349_v4, 16  ;;  %v605_v21 = vshll.u32 %v349_v4, 16  ;;  %v350_v22 = vld [vmem:[%s8975_s14 + $0xb8] sm:$0xf] }
  0xa0   : > { %v574_v23 = vsel %vm8987_vm9, %v566_v60, %v573_v13  ;;  %v767_v24 = vsel %vm8828_vm3, %v575_v14, %v6781_v61  ;;  %v582_v25 = vor.u32 %v580_v1, %v579_v15  ;;  %v583_v26 = vrot.slane %v579_v15, 4  ;;  %v6788_v27 = vld [vmem:[%s8979_s15 + $0x12c] sm:$0xf]  ;;  %v351_v28 = vld [vmem:[%s8975_s14 + $0xbc] sm:$0xf] }
  0xa1   : > { %6780 = vst [vmem:[%s8979_s15 + $0x118] sm:$0xf] %v574_v23  ;;  %6782 = vst [vmem:[%s8979_s15 + $0x11c] sm:$0x1] %v767_v24  ;;  %v590_v29 = vor.u32 %v588_v11, %v587_v18  ;;  %v592_v30 = vrot.slane %v587_v18, 4  ;;  %v599_v32 = vor.u32 %v597_v17, %v596_v19  ;;  %v600_v33 = vrot.slane %v596_v19, 4 }
  0xa2   : > { %v770_v34 = vsel %vm8892_vm7, %v582_v25, %v6783_v9  ;;  %v604_v35 = vrot.slane %v602_v20, 7  ;;  %v611_v36 = vshrl.u32 %v350_v22, 16  ;;  %v614_v37 = vshll.u32 %v350_v22, 16  ;;  %v6791_v41 = vld [vmem:[%s8979_s15 + $0x134] sm:$0x1] }
  0xa3   : > { %6784 = vst [vmem:[%s8979_s15 + $0x120] sm:$0xf] %v770_v34  ;;  %v591_v38 = vsel %vm8987_vm9, %v583_v26, %v590_v29  ;;  %v774_v39 = vsel %vm8828_vm3, %v592_v30, %v6786_v16  ;;  %v777_v40 = vsel %vm8892_vm7, %v599_v32, %v6788_v27  ;;  %v619_v42 = vshrl.u32 %v351_v28, 16  ;;  %v6793_v47 = vld [vmem:[%s8979_s15 + $0x138] sm:$0xf] }
  0xa4   : > { %6785 = vst [vmem:[%s8979_s15 + $0x124] sm:$0xf] %v591_v38  ;;  %6787 = vst [vmem:[%s8979_s15 + $0x128] sm:$0x1] %v774_v39  ;;  %v607_v43 = vor.u32 %v605_v21, %v604_v35  ;;  %v609_v44 = vrot.slane %v604_v35, 4  ;;  %v613_v45 = vrot.slane %v611_v36, 7 }
  0xa5   : > { %6789 = vst [vmem:[%s8979_s15 + $0x12c] sm:$0xf] %v777_v40  ;;  %v622_v46 = vshll.u32 %v351_v28, 16  ;;  %v621_v48 = vrot.slane %v619_v42, 7  ;;  %v6796_v53 = vld [vmem:[%s8979_s15 + $0x140] sm:$0x1] }
  0xa6   : > { %v608_v49 = vsel %vm8987_vm9, %v600_v33, %v607_v43  ;;  %v781_v50 = vsel %vm8828_vm3, %v609_v44, %v6791_v41  ;;  %v616_v51 = vor.u32 %v614_v37, %v613_v45  ;;  %v617_v52 = vrot.slane %v613_v45, 4  ;;  %314 = sbr.rel (!%p312_p1) target bundleno = 104 (0x68), region = 95 }
  0xa7   : > { %6790 = vst [vmem:[%s8979_s15 + $0x130] sm:$0xf] %v608_v49  ;;  %6792 = vst [vmem:[%s8979_s15 + $0x134] sm:$0x1] %v781_v50  ;;  %v624_v54 = vor.u32 %v622_v46, %v621_v48  ;;  %v626_v55 = vrot.slane %v621_v48, 4 }
  0xa8   : > { %v784_v56 = vsel %vm8892_vm7, %v616_v51, %v6793_v47 }
  0xa9   : > { %6794 = vst [vmem:[%s8979_s15 + $0x138] sm:$0xf] %v784_v56  ;;  %v625_v57 = vsel %vm8987_vm9, %v617_v52, %v624_v54  ;;  %v788_v58 = vsel %vm8828_vm3, %v626_v55, %v6796_v53 }
  0xaa   : > { %6795 = vst [vmem:[%s8979_s15 + $0x13c] sm:$0xf] %v625_v57  ;;  %6797 = vst [vmem:[%s8979_s15 + $0x140] sm:$0x1] %v788_v58 }
  0xab LB: > { %v8369_v31 = vld [vmem:[#allocation7 + $0x38] sm:$0xff]   ;;  %v8764_v59 = vmov 0   ;;  %v8371_v61 = vld [vmem:[#allocation7 + $0x30] sm:$0xff]   ;;  %v9210_v3 = vld [vmem:[#allocation7 + $0xa8] sm:$0xff]   ;;  %s9218_s17 = smul.u32 96, %s8751_s16  ;;  %vm3064_vm10 = vcmp.lt.s32.totalorder %v8821_v2, 1  ;;  %s8751_s16 = sphi %s9196_s16, %s795_s16  }
  0xac   : > { %1280 = vmatprep.subr.bf16.mxu0 %v8764_v59  ;;  %v9202_v60 = vld [vmem:[#allocation7 + $0xb8] sm:$0xff]   ;;  %v9206_v6 = vld [vmem:[#allocation7 + $0xb0] sm:$0xff]   ;;  %v8373_v62 = vld [vmem:[#allocation7 + $0x28] sm:$0xff]   ;;  %vm3209_vm11 = vcmp.lt.s32.totalorder %v8821_v2, 7  ;;  %s795_s16 = sadd.s32 1, %s8751_s16  }
  0xad   : > { %1281 = vmatpush1.bf16.msra.mxu0 %v8369_v31  ;;  %8302 = vmatprep.subr.bf16.mxu1 %v9202_v60  ;;  %v9215_v63 = vld [vmem:[#allocation7 + $0xa0] sm:$0xff]   ;;  %v9223_v1 = vld [vmem:[#allocation7 + $0x98] sm:$0xff]   ;;  %s9228_s18 = scalar_lea.vmem [#allocation2], %s9218_s17  ;;  %v9235_v10 = vld [vmem:[#allocation7 + $0x90] sm:$0xff]   ;;  %s10493_s21 = scalar_lea.vmem [#allocation3], %s9218_s17 }
  0xae   : > { %1282 = vmatprep.subr.bf16.mxu0 %v8764_v59  ;;  %8310 = vmatpush3.bf16.msra.mxu1 %v9202_v60  ;;  %v8375_v0 = vld [vmem:[#allocation7 + $0x20] sm:$0xff]   ;;  %v8377_v4 = vld [vmem:[#allocation7 + $0x18] sm:$0xff]   ;;  %v8379_v13 = vld [vmem:[#allocation7 + $0x10] sm:$0xff]   ;;  %s10502_s22 = scalar_lea.vmem [#allocation10], %s9218_s17  ;;  %p792_p2 = scmp.ge.s32.totalorder %s795_s16, 2  }
  0xaf   : > { %8303 = vmatprep.subr.bf16.mxu1 %v9206_v6  ;;  %v9247_v15 = vld [vmem:[#allocation7 + $0x88] sm:$0xff]   ;;  %v9256_v20 = vld [vmem:[#allocation7 + $0x80] sm:$0xff]   ;;  %v8386_v23 = vld [vmem:[#allocation7 + $0x78] sm:$0xff]   ;;  %s10813_s23 = smov (%p792_p2), 0  }
  0xb0   : > { %v8381_v18 = vld [vmem:[#allocation7 + $0x8] sm:$0xff]   ;;  %v8383_v21 = vld [vmem:[#allocation7] sm:$0xff]   ;;  %v8388_v25 = vld [vmem:[#allocation7 + $0xf8] sm:$0xff]  }
  0xb1   : > { %1283 = vmatpush1.bf16.msra.mxu0 %v8371_v61  ;;  %v9231_v8 = vld [vmem:[%s9228_s18 + $0x58] sm:$0xf]  ;;  %v823_v9 = vld [vmem:[%s9228_s18 + $0x5c] sm:$0xf]  ;;  %v824_v12 = vld [vmem:[%s9228_s18 + $0x60] sm:$0xf] }
  0xb2   : > { %1284 = vmatprep.subr.bf16.mxu0 %v8764_v59  ;;  %8311 = vmatpush3.bf16.msra.mxu1 %v9206_v6  ;;  %v9238_v11 = vcombine.low %v9231_v8, %v823_v9  ;;  %v9241_v14 = vcombine.low %v823_v9, %v824_v12  ;;  %v825_v16 = vld [vmem:[%s9228_s18 + $0x64] sm:$0xf]  ;;  %v826_v17 = vld [vmem:[%s9228_s18 + $0x68] sm:$0xf]  ;;  %v827_v22 = vld [vmem:[%s9228_s18 + $0x6c] sm:$0xf] }
  0xb3   : > { %8304 = vmatprep.subr.bf16.mxu1 %v9210_v3  ;;  %v9251_v19 = vcombine.low %v825_v16, %v826_v17  ;;  %v9263_v24 = vcombine.low %v824_v12, %v825_v16  ;;  %v9266_v26 = vcombine.low %v826_v17, %v827_v22  ;;  %v8389_v27 = vld [vmem:[#allocation7 + $0x70] sm:$0xff]   ;;  %v8392_v29 = vld [vmem:[#allocation7 + $0x68] sm:$0xff]   ;;  %v8395_v39 = vld [vmem:[#allocation7 + $0x60] sm:$0xff]  }
  0xb4   : > { %7950 = vmatprep.mubr.bf16.mxu1 %v9238_v11  ;;  %v8390_v28 = vld [vmem:[#allocation7 + $0xf0] sm:$0xff]   ;;  %v9278_v33 = vld [vmem:[%s9228_s18 + $0xc] sm:$0xf]  ;;  %v838_v40 = vld [vmem:[%s9228_s18 + $0xf8] sm:$0xf] }
  0xb5   : > { %1285 = vmatpush1.bf16.msra.mxu0 %v8373_v62  ;;  %v9273_v30 = vld [vmem:[%s9228_s18 + $0xf0] sm:$0xf]  ;;  %v837_v32 = vld [vmem:[%s9228_s18 + $0xf4] sm:$0xf]  ;;  %v8394_v37 = vld [vmem:[#allocation7 + $0xe8] sm:$0xff]  }
  0xb6   : > { %1286 = vmatprep.subr.bf16.mxu0 %v8764_v59  ;;  %8312 = vmatpush3.bf16.msra.mxu1 %v9210_v3  ;;  %v9281_v34 = vld [vmem:[%s9228_s18 + $0x10] sm:$0xf]  ;;  %v9290_v38 = vcombine.low %v9273_v30, %v837_v32  ;;  %v9296_v41 = vcombine.low %v837_v32, %v838_v40  ;;  %v8396_v42 = vld [vmem:[#allocation7 + $0xe0] sm:$0xff]   ;;  %v839_v43 = vld [vmem:[%s9228_s18 + $0xfc] sm:$0xf] }
  0xb7   : > { %8305 = vmatprep.subr.bf16.mxu1 %v9215_v63  ;;  %v8393_v35 = vld [vmem:[%s9228_s18 + $0x70] sm:$0xff]   ;;  %v9287_v36 = vcombine.low %v9278_v33, %v9281_v34  ;;  %v840_v44 = vld [vmem:[%s9228_s18 + $0x100] sm:$0xf]  ;;  %v841_v45 = vld [vmem:[%s9228_s18 + $0x104] sm:$0xf]  ;;  %v9304_v47 = vcombine.low %v838_v40, %v839_v43 }
  0xb8   : > { %12441 = vst [vmem:[#allocation20_spill] sm:$0xff] %v9296_v41  ;;  %v8398_v46 = vld [vmem:[#allocation7 + $0x58] sm:$0xff]   ;;  %v9306_v49 = vcombine.low %v840_v44, %v841_v45  ;;  %v8401_v50 = vld [vmem:[#allocation7 + $0x50] sm:$0xff]   ;;  %v842_v52 = vld [vmem:[%s9228_s18 + $0x108] sm:$0xf]  ;;  %v9313_v54 = vcombine.low %v839_v43, %v840_v44 }
  0xb9   : > { %1287 = vmatpush1.bf16.msra.mxu0 %v8375_v0  ;;  %1312 = vmatprep.mubr.bf16.mxu0 %v9287_v36  ;;  %v8400_v48 = vld [vmem:[#allocation7 + $0xd8] sm:$0xff]   ;;  %v8402_v51 = vld [vmem:[#allocation7 + $0xd0] sm:$0xff]   ;;  %v843_v53 = vld [vmem:[%s9228_s18 + $0x10c] sm:$0xf]  ;;  %v9340_v16 = vcombine.low %v841_v45, %v842_v52 }
  0xba   : > { %1288 = vmatprep.subr.bf16.mxu0 %v8764_v59  ;;  %8313 = vmatpush3.bf16.msra.mxu1 %v9215_v63  ;;  %12442 = vst [vmem:[#allocation21_spill] sm:$0xff] %v9313_v54  ;;  %v844_v55 = vld [vmem:[%s9228_s18 + $0x110] sm:$0xf]  ;;  %v9319_v56 = vld [vmem:[%s9228_s18 + $0x114] sm:$0xf]  ;;  %v8404_v57 = vld [vmem:[#allocation7 + $0x48] sm:$0xff]   ;;  %v9322_v58 = vcombine.low %v842_v52, %v843_v53 }
  0xbb   : > { %8306 = vmatprep.subr.bf16.mxu1 %v9223_v1  ;;  %v8406_v31 = vld [vmem:[#allocation7 + $0xc8] sm:$0xff]   ;;  %v9325_v61 = vcombine.low %v844_v55, %v9319_v56  ;;  %v8407_v62 = vld [vmem:[#allocation7 + $0x40] sm:$0xff]   ;;  %v846_v9 = vld [vmem:[%s9228_s18 + $0x118] sm:$0xf]  ;;  %12443 = vst [vmem:[#allocation22_spill] sm:$0xff] %v9340_v16  ;;  %v9396_v43 = vcombine.low %v843_v53, %v844_v55 }
  0xbc   : > { %v8408_v0 = vld [vmem:[#allocation7 + $0xc0] sm:$0xff]   ;;  %v9335_v12 = vld [vmem:[%s9228_s18 + $0x14] sm:$0xf]  ;;  %v9344_v17 = vld [vmem:[%s9228_s18 + $0x11c] sm:$0xf] }
  0xbd   : > { %1289 = vmatpush1.bf16.msra.mxu0 %v8377_v4  ;;  %v9331_v4 = vld [vmem:[%s9228_s18] sm:$0xff]   ;;  %v9354_v22 = vld [vmem:[%s9228_s18 + $0x54] sm:$0xf]  ;;  %v802_v32 = vld [vmem:[%s9228_s18 + $0x8] sm:$0xf]  ;;  %12445 = vst [vmem:[#allocation24_spill] sm:$0xff] %v9396_v43 }
  0xbe   : > { %1290 = vmatprep.subr.bf16.mxu0 %v8764_v59  ;;  %8314 = vmatpush3.bf16.msra.mxu1 %v9223_v1  ;;  %v9385_v40 = vld [vmem:[%s9228_s18 + $0xec] sm:$0xf]  ;;  %v9400_v44 = vld [vmem:[%s9228_s18 + $0x130] sm:$0xf]  ;;  %v9404_v45 = vcombine.low %v802_v32, %v9278_v33  ;;  %v9426_v52 = vld [vmem:[%s9228_s18 + $0x28] sm:$0xf] }
  0xbf   : > { %8307 = vmatprep.subr.bf16.mxu1 %v9235_v10  ;;  %v9430_v53 = vld [vmem:[%s9228_s18 + $0x138] sm:$0xf]  ;;  %v9433_v55 = vld [vmem:[%s9228_s18 + $0x13c] sm:$0xf] }
  0xc0   : > { %v9457_v32 = vcombine.low %v9430_v53, %v9433_v55 }
  0xc1   : > { %1291 = vmatpush1.bf16.msra.mxu0 %v8379_v13  ;;  %v9338_v13 = vld [vmem:[%s9228_s18 + $0x18] sm:$0xf] }
  0xc2   : > { %1292 = vmatprep.subr.bf16.mxu0 %v8764_v59  ;;  %8315 = vmatpush3.bf16.msra.mxu1 %v9235_v10 }
  0xc3   : > { %8308 = vmatprep.subr.bf16.mxu1 %v9247_v15 }
  0xc5   : > { %1293 = vmatpush1.bf16.msra.mxu0 %v8381_v18  ;;  %v9348_v18 = vld [vmem:[%s9228_s18 + $0x120] sm:$0xf] }
  0xc6   : > { %1294 = vmatprep.subr.bf16.mxu0 %v8764_v59  ;;  %8316 = vmatpush3.bf16.msra.mxu1 %v9247_v15 }
  0xc7   : > { %8309 = vmatprep.subr.bf16.mxu1 %v9256_v20 }
  0xc9   : > { %1295 = vmatpush1.bf16.msra.mxu0 %v8383_v21  ;;  %v9351_v21 = vld [vmem:[%s9228_s18 + $0x124] sm:$0xf] }
  0xca   : > { %1296 = vmatprep.subr.bf16.mxu0 %v8764_v59  ;;  %8317 = vmatpush3.bf16.msra.mxu1 %v9256_v20 }
  0xcb   : > { %1923 = vmatprep.subr.bf16.mxu1 %v8764_v59 }
  0xcd   : > { %1297 = vmatpush2.bf16.msra.mxu0 %v8386_v23  ;;  %7951 = vmatmul.mubr.bf16.vlgmr.msra.gmra.mxu1 %v9263_v24  ;;  %v9358_v23 = vcombine.low %v9335_v12, %v9338_v13 }
  0xce   : > { %1298 = vmatprep.subr.bf16.mxu0 %v8764_v59  ;;  %1924 = vmatpush1.bf16.msra.mxu1 %v8388_v25  ;;  %v9362_v25 = vcombine.low %v9354_v22, %v9231_v8  ;;  %v8414_v8 = vld [vmem:[#allocation7 + $0x130] sm:$0xff]  }
  0xcf   : > { %7954 = vmatprep.mubr.bf16.mxu1 %v9266_v26  ;;  %1925 = vmatprep.subr.bf16.mxu1 %v8764_v59 }
  0xd1   : > { %1299 = vmatpush2.bf16.msra.mxu0 %v8389_v27  ;;  %v9366_v27 = vcombine.low %v846_v9, %v9344_v17 }
  0xd2   : > { %1300 = vmatprep.subr.bf16.mxu0 %v8764_v59  ;;  %1926 = vmatpush1.bf16.msra.mxu1 %v8390_v28  ;;  %v8413_v28 = vld [vmem:[#allocation7 + $0x138] sm:$0xff]  }
  0xd3   : > { %1927 = vmatprep.subr.bf16.mxu1 %v8764_v59 }
  0xd5   : > { %1301 = vmatpush2.bf16.msra.mxu0 %v8392_v29  ;;  %7955 = vmatmul.mubr.bf16.gmra.mxu1 %v8393_v35  ;;  %v9370_v29 = vcombine.low %v9348_v18, %v9351_v21  ;;  %v9378_v35 = vld [vmem:[%s9228_s18 + $0x128] sm:$0xf] }
  0xd6   : > { %1302 = vmatprep.subr.bf16.mxu0 %v8764_v59  ;;  %1928 = vmatpush1.bf16.msra.mxu1 %v8394_v37  ;;  %v9381_v37 = vld [vmem:[%s9228_s18 + $0x12c] sm:$0xf] }
  0xd7   : > { %7958 = vmatprep.mubr.bf16.mxu1 %v9290_v38  ;;  %1929 = vmatprep.subr.bf16.mxu1 %v8764_v59 }
  0xd9   : > { %1303 = vmatpush2.bf16.msra.mxu0 %v8395_v39  ;;  %v807_v39 = vld [vmem:[%s9228_s18 + $0x1c] sm:$0xf] }
  0xda   : > { %1304 = vmatprep.subr.bf16.mxu0 %v8764_v59  ;;  %1930 = vmatpush1.bf16.msra.mxu1 %v8396_v42  ;;  %v9389_v42 = vld [vmem:[%s9228_s18 + $0x20] sm:$0xf] }
  0xdb   : > { %1931 = vmatprep.subr.bf16.mxu1 %v8764_v59 }
  0xdd   : > { %1305 = vmatpush2.bf16.msra.mxu0 %v8398_v46  ;;  %7959 = vmatmul.mubr.bf16.gmra.mxu1 %v9304_v47  ;;  %v9407_v46 = vld [vmem:[%s9228_s18 + $0x134] sm:$0xf] }
  0xde   : > { %1306 = vmatprep.subr.bf16.mxu0 %v8764_v59  ;;  %1932 = vmatpush1.bf16.msra.mxu1 %v8400_v48  ;;  %v9410_v48 = vcombine.low %v807_v39, %v9389_v42  ;;  %v9420_v33 = vcombine.low %v9400_v44, %v9407_v46 }
  0xdf   : > { %7962 = vmatprep.mubr.bf16.mxu1 %v9306_v49  ;;  %1933 = vmatprep.subr.bf16.mxu1 %v8764_v59 }
  0xe1   : > { %1307 = vmatpush2.bf16.msra.mxu0 %v8401_v50  ;;  %v9415_v50 = vcombine.low %v9378_v35, %v9381_v37 }
  0xe2   : > { %1308 = vmatprep.subr.bf16.mxu0 %v8764_v59  ;;  %1934 = vmatpush1.bf16.msra.mxu1 %v8402_v51  ;;  %v809_v51 = vld [vmem:[%s9228_s18 + $0x24] sm:$0xf] }
  0xe3   : > { %1935 = vmatprep.subr.bf16.mxu1 %v8764_v59 }
  0xe5   : > { %1309 = vmatpush2.bf16.msra.mxu0 %v8404_v57  ;;  %7963 = vmatmul.mubr.bf16.gmra.mxu1 %v9322_v58  ;;  %v9438_v57 = vld [vmem:[%s9228_s18 + $0x140] sm:$0xf] }
  0xe6   : > { %1310 = vmatprep.subr.bf16.mxu0 %v8764_v59  ;;  %1936 = vmatpush1.bf16.msra.mxu1 %v8406_v31  ;;  %v857_v31 = vld [vmem:[%s9228_s18 + $0x144] sm:$0xf]  ;;  %v9659_v5 = vcombine.low %v9433_v55, %v9438_v57 }
  0xe7   : > { %7966 = vmatprep.mubr.bf16.mxu1 %v9325_v61  ;;  %1937 = vmatprep.subr.bf16.mxu1 %v8764_v59 }
  0xe8   : > { %12456 = vst [vmem:[#allocation35_spill] sm:$0xff] %v9659_v5 }
  0xe9   : > { %1311 = vmatpush2.bf16.msra.mxu0 %v8407_v62  ;;  %v9443_v62 = vcombine.low %v9319_v56, %v846_v9  ;;  %v9461_v56 = vcombine.low %v9438_v57, %v857_v31  ;;  %v812_v9 = vld [vmem:[%s9228_s18 + $0x30] sm:$0xf]  ;;  %v8436_v31 = vld [vmem:[#allocation7 + $0x1b8] sm:$0xff]  }
  0xea   : > { %7918 = vmatprep.subr.bf16.mxu0 %v9202_v60  ;;  %1938 = vmatpush1.bf16.msra.mxu1 %v8408_v0  ;;  %v8426_v0 = vld [vmem:[#allocation7 + $0x118] sm:$0xff]  }
  0xeb   : > { %1939 = vmatprep.subr.bf16.mxu1 %v8764_v59  ;;  %12446 = vst [vmem:[#allocation25_spill] sm:$0xff] %v9443_v62 }
  0xec   : > { %1313 = vmatmul.mubr.bf16.vlgmr.msra.gmra.mxu0 %v9331_v4 }
  0xed   : > { %7919 = vmatpush3.bf16.msra.mxu0 %v9202_v60  ;;  %1320 = vmatprep.mubr.bf16.mxu0 %v9358_v23  ;;  %v9394_v60 = vcombine.low %v9385_v40, %v9273_v30  ;;  %v8419_v30 = vld [vmem:[#allocation7 + $0x128] sm:$0xff]  }
  0xee   : > { %7967 = vmatmul.mubr.bf16.gmra.mxu1 %v9366_v27  ;;  %7920 = vmatprep.subr.bf16.mxu0 %v9206_v6 }
  0xef   : > { %12444 = vst [vmem:[#allocation23_spill] sm:$0xff] %v9394_v60  ;;  %1940 = vmatpush2.bf16.msra.mxu1 %v8413_v28  ;;  %7970 = vmatprep.mubr.bf16.mxu1 %v9370_v29  ;;  %v9452_v28 = vcombine.low %v809_v51, %v9426_v52 }
  0xf0   : > { %1941 = vmatprep.subr.bf16.mxu1 %v8764_v59 }
  0xf1   : > { %7921 = vmatpush3.bf16.msra.mxu0 %v9206_v6  ;;  %v8420_v6 = vld [vmem:[#allocation7 + $0x120] sm:$0xff]  }
  0xf2   : > { %7922 = vmatprep.subr.bf16.mxu0 %v9210_v3 }
  0xf3   : > { %1942 = vmatpush2.bf16.msra.mxu1 %v8414_v8  ;;  %v9477_v8 = vcombine.low %v9338_v13, %v807_v39  ;;  %v813_v13 = vld [vmem:[%s9228_s18 + $0x34] sm:$0xf]  ;;  %v8433_v39 = vld [vmem:[#allocation7 + $0x100] sm:$0xff]  }
  0xf4   : > { %1321 = vmatmul.mubr.bf16.gmra.mxu0 %v9404_v45  ;;  %1943 = vmatprep.subr.bf16.mxu1 %v8764_v59 }
  0xf5   : > { %1328 = vmatprep.mubr.bf16.mxu0 %v9410_v48  ;;  %7923 = vmatpush3.bf16.msra.mxu0 %v9210_v3  ;;  %v9449_v3 = vcombine.low %v9281_v34, %v9335_v12  ;;  %v811_v34 = vld [vmem:[%s9228_s18 + $0x2c] sm:$0xf]  ;;  %v8427_v12 = vld [vmem:[#allocation7 + $0x110] sm:$0xff]  }
  0xf6   : > { %7971 = vmatmul.mubr.bf16.gmra.mxu1 %v9415_v50  ;;  %7924 = vmatprep.subr.bf16.mxu0 %v9215_v63 }
  0xf7   : > { %1944 = vmatpush2.bf16.msra.mxu1 %v8419_v30  ;;  %7974 = vmatprep.mubr.bf16.mxu1 %v9420_v33  ;;  %v9480_v30 = vcombine.low %v811_v34, %v812_v9 }
  0xf8   : > { %1945 = vmatprep.subr.bf16.mxu1 %v8764_v59 }
  0xf9   : > { %7925 = vmatpush3.bf16.msra.mxu0 %v9215_v63  ;;  %v9473_v63 = vcombine.low %v9344_v17, %v9348_v18  ;;  %v8432_v17 = vld [vmem:[#allocation7 + $0x108] sm:$0xff]   ;;  %v814_v18 = vld [vmem:[%s9228_s18 + $0x38] sm:$0xf] }
  0xfa   : > { %7926 = vmatprep.subr.bf16.mxu0 %v9223_v1 }
  0xfb   : > { %1946 = vmatpush2.bf16.msra.mxu1 %v8420_v6  ;;  %12447 = vst [vmem:[#allocation26_spill] sm:$0xff] %v9473_v63  ;;  %v9501_v6 = vcombine.low %v9389_v42, %v809_v51  ;;  %v8441_v42 = vld [vmem:[#allocation7 + $0x1b0] sm:$0xff]  }
  0xfc   : > { %1329 = vmatmul.mubr.bf16.gmra.mxu0 %v9449_v3  ;;  %1947 = vmatprep.subr.bf16.mxu1 %v8764_v59 }
  0xfd   : > { %1336 = vmatprep.mubr.bf16.mxu0 %v9452_v28  ;;  %7927 = vmatpush3.bf16.msra.mxu0 %v9223_v1  ;;  %v9484_v1 = vld [vmem:[%s9228_s18 + $0x148] sm:$0xff]  }
  0xfe   : > { %7975 = vmatmul.mubr.bf16.gmra.mxu1 %v9457_v32  ;;  %7928 = vmatprep.subr.bf16.mxu0 %v9235_v10  ;;  %12448 = vst [vmem:[#allocation27_spill] sm:$0xff] %v9484_v1 }
  0xff   : > { %1948 = vmatpush2.bf16.msra.mxu1 %v8426_v0  ;;  %7978 = vmatprep.mubr.bf16.mxu1 %v9461_v56  ;;  %v9522_v0 = vcombine.low %v9381_v37, %v9400_v44  ;;  %v9531_v37 = vcombine.low %v812_v9, %v813_v13  ;;  %v819_v9 = vld [vmem:[%s9228_s18 + $0x4c] sm:$0xf] }
 0x100   : > { %1949 = vmatprep.subr.bf16.mxu1 %v8764_v59 }
 0x101   : > { %7929 = vmatpush3.bf16.msra.mxu0 %v9235_v10  ;;  %v9496_v10 = vcombine.low %v9351_v21, %v9378_v35  ;;  %v815_v21 = vld [vmem:[%s9228_s18 + $0x3c] sm:$0xf]  ;;  %v816_v35 = vld [vmem:[%s9228_s18 + $0x40] sm:$0xf]  ;;  %12450 = vst [vmem:[#allocation29_spill] sm:$0xff] %v9522_v0 }
 0x102   : > { %7930 = vmatprep.subr.bf16.mxu0 %v9247_v15  ;;  %v9518_v51 = vcombine.low %v815_v21, %v816_v35 }
 0x103   : > { %1950 = vmatpush2.bf16.msra.mxu1 %v8427_v12  ;;  %12449 = vst [vmem:[#allocation28_spill] sm:$0xff] %v9496_v10  ;;  %v8444_v12 = vld [vmem:[#allocation7 + $0x1a8] sm:$0xff]  }
 0x104   : > { %1337 = vmatmul.mubr.bf16.gmra.mxu0 %v9477_v8  ;;  %1951 = vmatprep.subr.bf16.mxu1 %v8764_v59 }
 0x105   : > { %1344 = vmatprep.mubr.bf16.mxu0 %v9480_v30  ;;  %7931 = vmatpush3.bf16.msra.mxu0 %v9247_v15  ;;  %v9504_v15 = vcombine.low %v813_v13, %v814_v18  ;;  %v820_v13 = vld [vmem:[%s9228_s18 + $0x50] sm:$0xf] }
 0x106   : > { %7979 = vmatmul.mubr.bf16.gmra.mxu1 %v9484_v1  ;;  %7932 = vmatprep.subr.bf16.mxu0 %v9256_v20 }
 0x107   : > { %1952 = vmatpush2.bf16.msra.mxu1 %v8432_v17  ;;  %1955 = vmatprep.mubr.bf16.mxu1 %v9287_v36  ;;  %v8449_v17 = vld [vmem:[#allocation7 + $0x1a0] sm:$0xff]  }
 0x108   : > { %1953 = vmatprep.subr.bf16.mxu1 %v8764_v59 }
 0x109   : > { %7933 = vmatpush3.bf16.msra.mxu0 %v9256_v20  ;;  %v9515_v20 = vcombine.low %v9426_v52, %v811_v34  ;;  %v817_v52 = vld [vmem:[%s9228_s18 + $0x44] sm:$0xf]  ;;  %v818_v34 = vld [vmem:[%s9228_s18 + $0x48] sm:$0xf] }
 0x10a   : > { %v9534_v44 = vcombine.low %v817_v52, %v818_v34 }
 0x10b   : > { %1954 = vmatpush2.bf16.msra.mxu1 %v8433_v39  ;;  %v9538_v39 = vcombine.low %v9407_v46, %v9430_v53  ;;  %v9550_v46 = vcombine.low %v819_v9, %v820_v13  ;;  %v8458_v53 = vld [vmem:[#allocation7 + $0x188] sm:$0xff]  }
 0x10c   : > { %1345 = vmatmul.mubr.bf16.gmra.mxu0 %v9501_v6  ;;  %2566 = vmatprep.subr.bf16.mxu1 %v8764_v59 }
 0x10d   : > { %1352 = vmatprep.mubr.bf16.mxu0 %v9504_v15  ;;  %12451 = vst [vmem:[#allocation30_spill] sm:$0xff] %v9538_v39 }
 0x10e   : > { %1956 = vmatmul.mubr.bf16.vlgmr.msra.gmra.mxu1 %v9331_v4 }
 0x10f   : > { %2567 = vmatpush1.bf16.msra.mxu1 %v8436_v31  ;;  %1963 = vmatprep.mubr.bf16.mxu1 %v9358_v23  ;;  %v8451_v31 = vld [vmem:[#allocation7 + $0x198] sm:$0xff]  }
 0x110   : > { %2568 = vmatprep.subr.bf16.mxu1 %v8764_v59 }
 0x113   : > { %2569 = vmatpush1.bf16.msra.mxu1 %v8441_v42  ;;  %v8454_v42 = vld [vmem:[#allocation7 + $0x190] sm:$0xff]  }
 0x114   : > { %1353 = vmatmul.mubr.bf16.gmra.mxu0 %v9515_v20  ;;  %2570 = vmatprep.subr.bf16.mxu1 %v8764_v59 }
 0x115   : > { %1360 = vmatprep.mubr.bf16.mxu0 %v9518_v51 }
 0x116   : > { %1964 = vmatmul.mubr.bf16.gmra.mxu1 %v9404_v45 }
 0x117   : > { %1971 = vmatprep.mubr.bf16.mxu1 %v9410_v48  ;;  %2571 = vmatpush1.bf16.msra.mxu1 %v8444_v12  ;;  %v9547_v12 = vcombine.low %v814_v18, %v815_v21  ;;  %v9557_v18 = vcombine.low %v816_v35, %v817_v52  ;;  %v8464_v21 = vld [vmem:[#allocation7 + $0x1f8] sm:$0xff]   ;;  %v8467_v35 = vld [vmem:[#allocation7 + $0x1f0] sm:$0xff]   ;;  %v9568_v52 = vcombine.low %v818_v34, %v819_v9 }
 0x118   : > { %2572 = vmatprep.subr.bf16.mxu1 %v8764_v59  ;;  %v9577_v34 = vcombine.low %v820_v13, %v9354_v22  ;;  %v8474_v9 = vld [vmem:[#allocation7 + $0x1d8] sm:$0xff]   ;;  %v8476_v22 = vld [vmem:[#allocation7 + $0x1d0] sm:$0xff]  }
 0x11b   : > { %2573 = vmatpush1.bf16.msra.mxu1 %v8449_v17  ;;  %v8462_v17 = vld [vmem:[#allocation7 + $0x180] sm:$0xff]  }
 0x11c   : > { %1361 = vmatmul.mubr.bf16.gmra.mxu0 %v9531_v37  ;;  %2574 = vmatprep.subr.bf16.mxu1 %v8764_v59 }
 0x11d   : > { %1368 = vmatprep.mubr.bf16.mxu0 %v9534_v44 }
 0x11e   : > { %1972 = vmatmul.mubr.bf16.gmra.mxu1 %v9449_v3 }
 0x11f   : > { %1979 = vmatprep.mubr.bf16.mxu1 %v9452_v28  ;;  %2575 = vmatpush1.bf16.msra.mxu1 %v8451_v31  ;;  %v9560_v31 = vld [vmem:[#allocation7 + $0x178] sm:$0xff]  }
 0x120   : > { %2576 = vmatprep.subr.bf16.mxu1 %v8764_v59  ;;  %7982 = vmatprep.subr.bf16.mxu0 %v9560_v31 }
 0x123   : > { %2577 = vmatpush1.bf16.msra.mxu1 %v8454_v42  ;;  %v8469_v42 = vld [vmem:[#allocation7 + $0x1e8] sm:$0xff]  }
 0x124   : > { %1369 = vmatmul.mubr.bf16.gmra.mxu0 %v9547_v12  ;;  %2578 = vmatprep.subr.bf16.mxu1 %v8764_v59 }
 0x125   : > { %1376 = vmatprep.mubr.bf16.mxu0 %v9550_v46 }
 0x126   : > { %1980 = vmatmul.mubr.bf16.gmra.mxu1 %v9477_v8 }
 0x127   : > { %1987 = vmatprep.mubr.bf16.mxu1 %v9480_v30  ;;  %2579 = vmatpush1.bf16.msra.mxu1 %v8458_v53  ;;  %v8472_v53 = vld [vmem:[#allocation7 + $0x1e0] sm:$0xff]  }
 0x128   : > { %2580 = vmatprep.subr.bf16.mxu1 %v8764_v59 }
 0x12b   : > { %2581 = vmatpush1.bf16.msra.mxu1 %v8462_v17  ;;  %v833_v17 = vld [vmem:[%s9228_s18 + $0xe4] sm:$0xf] }
 0x12c   : > { %1377 = vmatmul.mubr.bf16.gmra.mxu0 %v9557_v18  ;;  %2582 = vmatprep.subr.bf16.mxu1 %v8764_v59 }
 0x12d   : > { %1384 = vmatprep.mubr.bf16.mxu0 %v9362_v25 }
 0x12e   : > { %1988 = vmatmul.mubr.bf16.gmra.mxu1 %v9501_v6 }
 0x12f   : > { %1995 = vmatprep.mubr.bf16.mxu1 %v9504_v15  ;;  %2583 = vmatpush2.bf16.msra.mxu1 %v8464_v21  ;;  %v834_v21 = vld [vmem:[%s9228_s18 + $0xe8] sm:$0xf] }
 0x130   : > { %2584 = vmatprep.subr.bf16.mxu1 %v8764_v59  ;;  %v9588_v13 = vcombine.low %v833_v17, %v834_v21 }
 0x132   : > { %12452 = vst [vmem:[#allocation31_spill] sm:$0xff] %v9588_v13 }
 0x133   : > { %2585 = vmatpush2.bf16.msra.mxu1 %v8467_v35  ;;  %v8480_v35 = vld [vmem:[#allocation7 + $0x1c8] sm:$0xff]  }
 0x134   : > { %1385 = vmatmul.mubr.bf16.gmra.mxu0 %v9568_v52  ;;  %2586 = vmatprep.subr.bf16.mxu1 %v8764_v59 }
 0x135   : > { %1392 = vmatprep.mubr.bf16.mxu0 %v9241_v14 }
 0x136   : > { %1996 = vmatmul.mubr.bf16.gmra.mxu1 %v9515_v20 }
 0x137   : > { %2003 = vmatprep.mubr.bf16.mxu1 %v9518_v51  ;;  %2587 = vmatpush2.bf16.msra.mxu1 %v8469_v42  ;;  %v8484_v42 = vld [vmem:[#allocation7 + $0x1c0] sm:$0xff]  }
 0x138   : > { %2588 = vmatprep.subr.bf16.mxu1 %v8764_v59 }
 0x13b   : > { %2589 = vmatpush2.bf16.msra.mxu1 %v8472_v53  ;;  %v9596_v53 = vld [vmem:[%s9228_s18 + $0xd8] sm:$0xff]  }
 0x13c   : > { %1393 = vmatmul.mubr.bf16.gmra.mxu0 %v9577_v34  ;;  %2590 = vmatprep.subr.bf16.mxu1 %v8764_v59  ;;  %12453 = vst [vmem:[#allocation32_spill] sm:$0xff] %v9596_v53 }
 0x13d   : > { %1400 = vmatprep.mubr.bf16.mxu0 %v9251_v19 }
 0x13e   : > { %2004 = vmatmul.mubr.bf16.gmra.mxu1 %v9531_v37 }
 0x13f   : > { %2011 = vmatprep.mubr.bf16.mxu1 %v9534_v44  ;;  %2591 = vmatpush2.bf16.msra.mxu1 %v8474_v9  ;;  %v832_v9 = vld [vmem:[%s9228_s18 + $0xe0] sm:$0xf] }
 0x140   : > { %2592 = vmatprep.subr.bf16.mxu1 %v8764_v59 }
 0x143   : > { %2593 = vmatpush2.bf16.msra.mxu1 %v8476_v22  ;;  %v9604_v22 = vcombine.low %v832_v9, %v833_v17 }
 0x144   : > { %1401 = vmatmul.mubr.bf16.gmra.mxu0 %v9238_v11  ;;  %2594 = vmatprep.subr.bf16.mxu1 %v8764_v59 }
 0x145   : > { %1408 = vmatprep.mubr.bf16.mxu0 %v9588_v13  ;;  %12454 = vst [vmem:[#allocation33_spill] sm:$0xff] %v9604_v22 }
 0x146   : > { %2012 = vmatmul.mubr.bf16.gmra.mxu1 %v9547_v12 }
 0x147   : > { %2019 = vmatprep.mubr.bf16.mxu1 %v9550_v46  ;;  %2595 = vmatpush2.bf16.msra.mxu1 %v8480_v35 }
 0x148   : > { %2596 = vmatprep.subr.bf16.mxu1 %v8764_v59  ;;  %v9611_v59 = vcombine.low %v834_v21, %v9385_v40 }
 0x14a   : > { %12455 = vst [vmem:[#allocation34_spill] sm:$0xff] %v9611_v59 }
 0x14b   : > { %2597 = vmatpush2.bf16.msra.mxu1 %v8484_v42 }
 0x14c   : > { %1409 = vmatmul.mubr.bf16.gmra.mxu0 %v9596_v53 }
 0x14d   : > { %1416 = vmatprep.mubr.bf16.mxu0 %v9394_v60 }
 0x14e   : > { %2020 = vmatmul.mubr.bf16.gmra.mxu1 %v9557_v18 }
 0x14f   : > { %2027 = vmatprep.mubr.bf16.mxu1 %v9362_v25 }
 0x154   : > { %1417 = vmatmul.mubr.bf16.gmra.mxu0 %v9604_v22 }
 0x155   : > { %1424 = vmatprep.mubr.bf16.mxu0 %v9296_v41 }
 0x156   : > { %2028 = vmatmul.mubr.bf16.gmra.mxu1 %v9568_v52 }
 0x157   : > { %2035 = vmatprep.mubr.bf16.mxu1 %v9241_v14 }
 0x15c   : > { %1425 = vmatmul.mubr.bf16.gmra.mxu0 %v9611_v59 }
 0x15d   : > { %1432 = vmatprep.mubr.bf16.mxu0 %v9313_v54 }
 0x15e   : > { %2036 = vmatmul.mubr.bf16.gmra.mxu1 %v9577_v34 }
 0x15f   : > { %2043 = vmatprep.mubr.bf16.mxu1 %v9251_v19 }
 0x164   : > { %1433 = vmatmul.mubr.bf16.gmra.mxu0 %v9290_v38 }
 0x165   : > { %1440 = vmatprep.mubr.bf16.mxu0 %v9340_v16 }
 0x166   : > { %2044 = vmatmul.mubr.bf16.gmra.mxu1 %v9238_v11 }
 0x167   : > { %2051 = vmatprep.mubr.bf16.mxu1 %v9588_v13  ;;  %v8479_v13 = vld [vmem:[#allocation7 + $0x168] sm:$0xff]  }
 0x16c   : > { %1441 = vmatmul.mubr.bf16.gmra.mxu0 %v9304_v47 }
 0x16d   : > { %1448 = vmatprep.mubr.bf16.mxu0 %v9396_v43 }
 0x16e   : > { %2052 = vmatmul.mubr.bf16.gmra.mxu1 %v9596_v53 }
 0x16f   : > { %2059 = vmatprep.mubr.bf16.mxu1 %v9394_v60 }
 0x174   : > { %1449 = vmatmul.mubr.bf16.gmra.mxu0 %v9306_v49 }
 0x175   : > { %1456 = vmatprep.mubr.bf16.mxu0 %v9443_v62 }
 0x176   : > { %2060 = vmatmul.mubr.bf16.gmra.mxu1 %v9604_v22 }
 0x177   : > { %2067 = vmatprep.mubr.bf16.mxu1 %v9296_v41 }
 0x17c   : > { %1457 = vmatmul.mubr.bf16.gmra.mxu0 %v9322_v58 }
 0x17d   : > { %1464 = vmatprep.mubr.bf16.mxu0 %v9473_v63 }
 0x17e   : > { %2068 = vmatmul.mubr.bf16.gmra.mxu1 %v9611_v59 }
 0x17f   : > { %2075 = vmatprep.mubr.bf16.mxu1 %v9313_v54 }
 0x184   : > { %1465 = vmatmul.mubr.bf16.gmra.mxu0 %v9325_v61 }
 0x185   : > { %1472 = vmatprep.mubr.bf16.mxu0 %v9496_v10 }
 0x186   : > { %2076 = vmatmul.mubr.bf16.gmra.mxu1 %v9290_v38 }
 0x187   : > { %2083 = vmatprep.mubr.bf16.mxu1 %v9340_v16 }
 0x18c   : > { %1473 = vmatmul.mubr.bf16.gmra.mxu0 %v9366_v27 }
 0x18d   : > { %1480 = vmatprep.mubr.bf16.mxu0 %v9522_v0  ;;  %v9639_v40 = vpop.f32.mrf.mxu1 }
 0x18e   : > { %2084 = vmatmul.mubr.bf16.gmra.mxu1 %v9304_v47 }
 0x18f   : > { %2091 = vmatprep.mubr.bf16.mxu1 %v9396_v43  ;;  %v9643_v17 = vpop.f32.mrf.mxu1 }
 0x191   : > { %v9645_v21 = vpop.f32.mrf.mxu1 }
 0x193   : > { %v9647_v35 = vpop.f32.mrf.mxu1 }
 0x194   : > { %1481 = vmatmul.mubr.bf16.gmra.mxu0 %v9370_v29 }
 0x195   : > { %1488 = vmatprep.mubr.bf16.mxu0 %v9538_v39  ;;  %v9651_v42 = vpop.f32.mrf.mxu1 }
 0x196   : > { %2092 = vmatmul.mubr.bf16.gmra.mxu1 %v9306_v49 }
 0x197   : > { %2099 = vmatprep.mubr.bf16.mxu1 %v9443_v62  ;;  %v9655_v9 = vpop.f32.mrf.mxu1 }
 0x199   : > { %v9661_v7 = vpop.f32.mrf.mxu1 }
 0x19b   : > { %v9663_v43 = vpop.f32.mrf.mxu1 }
 0x19c   : > { %1489 = vmatmul.mubr.bf16.gmra.mxu0 %v9415_v50 }
 0x19d   : > { %1496 = vmatprep.mubr.bf16.mxu0 %v9659_v5  ;;  %v9667_v16 = vpop.f32.mrf.mxu1 }
 0x19e   : > { %2100 = vmatmul.mubr.bf16.gmra.mxu1 %v9322_v58 }
 0x19f   : > { %2107 = vmatprep.mubr.bf16.mxu1 %v9473_v63  ;;  %v9671_v62 = vpop.f32.mrf.mxu1  ;;  %v8478_v63 = vld [vmem:[#allocation7 + $0x170] sm:$0xff]  }
 0x1a1   : > { %v9673_v54 = vpop.f32.mrf.mxu1 }
 0x1a3   : > { %v9675_v55 = vpop.f32.mrf.mxu1 }
 0x1a4   : > { %1497 = vmatmul.mubr.bf16.gmra.mxu0 %v9420_v33 }
 0x1a5   : > { %7934 = vmatprep.mubr.bf16.mxu0 %v9477_v8  ;;  %v9679_v57 = vpop.f32.mrf.mxu1 }
 0x1a6   : > { %12457 = vst [vmem:[#allocation36_spill] sm:$0xff] %v9679_v57  ;;  %2108 = vmatmul.mubr.bf16.gmra.mxu1 %v9325_v61 }
 0x1a7   : > { %2115 = vmatprep.mubr.bf16.mxu1 %v9496_v10  ;;  %v9683_v59 = vpop.f32.mrf.mxu1 }
 0x1a9   : > { %v9685_v41 = vpop.f32.mrf.mxu1 }
 0x1aa   : > { %12458 = vst [vmem:[#allocation37_spill] sm:$0xff] %v9685_v41 }
 0x1ab   : > { %v9687_v22 = vpop.f32.mrf.mxu1 }
 0x1ac   : > { %12459 = vst [vmem:[#allocation38_spill] sm:$0xff] %v9687_v22  ;;  %v9689_v60 = vpop.f32.mrf.mxu0  ;;  %7935 = vmatmul.mubr.bf16.vlgmr.msra.gmra.mxu0 %v9501_v6 }
 0x1ad   : > { %12460 = vst [vmem:[#allocation39_spill] sm:$0xff] %v9689_v60  ;;  %7983 = vmatpush3.bf16.msra.mxu0 %v9560_v31  ;;  %7938 = vmatprep.mubr.bf16.mxu0 %v9515_v20  ;;  %v8481_v31 = vld [vmem:[#allocation7 + $0x160] sm:$0xff]  }
 0x1ae   : > { %v9694_v53 = vpop.f32.mrf.mxu1  ;;  %2116 = vmatmul.mubr.bf16.gmra.mxu1 %v9366_v27  ;;  %v1316_v10 = vpop.f32.mrf.mxu0  ;;  %7984 = vmatprep.subr.bf16.mxu0 %v8478_v63 }
 0x1af   : > { %12461 = vst [vmem:[#allocation40_spill] sm:$0xff] %v9694_v53  ;;  %2123 = vmatprep.mubr.bf16.mxu1 %v9522_v0 }
 0x1b0   : > { %v9698_v41 = vpop.f32.mrf.mxu1  ;;  %v9700_v57 = vpop.f32.mrf.mxu0 }
 0x1b1   : > { %12462 = vst [vmem:[#allocation41_spill] sm:$0xff] %v9700_v57  ;;  %7985 = vmatpush3.bf16.msra.mxu0 %v8478_v63  ;;  %v8482_v63 = vld [vmem:[#allocation7 + $0x158] sm:$0xff]  }
 0x1b2   : > { %v9702_v60 = vpop.f32.mrf.mxu1  ;;  %v1319_v1 = vpop.f32.mrf.mxu0  ;;  %7986 = vmatprep.subr.bf16.mxu0 %v8479_v13 }
 0x1b3   : > { %12463 = vst [vmem:[#allocation42_spill] sm:$0xff] %v9702_v60 }
 0x1b4   : > { %v9704_v22 = vpop.f32.mrf.mxu1  ;;  %v9706_v53 = vpop.f32.mrf.mxu0  ;;  %7939 = vmatmul.mubr.bf16.gmra.mxu0 %v9531_v37 }
 0x1b5   : > { %12464 = vst [vmem:[#allocation43_spill] sm:$0xff] %v9704_v22  ;;  %12465 = vst [vmem:[#allocation44_spill] sm:$0xff] %v9706_v53  ;;  %7987 = vmatpush3.bf16.msra.mxu0 %v8479_v13  ;;  %7942 = vmatprep.mubr.bf16.mxu0 %v9547_v12  ;;  %v8483_v13 = vld [vmem:[#allocation7 + $0x150] sm:$0xff]  }
 0x1b6   : > { %v9710_v10 = vpop.f32.mrf.mxu1  ;;  %2124 = vmatmul.mubr.bf16.gmra.mxu1 %v9370_v29  ;;  %v1324_v57 = vpop.f32.mrf.mxu0  ;;  %7988 = vmatprep.subr.bf16.mxu0 %v8481_v31 }
 0x1b7   : > { %12466 = vst [vmem:[#allocation45_spill] sm:$0xff] %v9710_v10  ;;  %2131 = vmatprep.mubr.bf16.mxu1 %v9538_v39 }
 0x1b8   : > { %v9714_v1 = vpop.f32.mrf.mxu1  ;;  %v9716_v0 = vpop.f32.mrf.mxu0 }
 0x1b9   : > { %12467 = vst [vmem:[#allocation46_spill] sm:$0xff] %v9716_v0  ;;  %7989 = vmatpush3.bf16.msra.mxu0 %v8481_v31  ;;  %v8485_v31 = vld [vmem:[#allocation7 + $0x148] sm:$0xff]  }
 0x1ba   : > { %v9718_v53 = vpop.f32.mrf.mxu1  ;;  %v1327_v60 = vpop.f32.mrf.mxu0  ;;  %7990 = vmatprep.subr.bf16.mxu0 %v8482_v63 }
 0x1bb   : > { %12468 = vst [vmem:[#allocation47_spill] sm:$0xff] %v9718_v53 }
 0x1bc   : > { %v9720_v22 = vpop.f32.mrf.mxu1  ;;  %v9722_v10 = vpop.f32.mrf.mxu0  ;;  %7943 = vmatmul.mubr.bf16.gmra.mxu0 %v9557_v18 }
 0x1bd   : > { %12469 = vst [vmem:[#allocation48_spill] sm:$0xff] %v9720_v22  ;;  %12470 = vst [vmem:[#allocation49_spill] sm:$0xff] %v9722_v10  ;;  %7991 = vmatpush3.bf16.msra.mxu0 %v8482_v63  ;;  %7946 = vmatprep.mubr.bf16.mxu0 %v9568_v52  ;;  %v8486_v63 = vld [vmem:[#allocation7 + $0x140] sm:$0xff]  }
 0x1be   : > { %v9726_v57 = vpop.f32.mrf.mxu1  ;;  %2132 = vmatmul.mubr.bf16.gmra.mxu1 %v9415_v50  ;;  %v1332_v39 = vpop.f32.mrf.mxu0  ;;  %7992 = vmatprep.subr.bf16.mxu0 %v8483_v13 }
 0x1bf   : > { %12471 = vst [vmem:[#allocation50_spill] sm:$0xff] %v9726_v57  ;;  %2139 = vmatprep.mubr.bf16.mxu1 %v9659_v5 }
 0x1c0   : > { %v9730_v60 = vpop.f32.mrf.mxu1  ;;  %v9732_v0 = vpop.f32.mrf.mxu0 }
 0x1c1   : > { %12472 = vst [vmem:[#allocation51_spill] sm:$0xff] %v9732_v0  ;;  %7993 = vmatpush3.bf16.msra.mxu0 %v8483_v13  ;;  %v8487_v13 = vld [vmem:[#allocation7 + $0x238] sm:$0xff]  }
 0x1c2   : > { %v9734_v10 = vpop.f32.mrf.mxu1  ;;  %v1335_v53 = vpop.f32.mrf.mxu0  ;;  %7994 = vmatprep.subr.bf16.mxu0 %v8485_v31 }
 0x1c3   : > { %12473 = vst [vmem:[#allocation52_spill] sm:$0xff] %v9734_v10 }
 0x1c4   : > { %v9736_v22 = vpop.f32.mrf.mxu1  ;;  %v9738_v57 = vpop.f32.mrf.mxu0  ;;  %7947 = vmatmul.mubr.bf16.gmra.mxu0 %v9577_v34 }
 0x1c5   : > { %12474 = vst [vmem:[#allocation53_spill] sm:$0xff] %v9736_v22  ;;  %12475 = vst [vmem:[#allocation54_spill] sm:$0xff] %v9738_v57  ;;  %7995 = vmatpush3.bf16.msra.mxu0 %v8485_v31  ;;  %7998 = vmatprep.mubr.bf16.mxu0 %v9477_v8  ;;  %v8488_v31 = vld [vmem:[#allocation7 + $0x230] sm:$0xff]  }
 0x1c6   : > { %v9742_v39 = vpop.f32.mrf.mxu1  ;;  %2140 = vmatmul.mubr.bf16.gmra.mxu1 %v9420_v33  ;;  %v1340_v5 = vpop.f32.mrf.mxu0  ;;  %7996 = vmatprep.subr.bf16.mxu0 %v8486_v63 }
 0x1c7   : > { %12476 = vst [vmem:[#allocation55_spill] sm:$0xff] %v9742_v39  ;;  %2598 = vmatprep.mubr.bf16.mxu1 %v9287_v36 }
 0x1c8   : > { %v9746_v53 = vpop.f32.mrf.mxu1  ;;  %v9748_v0 = vpop.f32.mrf.mxu0 }
 0x1c9   : > { %12477 = vst [vmem:[#allocation56_spill] sm:$0xff] %v9746_v53  ;;  %12478 = vst [vmem:[#allocation57_spill] sm:$0xff] %v9748_v0  ;;  %7997 = vmatpush3.bf16.msra.mxu0 %v8486_v63  ;;  %v8489_v63 = vld [vmem:[#allocation7 + $0x228] sm:$0xff]  }
 0x1ca   : > { %v9750_v57 = vpop.f32.mrf.mxu1  ;;  %v1343_v10 = vpop.f32.mrf.mxu0  ;;  %8046 = vmatprep.subr.bf16.mxu0 %v8487_v13 }
 0x1cb   : > { %12479 = vst [vmem:[#allocation58_spill] sm:$0xff] %v9750_v57 }
 0x1cc   : > { %v9752_v22 = vpop.f32.mrf.mxu1  ;;  %v9754_v39 = vpop.f32.mrf.mxu0  ;;  %7999 = vmatmul.mubr.bf16.vlgmr.msra.gmra.mxu0 %v9501_v6 }
 0x1cd   : > { %12480 = vst [vmem:[#allocation59_spill] sm:$0xff] %v9752_v22  ;;  %12481 = vst [vmem:[#allocation60_spill] sm:$0xff] %v9754_v39  ;;  %8047 = vmatpush3.bf16.msra.mxu0 %v8487_v13  ;;  %8002 = vmatprep.mubr.bf16.mxu0 %v9515_v20  ;;  %v8490_v13 = vld [vmem:[#allocation7 + $0x220] sm:$0xff]  }
 0x1ce   : > { %v9758_v5 = vpop.f32.mrf.mxu1  ;;  %2599 = vmatmul.mubr.bf16.vlgmr.msra.gmra.mxu1 %v9331_v4  ;;  %v1348_v36 = vpop.f32.mrf.mxu0  ;;  %8048 = vmatprep.subr.bf16.mxu0 %v8488_v31 }
 0x1cf   : > { %12482 = vst [vmem:[#allocation61_spill] sm:$0xff] %v9758_v5  ;;  %2606 = vmatprep.mubr.bf16.mxu1 %v9358_v23 }
 0x1d0   : > { %v1959_v10 = vpop.f32.mrf.mxu1  ;;  %v9762_v0 = vpop.f32.mrf.mxu0 }
 0x1d1   : > { %8049 = vmatpush3.bf16.msra.mxu0 %v8488_v31  ;;  %v8491_v31 = vld [vmem:[#allocation7 + $0x218] sm:$0xff]  }
 0x1d2   : > { %v9764_v57 = vpop.f32.mrf.mxu1  ;;  %v1351_v39 = vpop.f32.mrf.mxu0  ;;  %8050 = vmatprep.subr.bf16.mxu0 %v8489_v63 }
 0x1d3   : > { %12483 = vst [vmem:[#allocation62_spill] sm:$0xff] %v9764_v57  ;;  %v8492_v57 = vld [vmem:[#allocation7 + $0x210] sm:$0xff]  }
 0x1d4   : > { %v1962_v22 = vpop.f32.mrf.mxu1  ;;  %v9766_v53 = vpop.f32.mrf.mxu0  ;;  %8003 = vmatmul.mubr.bf16.gmra.mxu0 %v9531_v37 }
 0x1d5   : > { %8006 = vmatprep.mubr.bf16.mxu0 %v9547_v12  ;;  %8051 = vmatpush3.bf16.msra.mxu0 %v8489_v63 }
 0x1d6   : > { %v9770_v4 = vpop.f32.mrf.mxu1  ;;  %2607 = vmatmul.mubr.bf16.gmra.mxu1 %v9404_v45  ;;  %v1356_v23 = vpop.f32.mrf.mxu0  ;;  %8052 = vmatprep.subr.bf16.mxu0 %v8490_v13 }
 0x1d7   : > { %12484 = vst [vmem:[#allocation63_spill] sm:$0xff] %v9770_v4  ;;  %2614 = vmatprep.mubr.bf16.mxu1 %v9410_v48 }
 0x1d8   : > { %v1967_v39 = vpop.f32.mrf.mxu1  ;;  %v9774_v36 = vpop.f32.mrf.mxu0 }
 0x1d9   : > { %8053 = vmatpush3.bf16.msra.mxu0 %v8490_v13  ;;  %v8493_v13 = vld [vmem:[#allocation7 + $0x208] sm:$0xff]  }
 0x1da   : > { %v9776_v22 = vpop.f32.mrf.mxu1  ;;  %v1359_v10 = vpop.f32.mrf.mxu0  ;;  %8054 = vmatprep.subr.bf16.mxu0 %v8491_v31 }
 0x1db   : > { %12485 = vst [vmem:[#allocation64_spill] sm:$0xff] %v9776_v22  ;;  %v8494_v22 = vld [vmem:[#allocation7 + $0x200] sm:$0xff]  }
 0x1dc   : > { %v1970_v5 = vpop.f32.mrf.mxu1  ;;  %v9778_v63 = vpop.f32.mrf.mxu0  ;;  %8007 = vmatmul.mubr.bf16.gmra.mxu0 %v9557_v18 }
 0x1dd   : > { %8010 = vmatprep.mubr.bf16.mxu0 %v9568_v52  ;;  %8055 = vmatpush3.bf16.msra.mxu0 %v8491_v31 }
 0x1de   : > { %v9782_v45 = vpop.f32.mrf.mxu1  ;;  %2615 = vmatmul.mubr.bf16.gmra.mxu1 %v9449_v3  ;;  %v1364_v48 = vpop.f32.mrf.mxu0  ;;  %8056 = vmatprep.subr.bf16.mxu0 %v8492_v57 }
 0x1df   : > { %12486 = vst [vmem:[#allocation65_spill] sm:$0xff] %v9782_v45  ;;  %2622 = vmatprep.mubr.bf16.mxu1 %v9452_v28 }
 0x1e0   : > { %v1975_v23 = vpop.f32.mrf.mxu1  ;;  %v9786_v39 = vpop.f32.mrf.mxu0 }
 0x1e1   : > { %12487 = vst [vmem:[#allocation66_spill] sm:$0xff] %v9786_v39  ;;  %8057 = vmatpush3.bf16.msra.mxu0 %v8492_v57 }
 0x1e2   : > { %v9788_v5 = vpop.f32.mrf.mxu1  ;;  %v1367_v10 = vpop.f32.mrf.mxu0  ;;  %8058 = vmatprep.subr.bf16.mxu0 %v8493_v13 }
 0x1e3   : > { %12488 = vst [vmem:[#allocation67_spill] sm:$0xff] %v9788_v5 }
 0x1e4   : > { %v1978_v4 = vpop.f32.mrf.mxu1  ;;  %v9790_v31 = vpop.f32.mrf.mxu0  ;;  %8011 = vmatmul.mubr.bf16.gmra.mxu0 %v9577_v34 }
 0x1e5   : > { %8014 = vmatprep.mubr.bf16.mxu0 %v9238_v11  ;;  %8059 = vmatpush3.bf16.msra.mxu0 %v8493_v13 }
 0x1e6   : > { %v9794_v3 = vpop.f32.mrf.mxu1  ;;  %2623 = vmatmul.mubr.bf16.gmra.mxu1 %v9477_v8  ;;  %v1372_v28 = vpop.f32.mrf.mxu0  ;;  %8060 = vmatprep.subr.bf16.mxu0 %v8494_v22 }
 0x1e7   : > { %12489 = vst [vmem:[#allocation68_spill] sm:$0xff] %v9794_v3  ;;  %2630 = vmatprep.mubr.bf16.mxu1 %v9480_v30 }
 0x1e8   : > { %v1983_v57 = vpop.f32.mrf.mxu1  ;;  %v9798_v48 = vpop.f32.mrf.mxu0 }
 0x1e9   : > { %8061 = vmatpush3.bf16.msra.mxu0 %v8494_v22 }
 0x1ea   : > { %v9800_v4 = vpop.f32.mrf.mxu1  ;;  %v1375_v23 = vpop.f32.mrf.mxu0 }
 0x1eb   : > { %12490 = vst [vmem:[#allocation69_spill] sm:$0xff] %v9800_v4 }
 0x1ec   : > { %v1986_v10 = vpop.f32.mrf.mxu1  ;;  %v1378_v5 = vpop.f32.mrf.mxu0  ;;  %8015 = vmatmul.mubr.bf16.gmra.mxu0 %v9263_v24 }
 0x1ed   : > { %8018 = vmatprep.mubr.bf16.mxu0 %v9266_v26  ;;  %v9808_v30 = vadd.f32 %v9643_v17, %v1378_v5 }
 0x1ee   : > { %v9804_v13 = vpop.f32.mrf.mxu1  ;;  %2631 = vmatmul.mubr.bf16.gmra.mxu1 %v9501_v6  ;;  %v1380_v28 = vpop.f32.mrf.mxu0 }
 0x1ef   : > { %12491 = vst [vmem:[#allocation70_spill] sm:$0xff] %v9804_v13  ;;  %2638 = vmatprep.mubr.bf16.mxu1 %v9504_v15  ;;  %v12407_v45 = vrot.slane %v9808_v30, 7  ;;  %v9817_v28 = vld [vmem:[%s9228_s18 + $0x70] sm:$0xff]  }
 0x1f0   : > { %v1991_v22 = vpop.f32.mrf.mxu1  ;;  %v1381_v57 = vpop.f32.mrf.mxu0 }
 0x1f1   : > { %v1607_v23 = vadd.f32 %v9647_v35, %v1381_v57 }
 0x1f2   : > { %v9812_v10 = vpop.f32.mrf.mxu1  ;;  %v1383_v4 = vpop.f32.mrf.mxu0 }
 0x1f3   : > { %12492 = vst [vmem:[#allocation71_spill] sm:$0xff] %v9812_v10  ;;  %v3033_v13 = vrot.slane %v1607_v23, 7 }
 0x1f4   : > { %v1994_v3 = vpop.f32.mrf.mxu1  ;;  %v1386_v39 = vpop.f32.mrf.mxu0  ;;  %8019 = vmatmul.mubr.bf16.gmra.mxu0 %v9817_v28 }
 0x1f5   : > { %v1612_v15 = vadd.f32 %v9639_v40, %v1386_v39  ;;  %8022 = vmatprep.mubr.bf16.mxu0 %v9290_v38  ;;  %v9826_v17 = vsel %vm3064_vm10, %v12407_v45, %v3033_v13 }
 0x1f6   : > { %12493 = vst [vmem:[#allocation72_spill] sm:$0xff] %v9826_v17  ;;  %v9828_v35 = vpop.f32.mrf.mxu1  ;;  %2639 = vmatmul.mubr.bf16.gmra.mxu1 %v9515_v20  ;;  %v1388_v5 = vpop.f32.mrf.mxu0 }
 0x1f7   : > { %v3034_v3 = vrot.slane %v1612_v15, 7  ;;  %2646 = vmatprep.mubr.bf16.mxu1 %v9518_v51 }
 0x1f8   : > { %v1999_v4 = vpop.f32.mrf.mxu1  ;;  %v1389_v22 = vpop.f32.mrf.mxu0 }
 0x1f9   : > { %v1615_v40 = vadd.f32 %v9645_v21, %v1389_v22  ;;  %v9835_v39 = vsel %vm3064_vm10, %v3033_v13, %v3034_v3 }
 0x1fa   : > { %v9837_v57 = vpop.f32.mrf.mxu1  ;;  %v1391_v23 = vpop.f32.mrf.mxu0 }
 0x1fb   : > { %v3035_v45 = vrot.slane %v1615_v40, 7 }
 0x1fc   : > { %v2002_v17 = vpop.f32.mrf.mxu1  ;;  %v1394_v10 = vpop.f32.mrf.mxu0  ;;  %8023 = vmatmul.mubr.bf16.gmra.mxu0 %v9304_v47 }
 0x1fd   : > { %v1620_v15 = vadd.f32 %v9655_v9, %v1394_v10  ;;  %8026 = vmatprep.mubr.bf16.mxu0 %v9306_v49  ;;  %v9844_v51 = vsel %vm3064_vm10, %v3034_v3, %v3035_v45 }
 0x1fe   : > { %12494 = vst [vmem:[#allocation73_spill] sm:$0xff] %v9844_v51  ;;  %v9846_v21 = vpop.f32.mrf.mxu1  ;;  %2647 = vmatmul.mubr.bf16.gmra.mxu1 %v9531_v37  ;;  %v1396_v13 = vpop.f32.mrf.mxu0 }
 0x1ff   : > { %v3036_v5 = vrot.slane %v1620_v15, 7  ;;  %2654 = vmatprep.mubr.bf16.mxu1 %v9534_v44 }
 0x200   : > { %v2007_v17 = vpop.f32.mrf.mxu1  ;;  %v1397_v4 = vpop.f32.mrf.mxu0 }
 0x201   : > { %v1623_v22 = vadd.f32 %v9663_v43, %v1397_v4  ;;  %v9853_v9 = vsel %vm3064_vm10, %v3035_v45, %v3036_v5 }
 0x202   : > { %v9855_v10 = vpop.f32.mrf.mxu1  ;;  %v1399_v3 = vpop.f32.mrf.mxu0 }
 0x203   : > { %v3037_v40 = vrot.slane %v1623_v22, 7 }
 0x204   : > { %v2010_v23 = vpop.f32.mrf.mxu1  ;;  %v1402_v51 = vpop.f32.mrf.mxu0  ;;  %8027 = vmatmul.mubr.bf16.gmra.mxu0 %v9322_v58 }
 0x205   : > { %v1628_v15 = vadd.f32 %v9651_v42, %v1402_v51  ;;  %8030 = vmatprep.mubr.bf16.mxu0 %v9325_v61  ;;  %v9862_v44 = vsel %vm3064_vm10, %v3036_v5, %v3037_v40 }
 0x206   : > { %12495 = vst [vmem:[#allocation74_spill] sm:$0xff] %v9862_v44  ;;  %v9864_v43 = vpop.f32.mrf.mxu1  ;;  %2655 = vmatmul.mubr.bf16.gmra.mxu1 %v9547_v12  ;;  %v1404_v45 = vpop.f32.mrf.mxu0 }
 0x207   : > { %v3038_v13 = vrot.slane %v1628_v15, 7  ;;  %2662 = vmatprep.mubr.bf16.mxu1 %v9550_v46 }
 0x208   : > { %v2015_v17 = vpop.f32.mrf.mxu1  ;;  %v1405_v4 = vpop.f32.mrf.mxu0 }
 0x209   : > { %v1631_v22 = vadd.f32 %v9661_v7, %v1405_v4  ;;  %v9871_v42 = vsel %vm3064_vm10, %v3037_v40, %v3038_v13 }
 0x20a   : > { %v9873_v51 = vpop.f32.mrf.mxu1  ;;  %v1407_v5 = vpop.f32.mrf.mxu0 }
 0x20b   : > { %v3039_v3 = vrot.slane %v1631_v22, 7 }
 0x20c   : > { %v2018_v23 = vpop.f32.mrf.mxu1  ;;  %v1410_v44 = vpop.f32.mrf.mxu0  ;;  %8031 = vmatmul.mubr.bf16.gmra.mxu0 %v9366_v27 }
 0x20d   : > { %v1636_v15 = vadd.f32 %v9671_v62, %v1410_v44  ;;  %8034 = vmatprep.mubr.bf16.mxu0 %v9370_v29  ;;  %v9880_v46 = vsel %vm3064_vm10, %v3038_v13, %v3039_v3 }
 0x20e   : > { %12496 = vst [vmem:[#allocation75_spill] sm:$0xff] %v9880_v46  ;;  %v9882_v7 = vpop.f32.mrf.mxu1  ;;  %2663 = vmatmul.mubr.bf16.gmra.mxu1 %v9557_v18  ;;  %v1412_v40 = vpop.f32.mrf.mxu0 }
 0x20f   : > { %v3040_v45 = vrot.slane %v1636_v15, 7  ;;  %2670 = vmatprep.mubr.bf16.mxu1 %v9362_v25 }
 0x210   : > { %v2023_v17 = vpop.f32.mrf.mxu1  ;;  %v1413_v4 = vpop.f32.mrf.mxu0 }
 0x211   : > { %v1639_v22 = vadd.f32 %v9675_v55, %v1413_v4  ;;  %v9889_v62 = vsel %vm3064_vm10, %v3039_v3, %v3040_v45 }
 0x212   : > { %12497 = vst [vmem:[#allocation76_spill] sm:$0xff] %v9889_v62  ;;  %v9891_v44 = vpop.f32.mrf.mxu1  ;;  %v1415_v13 = vpop.f32.mrf.mxu0 }
 0x213   : > { %v3041_v5 = vrot.slane %v1639_v22, 7 }
 0x214   : > { %v2026_v23 = vpop.f32.mrf.mxu1  ;;  %v1418_v46 = vpop.f32.mrf.mxu0  ;;  %8035 = vmatmul.mubr.bf16.gmra.mxu0 %v9415_v50 }
 0x215   : > { %v1644_v15 = vadd.f32 %v9667_v16, %v1418_v46  ;;  %8038 = vmatprep.mubr.bf16.mxu0 %v9420_v33  ;;  %v9898_v25 = vsel %vm3064_vm10, %v3040_v45, %v3041_v5 }
 0x216   : > { %12498 = vst [vmem:[#allocation77_spill] sm:$0xff] %v9898_v25  ;;  %v9900_v55 = vpop.f32.mrf.mxu1  ;;  %2671 = vmatmul.mubr.bf16.gmra.mxu1 %v9568_v52  ;;  %v1420_v3 = vpop.f32.mrf.mxu0 }
 0x217   : > { %v3042_v40 = vrot.slane %v1644_v15, 7  ;;  %2678 = vmatprep.mubr.bf16.mxu1 %v9241_v14 }
 0x218   : > { %v2031_v17 = vpop.f32.mrf.mxu1  ;;  %v1421_v4 = vpop.f32.mrf.mxu0 }
 0x219   : > { %v1647_v22 = vadd.f32 %v9673_v54, %v1421_v4  ;;  %v9907_v16 = vsel %vm3064_vm10, %v3041_v5, %v3042_v40 }
 0x21a   : > { %12499 = vst [vmem:[#allocation78_spill] sm:$0xff] %v9907_v16  ;;  %v9909_v46 = vpop.f32.mrf.mxu1  ;;  %v1423_v45 = vpop.f32.mrf.mxu0  ;;  %v12503_v16 = vld [vmem:[#allocation27_spill] sm:$0xff] }
 0x21b   : > { %v3043_v13 = vrot.slane %v1647_v22, 7  ;;  %v12501_v22 = vld [vmem:[#allocation38_spill] sm:$0xff] }
 0x21c   : > { %v2034_v23 = vpop.f32.mrf.mxu1  ;;  %v1426_v25 = vpop.f32.mrf.mxu0  ;;  %8039 = vmatmul.mubr.bf16.gmra.mxu0 %v9457_v32 }
 0x21d   : > { %v1652_v15 = vadd.f32 %v9683_v59, %v1426_v25  ;;  %8042 = vmatprep.mubr.bf16.mxu0 %v9461_v56  ;;  %v9916_v14 = vsel %vm3064_vm10, %v3042_v40, %v3043_v13 }
 0x21e   : > { %12500 = vst [vmem:[#allocation79_spill] sm:$0xff] %v9916_v14  ;;  %v9918_v54 = vpop.f32.mrf.mxu1  ;;  %2679 = vmatmul.mubr.bf16.gmra.mxu1 %v9577_v34  ;;  %v1428_v5 = vpop.f32.mrf.mxu0 }
 0x21f   : > { %v3044_v3 = vrot.slane %v1652_v15, 7  ;;  %2686 = vmatprep.mubr.bf16.mxu1 %v9251_v19  ;;  %v12504_v5 = vld [vmem:[#allocation36_spill] sm:$0xff] }
 0x220   : > { %v2039_v17 = vpop.f32.mrf.mxu1  ;;  %v1429_v4 = vpop.f32.mrf.mxu0 }
 0x221   : > { %v1655_v45 = vadd.f32 %v12501_v22, %v1429_v4  ;;  %v9925_v59 = vsel %vm3064_vm10, %v3043_v13, %v3044_v3  ;;  %v12506_v22 = vld [vmem:[#allocation31_spill] sm:$0xff] }
 0x222   : > { %12502 = vst [vmem:[#allocation38_spill] sm:$0xff] %v9925_v59  ;;  %v9927_v25 = vpop.f32.mrf.mxu1  ;;  %v1431_v40 = vpop.f32.mrf.mxu0 }
 0x223   : > { %v3045_v23 = vrot.slane %v1655_v45, 7  ;;  %v12507_v40 = vld [vmem:[#allocation37_spill] sm:$0xff] }
 0x224   : > { %v2042_v14 = vpop.f32.mrf.mxu1  ;;  %v1434_v62 = vpop.f32.mrf.mxu0  ;;  %8043 = vmatmul.mubr.bf16.gmra.mxu0 %v12503_v16 }
 0x225   : > { %v1660_v15 = vadd.f32 %v12504_v5, %v1434_v62  ;;  %8062 = vmatprep.mubr.bf16.mxu0 %v9477_v8  ;;  %v9934_v19 = vsel %vm3064_vm10, %v3044_v3, %v3045_v23 }
 0x226   : > { %12505 = vst [vmem:[#allocation27_spill] sm:$0xff] %v9934_v19  ;;  %v9936_v17 = vpop.f32.mrf.mxu1  ;;  %2687 = vmatmul.mubr.bf16.gmra.mxu1 %v9238_v11  ;;  %v1436_v13 = vpop.f32.mrf.mxu0 }
 0x227   : > { %v3046_v4 = vrot.slane %v1660_v15, 7  ;;  %2694 = vmatprep.mubr.bf16.mxu1 %v12506_v22 }
 0x228   : > { %v2047_v14 = vpop.f32.mrf.mxu1  ;;  %v1437_v45 = vpop.f32.mrf.mxu0 }
 0x229   : > { %v1663_v16 = vadd.f32 %v12507_v40, %v1437_v45  ;;  %v9943_v62 = vsel %vm3064_vm10, %v3045_v23, %v3046_v4  ;;  %v12510_v23 = vld [vmem:[#allocation32_spill] sm:$0xff]  ;;  %v12511_v40 = vld [vmem:[#allocation23_spill] sm:$0xff] }
 0x22a   : > { %12508 = vst [vmem:[#allocation36_spill] sm:$0xff] %v9943_v62  ;;  %v9945_v8 = vpop.f32.mrf.mxu1  ;;  %v1439_v3 = vpop.f32.mrf.mxu0 }
 0x22b   : > { %v3047_v5 = vrot.slane %v1663_v16, 7  ;;  %v12512_v3 = vld [vmem:[#allocation43_spill] sm:$0xff] }
 0x22c   : > { %v2050_v19 = vpop.f32.mrf.mxu1  ;;  %v1442_v59 = vpop.f32.mrf.mxu0  ;;  %8063 = vmatmul.mubr.bf16.vlgmr.msra.gmra.mxu0 %v9501_v6 }
 0x22d   : > { %v1668_v15 = vadd.f32 %v9698_v41, %v1442_v59  ;;  %8066 = vmatprep.mubr.bf16.mxu0 %v9515_v20  ;;  %v9952_v13 = vsel %vm3064_vm10, %v3046_v4, %v3047_v5 }
 0x22e   : > { %12509 = vst [vmem:[#allocation31_spill] sm:$0xff] %v9952_v13  ;;  %v9954_v22 = vpop.f32.mrf.mxu1  ;;  %2695 = vmatmul.mubr.bf16.gmra.mxu1 %v12510_v23  ;;  %v1444_v14 = vpop.f32.mrf.mxu0  ;;  %v12514_v23 = vld [vmem:[#allocation40_spill] sm:$0xff] }
 0x22f   : > { %v3048_v45 = vrot.slane %v1668_v15, 7  ;;  %2702 = vmatprep.mubr.bf16.mxu1 %v12511_v40 }
 0x230   : > { %v2055_v19 = vpop.f32.mrf.mxu1  ;;  %v1445_v16 = vpop.f32.mrf.mxu0 }
 0x231   : > { %v1671_v6 = vadd.f32 %v12512_v3, %v1445_v16  ;;  %v9961_v41 = vsel %vm3064_vm10, %v3047_v5, %v3048_v45  ;;  %v12516_v5 = vld [vmem:[#allocation33_spill] sm:$0xff]  ;;  %v12517_v3 = vld [vmem:[#allocation20_spill] sm:$0xff] }
 0x232   : > { %12513 = vst [vmem:[#allocation37_spill] sm:$0xff] %v9961_v41  ;;  %v9963_v20 = vpop.f32.mrf.mxu1  ;;  %v1447_v59 = vpop.f32.mrf.mxu0 }
 0x233   : > { %v3049_v4 = vrot.slane %v1671_v6, 7  ;;  %v12518_v59 = vld [vmem:[#allocation42_spill] sm:$0xff] }
 0x234   : > { %v2058_v13 = vpop.f32.mrf.mxu1  ;;  %v1450_v62 = vpop.f32.mrf.mxu0  ;;  %8067 = vmatmul.mubr.bf16.gmra.mxu0 %v9531_v37 }
 0x235   : > { %v1676_v15 = vadd.f32 %v12514_v23, %v1450_v62  ;;  %8070 = vmatprep.mubr.bf16.mxu0 %v9547_v12  ;;  %v9970_v14 = vsel %vm3064_vm10, %v3048_v45, %v3049_v4 }
 0x236   : > { %12515 = vst [vmem:[#allocation32_spill] sm:$0xff] %v9970_v14  ;;  %v9972_v40 = vpop.f32.mrf.mxu1  ;;  %2703 = vmatmul.mubr.bf16.gmra.mxu1 %v12516_v5  ;;  %v1452_v19 = vpop.f32.mrf.mxu0 }
 0x237   : > { %v3050_v16 = vrot.slane %v1676_v15, 7  ;;  %2710 = vmatprep.mubr.bf16.mxu1 %v12517_v3 }
 0x238   : > { %v2063_v13 = vpop.f32.mrf.mxu1  ;;  %v1453_v6 = vpop.f32.mrf.mxu0 }
 0x239   : > { %v1679_v37 = vadd.f32 %v12518_v59, %v1453_v6  ;;  %v9979_v62 = vsel %vm3064_vm10, %v3049_v4, %v3050_v16  ;;  %v12520_v4 = vld [vmem:[#allocation34_spill] sm:$0xff]  ;;  %v12521_v6 = vld [vmem:[#allocation21_spill] sm:$0xff] }
 0x23a   : > { %v9981_v12 = vpop.f32.mrf.mxu1  ;;  %v1455_v45 = vpop.f32.mrf.mxu0 }
 0x23b   : > { %v3051_v23 = vrot.slane %v1679_v37, 7  ;;  %v12522_v37 = vld [vmem:[#allocation48_spill] sm:$0xff] }
 0x23c   : > { %v2066_v14 = vpop.f32.mrf.mxu1  ;;  %v1458_v41 = vpop.f32.mrf.mxu0  ;;  %8071 = vmatmul.mubr.bf16.gmra.mxu0 %v9557_v18 }
 0x23d   : > { %v1684_v15 = vadd.f32 %v9714_v1, %v1458_v41  ;;  %8074 = vmatprep.mubr.bf16.mxu0 %v9568_v52  ;;  %v9988_v5 = vsel %vm3064_vm10, %v3050_v16, %v3051_v23 }
 0x23e   : > { %12519 = vst [vmem:[#allocation23_spill] sm:$0xff] %v9988_v5  ;;  %v9990_v19 = vpop.f32.mrf.mxu1  ;;  %2711 = vmatmul.mubr.bf16.gmra.mxu1 %v12520_v4  ;;  %v1460_v3 = vpop.f32.mrf.mxu0  ;;  %v12524_v4 = vld [vmem:[#allocation45_spill] sm:$0xff] }
 0x23f   : > { %v3052_v13 = vrot.slane %v1684_v15, 7  ;;  %2718 = vmatprep.mubr.bf16.mxu1 %v12521_v6 }
 0x240   : > { %v2071_v14 = vpop.f32.mrf.mxu1  ;;  %v1461_v59 = vpop.f32.mrf.mxu0 }
 0x241   : > { %v1687_v18 = vadd.f32 %v12522_v37, %v1461_v59  ;;  %v9997_v1 = vsel %vm3064_vm10, %v3051_v23, %v3052_v13  ;;  %v12526_v59 = vld [vmem:[#allocation22_spill] sm:$0xff] }
 0x242   : > { %12523 = vst [vmem:[#allocation43_spill] sm:$0xff] %v9997_v1  ;;  %v9999_v52 = vpop.f32.mrf.mxu1  ;;  %v1463_v41 = vpop.f32.mrf.mxu0 }
 0x243   : > { %v3053_v16 = vrot.slane %v1687_v18, 7  ;;  %v12527_v41 = vld [vmem:[#allocation47_spill] sm:$0xff] }
 0x244   : > { %v2074_v45 = vpop.f32.mrf.mxu1  ;;  %v1466_v5 = vpop.f32.mrf.mxu0  ;;  %8075 = vmatmul.mubr.bf16.gmra.mxu0 %v9577_v34 }
 0x245   : > { %v1692_v15 = vadd.f32 %v12524_v4, %v1466_v5  ;;  %8078 = vmatprep.mubr.bf16.mxu0 %v9238_v11  ;;  %v10006_v3 = vsel %vm3064_vm10, %v3052_v13, %v3053_v16 }
 0x246   : > { %12525 = vst [vmem:[#allocation40_spill] sm:$0xff] %v10006_v3  ;;  %v10008_v6 = vpop.f32.mrf.mxu1  ;;  %2719 = vmatmul.mubr.bf16.gmra.mxu1 %v9290_v38  ;;  %v1468_v23 = vpop.f32.mrf.mxu0 }
 0x247   : > { %v3054_v14 = vrot.slane %v1692_v15, 7  ;;  %2726 = vmatprep.mubr.bf16.mxu1 %v12526_v59 }
 0x248   : > { %v2079_v37 = vpop.f32.mrf.mxu1  ;;  %v1469_v18 = vpop.f32.mrf.mxu0 }
 0x249   : > { %v1695_v34 = vadd.f32 %v12527_v41, %v1469_v18  ;;  %v10015_v5 = vsel %vm3064_vm10, %v3053_v16, %v3054_v14  ;;  %v12530_v18 = vld [vmem:[#allocation24_spill] sm:$0xff] }
 0x24a   : > { %12528 = vst [vmem:[#allocation33_spill] sm:$0xff] %v10015_v5  ;;  %v10017_v11 = vpop.f32.mrf.mxu1  ;;  %v1471_v13 = vpop.f32.mrf.mxu0 }
 0x24b   : > { %v3055_v45 = vrot.slane %v1695_v34, 7  ;;  %v12531_v13 = vld [vmem:[#allocation53_spill] sm:$0xff] }
 0x24c   : > { %v2082_v4 = vpop.f32.mrf.mxu1  ;;  %v1474_v3 = vpop.f32.mrf.mxu0  ;;  %8079 = vmatmul.mubr.bf16.gmra.mxu0 %v9263_v24 }
 0x24d   : > { %v1700_v15 = vadd.f32 %v9730_v60, %v1474_v3  ;;  %8082 = vmatprep.mubr.bf16.mxu0 %v9266_v26  ;;  %v10024_v23 = vsel %vm3064_vm10, %v3054_v14, %v3055_v45 }
 0x24e   : > { %12529 = vst [vmem:[#allocation20_spill] sm:$0xff] %v10024_v23  ;;  %v10026_v59 = vpop.f32.mrf.mxu1  ;;  %2727 = vmatmul.mubr.bf16.gmra.mxu1 %v9304_v47  ;;  %v1476_v16 = vpop.f32.mrf.mxu0 }
 0x24f   : > { %v3056_v37 = vrot.slane %v1700_v15, 7  ;;  %2734 = vmatprep.mubr.bf16.mxu1 %v12530_v18  ;;  %v12534_v16 = vld [vmem:[#allocation50_spill] sm:$0xff] }
 0x250   : > { %v2087_v41 = vpop.f32.mrf.mxu1  ;;  %v1477_v34 = vpop.f32.mrf.mxu0 }
 0x251   : > { %v1703_v24 = vadd.f32 %v12531_v13, %v1477_v34  ;;  %v10033_v60 = vsel %vm3064_vm10, %v3055_v45, %v3056_v37  ;;  %v12536_v13 = vld [vmem:[#allocation25_spill] sm:$0xff] }
 0x252   : > { %12532 = vst [vmem:[#allocation42_spill] sm:$0xff] %v10033_v60  ;;  %v10035_v26 = vpop.f32.mrf.mxu1  ;;  %v1479_v3 = vpop.f32.mrf.mxu0 }
 0x253   : > { %12533 = vst [vmem:[#allocation34_spill] sm:$0xff] %v10035_v26  ;;  %v3057_v14 = vrot.slane %v1703_v24, 7 }
 0x254   : > { %v2090_v4 = vpop.f32.mrf.mxu1  ;;  %v1482_v23 = vpop.f32.mrf.mxu0  ;;  %8083 = vmatmul.mubr.bf16.gmra.mxu0 %v9817_v28 }
 0x255   : > { %v1708_v15 = vadd.f32 %v12534_v16, %v1482_v23  ;;  %8086 = vmatprep.mubr.bf16.mxu0 %v9290_v38  ;;  %v10042_v18 = vsel %vm3064_vm10, %v3056_v37, %v3057_v14  ;;  %v12537_v4 = vld [vmem:[#allocation52_spill] sm:$0xff] }
 0x256   : > { %12535 = vst [vmem:[#allocation21_spill] sm:$0xff] %v10042_v18  ;;  %v10044_v41 = vpop.f32.mrf.mxu1  ;;  %2735 = vmatmul.mubr.bf16.gmra.mxu1 %v9306_v49  ;;  %v1484_v45 = vpop.f32.mrf.mxu0 }
 0x257   : > { %v3058_v34 = vrot.slane %v1708_v15, 7  ;;  %2742 = vmatprep.mubr.bf16.mxu1 %v12536_v13  ;;  %v12539_v45 = vld [vmem:[#allocation56_spill] sm:$0xff] }
 0x258   : > { %v2095_v24 = vpop.f32.mrf.mxu1  ;;  %v1485_v3 = vpop.f32.mrf.mxu0 }
 0x259   : > { %v1711_v28 = vadd.f32 %v12537_v4, %v1485_v3  ;;  %v10051_v23 = vsel %vm3064_vm10, %v3057_v14, %v3058_v34  ;;  %v12542_v4 = vld [vmem:[#allocation26_spill] sm:$0xff] }
 0x25a   : > { %12538 = vst [vmem:[#allocation48_spill] sm:$0xff] %v10051_v23  ;;  %v10053_v38 = vpop.f32.mrf.mxu1  ;;  %v1487_v37 = vpop.f32.mrf.mxu0 }
 0x25b   : > { %v3059_v16 = vrot.slane %v1711_v28, 7  ;;  %v12543_v37 = vld [vmem:[#allocation59_spill] sm:$0xff] }
 0x25c   : > { %v2098_v18 = vpop.f32.mrf.mxu1  ;;  %v1490_v60 = vpop.f32.mrf.mxu0  ;;  %8087 = vmatmul.mubr.bf16.gmra.mxu0 %v9304_v47 }
 0x25d   : > { %v1716_v15 = vadd.f32 %v12539_v45, %v1490_v60  ;;  %8090 = vmatprep.mubr.bf16.mxu0 %v9306_v49  ;;  %v10060_v13 = vsel %vm3064_vm10, %v3058_v34, %v3059_v16 }
 0x25e   : > { %12540 = vst [vmem:[#allocation45_spill] sm:$0xff] %v10060_v13  ;;  %v10062_v24 = vpop.f32.mrf.mxu1  ;;  %2743 = vmatmul.mubr.bf16.gmra.mxu1 %v9322_v58  ;;  %v1492_v14 = vpop.f32.mrf.mxu0 }
 0x25f   : > { %12541 = vst [vmem:[#allocation22_spill] sm:$0xff] %v10062_v24  ;;  %v3060_v3 = vrot.slane %v1716_v15, 7  ;;  %2750 = vmatprep.mubr.bf16.mxu1 %v12542_v4  ;;  %v12546_v14 = vld [vmem:[#allocation55_spill] sm:$0xff] }
 0x260   : > { %v2103_v18 = vpop.f32.mrf.mxu1  ;;  %v1493_v28 = vpop.f32.mrf.mxu0 }
 0x261   : > { %v1719_v47 = vadd.f32 %v12543_v37, %v1493_v28  ;;  %v10069_v60 = vsel %vm3064_vm10, %v3059_v16, %v3060_v3  ;;  %v12549_v37 = vld [vmem:[#allocation28_spill] sm:$0xff] }
 0x262   : > { %12544 = vst [vmem:[#allocation47_spill] sm:$0xff] %v10069_v60  ;;  %v10071_v49 = vpop.f32.mrf.mxu1  ;;  %v1495_v34 = vpop.f32.mrf.mxu0 }
 0x263   : > { %12545 = vst [vmem:[#allocation24_spill] sm:$0xff] %v10071_v49  ;;  %v3061_v45 = vrot.slane %v1719_v47, 7  ;;  %v12550_v34 = vld [vmem:[#allocation58_spill] sm:$0xff] }
 0x264   : > { %v2106_v13 = vpop.f32.mrf.mxu1  ;;  %v1498_v23 = vpop.f32.mrf.mxu0  ;;  %8091 = vmatmul.mubr.bf16.gmra.mxu0 %v9322_v58 }
 0x265   : > { %v1724_v15 = vadd.f32 %v12546_v14, %v1498_v23  ;;  %8094 = vmatprep.mubr.bf16.mxu0 %v9325_v61  ;;  %v10078_v4 = vsel %vm3064_vm10, %v3060_v3, %v3061_v45 }
 0x266   : > { %12547 = vst [vmem:[#allocation53_spill] sm:$0xff] %v10078_v4  ;;  %v10080_v18 = vpop.f32.mrf.mxu1  ;;  %2751 = vmatmul.mubr.bf16.gmra.mxu1 %v9325_v61  ;;  %v1500_v16 = vpop.f32.mrf.mxu0 }
 0x267   : > { %12548 = vst [vmem:[#allocation50_spill] sm:$0xff] %v10080_v18  ;;  %v3062_v28 = vrot.slane %v1724_v15, 7  ;;  %2758 = vmatprep.mubr.bf16.mxu1 %v12549_v37  ;;  %v12555_v16 = vld [vmem:[#allocation44_spill] sm:$0xff] }
 0x268   : > { %v2111_v13 = vpop.f32.mrf.mxu1  ;;  %v1501_v47 = vpop.f32.mrf.mxu0 }
 0x269   : > { %v1727_v58 = vadd.f32 %v12550_v34, %v1501_v47  ;;  %v10087_v23 = vsel %vm3064_vm10, %v3061_v45, %v3062_v28  ;;  %v12556_v13 = vld [vmem:[#allocation39_spill] sm:$0xff]  ;;  %v12557_v34 = vld [vmem:[#allocation29_spill] sm:$0xff] }
 0x26a   : > { %12551 = vst [vmem:[#allocation25_spill] sm:$0xff] %v10087_v23  ;;  %v10089_v14 = vpop.f32.mrf.mxu1  ;;  %v1503_v3 = vpop.f32.mrf.mxu0  ;;  %v12558_v23 = vld [vmem:[#allocation46_spill] sm:$0xff] }
 0x26b   : > { %12552 = vst [vmem:[#allocation52_spill] sm:$0xff] %v10089_v14  ;;  %v3063_v4 = vrot.slane %v1727_v58, 7 }
 0x26c   : > { %v2114_v60 = vpop.f32.mrf.mxu1  ;;  %v7936_v49 = vpop.f32.mrf.mxu0  ;;  %8095 = vmatmul.mubr.bf16.gmra.mxu0 %v9366_v27 }
 0x26d   : > { %8098 = vmatprep.mubr.bf16.mxu0 %v9370_v29  ;;  %v10095_v61 = vsel %vm3064_vm10, %v3062_v28, %v3063_v4  ;;  %v1548_v37 = vadd.f32 %v7936_v49, %v12555_v16 }
 0x26e   : > { %12553 = vst [vmem:[#allocation56_spill] sm:$0xff] %v10095_v61  ;;  %v10097_v15 = vpop.f32.mrf.mxu1  ;;  %2759 = vmatmul.mubr.bf16.gmra.mxu1 %v9366_v27  ;;  %v1539_v45 = vpop.f32.mrf.mxu0 }
 0x26f   : > { %12554 = vst [vmem:[#allocation26_spill] sm:$0xff] %v10097_v15  ;;  %v1540_v47 = vadd.f32 %v1539_v45, %v12556_v13  ;;  %2766 = vmatprep.mubr.bf16.mxu1 %v12557_v34  ;;  %v3018_v61 = vrot.slane %v1548_v37, 7  ;;  %v12560_v15 = vld [vmem:[#allocation41_spill] sm:$0xff]  ;;  %v12564_v34 = vld [vmem:[#allocation30_spill] sm:$0xff] }
 0x270   : > { %v2119_v60 = vpop.f32.mrf.mxu1  ;;  %v7937_v58 = vpop.f32.mrf.mxu0 }
 0x271   : > { %v3016_v3 = vrot.slane %v1540_v47, 7  ;;  %v1551_v14 = vadd.f32 %v7937_v58, %v12558_v23 }
 0x272   : > { %v10104_v1 = vpop.f32.mrf.mxu1  ;;  %v1542_v28 = vpop.f32.mrf.mxu0 }
 0x273   : > { %12559 = vst [vmem:[#allocation59_spill] sm:$0xff] %v10104_v1  ;;  %v3019_v24 = vrot.slane %v1551_v14, 7  ;;  %v1543_v5 = vadd.f32 %v1542_v28, %v12560_v15  ;;  %v10109_v27 = vsel %vm3064_vm10, %v3063_v4, %v3016_v3  ;;  %v12562_v15 = vld [vmem:[#allocation54_spill] sm:$0xff]  ;;  %v12563_v4 = vld [vmem:[#allocation49_spill] sm:$0xff] }
 0x274   : > { %v2122_v49 = vpop.f32.mrf.mxu1  ;;  %v7940_v45 = vpop.f32.mrf.mxu0  ;;  %8099 = vmatmul.mubr.bf16.gmra.mxu0 %v9415_v50  ;;  %v12565_v1 = vld [vmem:[#allocation57_spill] sm:$0xff] }
 0x275   : > { %v3017_v16 = vrot.slane %v1543_v5, 7  ;;  %8102 = vmatprep.mubr.bf16.mxu0 %v9420_v33  ;;  %v10115_v23 = vsel %vm3064_vm10, %v3018_v61, %v3019_v24  ;;  %v1564_v37 = vadd.f32 %v7940_v45, %v12562_v15 }
 0x276   : > { %v10117_v13 = vpop.f32.mrf.mxu1  ;;  %2767 = vmatmul.mubr.bf16.gmra.mxu1 %v9370_v29  ;;  %v1555_v14 = vpop.f32.mrf.mxu0 }
 0x277   : > { %12561 = vst [vmem:[#allocation55_spill] sm:$0xff] %v10117_v13  ;;  %v1556_v47 = vadd.f32 %v1555_v14, %v12563_v4  ;;  %2774 = vmatprep.mubr.bf16.mxu1 %v12564_v34  ;;  %v10125_v5 = vsel %vm3064_vm10, %v3017_v16, %v3018_v61  ;;  %v10129_v60 = vsel %vm3064_vm10, %v3016_v3, %v3017_v16  ;;  %v3022_v15 = vrot.slane %v1564_v37, 7  ;;  %v12566_v4 = vld [vmem:[#allocation51_spill] sm:$0xff] }
 0x278   : > { %v2127_v58 = vpop.f32.mrf.mxu1  ;;  %v7941_v28 = vpop.f32.mrf.mxu0 }
 0x279   : > { %v3020_v49 = vrot.slane %v1556_v47, 7  ;;  %v1567_v29 = vadd.f32 %v7941_v28, %v12565_v1 }
 0x27a   : > { %v10132_v13 = vpop.f32.mrf.mxu1  ;;  %v1558_v45 = vpop.f32.mrf.mxu0 }
 0x27b   : > { %v3023_v14 = vrot.slane %v1567_v29, 7  ;;  %v1559_v34 = vadd.f32 %v1558_v45, %v12566_v4  ;;  %v10137_v61 = vsel %vm3064_vm10, %v3019_v24, %v3020_v49  ;;  %v12568_v24 = vld [vmem:[#allocation60_spill] sm:$0xff] }
 0x27c   : > { %v2130_v18 = vpop.f32.mrf.mxu1  ;;  %v7944_v26 = vpop.f32.mrf.mxu0  ;;  %8103 = vmatmul.mubr.bf16.gmra.mxu0 %v9457_v32 }
 0x27d   : > { %v3021_v3 = vrot.slane %v1559_v34, 7  ;;  %8106 = vmatprep.mubr.bf16.mxu0 %v9461_v56  ;;  %v10143_v1 = vsel %vm3064_vm10, %v3022_v15, %v3023_v14  ;;  %v1580_v47 = vadd.f32 %v7944_v26, %v9766_v53  ;;  %v12569_v18 = vld [vmem:[#allocation35_spill] sm:$0xff] }
 0x27e   : > { %v10145_v16 = vpop.f32.mrf.mxu1  ;;  %2775 = vmatmul.mubr.bf16.gmra.mxu1 %v9415_v50  ;;  %v1571_v37 = vpop.f32.mrf.mxu0 }
 0x27f   : > { %12567 = vst [vmem:[#allocation28_spill] sm:$0xff] %v10145_v16  ;;  %v1572_v58 = vadd.f32 %v1571_v37, %v12568_v24  ;;  %2782 = vmatprep.mubr.bf16.mxu1 %v12569_v18  ;;  %v3106_v32 = vsel %vm3064_vm10, %v3021_v3, %v3022_v15  ;;  %v10155_v56 = vsel %vm3064_vm10, %v3020_v49, %v3021_v3  ;;  %v3026_v26 = vrot.slane %v1580_v47, 7  ;;  %v8496_v49 = vld [vmem:[%s9228_s18 + $0x148] sm:$0xff]  }
 0x280   : > { %v2135_v28 = vpop.f32.mrf.mxu1  ;;  %v7945_v29 = vpop.f32.mrf.mxu0 }
 0x281   : > { %v3024_v45 = vrot.slane %v1572_v58, 7  ;;  %v1583_v50 = vadd.f32 %v7945_v29, %v9774_v36 }
 0x282   : > { %v10158_v4 = vpop.f32.mrf.mxu1  ;;  %v1574_v53 = vpop.f32.mrf.mxu0 }
 0x283   : > { %12570 = vst [vmem:[#allocation58_spill] sm:$0xff] %v10158_v4  ;;  %v3027_v34 = vrot.slane %v1583_v50, 7  ;;  %v1575_v37 = vadd.f32 %v1574_v53, %v9762_v0  ;;  %v10163_v24 = vsel %vm3064_vm10, %v3023_v14, %v3024_v45 }
 0x284   : > { %v2138_v15 = vpop.f32.mrf.mxu1  ;;  %v7948_v18 = vpop.f32.mrf.mxu0  ;;  %8107 = vmatmul.mubr.bf16.gmra.mxu0 %v8496_v49 }
 0x285   : > { %v3025_v3 = vrot.slane %v1575_v37, 7  ;;  %v10168_v58 = vsel %vm3064_vm10, %v3026_v26, %v3027_v34  ;;  %v1596_v0 = vadd.f32 %v7948_v18, %v9790_v31  ;;  %v12572_v31 = vld [vmem:[#allocation66_spill] sm:$0xff] }
 0x286   : > { %v10170_v36 = vpop.f32.mrf.mxu1  ;;  %2783 = vmatmul.mubr.bf16.gmra.mxu1 %v9420_v33  ;;  %v1587_v47 = vpop.f32.mrf.mxu0 }
 0x287   : > { %v1588_v28 = vadd.f32 %v1587_v47, %v9778_v63  ;;  %v3102_v14 = vsel %vm3064_vm10, %v3025_v3, %v3026_v26  ;;  %v10179_v29 = vsel %vm3064_vm10, %v3024_v45, %v3025_v3  ;;  %v3030_v4 = vrot.slane %v1596_v0, 7  ;;  %v12573_v3 = vld [vmem:[#allocation63_spill] sm:$0xff] }
 0x288   : > { %v2143_v50 = vpop.f32.mrf.mxu1  ;;  %v7949_v53 = vpop.f32.mrf.mxu0 }
 0x289   : > { %v3028_v37 = vrot.slane %v1588_v28, 7  ;;  %v1599_v15 = vadd.f32 %v7949_v53, %v9798_v48  ;;  %v12574_v48 = vrot.slane %v9808_v30, 7 }
 0x28a   : > { %v10182_v49 = vpop.f32.mrf.mxu1  ;;  %v1590_v33 = vpop.f32.mrf.mxu0 }
 0x28b   : > { %12571 = vst [vmem:[#allocation44_spill] sm:$0xff] %v10182_v49  ;;  %v3031_v16 = vrot.slane %v1599_v15, 7  ;;  %v1591_v18 = vadd.f32 %v1590_v33, %v12572_v31  ;;  %v10187_v63 = vsel %vm3064_vm10, %v3027_v34, %v3028_v37  ;;  %v12577_v33 = vld [vmem:[#allocation61_spill] sm:$0xff] }
 0x28c   : > { %v2146_v26 = vpop.f32.mrf.mxu1  ;;  %v8000_v47 = vpop.f32.mrf.mxu0 }
 0x28d   : > { %v3029_v45 = vrot.slane %v1591_v18, 7  ;;  %v2191_v50 = vadd.f32 %v8000_v47, %v12573_v3  ;;  %v3097_v28 = vsel %vm3064_vm10, %v3030_v4, %v3031_v16  ;;  %v10196_v0 = vsel %vm3064_vm10, %v3031_v16, %v12574_v48  ;;  %v12579_v16 = vld [vmem:[#allocation64_spill] sm:$0xff] }
 0x28e   : > { %v10198_v53 = vpop.f32.mrf.mxu1  ;;  %v2182_v15 = vpop.f32.mrf.mxu0 }
 0x28f   : > { %12575 = vst [vmem:[#allocation39_spill] sm:$0xff] %v10198_v53  ;;  %v10201_v34 = vadd.f32 %v10125_v5, %v2191_v50  ;;  %v2183_v31 = vadd.f32 %v2182_v15, %v12577_v33  ;;  %v3098_v18 = vsel %vm3064_vm10, %v3029_v45, %v3030_v4  ;;  %v3099_v26 = vsel %vm3064_vm10, %v3028_v37, %v3029_v45  ;;  %v12581_v50 = vld [vmem:[#allocation62_spill] sm:$0xff]  ;;  %v12582_v37 = vld [vmem:[#allocation68_spill] sm:$0xff] }
 0x290   : > { %v2602_v47 = vpop.f32.mrf.mxu1  ;;  %v8001_v30 = vpop.f32.mrf.mxu0 }
 0x291   : > { %12576 = vst [vmem:[#allocation29_spill] sm:$0xff] %v10201_v34  ;;  %v10209_v3 = vadd.f32 %v10109_v27, %v2183_v31  ;;  %v2194_v48 = vadd.f32 %v8001_v30, %v12579_v16  ;;  %v12583_v30 = vld [vmem:[#allocation65_spill] sm:$0xff] }
 0x292   : > { %v10212_v53 = vpop.f32.mrf.mxu1  ;;  %v2185_v49 = vpop.f32.mrf.mxu0 }
 0x293   : > { %12578 = vst [vmem:[#allocation46_spill] sm:$0xff] %v10209_v3  ;;  %12580 = vst [vmem:[#allocation41_spill] sm:$0xff] %v10212_v53  ;;  %v10215_v5 = vadd.f32 %v10115_v23, %v2194_v48  ;;  %v2186_v15 = vadd.f32 %v2185_v49, %v12581_v50  ;;  %v12585_v49 = vld [vmem:[#allocation69_spill] sm:$0xff] }
 0x294   : > { %v2605_v33 = vpop.f32.mrf.mxu1  ;;  %v8004_v4 = vpop.f32.mrf.mxu0 }
 0x295   : > { %v10219_v34 = vadd.f32 %v10129_v60, %v2186_v15  ;;  %v2207_v45 = vadd.f32 %v8004_v4, %v12582_v37  ;;  %v12586_v33 = vld [vmem:[#allocation67_spill] sm:$0xff] }
 0x296   : > { %v10222_v47 = vpop.f32.mrf.mxu1  ;;  %v2198_v27 = vpop.f32.mrf.mxu0 }
 0x297   : > { %v10224_v31 = vadd.f32 %v3106_v32, %v2207_v45  ;;  %v2199_v16 = vadd.f32 %v2198_v27, %v12583_v30 }
 0x298   : > { %v2610_v3 = vpop.f32.mrf.mxu1  ;;  %v8005_v53 = vpop.f32.mrf.mxu0 }
 0x299   : > { %v10228_v23 = vadd.f32 %v10137_v61, %v2199_v16  ;;  %v2210_v48 = vadd.f32 %v8005_v53, %v12585_v49  ;;  %v12587_v53 = vld [vmem:[#allocation70_spill] sm:$0xff] }
 0x29a   : > { %v10231_v50 = vpop.f32.mrf.mxu1  ;;  %v2201_v60 = vpop.f32.mrf.mxu0 }
 0x29b   : > { %12584 = vst [vmem:[#allocation54_spill] sm:$0xff] %v10228_v23  ;;  %v10234_v15 = vadd.f32 %v10143_v1, %v2210_v48  ;;  %v2202_v4 = vadd.f32 %v2201_v60, %v12586_v33 }
 0x29c   : > { %v2613_v37 = vpop.f32.mrf.mxu1  ;;  %v8008_v32 = vpop.f32.mrf.mxu0 }
 0x29d   : > { %v10238_v45 = vadd.f32 %v10155_v56, %v2202_v4  ;;  %v2223_v3 = vadd.f32 %v8008_v32, %v9828_v35  ;;  %v12588_v35 = vld [vmem:[#allocation71_spill] sm:$0xff] }
 0x29e   : > { %v10241_v27 = vpop.f32.mrf.mxu1  ;;  %v2214_v61 = vpop.f32.mrf.mxu0 }
 0x29f   : > { %v10243_v30 = vadd.f32 %v3102_v14, %v2223_v3  ;;  %v2215_v16 = vadd.f32 %v2214_v61, %v12587_v53 }
 0x2a0   : > { %v2618_v49 = vpop.f32.mrf.mxu1  ;;  %v8009_v23 = vpop.f32.mrf.mxu0 }
 0x2a1   : > { %v10247_v1 = vadd.f32 %v10163_v24, %v2215_v16  ;;  %v2226_v48 = vadd.f32 %v8009_v23, %v9837_v57 }
 0x2a2   : > { %v10250_v60 = vpop.f32.mrf.mxu1  ;;  %v2217_v56 = vpop.f32.mrf.mxu0 }
 0x2a3   : > { %v10253_v33 = vadd.f32 %v10168_v58, %v2226_v48  ;;  %v2218_v4 = vadd.f32 %v2217_v56, %v12588_v35 }
 0x2a4   : > { %v2621_v37 = vpop.f32.mrf.mxu1  ;;  %v8012_v14 = vpop.f32.mrf.mxu0 }
 0x2a5   : > { %v10257_v32 = vadd.f32 %v10179_v29, %v2218_v4  ;;  %v2239_v3 = vadd.f32 %v8012_v14, %v9864_v43 }
 0x2a6   : > { %v10260_v61 = vpop.f32.mrf.mxu1  ;;  %v2230_v24 = vpop.f32.mrf.mxu0 }
 0x2a7   : > { %v10262_v53 = vadd.f32 %v3098_v18, %v2239_v3  ;;  %v2231_v57 = vadd.f32 %v2230_v24, %v9846_v21 }
 0x2a8   : > { %v2626_v23 = vpop.f32.mrf.mxu1  ;;  %v8013_v16 = vpop.f32.mrf.mxu0 }
 0x2a9   : > { %v10266_v58 = vadd.f32 %v10187_v63, %v2231_v57  ;;  %v2242_v49 = vadd.f32 %v8013_v16, %v9873_v51  ;;  %v12589_v23 = vld [vmem:[#allocation73_spill] sm:$0xff] }
 0x2aa   : > { %v10269_v48 = vpop.f32.mrf.mxu1  ;;  %v2233_v29 = vpop.f32.mrf.mxu0 }
 0x2ab   : > { %v10271_v56 = vadd.f32 %v3097_v28, %v2242_v49  ;;  %v2234_v43 = vadd.f32 %v2233_v29, %v9855_v10  ;;  %v12590_v29 = vld [vmem:[#allocation72_spill] sm:$0xff] }
 0x2ac   : > { %v2629_v35 = vpop.f32.mrf.mxu1  ;;  %v8016_v4 = vpop.f32.mrf.mxu0 }
 0x2ad   : > { %v10274_v18 = vadd.f32 %v3099_v26, %v2234_v43  ;;  %v2255_v21 = vadd.f32 %v8016_v4, %v9900_v55 }
 0x2ae   : > { %v10277_v37 = vpop.f32.mrf.mxu1  ;;  %v2246_v14 = vpop.f32.mrf.mxu0 }
 0x2af   : > { %v10280_v63 = vadd.f32 %v9835_v39, %v2255_v21  ;;  %v2247_v51 = vadd.f32 %v2246_v14, %v9882_v7 }
 0x2b0   : > { %v2634_v3 = vpop.f32.mrf.mxu1  ;;  %v8017_v24 = vpop.f32.mrf.mxu0 }
 0x2b1   : > { %v10284_v28 = vadd.f32 %v10196_v0, %v2247_v51  ;;  %v2258_v10 = vadd.f32 %v8017_v24, %v9909_v46 }
 0x2b2   : > { %v10287_v57 = vpop.f32.mrf.mxu1  ;;  %v2249_v26 = vpop.f32.mrf.mxu0 }
 0x2b3   : > { %v10290_v55 = vadd.f32 %v12589_v23, %v2258_v10  ;;  %v2250_v16 = vadd.f32 %v2249_v26, %v9891_v44  ;;  %v12591_v10 = vld [vmem:[#allocation75_spill] sm:$0xff] }
 0x2b4   : > { %v2637_v49 = vpop.f32.mrf.mxu1  ;;  %v8020_v39 = vpop.f32.mrf.mxu0 }
 0x2b5   : > { %v10294_v43 = vadd.f32 %v12590_v29, %v2250_v16  ;;  %v2271_v7 = vadd.f32 %v8020_v39, %v9936_v17  ;;  %v12593_v16 = vld [vmem:[#allocation74_spill] sm:$0xff] }
 0x2b6   : > { %v10297_v35 = vpop.f32.mrf.mxu1  ;;  %v2262_v0 = vpop.f32.mrf.mxu0  ;;  %v12594_v29 = vld [vmem:[#allocation78_spill] sm:$0xff] }
 0x2b7   : > { %v10300_v46 = vadd.f32 %v9871_v42, %v2271_v7  ;;  %v2263_v4 = vadd.f32 %v2262_v0, %v9918_v54 }
 0x2b8   : > { %v2642_v21 = vpop.f32.mrf.mxu1  ;;  %v8021_v14 = vpop.f32.mrf.mxu0 }
 0x2b9   : > { %v10304_v51 = vadd.f32 %v9853_v9, %v2263_v4  ;;  %v2274_v44 = vadd.f32 %v8021_v14, %v9945_v8  ;;  %v12596_v21 = vld [vmem:[#allocation76_spill] sm:$0xff] }
 0x2ba   : > { %v10307_v3 = vpop.f32.mrf.mxu1  ;;  %v2265_v24 = vpop.f32.mrf.mxu0 }
 0x2bb   : > { %v10310_v17 = vadd.f32 %v12591_v10, %v2274_v44  ;;  %v2266_v26 = vadd.f32 %v2265_v24, %v9927_v25  ;;  %v12598_v10 = vld [vmem:[#allocation79_spill] sm:$0xff] }
 0x2bc   : > { %v2645_v23 = vpop.f32.mrf.mxu1  ;;  %v8024_v42 = vpop.f32.mrf.mxu0 }
 0x2bd   : > { %12592 = vst [vmem:[#allocation49_spill] sm:$0xff] %v10310_v17  ;;  %v10314_v49 = vadd.f32 %v12593_v16, %v2266_v26  ;;  %v2287_v54 = vadd.f32 %v8024_v42, %v9972_v40  ;;  %v12600_v16 = vld [vmem:[#allocation77_spill] sm:$0xff] }
 0x2be   : > { %v10317_v39 = vpop.f32.mrf.mxu1  ;;  %v2278_v9 = vpop.f32.mrf.mxu0 }
 0x2bf   : > { %v10320_v8 = vadd.f32 %v12594_v29, %v2287_v54  ;;  %v2279_v7 = vadd.f32 %v2278_v9, %v9954_v22 }
 0x2c0   : > { %v2650_v0 = vpop.f32.mrf.mxu1  ;;  %v8025_v4 = vpop.f32.mrf.mxu0 }
 0x2c1   : > { %12595 = vst [vmem:[#allocation30_spill] sm:$0xff] %v10320_v8  ;;  %v10324_v14 = vadd.f32 %v12596_v21, %v2279_v7  ;;  %v2290_v25 = vadd.f32 %v8025_v4, %v9981_v12  ;;  %v12602_v7 = vld [vmem:[#allocation36_spill] sm:$0xff] }
 0x2c2   : > { %v10327_v44 = vpop.f32.mrf.mxu1  ;;  %v2281_v24 = vpop.f32.mrf.mxu0 }
 0x2c3   : > { %12597 = vst [vmem:[#allocation57_spill] sm:$0xff] %v10324_v14  ;;  %v10330_v40 = vadd.f32 %v12598_v10, %v2290_v25  ;;  %v2282_v26 = vadd.f32 %v2281_v24, %v9963_v20  ;;  %v12604_v25 = vld [vmem:[#allocation38_spill] sm:$0xff] }
 0x2c4   : > { %v2653_v23 = vpop.f32.mrf.mxu1  ;;  %v8028_v42 = vpop.f32.mrf.mxu0 }
 0x2c5   : > { %12599 = vst [vmem:[#allocation51_spill] sm:$0xff] %v10330_v40  ;;  %v10334_v54 = vadd.f32 %v12600_v16, %v2282_v26  ;;  %v2303_v22 = vadd.f32 %v8028_v42, %v10008_v6  ;;  %v12606_v23 = vld [vmem:[#allocation31_spill] sm:$0xff] }
 0x2c6   : > { %v10337_v9 = vpop.f32.mrf.mxu1  ;;  %v2294_v29 = vpop.f32.mrf.mxu0 }
 0x2c7   : > { %12601 = vst [vmem:[#allocation60_spill] sm:$0xff] %v10334_v54  ;;  %v10340_v12 = vadd.f32 %v12602_v7, %v2303_v22  ;;  %v2295_v0 = vadd.f32 %v2294_v29, %v9990_v19  ;;  %v12608_v7 = vld [vmem:[#allocation27_spill] sm:$0xff] }
 0x2c8   : > { %v2658_v4 = vpop.f32.mrf.mxu1  ;;  %v8029_v21 = vpop.f32.mrf.mxu0 }
 0x2c9   : > { %12603 = vst [vmem:[#allocation35_spill] sm:$0xff] %v10340_v12  ;;  %v10344_v10 = vadd.f32 %v12604_v25, %v2295_v0  ;;  %v2306_v20 = vadd.f32 %v8029_v21, %v10017_v11 }
 0x2ca   : > { %v10347_v24 = vpop.f32.mrf.mxu1  ;;  %v2297_v26 = vpop.f32.mrf.mxu0 }
 0x2cb   : > { %12605 = vst [vmem:[#allocation66_spill] sm:$0xff] %v10344_v10  ;;  %v10350_v6 = vadd.f32 %v12606_v23, %v2306_v20  ;;  %v2298_v42 = vadd.f32 %v2297_v26, %v9999_v52  ;;  %v12611_v20 = vld [vmem:[#allocation37_spill] sm:$0xff] }
 0x2cc   : > { %v2661_v16 = vpop.f32.mrf.mxu1  ;;  %v8032_v22 = vpop.f32.mrf.mxu0 }
 0x2cd   : > { %12607 = vst [vmem:[#allocation63_spill] sm:$0xff] %v10350_v6  ;;  %v10354_v12 = vadd.f32 %v12608_v7, %v2298_v42  ;;  %v2319_v19 = vadd.f32 %v8032_v22, %v10044_v41  ;;  %v12613_v16 = vld [vmem:[#allocation23_spill] sm:$0xff]  ;;  %v12615_v22 = vld [vmem:[#allocation34_spill] sm:$0xff] }
 0x2ce   : > { %v10357_v29 = vpop.f32.mrf.mxu1  ;;  %v2310_v0 = vpop.f32.mrf.mxu0 }
 0x2cf   : > { %12609 = vst [vmem:[#allocation61_spill] sm:$0xff] %v10354_v12  ;;  %v10360_v11 = vadd.f32 %v9979_v62, %v2319_v19  ;;  %v2311_v4 = vadd.f32 %v2310_v0, %v10026_v59  ;;  %v12616_v19 = vld [vmem:[#allocation32_spill] sm:$0xff]  ;;  %v12618_v59 = vld [vmem:[#allocation50_spill] sm:$0xff] }
 0x2d0   : > { %v2666_v21 = vpop.f32.mrf.mxu1  ;;  %v8033_v25 = vpop.f32.mrf.mxu0 }
 0x2d1   : > { %12610 = vst [vmem:[#allocation64_spill] sm:$0xff] %v10360_v11  ;;  %v10364_v23 = vadd.f32 %v12611_v20, %v2311_v4  ;;  %v2322_v52 = vadd.f32 %v8033_v25, %v10053_v38  ;;  %v12619_v20 = vld [vmem:[#allocation33_spill] sm:$0xff]  ;;  %v12621_v25 = vld [vmem:[#allocation22_spill] sm:$0xff] }
 0x2d2   : > { %v10367_v26 = vpop.f32.mrf.mxu1  ;;  %v2313_v42 = vpop.f32.mrf.mxu0 }
 0x2d3   : > { %12612 = vst [vmem:[#allocation62_spill] sm:$0xff] %v10364_v23  ;;  %v10370_v41 = vadd.f32 %v12613_v16, %v2322_v52  ;;  %v2314_v7 = vadd.f32 %v2313_v42, %v12615_v22  ;;  %v12622_v16 = vld [vmem:[#allocation43_spill] sm:$0xff] }
 0x2d4   : > { %v2669_v6 = vpop.f32.mrf.mxu1  ;;  %v8036_v62 = vpop.f32.mrf.mxu0 }
 0x2d5   : > { %12614 = vst [vmem:[#allocation68_spill] sm:$0xff] %v10370_v41  ;;  %v10374_v11 = vadd.f32 %v12616_v19, %v2314_v7  ;;  %v2335_v0 = vadd.f32 %v8036_v62, %v12618_v59  ;;  %v12624_v6 = vld [vmem:[#allocation52_spill] sm:$0xff] }
 0x2d6   : > { %v10377_v21 = vpop.f32.mrf.mxu1  ;;  %v2326_v4 = vpop.f32.mrf.mxu0  ;;  %v12625_v19 = vld [vmem:[#allocation20_spill] sm:$0xff] }
 0x2d7   : > { %12617 = vst [vmem:[#allocation65_spill] sm:$0xff] %v10374_v11  ;;  %v10380_v38 = vadd.f32 %v12619_v20, %v2335_v0  ;;  %v2327_v23 = vadd.f32 %v2326_v4, %v12621_v25  ;;  %v12627_v59 = vld [vmem:[#allocation24_spill] sm:$0xff] }
 0x2d8   : > { %v2674_v12 = vpop.f32.mrf.mxu1  ;;  %v8037_v52 = vpop.f32.mrf.mxu0  ;;  %v12628_v20 = vld [vmem:[#allocation40_spill] sm:$0xff] }
 0x2d9   : > { %12620 = vst [vmem:[#allocation69_spill] sm:$0xff] %v10380_v38  ;;  %v10384_v41 = vadd.f32 %v12622_v16, %v2327_v23  ;;  %v2338_v42 = vadd.f32 %v8037_v52, %v12624_v6  ;;  %v12630_v12 = vld [vmem:[#allocation55_spill] sm:$0xff]  ;;  %v12631_v16 = vld [vmem:[#allocation48_spill] sm:$0xff]  ;;  %v12633_v6 = vld [vmem:[#allocation26_spill] sm:$0xff] }
 0x2da   : > { %v10387_v22 = vpop.f32.mrf.mxu1  ;;  %v2329_v7 = vpop.f32.mrf.mxu0 }
 0x2db   : > { %12623 = vst [vmem:[#allocation67_spill] sm:$0xff] %v10384_v41  ;;  %v10390_v62 = vadd.f32 %v12625_v19, %v2338_v42  ;;  %v2330_v11 = vadd.f32 %v2329_v7, %v12627_v59  ;;  %v12634_v19 = vld [vmem:[#allocation42_spill] sm:$0xff]  ;;  %v12636_v59 = vld [vmem:[#allocation45_spill] sm:$0xff] }
 0x2dc   : > { %v2677_v10 = vpop.f32.mrf.mxu1  ;;  %v8040_v0 = vpop.f32.mrf.mxu0 }
 0x2dd   : > { %12626 = vst [vmem:[#allocation70_spill] sm:$0xff] %v10390_v62  ;;  %v10394_v38 = vadd.f32 %v12628_v20, %v2330_v11  ;;  %v2351_v4 = vadd.f32 %v8040_v0, %v12630_v12  ;;  %v12638_v20 = vld [vmem:[#allocation59_spill] sm:$0xff] }
 0x2de   : > { %v10397_v25 = vpop.f32.mrf.mxu1  ;;  %v2342_v23 = vpop.f32.mrf.mxu0 }
 0x2df   : > { %12629 = vst [vmem:[#allocation71_spill] sm:$0xff] %v10394_v38  ;;  %v10400_v52 = vadd.f32 %v12631_v16, %v2351_v4  ;;  %v2343_v41 = vadd.f32 %v2342_v23, %v12633_v6  ;;  %v12639_v16 = vld [vmem:[#allocation21_spill] sm:$0xff] }
 0x2e0   : > { %v2682_v40 = vpop.f32.mrf.mxu1  ;;  %v8041_v42 = vpop.f32.mrf.mxu0  ;;  %v12641_v6 = vld [vmem:[#allocation25_spill] sm:$0xff] }
 0x2e1   : > { %12632 = vst [vmem:[#allocation73_spill] sm:$0xff] %v10400_v52  ;;  %v10404_v62 = vadd.f32 %v12634_v19, %v2343_v41  ;;  %v2354_v10 = vadd.f32 %v8041_v42, %v10132_v13  ;;  %v12643_v42 = vld [vmem:[#allocation28_spill] sm:$0xff] }
 0x2e2   : > { %v10407_v7 = vpop.f32.mrf.mxu1  ;;  %v2345_v11 = vpop.f32.mrf.mxu0 }
 0x2e3   : > { %12635 = vst [vmem:[#allocation72_spill] sm:$0xff] %v10404_v62  ;;  %v10410_v0 = vadd.f32 %v12636_v59, %v2354_v10  ;;  %v2346_v12 = vadd.f32 %v2345_v11, %v12638_v20  ;;  %v12644_v59 = vld [vmem:[#allocation47_spill] sm:$0xff] }
 0x2e4   : > { %v2685_v38 = vpop.f32.mrf.mxu1  ;;  %v8044_v4 = vpop.f32.mrf.mxu0 }
 0x2e5   : > { %12637 = vst [vmem:[#allocation75_spill] sm:$0xff] %v10410_v0  ;;  %v10414_v52 = vadd.f32 %v12639_v16, %v2346_v12  ;;  %v2367_v40 = vadd.f32 %v8044_v4, %v10170_v36  ;;  %v12646_v38 = vld [vmem:[#allocation44_spill] sm:$0xff]  ;;  %v12649_v4 = vld [vmem:[#allocation58_spill] sm:$0xff] }
 0x2e6   : > { %v10417_v23 = vpop.f32.mrf.mxu1  ;;  %v2358_v41 = vpop.f32.mrf.mxu0  ;;  %v12647_v16 = vld [vmem:[#allocation56_spill] sm:$0xff] }
 0x2e7   : > { %12640 = vst [vmem:[#allocation74_spill] sm:$0xff] %v10414_v52  ;;  %v10420_v13 = vadd.f32 %v12641_v6, %v2367_v40  ;;  %v2359_v19 = vadd.f32 %v2358_v41, %v12643_v42  ;;  %v12650_v6 = vld [vmem:[#allocation53_spill] sm:$0xff] }
 0x2e8   : > { %v2690_v62 = vpop.f32.mrf.mxu1  ;;  %v8045_v10 = vpop.f32.mrf.mxu0 }
 0x2e9   : > { %12642 = vst [vmem:[#allocation78_spill] sm:$0xff] %v10420_v13  ;;  %v10424_v0 = vadd.f32 %v12644_v59, %v2359_v19  ;;  %v2370_v11 = vadd.f32 %v8045_v10, %v12646_v38  ;;  %v12652_v59 = vld [vmem:[#allocation39_spill] sm:$0xff] }
 0x2ea   : > { %v10427_v20 = vpop.f32.mrf.mxu1  ;;  %v2361_v12 = vpop.f32.mrf.mxu0 }
 0x2eb   : > { %12645 = vst [vmem:[#allocation76_spill] sm:$0xff] %v10424_v0  ;;  %v10430_v36 = vadd.f32 %v12647_v16, %v2370_v11  ;;  %v2362_v52 = vadd.f32 %v2361_v12, %v12649_v4  ;;  %v12655_v4 = vld [vmem:[#allocation41_spill] sm:$0xff] }
 0x2ec   : > { %v2693_v54 = vpop.f32.mrf.mxu1  ;;  %v8064_v40 = vpop.f32.mrf.mxu0 }
 0x2ed   : > { %12648 = vst [vmem:[#allocation79_spill] sm:$0xff] %v10430_v36  ;;  %v10434_v13 = vadd.f32 %v12650_v6, %v2362_v52  ;;  %v2834_v42 = vadd.f32 %v8064_v40, %v10222_v47 }
 0x2ee   : > { %v10436_v62 = vpop.f32.mrf.mxu1  ;;  %v2825_v41 = vpop.f32.mrf.mxu0 }
 0x2ef   : > { %12651 = vst [vmem:[#allocation77_spill] sm:$0xff] %v10434_v13  ;;  %v10440_v38 = vadd.f32 %v2825_v41, %v12652_v59  ;;  %v3163_v16 = vrot.slane %v2834_v42, 1 }
 0x2f0   : > { %v2698_v19 = vpop.f32.mrf.mxu1  ;;  %v8065_v10 = vpop.f32.mrf.mxu0 }
 0x2f1   : > { %12653 = vst [vmem:[#allocation36_spill] sm:$0xff] %v10440_v38  ;;  %v2837_v11 = vadd.f32 %v8065_v10, %v10231_v50  ;;  %v12409_v47 = vrot.slane %v10440_v38, 1  ;;  %v10453_v50 = vld [vmem:[%s12385_s3] ss:$0 sm:$0xff] }
 0x2f2   : > { %v10444_v12 = vpop.f32.mrf.mxu1  ;;  %v2828_v54 = vpop.f32.mrf.mxu0  ;;  %v12656_v19 = vld [vmem:[#allocation29_spill] sm:$0xff] }
 0x2f3   : > { %12654 = vst [vmem:[#allocation38_spill] sm:$0xff] %v10444_v12  ;;  %v3164_v52 = vrot.slane %v2837_v11, 1  ;;  %v2829_v6 = vadd.f32 %v2828_v54, %v12655_v4 }
 0x2f4   : > { %v2701_v13 = vpop.f32.mrf.mxu1  ;;  %v8068_v0 = vpop.f32.mrf.mxu0 }
 0x2f5   : > { %v3254_v40 = vsel %vm3209_vm11, %v3163_v16, %v3164_v52  ;;  %v3162_v41 = vrot.slane %v2829_v6, 1  ;;  %v2850_v54 = vadd.f32 %v8068_v0, %v10260_v61  ;;  %v12657_v6 = vld [vmem:[#allocation46_spill] sm:$0xff] }
 0x2f6   : > { %v3260_v10 = vadd.f32 %v3254_v40, %v12656_v19  ;;  %v10456_v59 = vpop.f32.mrf.mxu1  ;;  %v2841_v42 = vpop.f32.mrf.mxu0 }
 0x2f7   : > { %v3255_v13 = vsel %vm3209_vm11, %v3162_v41, %v3163_v16  ;;  %v3256_v11 = vsel %vm3209_vm11, %v12409_v47, %v3162_v41  ;;  %v2842_v4 = vadd.f32 %v2841_v42, %v10241_v27  ;;  %v3167_v27 = vrot.slane %v2850_v54, 1  ;;  %v12658_v42 = vld [vmem:[#allocation19_spill] sm:$0xff] }
 0x2f8   : > { %v3315_v36 = vadd.f32 %v10453_v50, %v3260_v10  ;;  %v3258_v14 = vadd.f32 %v3256_v11, %v12657_v6  ;;  %v3259_v40 = vadd.f32 %v3255_v13, %v10219_v34  ;;  %v2706_v19 = vpop.f32.mrf.mxu1  ;;  %v8069_v8 = vpop.f32.mrf.mxu0 }
 0x2f9   : > { %v3165_v17 = vrot.slane %v2842_v4, 1  ;;  %v2853_v16 = vadd.f32 %v8069_v8, %v10269_v48 }
 0x2fa   : > { %v3363_v12 = vmax.f32 %v3315_v36, 0.0  ;;  %v3313_v38 = vadd.f32 %v10453_v50, %v3258_v14  ;;  %v3314_v41 = vadd.f32 %v10453_v50, %v3259_v40  ;;  %v10472_v47 = vpop.f32.mrf.mxu1  ;;  %v2844_v61 = vpop.f32.mrf.mxu0  ;;  %v12659_v40 = vld [vmem:[#allocation18_spill] sm:$0xff] }
 0x2fb   : > { %v3253_v0 = vsel %vm3209_vm11, %v3164_v52, %v3165_v17  ;;  %v3168_v10 = vrot.slane %v2853_v16, 1  ;;  %v2845_v34 = vadd.f32 %v2844_v61, %v10250_v60 }
 0x2fc   : > { %v3411_v13 = vmul.f32 %v12658_v42, %v3363_v12  ;;  %v3361_v11 = vmax.f32 %v3313_v38, 0.0  ;;  %v3362_v4 = vmax.f32 %v3314_v41, 0.0  ;;  %v3261_v48 = vadd.f32 %v3253_v0, %v10215_v5  ;;  %v2709_v8 = vpop.f32.mrf.mxu1  ;;  %v8072_v14 = vpop.f32.mrf.mxu0 }
 0x2fd   : > { %v3250_v36 = vsel %vm3209_vm11, %v3167_v27, %v3168_v10  ;;  %v3166_v6 = vrot.slane %v2845_v34, 1  ;;  %v2866_v54 = vadd.f32 %v8072_v14, %v10297_v35  ;;  %v12660_v8 = vld [vmem:[#allocation54_spill] sm:$0xff] }
 0x2fe   : > { %v3409_v52 = vmul.f32 %v12659_v40, %v3361_v11  ;;  %v7311_v19 = vpack.c.bf16 %v3411_v13, %v3362_v4  ;;  %v3316_v60 = vadd.f32 %v10453_v50, %v3261_v48  ;;  %v3264_v12 = vadd.f32 %v3250_v36, %v10224_v31  ;;  %v10485_v38 = vpop.f32.mrf.mxu1  ;;  %v2857_v16 = vpop.f32.mrf.mxu0 }
 0x2ff   : > { %v3251_v5 = vsel %vm3209_vm11, %v3166_v6, %v3167_v27  ;;  %v3252_v41 = vsel %vm3209_vm11, %v3165_v17, %v3166_v6  ;;  %v2858_v61 = vadd.f32 %v2857_v16, %v10277_v37  ;;  %v3171_v6 = vrot.slane %v2866_v54, 1 }
 0x300   : > { %v7209_v35 = vpack.c.bf16 %v3409_v52, %v3409_v52  ;;  %7658 = vst [vmem:[%s10493_s21 + $0x10] sm:$0xff] %v7311_v19   ;;  %v7421_v0 = vpack.c.bf16 %v3362_v4, %v3409_v52  ;;  %v3364_v31 = vmax.f32 %v3316_v60, 0.0  ;;  %v3319_v34 = vadd.f32 %v10453_v50, %v3264_v12  ;;  %v2714_v11 = vpop.f32.mrf.mxu1  ;;  %v8073_v48 = vpop.f32.mrf.mxu0 }
 0x301   : > { %v3262_v27 = vadd.f32 %v3252_v41, %v12660_v8  ;;  %v3263_v14 = vadd.f32 %v3251_v5, %v10238_v45  ;;  %v3169_v36 = vrot.slane %v2858_v61, 1  ;;  %v2869_v17 = vadd.f32 %v8073_v48, %v10307_v3 }
 0x302   : > { %6978 = vst [vmem:[%s10493_s21 + $0xc] sm:$0xf] %v7209_v35  ;;  %7422 = vst [vmem:[%s10502_s22] sm:$0xff] %v7421_v0   ;;  %v3412_v37 = vmul.f32 %v12659_v40, %v3364_v31  ;;  %v3367_v4 = vmax.f32 %v3319_v34, 0.0  ;;  %v10506_v52 = vpop.f32.mrf.mxu1  ;;  %v2860_v19 = vpop.f32.mrf.mxu0 }
 0x303   : > { %v3317_v60 = vadd.f32 %v10453_v50, %v3262_v27  ;;  %v3318_v45 = vadd.f32 %v10453_v50, %v3263_v14  ;;  %v3249_v3 = vsel %vm3209_vm11, %v3168_v10, %v3169_v36  ;;  %v3172_v12 = vrot.slane %v2869_v17, 1 }
 0x304   : > { %v7426_v16 = vpack.c.bf16 %v3412_v37, %v3411_v13  ;;  %v3265_v5 = vadd.f32 %v3249_v3, %v10234_v15  ;;  %v2861_v41 = vadd.f32 %v2860_v19, %v10287_v57  ;;  %v2717_v61 = vpop.f32.mrf.mxu1  ;;  %v8076_v35 = vpop.f32.mrf.mxu0  ;;  %v3415_v15 = vmul.f32 %v12659_v40, %v3367_v4 }
 0x305   : > { %v3365_v0 = vmax.f32 %v3317_v60, 0.0  ;;  %v3366_v54 = vmax.f32 %v3318_v45, 0.0  ;;  %v3246_v31 = vsel %vm3209_vm11, %v3171_v6, %v3172_v12 }
 0x306   : > { %7680 = vst [vmem:[%s10502_s22 + $0x8] sm:$0xff] %v7426_v16   ;;  %v3320_v34 = vadd.f32 %v10453_v50, %v3265_v5  ;;  %v3268_v11 = vadd.f32 %v3246_v31, %v10243_v30  ;;  %v3170_v10 = vrot.slane %v2861_v41, 1  ;;  %v10519_v48 = vpop.f32.mrf.mxu1  ;;  %v2873_v13 = vpop.f32.mrf.mxu0  ;;  %v2882_v30 = vadd.f32 %v8076_v35, %v10337_v9 }
 0x307   : > { %v3414_v57 = vmul.f32 %v12658_v42, %v3366_v54  ;;  %v7316_v8 = vpack.c.bf16 %v3365_v0, %v3412_v37  ;;  %v2874_v27 = vadd.f32 %v2873_v13, %v10317_v39 }
 0x308   : > { %v3368_v14 = vmax.f32 %v3320_v34, 0.0  ;;  %v3247_v17 = vsel %vm3209_vm11, %v3170_v10, %v3171_v6  ;;  %v3248_v19 = vsel %vm3209_vm11, %v3169_v36, %v3170_v10  ;;  %v2722_v60 = vpop.f32.mrf.mxu1  ;;  %v8077_v45 = vpop.f32.mrf.mxu0  ;;  %v3323_v6 = vadd.f32 %v10453_v50, %v3268_v11 }
 0x309   : > { %7659 = vst [vmem:[%s10493_s21 + $0x18] sm:$0xff] %v7316_v8   ;;  %v7321_v4 = vpack.c.bf16 %v3415_v15, %v3414_v57  ;;  %v7431_v3 = vpack.c.bf16 %v3414_v57, %v3365_v0  ;;  %v3266_v37 = vadd.f32 %v3248_v19, %v10247_v1  ;;  %v3267_v39 = vadd.f32 %v3247_v17, %v10257_v32 }
 0x30a   : > { %v7436_v16 = vpack.c.bf16 %v3368_v14, %v3415_v15  ;;  %v3173_v5 = vrot.slane %v2874_v27, 1  ;;  %v2885_v41 = vadd.f32 %v8077_v45, %v10347_v24  ;;  %v10534_v36 = vpop.f32.mrf.mxu1  ;;  %v2876_v61 = vpop.f32.mrf.mxu0  ;;  %v3175_v1 = vrot.slane %v2882_v30, 1 }
 0x30b   : > { %7660 = vst [vmem:[%s10493_s21 + $0x20] sm:$0xff] %v7321_v4   ;;  %7681 = vst [vmem:[%s10502_s22 + $0x10] sm:$0xff] %v7431_v3   ;;  %v3321_v9 = vadd.f32 %v10453_v50, %v3266_v37  ;;  %v3322_v35 = vadd.f32 %v10453_v50, %v3267_v39  ;;  %v2877_v0 = vadd.f32 %v2876_v61, %v10327_v44  ;;  %v3371_v15 = vmax.f32 %v3323_v6, 0.0 }
 0x30c   : > { %7682 = vst [vmem:[%s10502_s22 + $0x18] sm:$0xff] %v7436_v16   ;;  %v3245_v32 = vsel %vm3209_vm11, %v3172_v12, %v3173_v5  ;;  %v3176_v54 = vrot.slane %v2885_v41, 1  ;;  %v2725_v31 = vpop.f32.mrf.mxu1  ;;  %v8080_v34 = vpop.f32.mrf.mxu0 }
 0x30d   : > { %v3369_v24 = vmax.f32 %v3321_v9, 0.0  ;;  %v3370_v11 = vmax.f32 %v3322_v35, 0.0  ;;  %v3269_v10 = vadd.f32 %v3245_v32, %v10253_v33  ;;  %v3174_v13 = vrot.slane %v2877_v0, 1 }
 0x30e   : > { %v3242_v57 = vsel %vm3209_vm11, %v3175_v1, %v3176_v54  ;;  %v2898_v8 = vadd.f32 %v8080_v34, %v10377_v21  ;;  %v10548_v44 = vpop.f32.mrf.mxu1  ;;  %v2889_v27 = vpop.f32.mrf.mxu0 }
 0x30f   : > { %v3417_v17 = vmul.f32 %v12658_v42, %v3369_v24  ;;  %v3418_v12 = vmul.f32 %v12659_v40, %v3370_v11  ;;  %v3324_v19 = vadd.f32 %v10453_v50, %v3269_v10  ;;  %v3272_v30 = vadd.f32 %v3242_v57, %v10262_v53 }
 0x310   : > { %v3243_v33 = vsel %vm3209_vm11, %v3174_v13, %v3175_v1  ;;  %v3244_v60 = vsel %vm3209_vm11, %v3173_v5, %v3174_v13  ;;  %v2890_v21 = vadd.f32 %v2889_v27, %v10357_v29  ;;  %v2730_v45 = vpop.f32.mrf.mxu1  ;;  %v8081_v4 = vpop.f32.mrf.mxu0  ;;  %v3179_v5 = vrot.slane %v2898_v8, 1 }
 0x311   : > { %v7326_v3 = vpack.c.bf16 %v3417_v17, %v3368_v14  ;;  %v7331_v37 = vpack.c.bf16 %v3371_v15, %v3418_v12  ;;  %v7441_v39 = vpack.c.bf16 %v3418_v12, %v3417_v17  ;;  %v3372_v16 = vmax.f32 %v3324_v19, 0.0 }
 0x312   : > { %v3327_v6 = vadd.f32 %v10453_v50, %v3272_v30  ;;  %v3270_v53 = vadd.f32 %v3244_v60, %v10266_v58  ;;  %v3271_v41 = vadd.f32 %v3243_v33, %v10274_v18  ;;  %v3177_v61 = vrot.slane %v2890_v21, 1  ;;  %v10562_v9 = vpop.f32.mrf.mxu1  ;;  %v2892_v35 = vpop.f32.mrf.mxu0 }
 0x313   : > { %7661 = vst [vmem:[%s10493_s21 + $0x28] sm:$0xff] %v7326_v3   ;;  %7662 = vst [vmem:[%s10493_s21 + $0x30] sm:$0xff] %v7331_v37   ;;  %v3420_v29 = vmul.f32 %v12658_v42, %v3372_v16  ;;  %v2901_v14 = vadd.f32 %v8081_v4, %v10387_v22  ;;  %v2893_v0 = vadd.f32 %v2892_v35, %v10367_v26 }
 0x314   : > { %7683 = vst [vmem:[%s10502_s22 + $0x20] sm:$0xff] %v7441_v39   ;;  %v3375_v1 = vmax.f32 %v3327_v6, 0.0  ;;  %v3325_v58 = vadd.f32 %v10453_v50, %v3270_v53  ;;  %v3326_v18 = vadd.f32 %v10453_v50, %v3271_v41  ;;  %v3241_v32 = vsel %vm3209_vm11, %v3176_v54, %v3177_v61  ;;  %v2733_v31 = vpop.f32.mrf.mxu1  ;;  %v8084_v34 = vpop.f32.mrf.mxu0 }
 0x315   : > { %v7446_v24 = vpack.c.bf16 %v3420_v29, %v3371_v15  ;;  %v3273_v11 = vadd.f32 %v3241_v32, %v10271_v56  ;;  %v3180_v10 = vrot.slane %v2901_v14, 1  ;;  %v3178_v13 = vrot.slane %v2893_v0, 1 }
 0x316   : > { %v3423_v22 = vmul.f32 %v12658_v42, %v3375_v1  ;;  %v3373_v57 = vmax.f32 %v3325_v58, 0.0  ;;  %v3374_v26 = vmax.f32 %v3326_v18, 0.0  ;;  %v2914_v8 = vadd.f32 %v8084_v34, %v10417_v23  ;;  %v10577_v27 = vpop.f32.mrf.mxu1  ;;  %v2905_v17 = vpop.f32.mrf.mxu0 }
 0x317   : > { %7684 = vst [vmem:[%s10502_s22 + $0x28] sm:$0xff] %v7446_v24   ;;  %v3328_v54 = vadd.f32 %v10453_v50, %v3273_v11  ;;  %v3238_v15 = vsel %vm3209_vm11, %v3179_v5, %v3180_v10  ;;  %v3239_v56 = vsel %vm3209_vm11, %v3178_v13, %v3179_v5  ;;  %v3240_v12 = vsel %vm3209_vm11, %v3177_v61, %v3178_v13 }
 0x318   : > { %v3421_v19 = vmul.f32 %v12659_v40, %v3373_v57  ;;  %v7341_v30 = vpack.c.bf16 %v3423_v22, %v3374_v26  ;;  %v3276_v23 = vadd.f32 %v3238_v15, %v10280_v63  ;;  %v3274_v33 = vadd.f32 %v3240_v12, %v10284_v28  ;;  %v2738_v60 = vpop.f32.mrf.mxu1  ;;  %v8085_v21 = vpop.f32.mrf.mxu0 }
 0x319   : > { %v3376_v45 = vmax.f32 %v3328_v54, 0.0  ;;  %v3275_v4 = vadd.f32 %v3239_v56, %v10294_v43  ;;  %v2906_v3 = vadd.f32 %v2905_v17, %v10397_v25  ;;  %v2917_v35 = vadd.f32 %v8085_v21, %v10427_v20 }
 0x31a   : > { %v7336_v37 = vpack.c.bf16 %v3421_v19, %v3420_v29  ;;  %7664 = vst [vmem:[%s10493_s21 + $0x40] sm:$0xff] %v7341_v30   ;;  %v7451_v39 = vpack.c.bf16 %v3374_v26, %v3421_v19  ;;  %v3331_v16 = vadd.f32 %v10453_v50, %v3276_v23  ;;  %v3329_v6 = vadd.f32 %v10453_v50, %v3274_v33  ;;  %v10595_v53 = vpop.f32.mrf.mxu1  ;;  %v2908_v63 = vpop.f32.mrf.mxu0 }
 0x31b   : > { %v3424_v28 = vmul.f32 %v12659_v40, %v3376_v45  ;;  %v3330_v41 = vadd.f32 %v10453_v50, %v3275_v4  ;;  %v3181_v61 = vrot.slane %v2906_v3, 1  ;;  %v3183_v29 = vrot.slane %v2914_v8, 1  ;;  %v12661_v4 = vld [vmem:[#allocation38_spill] sm:$0xff] }
 0x31c   : > { %7663 = vst [vmem:[%s10493_s21 + $0x38] sm:$0xff] %v7336_v37   ;;  %7685 = vst [vmem:[%s10502_s22 + $0x30] sm:$0xff] %v7451_v39   ;;  %v3379_v43 = vmax.f32 %v3331_v16, 0.0  ;;  %v3377_v25 = vmax.f32 %v3329_v6, 0.0  ;;  %v2909_v5 = vadd.f32 %v2908_v63, %v10407_v7  ;;  %v2741_v14 = vpop.f32.mrf.mxu1  ;;  %v8088_v0 = vpop.f32.mrf.mxu0  ;;  %v3184_v32 = vrot.slane %v2917_v35, 1 }
 0x31d   : > { %v7456_v1 = vpack.c.bf16 %v3424_v28, %v3423_v22  ;;  %v3378_v58 = vmax.f32 %v3330_v41, 0.0  ;;  %v3237_v18 = vsel %vm3209_vm11, %v3180_v10, %v3181_v61  ;;  %v2930_v57 = vadd.f32 %v8088_v0, %v10456_v59 }
 0x31e   : > { %v3427_v31 = vmul.f32 %v12659_v40, %v3379_v43  ;;  %v7346_v20 = vpack.c.bf16 %v3377_v25, %v3424_v28  ;;  %v3277_v34 = vadd.f32 %v3237_v18, %v10290_v55  ;;  %v3182_v24 = vrot.slane %v2909_v5, 1  ;;  %v10607_v11 = vpop.f32.mrf.mxu1  ;;  %v2921_v13 = vpop.f32.mrf.mxu0  ;;  %v12662_v28 = vld [vmem:[#allocation49_spill] sm:$0xff] }
 0x31f   : > { %7686 = vst [vmem:[%s10502_s22 + $0x38] sm:$0xff] %v7456_v1   ;;  %v3426_v7 = vmul.f32 %v12658_v42, %v3378_v58  ;;  %v3234_v22 = vsel %vm3209_vm11, %v3183_v29, %v3184_v32  ;;  %v2922_v10 = vadd.f32 %v2921_v13, %v10436_v62  ;;  %v12663_v58 = vld [vmem:[#allocation30_spill] sm:$0xff] }
 0x320   : > { %7665 = vst [vmem:[%s10493_s21 + $0x48] sm:$0xff] %v7346_v20   ;;  %v3332_v26 = vadd.f32 %v10453_v50, %v3277_v34  ;;  %v3280_v55 = vadd.f32 %v3234_v22, %v10300_v46  ;;  %v3235_v8 = vsel %vm3209_vm11, %v3182_v24, %v3183_v29  ;;  %v3236_v17 = vsel %vm3209_vm11, %v3181_v61, %v3182_v24  ;;  %v2746_v54 = vpop.f32.mrf.mxu1  ;;  %v8089_v15 = vpop.f32.mrf.mxu0 }
 0x321   : > { %v7351_v56 = vpack.c.bf16 %v3427_v31, %v3426_v7  ;;  %v7461_v12 = vpack.c.bf16 %v3426_v7, %v3377_v25  ;;  %v3278_v59 = vadd.f32 %v3236_v17, %v10304_v51  ;;  %v3279_v62 = vadd.f32 %v3235_v8, %v10314_v49 }
 0x322   : > { %v3380_v19 = vmax.f32 %v3332_v26, 0.0  ;;  %v3335_v30 = vadd.f32 %v10453_v50, %v3280_v55  ;;  %v3185_v23 = vrot.slane %v2922_v10, 1  ;;  %v10625_v33 = vpop.f32.mrf.mxu1  ;;  %v2924_v46 = vpop.f32.mrf.mxu0  ;;  %v2933_v45 = vadd.f32 %v8089_v15, %v10472_v47  ;;  %v12665_v26 = vld [vmem:[#allocation60_spill] sm:$0xff] }
 0x323   : > { %7666 = vst [vmem:[%s10493_s21 + $0x50] sm:$0xff] %v7351_v56   ;;  %7687 = vst [vmem:[%s10502_s22 + $0x40] sm:$0xff] %v7461_v12   ;;  %v3333_v60 = vadd.f32 %v10453_v50, %v3278_v59  ;;  %v3334_v21 = vadd.f32 %v10453_v50, %v3279_v62  ;;  %v2925_v51 = vadd.f32 %v2924_v46, %v12661_v4  ;;  %v3187_v49 = vrot.slane %v2930_v57, 1  ;;  %v12664_v57 = vld [vmem:[#allocation57_spill] sm:$0xff] }
 0x324   : > { %v7466_v3 = vpack.c.bf16 %v3380_v19, %v3427_v31  ;;  %v3233_v37 = vsel %vm3209_vm11, %v3184_v32, %v3185_v23  ;;  %v2749_v39 = vpop.f32.mrf.mxu1  ;;  %v8092_v16 = vpop.f32.mrf.mxu0  ;;  %v3188_v61 = vrot.slane %v2933_v45, 1  ;;  %v3383_v35 = vmax.f32 %v3335_v30, 0.0 }
 0x325   : > { %v3381_v6 = vmax.f32 %v3333_v60, 0.0  ;;  %v3382_v63 = vmax.f32 %v3334_v21, 0.0  ;;  %v3281_v41 = vadd.f32 %v3233_v37, %v12662_v28  ;;  %v3186_v43 = vrot.slane %v2925_v51, 1  ;;  %v12666_v39 = vld [vmem:[#allocation51_spill] sm:$0xff] }
 0x326   : > { %7688 = vst [vmem:[%s10502_s22 + $0x48] sm:$0xff] %v7466_v3   ;;  %v2946_v25 = vadd.f32 %v8092_v16, %v10519_v48  ;;  %v10638_v47 = vpop.f32.mrf.mxu1  ;;  %v2937_v29 = vpop.f32.mrf.mxu0  ;;  %v3230_v1 = vsel %vm3209_vm11, %v3187_v49, %v3188_v61 }
 0x327   : > { %v3429_v5 = vmul.f32 %v12658_v42, %v3381_v6  ;;  %v3430_v14 = vmul.f32 %v12659_v40, %v3382_v63  ;;  %v3336_v0 = vadd.f32 %v10453_v50, %v3281_v41  ;;  %v3284_v18 = vadd.f32 %v3230_v1, %v12663_v58  ;;  %v12669_v1 = vld [vmem:[#allocation61_spill] sm:$0xff] }
 0x328   : > { %v3231_v32 = vsel %vm3209_vm11, %v3186_v43, %v3187_v49  ;;  %v3232_v48 = vsel %vm3209_vm11, %v3185_v23, %v3186_v43  ;;  %v2754_v31 = vpop.f32.mrf.mxu1  ;;  %v8093_v20 = vpop.f32.mrf.mxu0  ;;  %v2938_v8 = vadd.f32 %v2937_v29, %v10485_v38  ;;  %v3191_v56 = vrot.slane %v2946_v25, 1  ;;  %v12668_v25 = vld [vmem:[#allocation66_spill] sm:$0xff] }
 0x329   : > { %v7356_v34 = vpack.c.bf16 %v3429_v5, %v3380_v19  ;;  %v7361_v24 = vpack.c.bf16 %v3383_v35, %v3430_v14  ;;  %v7471_v13 = vpack.c.bf16 %v3430_v14, %v3429_v5  ;;  %v3384_v7 = vmax.f32 %v3336_v0, 0.0 }
 0x32a   : > { %v3339_v22 = vadd.f32 %v10453_v50, %v3284_v18  ;;  %v3282_v10 = vadd.f32 %v3232_v48, %v12664_v57  ;;  %v3283_v55 = vadd.f32 %v3231_v32, %v12665_v26  ;;  %v10654_v17 = vpop.f32.mrf.mxu1  ;;  %v2940_v54 = vpop.f32.mrf.mxu0  ;;  %v2949_v12 = vadd.f32 %v8093_v20, %v10534_v36 }
 0x32b   : > { %7667 = vst [vmem:[%s10493_s21 + $0x58] sm:$0xff] %v7356_v34   ;;  %7668 = vst [vmem:[%s10493_s21 + $0x60] sm:$0xff] %v7361_v24   ;;  %v3432_v15 = vmul.f32 %v12658_v42, %v3384_v7  ;;  %v2941_v59 = vadd.f32 %v2940_v54, %v10506_v52  ;;  %v3189_v30 = vrot.slane %v2938_v8, 1 }
 0x32c   : > { %7689 = vst [vmem:[%s10502_s22 + $0x50] sm:$0xff] %v7471_v13   ;;  %v3387_v62 = vmax.f32 %v3339_v22, 0.0  ;;  %v3337_v19 = vadd.f32 %v10453_v50, %v3282_v10  ;;  %v3338_v38 = vadd.f32 %v10453_v50, %v3283_v55  ;;  %v2757_v23 = vpop.f32.mrf.mxu1  ;;  %v8096_v46 = vpop.f32.mrf.mxu0  ;;  %v3192_v45 = vrot.slane %v2949_v12, 1 }
 0x32d   : > { %v7232_v60 = vpack.c.bf16 %v3432_v15, %v3432_v15  ;;  %v7476_v21 = vpack.c.bf16 %v3432_v15, %v3383_v35  ;;  %v3190_v4 = vrot.slane %v2941_v59, 1  ;;  %v3229_v52 = vsel %vm3209_vm11, %v3188_v61, %v3189_v30  ;;  %v12667_v35 = vld [vmem:[#allocation35_spill] sm:$0xff] }
 0x32e   : > { %v3435_v51 = vmul.f32 %v12658_v42, %v3387_v62  ;;  %v3385_v3 = vmax.f32 %v3337_v19, 0.0  ;;  %v3386_v36 = vmax.f32 %v3338_v38, 0.0  ;;  %v10667_v49 = vpop.f32.mrf.mxu1  ;;  %v2953_v37 = vpop.f32.mrf.mxu0  ;;  %v3285_v16 = vadd.f32 %v3229_v52, %v12666_v39  ;;  %v12670_v59 = vld [vmem:[#allocation63_spill] sm:$0xff]  ;;  %v12671_v39 = vld [vmem:[#allocation64_spill] sm:$0xff] }
 0x32f   : > { %7001 = vst [vmem:[%s10493_s21 + $0x68] sm:$0xf] %v7232_v60  ;;  %7690 = vst [vmem:[%s10502_s22 + $0x58] sm:$0xff] %v7476_v21   ;;  %v3226_v6 = vsel %vm3209_vm11, %v3191_v56, %v3192_v45  ;;  %v3227_v63 = vsel %vm3209_vm11, %v3190_v4, %v3191_v56  ;;  %v3228_v28 = vsel %vm3209_vm11, %v3189_v30, %v3190_v4 }
 0x330   : > { %v3433_v41 = vmul.f32 %v12659_v40, %v3385_v3  ;;  %v7366_v61 = vpack.c.bf16 %v3435_v51, %v3386_v36  ;;  %v3288_v43 = vadd.f32 %v3226_v6, %v12667_v35  ;;  %v3286_v29 = vadd.f32 %v3228_v28, %v12668_v25  ;;  %v2762_v5 = vpop.f32.mrf.mxu1  ;;  %v8097_v14 = vpop.f32.mrf.mxu0  ;;  %v12672_v6 = vld [vmem:[#allocation62_spill] sm:$0xff] }
 0x331   : > { %v3340_v0 = vadd.f32 %v10453_v50, %v3285_v16  ;;  %v3287_v58 = vadd.f32 %v3227_v63, %v12669_v1  ;;  %v2962_v18 = vadd.f32 %v8096_v46, %v10577_v27  ;;  %v2954_v32 = vadd.f32 %v2953_v37, %v10548_v44 }
 0x332   : > { %v7233_v48 = vpack.c.bf16 %v3433_v41, %v3433_v41  ;;  %7669 = vst [vmem:[%s10493_s21 + $0xe8] sm:$0xff] %v7366_v61   ;;  %v7481_v31 = vpack.c.bf16 %v3386_v36, %v3433_v41  ;;  %v3343_v20 = vadd.f32 %v10453_v50, %v3288_v43  ;;  %v3341_v34 = vadd.f32 %v10453_v50, %v3286_v29  ;;  %v10688_v24 = vpop.f32.mrf.mxu1  ;;  %v2956_v13 = vpop.f32.mrf.mxu0  ;;  %v12673_v41 = vld [vmem:[#allocation65_spill] sm:$0xff] }
 0x333   : > { %v3388_v7 = vmax.f32 %v3340_v0, 0.0  ;;  %v3342_v22 = vadd.f32 %v10453_v50, %v3287_v58  ;;  %v3193_v57 = vrot.slane %v2954_v32, 1  ;;  %v2965_v44 = vadd.f32 %v8097_v14, %v10595_v53 }
 0x334   : > { %7002 = vst [vmem:[%s10493_s21 + $0xe4] sm:$0xf] %v7233_v48  ;;  %7691 = vst [vmem:[%s10502_s22 + $0xc0] sm:$0xff] %v7481_v31   ;;  %v3391_v10 = vmax.f32 %v3343_v20, 0.0  ;;  %v3389_v27 = vmax.f32 %v3341_v34, 0.0  ;;  %v2957_v26 = vadd.f32 %v2956_v13, %v10562_v9  ;;  %v2765_v55 = vpop.f32.mrf.mxu1  ;;  %v8100_v8 = vpop.f32.mrf.mxu0  ;;  %v3195_v56 = vrot.slane %v2962_v18, 1 }
 0x335   : > { %v3436_v54 = vmul.f32 %v12659_v40, %v3388_v7  ;;  %v3390_v15 = vmax.f32 %v3342_v22, 0.0  ;;  %v3225_v12 = vsel %vm3209_vm11, %v3192_v45, %v3193_v57  ;;  %v3196_v19 = vrot.slane %v2965_v44, 1 }
 0x336   : > { %v3289_v62 = vadd.f32 %v3225_v12, %v12670_v59  ;;  %v3194_v38 = vrot.slane %v2957_v26, 1  ;;  %v2978_v30 = vadd.f32 %v8100_v8, %v10638_v47  ;;  %v2768_v53 = vpop.f32.mrf.mxu1  ;;  %v2969_v23 = vpop.f32.mrf.mxu0  ;;  %v3439_v46 = vmul.f32 %v12659_v40, %v3391_v10  ;;  %v12675_v26 = vld [vmem:[#allocation69_spill] sm:$0xff] }
 0x337   : > { %v7486_v9 = vpack.c.bf16 %v3436_v54, %v3435_v51  ;;  %v3438_v60 = vmul.f32 %v12658_v42, %v3390_v15  ;;  %v7371_v21 = vpack.c.bf16 %v3389_v27, %v3436_v54  ;;  %v3222_v45 = vsel %vm3209_vm11, %v3195_v56, %v3196_v19 }
 0x338   : > { %v3344_v4 = vadd.f32 %v10453_v50, %v3289_v62  ;;  %v3223_v3 = vsel %vm3209_vm11, %v3194_v38, %v3195_v56  ;;  %v3224_v47 = vsel %vm3209_vm11, %v3193_v57, %v3194_v38  ;;  %v2770_v36 = vpop.f32.mrf.mxu1  ;;  %v8101_v51 = vpop.f32.mrf.mxu0  ;;  %v3292_v16 = vadd.f32 %v3222_v45, %v12671_v39  ;;  %v12676_v56 = vld [vmem:[#allocation71_spill] sm:$0xff] }
 0x339   : > { %7692 = vst [vmem:[%s10502_s22 + $0xc8] sm:$0xff] %v7486_v9   ;;  %7670 = vst [vmem:[%s10493_s21 + $0xf0] sm:$0xff] %v7371_v21   ;;  %v7376_v52 = vpack.c.bf16 %v3439_v46, %v3438_v60  ;;  %v7491_v37 = vpack.c.bf16 %v3438_v60, %v3389_v27  ;;  %v3290_v63 = vadd.f32 %v3224_v47, %v12672_v6  ;;  %v3199_v0 = vrot.slane %v2978_v30, 1  ;;  %v12674_v27 = vld [vmem:[#allocation68_spill] sm:$0xff]  ;;  %v12677_v9 = vld [vmem:[#allocation67_spill] sm:$0xff] }
 0x33a   : > { %v3392_v28 = vmax.f32 %v3344_v4, 0.0  ;;  %v3291_v61 = vadd.f32 %v3223_v3, %v12673_v41  ;;  %v2970_v35 = vadd.f32 %v2969_v23, %v10607_v11  ;;  %v10716_v43 = vadd.f32 %v8101_v51, %v10654_v17  ;;  %v2771_v25 = vpop.f32.mrf.mxu1  ;;  %v2972_v29 = vpop.f32.mrf.mxu0 }
 0x33b   : > { %7671 = vst [vmem:[%s10493_s21 + $0xf8] sm:$0xff] %v7376_v52   ;;  %7693 = vst [vmem:[%s10502_s22 + $0xd0] sm:$0xff] %v7491_v37   ;;  %v3347_v5 = vadd.f32 %v10453_v50, %v3292_v16  ;;  %v3345_v14 = vadd.f32 %v10453_v50, %v3290_v63  ;;  %v2973_v1 = vadd.f32 %v2972_v29, %v10625_v33 }
 0x33c   : > { %v7496_v58 = vpack.c.bf16 %v3392_v28, %v3439_v46  ;;  %v3346_v18 = vadd.f32 %v10453_v50, %v3291_v61  ;;  %v3197_v32 = vrot.slane %v2970_v35, 1  ;;  %v3200_v11 = vrot.slane %v10716_v43, 1  ;;  %v2773_v17 = vpop.f32.mrf.mxu1  ;;  %v8104_v48 = vpop.f32.mrf.mxu0 }
 0x33d   : > { %v3393_v31 = vmax.f32 %v3345_v14, 0.0  ;;  %v3198_v20 = vrot.slane %v2973_v1, 1  ;;  %v3395_v34 = vmax.f32 %v3347_v5, 0.0  ;;  %v2994_v59 = vadd.f32 %v8104_v48, %v2768_v53  ;;  %v12678_v1 = vld [vmem:[#allocation70_spill] sm:$0xff] }
 0x33e   : > { %7694 = vst [vmem:[%s10502_s22 + $0xd8] sm:$0xff] %v7496_v58   ;;  %v3394_v13 = vmax.f32 %v3346_v18, 0.0  ;;  %v3221_v7 = vsel %vm3209_vm11, %v3196_v19, %v3197_v32  ;;  %v3218_v22 = vsel %vm3209_vm11, %v3199_v0, %v3200_v11  ;;  %v2776_v33 = vpop.f32.mrf.mxu1  ;;  %v2985_v57 = vpop.f32.mrf.mxu0 }
 0x33f   : > { %v3441_v10 = vmul.f32 %v12658_v42, %v3393_v31  ;;  %v3293_v44 = vadd.f32 %v3221_v7, %v12674_v27  ;;  %v3296_v55 = vadd.f32 %v3218_v22, %v12675_v26  ;;  %v3219_v8 = vsel %vm3209_vm11, %v3198_v20, %v3199_v0  ;;  %v12679_v7 = vld [vmem:[#allocation73_spill] sm:$0xff]  ;;  %v12681_v27 = vld [vmem:[#allocation74_spill] sm:$0xff] }
 0x340   : > { %v3442_v54 = vmul.f32 %v12659_v40, %v3394_v13  ;;  %v3220_v15 = vsel %vm3209_vm11, %v3197_v32, %v3198_v20  ;;  %v3295_v12 = vadd.f32 %v3219_v8, %v12676_v56  ;;  %v2778_v62 = vpop.f32.mrf.mxu1  ;;  %v8105_v19 = vpop.f32.mrf.mxu0  ;;  %v2986_v45 = vadd.f32 %v2985_v57, %v10667_v49  ;;  %v12680_v57 = vld [vmem:[#allocation72_spill] sm:$0xff] }
 0x341   : > { %v7381_v38 = vpack.c.bf16 %v3441_v10, %v3392_v28  ;;  %v3348_v30 = vadd.f32 %v10453_v50, %v3293_v44  ;;  %v3351_v23 = vadd.f32 %v10453_v50, %v3296_v55  ;;  %v3294_v46 = vadd.f32 %v3220_v15, %v12677_v9 }
 0x342   : > { %v7386_v60 = vpack.c.bf16 %v3395_v34, %v3442_v54  ;;  %v7501_v21 = vpack.c.bf16 %v3442_v54, %v3441_v10  ;;  %v3350_v4 = vadd.f32 %v10453_v50, %v3295_v12  ;;  %v2779_v3 = vpop.f32.mrf.mxu1  ;;  %v2988_v47 = vpop.f32.mrf.mxu0  ;;  %v2997_v52 = vadd.f32 %v8105_v19, %v2771_v25 }
 0x343   : > { %7672 = vst [vmem:[%s10493_s21 + $0x100] sm:$0xff] %v7381_v38   ;;  %v3396_v53 = vmax.f32 %v3348_v30, 0.0  ;;  %v3399_v36 = vmax.f32 %v3351_v23, 0.0  ;;  %v3349_v51 = vadd.f32 %v10453_v50, %v3294_v46  ;;  %v3201_v39 = vrot.slane %v2986_v45, 1 }
 0x344   : > { %7673 = vst [vmem:[%s10493_s21 + $0x108] sm:$0xff] %v7386_v60   ;;  %7695 = vst [vmem:[%s10502_s22 + $0xe0] sm:$0xff] %v7501_v21   ;;  %v3398_v37 = vmax.f32 %v3350_v4, 0.0  ;;  %v2989_v16 = vadd.f32 %v2988_v47, %v10688_v24  ;;  %v2781_v6 = vpop.f32.mrf.mxu1  ;;  %v8108_v63 = vpop.f32.mrf.mxu0  ;;  %v3204_v61 = vrot.slane %v2997_v52, 1  ;;  %v3203_v35 = vrot.slane %v2994_v59, 1  ;;  %v12682_v47 = vld [vmem:[#allocation75_spill] sm:$0xff] }
 0x345   : > { %v3444_v28 = vmul.f32 %v12658_v42, %v3396_v53  ;;  %v3447_v49 = vmul.f32 %v12658_v42, %v3399_v36  ;;  %v3397_v41 = vmax.f32 %v3349_v51, 0.0  ;;  %v3217_v43 = vsel %vm3209_vm11, %v3200_v11, %v3201_v39  ;;  %v12685_v6 = vld [vmem:[#allocation78_spill] sm:$0xff] }
 0x346   : > { %v3202_v25 = vrot.slane %v2989_v16, 1  ;;  %v2784_v29 = vpop.f32.mrf.mxu1  ;;  %v3001_v5 = vpop.f32.mrf.mxu0  ;;  %v3297_v58 = vadd.f32 %v3217_v43, %v12678_v1  ;;  %v3214_v18 = vsel %vm3209_vm11, %v3203_v35, %v3204_v61  ;;  %v12688_v1 = vld [vmem:[#allocation77_spill] sm:$0xff] }
 0x347   : > { %v7506_v14 = vpack.c.bf16 %v3444_v28, %v3395_v34  ;;  %v3445_v24 = vmul.f32 %v12659_v40, %v3397_v41  ;;  %v7396_v0 = vpack.c.bf16 %v3447_v49, %v3398_v37  ;;  %v3010_v17 = vadd.f32 %v8108_v63, %v2784_v29  ;;  %v12687_v29 = vld [vmem:[#allocation76_spill] sm:$0xff] }
 0x348   : > { %v3215_v32 = vsel %vm3209_vm11, %v3202_v25, %v3203_v35  ;;  %v3216_v11 = vsel %vm3209_vm11, %v3201_v39, %v3202_v25  ;;  %v2786_v48 = vpop.f32.mrf.mxu1  ;;  %v8109_v31 = vpop.f32.mrf.mxu0  ;;  %v3352_v13 = vadd.f32 %v10453_v50, %v3297_v58  ;;  %v3300_v22 = vadd.f32 %v3214_v18, %v12679_v7 }
 0x349   : > { %7696 = vst [vmem:[%s10502_s22 + $0xe8] sm:$0xff] %v7506_v14   ;;  %v7391_v20 = vpack.c.bf16 %v3445_v24, %v3444_v28  ;;  %7675 = vst [vmem:[%s10493_s21 + $0x118] sm:$0xff] %v7396_v0   ;;  %v7511_v34 = vpack.c.bf16 %v3398_v37, %v3445_v24  ;;  %v3298_v10 = vadd.f32 %v3216_v11, %v12680_v57  ;;  %v3207_v19 = vrot.slane %v3010_v17, 1  ;;  %v12683_v37 = vld [vmem:[#allocation36_spill] sm:$0xff] }
 0x34a   : > { %v3299_v44 = vadd.f32 %v3215_v32, %v12681_v27  ;;  %v3002_v26 = vadd.f32 %v3001_v5, %v2776_v33  ;;  %v2787_v55 = vpop.f32.mrf.mxu1  ;;  %v3004_v8 = vpop.f32.mrf.mxu0  ;;  %v3400_v54 = vmax.f32 %v3352_v13, 0.0  ;;  %v3355_v15 = vadd.f32 %v10453_v50, %v3300_v22 }
 0x34b   : > { %7674 = vst [vmem:[%s10493_s21 + $0x110] sm:$0xff] %v7391_v20   ;;  %7697 = vst [vmem:[%s10502_s22 + $0xf0] sm:$0xff] %v7511_v34   ;;  %v3013_v56 = vadd.f32 %v8109_v31, %v2787_v55  ;;  %v3005_v12 = vadd.f32 %v3004_v8, %v2779_v3  ;;  %v3353_v59 = vadd.f32 %v10453_v50, %v3298_v10  ;;  %v12684_v39 = vrot.slane %v12683_v37, 1 }
 0x34c   : > { %v3354_v62 = vadd.f32 %v10453_v50, %v3299_v44  ;;  %v3205_v38 = vrot.slane %v3002_v26, 1  ;;  %v2789_v30 = vpop.f32.mrf.mxu1  ;;  %v3448_v23 = vmul.f32 %v12659_v40, %v3400_v54  ;;  %v3403_v33 = vmax.f32 %v3355_v15, 0.0 }
 0x34d   : > { %v3208_v9 = vrot.slane %v3013_v56, 1  ;;  %v3206_v46 = vrot.slane %v3005_v12, 1  ;;  %v3401_v60 = vmax.f32 %v3353_v59, 0.0 }
 0x34e   : > { %v3402_v21 = vmax.f32 %v3354_v62, 0.0  ;;  %v3213_v4 = vsel %vm3209_vm11, %v3204_v61, %v3205_v38  ;;  %v7516_v45 = vpack.c.bf16 %v3448_v23, %v3447_v49  ;;  %v3451_v3 = vmul.f32 %v12659_v40, %v3403_v33  ;;  %v12686_v49 = vld [vmem:[#allocation79_spill] sm:$0xff] }
 0x34f   : > { %v3301_v53 = vadd.f32 %v3213_v4, %v12682_v47  ;;  %v3210_v36 = vsel %vm3209_vm11, %v3207_v19, %v3208_v9  ;;  %v7401_v52 = vpack.c.bf16 %v3401_v60, %v3448_v23  ;;  %v3257_v16 = vsel %vm3209_vm11, %v3208_v9, %v12684_v39 }
 0x350   : > { %v3450_v51 = vmul.f32 %v12658_v42, %v3402_v21  ;;  %v3304_v63 = vadd.f32 %v3210_v36, %v12685_v6  ;;  %7698 = vst [vmem:[%s10502_s22 + $0xf8] sm:$0xff] %v7516_v45   ;;  %v3305_v41 = vadd.f32 %v3257_v16, %v12686_v49  ;;  %v3211_v61 = vsel %vm3209_vm11, %v3206_v46, %v3207_v19 }
 0x351   : > { %v3356_v28 = vadd.f32 %v10453_v50, %v3301_v53  ;;  %v3212_v35 = vsel %vm3209_vm11, %v3205_v38, %v3206_v46  ;;  %7676 = vst [vmem:[%s10493_s21 + $0x120] sm:$0xff] %v7401_v52   ;;  %v3303_v58 = vadd.f32 %v3211_v61, %v12688_v1 }
 0x352   : > { %v7406_v43 = vpack.c.bf16 %v3451_v3, %v3450_v51  ;;  %v7521_v25 = vpack.c.bf16 %v3450_v51, %v3401_v60  ;;  %v3302_v5 = vadd.f32 %v3212_v35, %v12687_v29  ;;  %v3359_v24 = vadd.f32 %v10453_v50, %v3304_v63 }
 0x353   : > { %v3404_v14 = vmax.f32 %v3356_v28, 0.0  ;;  %v3360_v0 = vadd.f32 %v10453_v50, %v3305_v41  ;;  %v3358_v17 = vadd.f32 %v10453_v50, %v3303_v58 }
 0x354   : > { %7677 = vst [vmem:[%s10493_s21 + $0x128] sm:$0xff] %v7406_v43   ;;  %7699 = vst [vmem:[%s10502_s22 + $0x100] sm:$0xff] %v7521_v25   ;;  %v3357_v18 = vadd.f32 %v10453_v50, %v3302_v5  ;;  %v3407_v31 = vmax.f32 %v3359_v24, 0.0 }
 0x355   : > { %v7526_v32 = vpack.c.bf16 %v3404_v14, %v3451_v3  ;;  %v3408_v11 = vmax.f32 %v3360_v0, 0.0  ;;  %v3406_v34 = vmax.f32 %v3358_v17, 0.0 }
 0x356   : > { %v3405_v48 = vmax.f32 %v3357_v18, 0.0 }
 0x357   : > { %7700 = vst [vmem:[%s10502_s22 + $0x108] sm:$0xff] %v7526_v32   ;;  %v3456_v20 = vmul.f32 %v12658_v42, %v3408_v11  ;;  %v3454_v57 = vmul.f32 %v12659_v40, %v3406_v34 }
 0x358   : > { %v3453_v13 = vmul.f32 %v12658_v42, %v3405_v48 }
 0x359   : > { %v7256_v7 = vpack.c.bf16 %v3456_v20, %v3456_v20  ;;  %v7536_v22 = vpack.c.bf16 %v3456_v20, %v3407_v31  ;;  %v7416_v27 = vpack.c.bf16 %v3407_v31, %v3454_v57  ;;  %794 = sbr.rel (!%p792_p2) target bundleno = 171 (0xab), region = 106 }
 0x35a   : > { %v7411_v10 = vpack.c.bf16 %v3453_v13, %v3404_v14  ;;  %v7531_v44 = vpack.c.bf16 %v3454_v57, %v3453_v13 }
 0x35b   : > { %7025 = vst [vmem:[%s10493_s21 + $0x140] sm:$0xf] %v7256_v7  ;;  %7702 = vst [vmem:[%s10502_s22 + $0x118] sm:$0xff] %v7536_v22  }
 0x35c   : > { %7678 = vst [vmem:[%s10493_s21 + $0x130] sm:$0xff] %v7411_v10   ;;  %7679 = vst [vmem:[%s10493_s21 + $0x138] sm:$0xff] %v7416_v27  }
 0x35d   : > { %7701 = vst [vmem:[%s10502_s22 + $0x110] sm:$0xff] %v7531_v44  }
 0x35e LB: > { %v8497_v50 = vld [vmem:[#allocation9 + $0x38] sm:$0xff]   ;;  %v8765_v26 = vmov 0   ;;  %v8499_v8 = vld [vmem:[#allocation9 + $0x30] sm:$0xff]   ;;  %v10827_v40 = vld [vmem:[#allocation9 + $0xa8] sm:$0xff]   ;;  %s7258_s3 = smul.u32 96, %s8755_s23  ;;  %s3772_s23 = sadd.s32 1, %s8755_s23   ;;  %s8755_s23 = sphi %s10813_s23, %s3772_s23  }
 0x35f   : > { %4257 = vmatprep.subr.bf16.mxu0 %v8765_v26  ;;  %v10819_v55 = vld [vmem:[#allocation9 + $0xb8] sm:$0xff]   ;;  %v10823_v42 = vld [vmem:[#allocation9 + $0xb0] sm:$0xff]   ;;  %v8501_v54 = vld [vmem:[#allocation9 + $0x28] sm:$0xff]   ;;  %p3769_p3 = scmp.ge.s32.totalorder %s3772_s23, 2  }
 0x360   : > { %4258 = vmatpush1.bf16.msra.mxu0 %v8497_v50  ;;  %8318 = vmatprep.subr.bf16.mxu1 %v10819_v55  ;;  %v10832_v15 = vld [vmem:[#allocation9 + $0xa0] sm:$0xff]   ;;  %v10838_v12 = vld [vmem:[#allocation9 + $0x98] sm:$0xff]   ;;  %s10844_s24 = scalar_lea.vmem [#allocation3], %s7258_s3  ;;  %v10851_v38 = vld [vmem:[#allocation9 + $0x90] sm:$0xff]   ;;  %s12112_s29 = scalar_lea.vmem [#allocation11], %s7258_s3 }
 0x361   : > { %4259 = vmatprep.subr.bf16.mxu0 %v8765_v26  ;;  %8326 = vmatpush3.bf16.msra.mxu1 %v10819_v55  ;;  %v8503_v56 = vld [vmem:[#allocation9 + $0x20] sm:$0xff]   ;;  %v8505_v59 = vld [vmem:[#allocation9 + $0x18] sm:$0xff]   ;;  %v8507_v33 = vld [vmem:[#allocation9 + $0x10] sm:$0xff]   ;;  %s8766_s30 = smov (%p3769_p3), [#allocation10]   ;;  %s8767_s8 = smov (%p3769_p3), [#allocation11]  }
 0x362   : > { %8319 = vmatprep.subr.bf16.mxu1 %v10823_v42  ;;  %v10863_v46 = vld [vmem:[#allocation9 + $0x88] sm:$0xff]   ;;  %v10872_v3 = vld [vmem:[#allocation9 + $0x80] sm:$0xff]   ;;  %v8514_v36 = vld [vmem:[#allocation9 + $0x78] sm:$0xff]   ;;  %s6649_s7 = sshll.u32 (%p3769_p3), %s8766_s30, 4  ;;  %s6661_s9 = sshll.u32 (%p3769_p3), %s8767_s8, 4  ;;  %s6650_s7 = int_to_ptr.vmem [resolvable:$true] %s6649_s7  ;;  %s6662_s9 = int_to_ptr.vmem [resolvable:$true] %s6661_s9 }
 0x363   : > { %v10847_v62 = vld [vmem:[%s10844_s24 + $0x58] sm:$0xf]  ;;  %v3800_v19 = vld [vmem:[%s10844_s24 + $0x5c] sm:$0xf]  ;;  %v3801_v23 = vld [vmem:[%s10844_s24 + $0x60] sm:$0xf]  ;;  %p8690_p5 = scmp.lt.s32.totalorder (%p3769_p3), %s6650_s7, %s6650_s7 }
 0x364   : > { %4260 = vmatpush1.bf16.msra.mxu0 %v8499_v8  ;;  %v10854_v30 = vcombine.low %v10847_v62, %v3800_v19  ;;  %v10857_v9 = vcombine.low %v3800_v19, %v3801_v23  ;;  %v3802_v60 = vld [vmem:[%s10844_s24 + $0x64] sm:$0xf]  ;;  %v3803_v21 = vld [vmem:[%s10844_s24 + $0x68] sm:$0xf]  ;;  %v3804_v53 = vld [vmem:[%s10844_s24 + $0x6c] sm:$0xf] }
 0x365   : > { %4261 = vmatprep.subr.bf16.mxu0 %v8765_v26  ;;  %8327 = vmatpush3.bf16.msra.mxu1 %v10823_v42  ;;  %v8509_v4 = vld [vmem:[#allocation9 + $0x8] sm:$0xff]   ;;  %v10867_v45 = vcombine.low %v3802_v60, %v3803_v21  ;;  %v8511_v47 = vld [vmem:[#allocation9] sm:$0xff]   ;;  %v10879_v51 = vcombine.low %v3801_v23, %v3802_v60  ;;  %v8516_v52 = vld [vmem:[#allocation9 + $0xf8] sm:$0xff]   ;;  %v10882_v37 = vcombine.low %v3803_v21, %v3804_v53  ;;  %s8685_s10 = scalar_lea.vmem (%p3769_p3), %s6650_s7, 6144 }
 0x366   : > { %8320 = vmatprep.subr.bf16.mxu1 %v10827_v40  ;;  %8142 = vmatprep.mubr.bf16.mxu1 %v10854_v30  ;;  %v8517_v39 = vld [vmem:[#allocation9 + $0x70] sm:$0xff]   ;;  %v8520_v6 = vld [vmem:[#allocation9 + $0x68] sm:$0xff]   ;;  %v8523_v29 = vld [vmem:[#allocation9 + $0x60] sm:$0xff]   ;;  %p8686_p4 = scmp.ne.s32.totalorder (%p3769_p3), %s6650_s7, %s8685_s10  ;;  %p8691_p6 = scmp.lt.s32.totalorder (%p3769_p3), %s8685_s10, %s8685_s10 }
 0x367   : > { %v8518_v16 = vld [vmem:[#allocation9 + $0xf0] sm:$0xff]   ;;  %v10894_v49 = vld [vmem:[%s10844_s24 + $0xc] sm:$0xf]  ;;  %v3815_v5 = vld [vmem:[%s10844_s24 + $0xf8] sm:$0xf] }
 0x368   : > { %4262 = vmatpush1.bf16.msra.mxu0 %v8501_v54  ;;  %v10889_v63 = vld [vmem:[%s10844_s24 + $0xf0] sm:$0xf]  ;;  %v3814_v28 = vld [vmem:[%s10844_s24 + $0xf4] sm:$0xf]  ;;  %v8522_v43 = vld [vmem:[#allocation9 + $0xe8] sm:$0xff]   ;;  %p8692_p7 = por (%p3769_p3), %p8691_p6, %p8690_p5 }
 0x369   : > { %4263 = vmatprep.subr.bf16.mxu0 %v8765_v26  ;;  %8328 = vmatpush3.bf16.msra.mxu1 %v10827_v40  ;;  %v10897_v41 = vld [vmem:[%s10844_s24 + $0x10] sm:$0xf]  ;;  %v10906_v25 = vcombine.low %v10889_v63, %v3814_v28  ;;  %v10912_v14 = vcombine.low %v3814_v28, %v3815_v5  ;;  %v8524_v24 = vld [vmem:[#allocation9 + $0xe0] sm:$0xff]   ;;  %v3816_v0 = vld [vmem:[%s10844_s24 + $0xfc] sm:$0xf] }
 0x36a   : > { %8321 = vmatprep.subr.bf16.mxu1 %v10832_v15  ;;  %v8521_v61 = vld [vmem:[%s10844_s24 + $0x70] sm:$0xff]   ;;  %v10903_v35 = vcombine.low %v10894_v49, %v10897_v41  ;;  %v3817_v1 = vld [vmem:[%s10844_s24 + $0x100] sm:$0xf]  ;;  %v3818_v58 = vld [vmem:[%s10844_s24 + $0x104] sm:$0xf]  ;;  %v10920_v32 = vcombine.low %v3815_v5, %v3816_v0  ;;  %p8693_p8 = pnand (%p3769_p3), %p8692_p7, %p8686_p4 }
 0x36b   : > { %12690 = vst [vmem:[#allocation80_spill] sm:$0xff] %v10912_v14  ;;  %v8526_v18 = vld [vmem:[#allocation9 + $0x58] sm:$0xff]   ;;  %v10922_v17 = vcombine.low %v3817_v1, %v3818_v58  ;;  %v8529_v48 = vld [vmem:[#allocation9 + $0x50] sm:$0xff]   ;;  %v3819_v20 = vld [vmem:[%s10844_s24 + $0x108] sm:$0xf]  ;;  %v10929_v13 = vcombine.low %v3816_v0, %v3817_v1 }
 0x36c   : > { %4264 = vmatpush1.bf16.msra.mxu0 %v8503_v56  ;;  %4289 = vmatprep.mubr.bf16.mxu0 %v10903_v35  ;;  %v8528_v11 = vld [vmem:[#allocation9 + $0xd8] sm:$0xff]   ;;  %v8530_v31 = vld [vmem:[#allocation9 + $0xd0] sm:$0xff]   ;;  %v3820_v34 = vld [vmem:[%s10844_s24 + $0x10c] sm:$0xf]  ;;  %v10956_v23 = vcombine.low %v3818_v58, %v3819_v20 }
 0x36d   : > { %4265 = vmatprep.subr.bf16.mxu0 %v8765_v26  ;;  %8329 = vmatpush3.bf16.msra.mxu1 %v10832_v15  ;;  %12691 = vst [vmem:[#allocation81_spill] sm:$0xff] %v10929_v13  ;;  %v3821_v7 = vld [vmem:[%s10844_s24 + $0x110] sm:$0xf]  ;;  %v10935_v22 = vld [vmem:[%s10844_s24 + $0x114] sm:$0xf]  ;;  %v8532_v57 = vld [vmem:[#allocation9 + $0x48] sm:$0xff]   ;;  %v10938_v10 = vcombine.low %v3819_v20, %v3820_v34 }
 0x36e   : > { %8322 = vmatprep.subr.bf16.mxu1 %v10838_v12  ;;  %v8534_v27 = vld [vmem:[#allocation9 + $0xc8] sm:$0xff]   ;;  %v10941_v44 = vcombine.low %v3821_v7, %v10935_v22  ;;  %v8535_v50 = vld [vmem:[#allocation9 + $0x40] sm:$0xff]   ;;  %v3823_v56 = vld [vmem:[%s10844_s24 + $0x118] sm:$0xf]  ;;  %12692 = vst [vmem:[#allocation82_spill] sm:$0xff] %v10956_v23  ;;  %v11012_v5 = vcombine.low %v3820_v34, %v3821_v7 }
 0x36f   : > { %v8536_v8 = vld [vmem:[#allocation9 + $0xc0] sm:$0xff]   ;;  %v10954_v19 = vld [vmem:[%s10844_s24 + $0x18] sm:$0xf]  ;;  %v10997_v28 = vld [vmem:[%s10844_s24 + $0x12c] sm:$0xf] }
 0x370   : > { %4266 = vmatpush1.bf16.msra.mxu0 %v8505_v59  ;;  %v10947_v54 = vld [vmem:[%s10844_s24] sm:$0xff]   ;;  %v10951_v59 = vld [vmem:[%s10844_s24 + $0x14] sm:$0xf]  ;;  %12694 = vst [vmem:[#allocation84_spill] sm:$0xff] %v11012_v5  ;;  %v11049_v20 = vld [vmem:[%s10844_s24 + $0x13c] sm:$0xf] }
 0x371   : > { %4267 = vmatprep.subr.bf16.mxu0 %v8765_v26  ;;  %8330 = vmatpush3.bf16.msra.mxu1 %v10838_v12  ;;  %v10964_v60 = vld [vmem:[%s10844_s24 + $0x120] sm:$0xf]  ;;  %v10967_v21 = vld [vmem:[%s10844_s24 + $0x124] sm:$0xf]  ;;  %v11023_v1 = vld [vmem:[%s10844_s24 + $0x134] sm:$0xf] }
 0x372   : > { %8323 = vmatprep.subr.bf16.mxu1 %v10851_v38  ;;  %v11054_v34 = vld [vmem:[%s10844_s24 + $0x140] sm:$0xf]  ;;  %v3834_v7 = vld [vmem:[%s10844_s24 + $0x144] sm:$0xf] }
 0x374   : > { %4268 = vmatpush1.bf16.msra.mxu0 %v8507_v33  ;;  %v10960_v33 = vld [vmem:[%s10844_s24 + $0x11c] sm:$0xf] }
 0x375   : > { %4269 = vmatprep.subr.bf16.mxu0 %v8765_v26  ;;  %8331 = vmatpush3.bf16.msra.mxu1 %v10851_v38 }
 0x376   : > { %8324 = vmatprep.subr.bf16.mxu1 %v10863_v46 }
 0x378   : > { %4270 = vmatpush1.bf16.msra.mxu0 %v8509_v4  ;;  %v10970_v4 = vld [vmem:[%s10844_s24 + $0x54] sm:$0xf] }
 0x379   : > { %4271 = vmatprep.subr.bf16.mxu0 %v8765_v26  ;;  %8332 = vmatpush3.bf16.msra.mxu1 %v10863_v46  ;;  %v10978_v53 = vcombine.low %v10970_v4, %v10847_v62  ;;  %v8542_v62 = vld [vmem:[#allocation9 + $0x130] sm:$0xff]  }
 0x37a   : > { %8325 = vmatprep.subr.bf16.mxu1 %v10872_v3 }
 0x37c   : > { %4272 = vmatpush1.bf16.msra.mxu0 %v8511_v47  ;;  %v10974_v47 = vcombine.low %v10951_v59, %v10954_v19 }
 0x37d   : > { %4273 = vmatprep.subr.bf16.mxu0 %v8765_v26  ;;  %8333 = vmatpush3.bf16.msra.mxu1 %v10872_v3 }
 0x37e   : > { %4900 = vmatprep.subr.bf16.mxu1 %v8765_v26 }
 0x380   : > { %4274 = vmatpush2.bf16.msra.mxu0 %v8514_v36  ;;  %8143 = vmatmul.mubr.bf16.vlgmr.msra.gmra.mxu1 %v10879_v51  ;;  %v10982_v36 = vcombine.low %v3823_v56, %v10960_v33 }
 0x381   : > { %4275 = vmatprep.subr.bf16.mxu0 %v8765_v26  ;;  %4901 = vmatpush1.bf16.msra.mxu1 %v8516_v52  ;;  %v8541_v52 = vld [vmem:[#allocation9 + $0x138] sm:$0xff]  }
 0x382   : > { %8146 = vmatprep.mubr.bf16.mxu1 %v10882_v37  ;;  %4902 = vmatprep.subr.bf16.mxu1 %v8765_v26 }
 0x384   : > { %4276 = vmatpush2.bf16.msra.mxu0 %v8517_v39  ;;  %v10986_v39 = vcombine.low %v10964_v60, %v10967_v21 }
 0x385   : > { %4277 = vmatprep.subr.bf16.mxu0 %v8765_v26  ;;  %4903 = vmatpush1.bf16.msra.mxu1 %v8518_v16  ;;  %v3779_v16 = vld [vmem:[%s10844_s24 + $0x8] sm:$0xf] }
 0x386   : > { %4904 = vmatprep.subr.bf16.mxu1 %v8765_v26  ;;  %v11020_v0 = vcombine.low %v3779_v16, %v10894_v49 }
 0x388   : > { %4278 = vmatpush2.bf16.msra.mxu0 %v8520_v6  ;;  %8147 = vmatmul.mubr.bf16.gmra.mxu1 %v8521_v61  ;;  %v10994_v6 = vld [vmem:[%s10844_s24 + $0x128] sm:$0xf]  ;;  %v3784_v61 = vld [vmem:[%s10844_s24 + $0x1c] sm:$0xf] }
 0x389   : > { %4279 = vmatprep.subr.bf16.mxu0 %v8765_v26  ;;  %4905 = vmatpush1.bf16.msra.mxu1 %v8522_v43  ;;  %v11001_v43 = vld [vmem:[%s10844_s24 + $0xec] sm:$0xf] }
 0x38a   : > { %8150 = vmatprep.mubr.bf16.mxu1 %v10906_v25  ;;  %4906 = vmatprep.subr.bf16.mxu1 %v8765_v26 }
 0x38c   : > { %4280 = vmatpush2.bf16.msra.mxu0 %v8523_v29  ;;  %v11005_v29 = vld [vmem:[%s10844_s24 + $0x20] sm:$0xf] }
 0x38d   : > { %4281 = vmatprep.subr.bf16.mxu0 %v8765_v26  ;;  %4907 = vmatpush1.bf16.msra.mxu1 %v8524_v24  ;;  %v11016_v24 = vld [vmem:[%s10844_s24 + $0x130] sm:$0xf]  ;;  %v11026_v58 = vcombine.low %v3784_v61, %v11005_v29 }
 0x38e   : > { %4908 = vmatprep.subr.bf16.mxu1 %v8765_v26  ;;  %v11036_v49 = vcombine.low %v11016_v24, %v11023_v1 }
 0x390   : > { %4282 = vmatpush2.bf16.msra.mxu0 %v8526_v18  ;;  %8151 = vmatmul.mubr.bf16.gmra.mxu1 %v10920_v32  ;;  %v11031_v18 = vcombine.low %v10994_v6, %v10997_v28 }
 0x391   : > { %4283 = vmatprep.subr.bf16.mxu0 %v8765_v26  ;;  %4909 = vmatpush1.bf16.msra.mxu1 %v8528_v11  ;;  %v3786_v11 = vld [vmem:[%s10844_s24 + $0x24] sm:$0xf] }
 0x392   : > { %8154 = vmatprep.mubr.bf16.mxu1 %v10922_v17  ;;  %4910 = vmatprep.subr.bf16.mxu1 %v8765_v26 }
 0x394   : > { %4284 = vmatpush2.bf16.msra.mxu0 %v8529_v48  ;;  %v11042_v48 = vld [vmem:[%s10844_s24 + $0x28] sm:$0xf] }
 0x395   : > { %4285 = vmatprep.subr.bf16.mxu0 %v8765_v26  ;;  %4911 = vmatpush1.bf16.msra.mxu1 %v8530_v31  ;;  %v11046_v31 = vld [vmem:[%s10844_s24 + $0x138] sm:$0xf] }
 0x396   : > { %4912 = vmatprep.subr.bf16.mxu1 %v8765_v26 }
 0x398   : > { %4286 = vmatpush2.bf16.msra.mxu0 %v8532_v57  ;;  %8155 = vmatmul.mubr.bf16.gmra.mxu1 %v10938_v10  ;;  %v11059_v57 = vcombine.low %v10935_v22, %v3823_v56  ;;  %v11077_v22 = vcombine.low %v11054_v34, %v3834_v7  ;;  %v3789_v56 = vld [vmem:[%s10844_s24 + $0x30] sm:$0xf]  ;;  %v8572_v7 = vld [vmem:[#allocation9 + $0x1a8] sm:$0xff]  }
 0x399   : > { %4287 = vmatprep.subr.bf16.mxu0 %v8765_v26  ;;  %4913 = vmatpush1.bf16.msra.mxu1 %v8534_v27  ;;  %v8554_v27 = vld [vmem:[#allocation9 + $0x118] sm:$0xff]  }
 0x39a   : > { %8158 = vmatprep.mubr.bf16.mxu1 %v10941_v44  ;;  %4914 = vmatprep.subr.bf16.mxu1 %v8765_v26  ;;  %12695 = vst [vmem:[#allocation85_spill] sm:$0xff] %v11059_v57 }
 0x39c   : > { %4288 = vmatpush2.bf16.msra.mxu0 %v8535_v50  ;;  %v11068_v50 = vcombine.low %v3786_v11, %v11042_v48 }
 0x39d   : > { %8110 = vmatprep.subr.bf16.mxu0 %v10819_v55  ;;  %4915 = vmatpush1.bf16.msra.mxu1 %v8536_v8  ;;  %v11073_v8 = vcombine.low %v11046_v31, %v11049_v20 }
 0x39e   : > { %4916 = vmatprep.subr.bf16.mxu1 %v8765_v26 }
 0x39f   : > { %4290 = vmatmul.mubr.bf16.vlgmr.msra.gmra.mxu0 %v10947_v54 }
 0x3a0   : > { %8111 = vmatpush3.bf16.msra.mxu0 %v10819_v55  ;;  %4297 = vmatprep.mubr.bf16.mxu0 %v10974_v47  ;;  %v11010_v55 = vcombine.low %v11001_v43, %v10889_v63  ;;  %v8547_v63 = vld [vmem:[#allocation9 + $0x128] sm:$0xff]  }
 0x3a1   : > { %8159 = vmatmul.mubr.bf16.gmra.mxu1 %v10982_v36  ;;  %8112 = vmatprep.subr.bf16.mxu0 %v10823_v42 }
 0x3a2   : > { %12693 = vst [vmem:[#allocation83_spill] sm:$0xff] %v11010_v55  ;;  %4917 = vmatpush2.bf16.msra.mxu1 %v8541_v52  ;;  %8162 = vmatprep.mubr.bf16.mxu1 %v10986_v39  ;;  %v11093_v52 = vcombine.low %v10954_v19, %v3784_v61  ;;  %v3790_v19 = vld [vmem:[%s10844_s24 + $0x34] sm:$0xf]  ;;  %v11117_v61 = vcombine.low %v11005_v29, %v3786_v11 }
 0x3a3   : > { %4918 = vmatprep.subr.bf16.mxu1 %v8765_v26  ;;  %v8569_v29 = vld [vmem:[#allocation9 + $0x1b0] sm:$0xff]  }
 0x3a4   : > { %8113 = vmatpush3.bf16.msra.mxu0 %v10823_v42  ;;  %v8548_v42 = vld [vmem:[#allocation9 + $0x120] sm:$0xff]  }
 0x3a5   : > { %8114 = vmatprep.subr.bf16.mxu0 %v10827_v40 }
 0x3a6   : > { %4919 = vmatpush2.bf16.msra.mxu1 %v8542_v62  ;;  %v8561_v62 = vld [vmem:[#allocation9 + $0x100] sm:$0xff]  }
 0x3a7   : > { %4298 = vmatmul.mubr.bf16.gmra.mxu0 %v11020_v0  ;;  %4920 = vmatprep.subr.bf16.mxu1 %v8765_v26 }
 0x3a8   : > { %4305 = vmatprep.mubr.bf16.mxu0 %v11026_v58  ;;  %8115 = vmatpush3.bf16.msra.mxu0 %v10827_v40  ;;  %v11065_v40 = vcombine.low %v10897_v41, %v10951_v59  ;;  %v3788_v41 = vld [vmem:[%s10844_s24 + $0x2c] sm:$0xf]  ;;  %v8555_v59 = vld [vmem:[#allocation9 + $0x110] sm:$0xff]  }
 0x3a9   : > { %8163 = vmatmul.mubr.bf16.gmra.mxu1 %v11031_v18  ;;  %8116 = vmatprep.subr.bf16.mxu0 %v10832_v15  ;;  %v11096_v16 = vcombine.low %v3788_v41, %v3789_v56 }
 0x3aa   : > { %4921 = vmatpush2.bf16.msra.mxu1 %v8547_v63  ;;  %8166 = vmatprep.mubr.bf16.mxu1 %v11036_v49  ;;  %v8564_v63 = vld [vmem:[#allocation9 + $0x1b8] sm:$0xff]  }
 0x3ab   : > { %4922 = vmatprep.subr.bf16.mxu1 %v8765_v26 }
 0x3ac   : > { %8117 = vmatpush3.bf16.msra.mxu0 %v10832_v15  ;;  %v11089_v15 = vcombine.low %v10960_v33, %v10964_v60  ;;  %v8560_v33 = vld [vmem:[#allocation9 + $0x108] sm:$0xff]   ;;  %v3791_v60 = vld [vmem:[%s10844_s24 + $0x38] sm:$0xf] }
 0x3ad   : > { %8118 = vmatprep.subr.bf16.mxu0 %v10838_v12 }
 0x3ae   : > { %4923 = vmatpush2.bf16.msra.mxu1 %v8548_v42  ;;  %12696 = vst [vmem:[#allocation86_spill] sm:$0xff] %v11089_v15  ;;  %v11138_v42 = vcombine.low %v10997_v28, %v11016_v24  ;;  %v11147_v28 = vcombine.low %v3789_v56, %v3790_v19  ;;  %v3796_v56 = vld [vmem:[%s10844_s24 + $0x4c] sm:$0xf] }
 0x3af   : > { %4306 = vmatmul.mubr.bf16.gmra.mxu0 %v11065_v40  ;;  %4924 = vmatprep.subr.bf16.mxu1 %v8765_v26 }
 0x3b0   : > { %4313 = vmatprep.mubr.bf16.mxu0 %v11068_v50  ;;  %8119 = vmatpush3.bf16.msra.mxu0 %v10838_v12  ;;  %v11100_v12 = vld [vmem:[%s10844_s24 + $0x148] sm:$0xff]   ;;  %12699 = vst [vmem:[#allocation89_spill] sm:$0xff] %v11138_v42 }
 0x3b1   : > { %8167 = vmatmul.mubr.bf16.gmra.mxu1 %v11073_v8  ;;  %8120 = vmatprep.subr.bf16.mxu0 %v10851_v38  ;;  %12697 = vst [vmem:[#allocation87_spill] sm:$0xff] %v11100_v12 }
 0x3b2   : > { %4925 = vmatpush2.bf16.msra.mxu1 %v8554_v27  ;;  %8170 = vmatprep.mubr.bf16.mxu1 %v11077_v22  ;;  %v3795_v27 = vld [vmem:[%s10844_s24 + $0x48] sm:$0xf] }
 0x3b3   : > { %4926 = vmatprep.subr.bf16.mxu1 %v8765_v26 }
 0x3b4   : > { %8121 = vmatpush3.bf16.msra.mxu0 %v10851_v38  ;;  %v11112_v38 = vcombine.low %v10967_v21, %v10994_v6  ;;  %v3792_v21 = vld [vmem:[%s10844_s24 + $0x3c] sm:$0xf]  ;;  %v3793_v6 = vld [vmem:[%s10844_s24 + $0x40] sm:$0xf] }
 0x3b5   : > { %8122 = vmatprep.subr.bf16.mxu0 %v10863_v46  ;;  %v11134_v11 = vcombine.low %v3792_v21, %v3793_v6 }
 0x3b6   : > { %4927 = vmatpush2.bf16.msra.mxu1 %v8555_v59  ;;  %12698 = vst [vmem:[#allocation88_spill] sm:$0xff] %v11112_v38  ;;  %v11154_v59 = vcombine.low %v11023_v1, %v11046_v31  ;;  %v8586_v31 = vld [vmem:[#allocation9 + $0x188] sm:$0xff]  }
 0x3b7   : > { %4314 = vmatmul.mubr.bf16.gmra.mxu0 %v11093_v52  ;;  %4928 = vmatprep.subr.bf16.mxu1 %v8765_v26 }
 0x3b8   : > { %4321 = vmatprep.mubr.bf16.mxu0 %v11096_v16  ;;  %8123 = vmatpush3.bf16.msra.mxu0 %v10863_v46  ;;  %v11120_v46 = vcombine.low %v3790_v19, %v3791_v60  ;;  %12700 = vst [vmem:[#allocation90_spill] sm:$0xff] %v11154_v59  ;;  %v3797_v19 = vld [vmem:[%s10844_s24 + $0x50] sm:$0xf] }
 0x3b9   : > { %8171 = vmatmul.mubr.bf16.gmra.mxu1 %v11100_v12  ;;  %8124 = vmatprep.subr.bf16.mxu0 %v10872_v3  ;;  %v11166_v1 = vcombine.low %v3796_v56, %v3797_v19 }
 0x3ba   : > { %4929 = vmatpush2.bf16.msra.mxu1 %v8560_v33  ;;  %4932 = vmatprep.mubr.bf16.mxu1 %v10903_v35  ;;  %v8579_v33 = vld [vmem:[#allocation9 + $0x198] sm:$0xff]  }
 0x3bb   : > { %4930 = vmatprep.subr.bf16.mxu1 %v8765_v26 }
 0x3bc   : > { %8125 = vmatpush3.bf16.msra.mxu0 %v10872_v3  ;;  %v11131_v3 = vcombine.low %v11042_v48, %v3788_v41  ;;  %v3794_v48 = vld [vmem:[%s10844_s24 + $0x44] sm:$0xf] }
 0x3bd   : > { %v8577_v41 = vld [vmem:[#allocation9 + $0x1a0] sm:$0xff]   ;;  %v11150_v24 = vcombine.low %v3794_v48, %v3795_v27 }
 0x3be   : > { %4931 = vmatpush2.bf16.msra.mxu1 %v8561_v62  ;;  %v8582_v62 = vld [vmem:[#allocation9 + $0x190] sm:$0xff]  }
 0x3bf   : > { %4322 = vmatmul.mubr.bf16.gmra.mxu0 %v11117_v61  ;;  %5543 = vmatprep.subr.bf16.mxu1 %v8765_v26 }
 0x3c0   : > { %4329 = vmatprep.mubr.bf16.mxu0 %v11120_v46 }
 0x3c1   : > { %4933 = vmatmul.mubr.bf16.vlgmr.msra.gmra.mxu1 %v10947_v54 }
 0x3c2   : > { %5544 = vmatpush1.bf16.msra.mxu1 %v8564_v63  ;;  %4940 = vmatprep.mubr.bf16.mxu1 %v10974_v47  ;;  %v11163_v63 = vcombine.low %v3791_v60, %v3792_v21  ;;  %v11173_v60 = vcombine.low %v3793_v6, %v3794_v48  ;;  %v8592_v21 = vld [vmem:[#allocation9 + $0x1f8] sm:$0xff]   ;;  %v8595_v6 = vld [vmem:[#allocation9 + $0x1f0] sm:$0xff]   ;;  %v11184_v48 = vcombine.low %v3795_v27, %v3796_v56 }
 0x3c3   : > { %5545 = vmatprep.subr.bf16.mxu1 %v8765_v26  ;;  %v11193_v27 = vcombine.low %v3797_v19, %v10970_v4  ;;  %v8602_v56 = vld [vmem:[#allocation9 + $0x1d8] sm:$0xff]   ;;  %v8604_v4 = vld [vmem:[#allocation9 + $0x1d0] sm:$0xff]  }
 0x3c6   : > { %5546 = vmatpush1.bf16.msra.mxu1 %v8569_v29  ;;  %v8590_v29 = vld [vmem:[#allocation9 + $0x180] sm:$0xff]  }
 0x3c7   : > { %4330 = vmatmul.mubr.bf16.gmra.mxu0 %v11131_v3  ;;  %5547 = vmatprep.subr.bf16.mxu1 %v8765_v26 }
 0x3c8   : > { %4337 = vmatprep.mubr.bf16.mxu0 %v11134_v11 }
 0x3c9   : > { %4941 = vmatmul.mubr.bf16.gmra.mxu1 %v11020_v0 }
 0x3ca   : > { %4948 = vmatprep.mubr.bf16.mxu1 %v11026_v58  ;;  %5548 = vmatpush1.bf16.msra.mxu1 %v8572_v7  ;;  %v11176_v7 = vld [vmem:[#allocation9 + $0x178] sm:$0xff]  }
 0x3cb   : > { %5549 = vmatprep.subr.bf16.mxu1 %v8765_v26  ;;  %8174 = vmatprep.subr.bf16.mxu0 %v11176_v7 }
 0x3ce   : > { %5550 = vmatpush1.bf16.msra.mxu1 %v8577_v41  ;;  %v8597_v41 = vld [vmem:[#allocation9 + $0x1e8] sm:$0xff]  }
 0x3cf   : > { %4338 = vmatmul.mubr.bf16.gmra.mxu0 %v11147_v28  ;;  %5551 = vmatprep.subr.bf16.mxu1 %v8765_v26 }
 0x3d0   : > { %4345 = vmatprep.mubr.bf16.mxu0 %v11150_v24 }
 0x3d1   : > { %4949 = vmatmul.mubr.bf16.gmra.mxu1 %v11065_v40 }
 0x3d2   : > { %4956 = vmatprep.mubr.bf16.mxu1 %v11068_v50  ;;  %5552 = vmatpush1.bf16.msra.mxu1 %v8579_v33  ;;  %v8600_v33 = vld [vmem:[#allocation9 + $0x1e0] sm:$0xff]  }
 0x3d3   : > { %5553 = vmatprep.subr.bf16.mxu1 %v8765_v26 }
 0x3d6   : > { %5554 = vmatpush1.bf16.msra.mxu1 %v8582_v62  ;;  %v3810_v62 = vld [vmem:[%s10844_s24 + $0xe4] sm:$0xf] }
 0x3d7   : > { %4346 = vmatmul.mubr.bf16.gmra.mxu0 %v11163_v63  ;;  %5555 = vmatprep.subr.bf16.mxu1 %v8765_v26 }
 0x3d8   : > { %4353 = vmatprep.mubr.bf16.mxu0 %v11166_v1 }
 0x3d9   : > { %4957 = vmatmul.mubr.bf16.gmra.mxu1 %v11093_v52 }
 0x3da   : > { %4964 = vmatprep.mubr.bf16.mxu1 %v11096_v16  ;;  %5556 = vmatpush1.bf16.msra.mxu1 %v8586_v31  ;;  %v3811_v31 = vld [vmem:[%s10844_s24 + $0xe8] sm:$0xf] }
 0x3db   : > { %5557 = vmatprep.subr.bf16.mxu1 %v8765_v26  ;;  %v11204_v19 = vcombine.low %v3810_v62, %v3811_v31 }
 0x3dd   : > { %12701 = vst [vmem:[#allocation91_spill] sm:$0xff] %v11204_v19 }
 0x3de   : > { %5558 = vmatpush1.bf16.msra.mxu1 %v8590_v29  ;;  %v8608_v29 = vld [vmem:[#allocation9 + $0x1c8] sm:$0xff]  }
 0x3df   : > { %4354 = vmatmul.mubr.bf16.gmra.mxu0 %v11173_v60  ;;  %5559 = vmatprep.subr.bf16.mxu1 %v8765_v26 }
 0x3e0   : > { %4361 = vmatprep.mubr.bf16.mxu0 %v10978_v53 }
 0x3e1   : > { %4965 = vmatmul.mubr.bf16.gmra.mxu1 %v11117_v61 }
 0x3e2   : > { %4972 = vmatprep.mubr.bf16.mxu1 %v11120_v46  ;;  %5560 = vmatpush2.bf16.msra.mxu1 %v8592_v21  ;;  %v8612_v21 = vld [vmem:[#allocation9 + $0x1c0] sm:$0xff]  }
 0x3e3   : > { %5561 = vmatprep.subr.bf16.mxu1 %v8765_v26 }
 0x3e6   : > { %5562 = vmatpush2.bf16.msra.mxu1 %v8595_v6  ;;  %v11212_v6 = vld [vmem:[%s10844_s24 + $0xd8] sm:$0xff]  }
 0x3e7   : > { %4362 = vmatmul.mubr.bf16.gmra.mxu0 %v11184_v48  ;;  %5563 = vmatprep.subr.bf16.mxu1 %v8765_v26  ;;  %12702 = vst [vmem:[#allocation92_spill] sm:$0xff] %v11212_v6 }
 0x3e8   : > { %4369 = vmatprep.mubr.bf16.mxu0 %v10857_v9 }
 0x3e9   : > { %4973 = vmatmul.mubr.bf16.gmra.mxu1 %v11131_v3 }
 0x3ea   : > { %4980 = vmatprep.mubr.bf16.mxu1 %v11134_v11  ;;  %5564 = vmatpush2.bf16.msra.mxu1 %v8597_v41  ;;  %v3809_v41 = vld [vmem:[%s10844_s24 + $0xe0] sm:$0xf] }
 0x3eb   : > { %5565 = vmatprep.subr.bf16.mxu1 %v8765_v26 }
 0x3ee   : > { %5566 = vmatpush2.bf16.msra.mxu1 %v8600_v33  ;;  %v11220_v33 = vcombine.low %v3809_v41, %v3810_v62 }
 0x3ef   : > { %4370 = vmatmul.mubr.bf16.gmra.mxu0 %v11193_v27  ;;  %5567 = vmatprep.subr.bf16.mxu1 %v8765_v26 }
 0x3f0   : > { %4377 = vmatprep.mubr.bf16.mxu0 %v10867_v45  ;;  %12703 = vst [vmem:[#allocation93_spill] sm:$0xff] %v11220_v33 }
 0x3f1   : > { %4981 = vmatmul.mubr.bf16.gmra.mxu1 %v11147_v28 }
 0x3f2   : > { %4988 = vmatprep.mubr.bf16.mxu1 %v11150_v24  ;;  %5568 = vmatpush2.bf16.msra.mxu1 %v8602_v56 }
 0x3f3   : > { %5569 = vmatprep.subr.bf16.mxu1 %v8765_v26 }
 0x3f6   : > { %5570 = vmatpush2.bf16.msra.mxu1 %v8604_v4 }
 0x3f7   : > { %4378 = vmatmul.mubr.bf16.gmra.mxu0 %v10854_v30  ;;  %5571 = vmatprep.subr.bf16.mxu1 %v8765_v26 }
 0x3f8   : > { %4385 = vmatprep.mubr.bf16.mxu0 %v11204_v19 }
 0x3f9   : > { %4989 = vmatmul.mubr.bf16.gmra.mxu1 %v11163_v63 }
 0x3fa   : > { %4996 = vmatprep.mubr.bf16.mxu1 %v11166_v1  ;;  %5572 = vmatpush2.bf16.msra.mxu1 %v8608_v29 }
 0x3fb   : > { %5573 = vmatprep.subr.bf16.mxu1 %v8765_v26  ;;  %v11227_v26 = vcombine.low %v3811_v31, %v11001_v43 }
 0x3fd   : > { %12704 = vst [vmem:[#allocation94_spill] sm:$0xff] %v11227_v26 }
 0x3fe   : > { %5574 = vmatpush2.bf16.msra.mxu1 %v8612_v21  ;;  %v11275_v21 = vcombine.low %v11049_v20, %v11054_v34 }
 0x3ff   : > { %4386 = vmatmul.mubr.bf16.gmra.mxu0 %v11212_v6 }
 0x400   : > { %4393 = vmatprep.mubr.bf16.mxu0 %v11010_v55  ;;  %12705 = vst [vmem:[#allocation95_spill] sm:$0xff] %v11275_v21 }
 0x401   : > { %4997 = vmatmul.mubr.bf16.gmra.mxu1 %v11173_v60 }
 0x402   : > { %5004 = vmatprep.mubr.bf16.mxu1 %v10978_v53 }
 0x407   : > { %4394 = vmatmul.mubr.bf16.gmra.mxu0 %v11220_v33 }
 0x408   : > { %4401 = vmatprep.mubr.bf16.mxu0 %v10912_v14 }
 0x409   : > { %5005 = vmatmul.mubr.bf16.gmra.mxu1 %v11184_v48 }
 0x40a   : > { %5012 = vmatprep.mubr.bf16.mxu1 %v10857_v9 }
 0x40f   : > { %4402 = vmatmul.mubr.bf16.gmra.mxu0 %v11227_v26 }
 0x410   : > { %4409 = vmatprep.mubr.bf16.mxu0 %v10929_v13 }
 0x411   : > { %5013 = vmatmul.mubr.bf16.gmra.mxu1 %v11193_v27 }
 0x412   : > { %5020 = vmatprep.mubr.bf16.mxu1 %v10867_v45 }
 0x417   : > { %4410 = vmatmul.mubr.bf16.gmra.mxu0 %v10906_v25 }
 0x418   : > { %4417 = vmatprep.mubr.bf16.mxu0 %v10956_v23 }
 0x419   : > { %5021 = vmatmul.mubr.bf16.gmra.mxu1 %v10854_v30 }
 0x41a   : > { %5028 = vmatprep.mubr.bf16.mxu1 %v11204_v19  ;;  %v8607_v19 = vld [vmem:[#allocation9 + $0x168] sm:$0xff]  }
 0x41f   : > { %4418 = vmatmul.mubr.bf16.gmra.mxu0 %v10920_v32 }
 0x420   : > { %4425 = vmatprep.mubr.bf16.mxu0 %v11012_v5 }
 0x421   : > { %5029 = vmatmul.mubr.bf16.gmra.mxu1 %v11212_v6 }
 0x422   : > { %5036 = vmatprep.mubr.bf16.mxu1 %v11010_v55 }
 0x427   : > { %4426 = vmatmul.mubr.bf16.gmra.mxu0 %v10922_v17 }
 0x428   : > { %4433 = vmatprep.mubr.bf16.mxu0 %v11059_v57 }
 0x429   : > { %5037 = vmatmul.mubr.bf16.gmra.mxu1 %v11220_v33 }
 0x42a   : > { %5044 = vmatprep.mubr.bf16.mxu1 %v10912_v14 }
 0x42f   : > { %4434 = vmatmul.mubr.bf16.gmra.mxu0 %v10938_v10 }
 0x430   : > { %4441 = vmatprep.mubr.bf16.mxu0 %v11089_v15 }
 0x431   : > { %5045 = vmatmul.mubr.bf16.gmra.mxu1 %v11227_v26 }
 0x432   : > { %5052 = vmatprep.mubr.bf16.mxu1 %v10929_v13 }
 0x437   : > { %4442 = vmatmul.mubr.bf16.gmra.mxu0 %v10941_v44 }
 0x438   : > { %4449 = vmatprep.mubr.bf16.mxu0 %v11112_v38 }
 0x439   : > { %5053 = vmatmul.mubr.bf16.gmra.mxu1 %v10906_v25 }
 0x43a   : > { %5060 = vmatprep.mubr.bf16.mxu1 %v10956_v23 }
 0x43f   : > { %4450 = vmatmul.mubr.bf16.gmra.mxu0 %v10982_v36 }
 0x440   : > { %4457 = vmatprep.mubr.bf16.mxu0 %v11138_v42  ;;  %v11255_v43 = vpop.f32.mrf.mxu1 }
 0x441   : > { %5061 = vmatmul.mubr.bf16.gmra.mxu1 %v10920_v32 }
 0x442   : > { %5068 = vmatprep.mubr.bf16.mxu1 %v11012_v5  ;;  %v11259_v56 = vpop.f32.mrf.mxu1 }
 0x444   : > { %v11261_v62 = vpop.f32.mrf.mxu1 }
 0x446   : > { %v11263_v31 = vpop.f32.mrf.mxu1 }
 0x447   : > { %4458 = vmatmul.mubr.bf16.gmra.mxu0 %v10986_v39 }
 0x448   : > { %4465 = vmatprep.mubr.bf16.mxu0 %v11154_v59  ;;  %v11267_v4 = vpop.f32.mrf.mxu1 }
 0x449   : > { %5069 = vmatmul.mubr.bf16.gmra.mxu1 %v10922_v17 }
 0x44a   : > { %5076 = vmatprep.mubr.bf16.mxu1 %v11059_v57  ;;  %v11271_v29 = vpop.f32.mrf.mxu1 }
 0x44c   : > { %v11277_v41 = vpop.f32.mrf.mxu1 }
 0x44e   : > { %v11279_v5 = vpop.f32.mrf.mxu1 }
 0x44f   : > { %4466 = vmatmul.mubr.bf16.gmra.mxu0 %v11031_v18 }
 0x450   : > { %4473 = vmatprep.mubr.bf16.mxu0 %v11275_v21  ;;  %v11283_v23 = vpop.f32.mrf.mxu1 }
 0x451   : > { %5077 = vmatmul.mubr.bf16.gmra.mxu1 %v10938_v10 }
 0x452   : > { %5084 = vmatprep.mubr.bf16.mxu1 %v11089_v15  ;;  %v11287_v57 = vpop.f32.mrf.mxu1  ;;  %v8606_v15 = vld [vmem:[#allocation9 + $0x170] sm:$0xff]  }
 0x454   : > { %v11289_v13 = vpop.f32.mrf.mxu1 }
 0x456   : > { %v11291_v20 = vpop.f32.mrf.mxu1 }
 0x457   : > { %4474 = vmatmul.mubr.bf16.gmra.mxu0 %v11036_v49 }
 0x458   : > { %8126 = vmatprep.mubr.bf16.mxu0 %v11093_v52  ;;  %v11295_v34 = vpop.f32.mrf.mxu1 }
 0x459   : > { %12706 = vst [vmem:[#allocation96_spill] sm:$0xff] %v11295_v34  ;;  %5085 = vmatmul.mubr.bf16.gmra.mxu1 %v10941_v44 }
 0x45a   : > { %5092 = vmatprep.mubr.bf16.mxu1 %v11112_v38  ;;  %v11299_v26 = vpop.f32.mrf.mxu1 }
 0x45c   : > { %v11301_v14 = vpop.f32.mrf.mxu1 }
 0x45d   : > { %12707 = vst [vmem:[#allocation97_spill] sm:$0xff] %v11301_v14 }
 0x45e   : > { %v11303_v33 = vpop.f32.mrf.mxu1 }
 0x45f   : > { %12708 = vst [vmem:[#allocation98_spill] sm:$0xff] %v11303_v33  ;;  %v11305_v55 = vpop.f32.mrf.mxu0  ;;  %8127 = vmatmul.mubr.bf16.vlgmr.msra.gmra.mxu0 %v11117_v61 }
 0x460   : > { %12709 = vst [vmem:[#allocation99_spill] sm:$0xff] %v11305_v55  ;;  %8175 = vmatpush3.bf16.msra.mxu0 %v11176_v7  ;;  %8130 = vmatprep.mubr.bf16.mxu0 %v11131_v3  ;;  %v8609_v7 = vld [vmem:[#allocation9 + $0x160] sm:$0xff]  }
 0x461   : > { %v11310_v6 = vpop.f32.mrf.mxu1  ;;  %5093 = vmatmul.mubr.bf16.gmra.mxu1 %v10982_v36  ;;  %v4293_v38 = vpop.f32.mrf.mxu0  ;;  %8176 = vmatprep.subr.bf16.mxu0 %v8606_v15 }
 0x462   : > { %12710 = vst [vmem:[#allocation100_spill] sm:$0xff] %v11310_v6  ;;  %5100 = vmatprep.mubr.bf16.mxu1 %v11138_v42 }
 0x463   : > { %v11314_v14 = vpop.f32.mrf.mxu1  ;;  %v11316_v34 = vpop.f32.mrf.mxu0 }
 0x464   : > { %12711 = vst [vmem:[#allocation101_spill] sm:$0xff] %v11316_v34  ;;  %8177 = vmatpush3.bf16.msra.mxu0 %v8606_v15  ;;  %v8610_v15 = vld [vmem:[#allocation9 + $0x158] sm:$0xff]  }
 0x465   : > { %v11318_v55 = vpop.f32.mrf.mxu1  ;;  %v4296_v12 = vpop.f32.mrf.mxu0  ;;  %8178 = vmatprep.subr.bf16.mxu0 %v8607_v19 }
 0x466   : > { %12712 = vst [vmem:[#allocation102_spill] sm:$0xff] %v11318_v55 }
 0x467   : > { %v11320_v33 = vpop.f32.mrf.mxu1  ;;  %v11322_v6 = vpop.f32.mrf.mxu0  ;;  %8131 = vmatmul.mubr.bf16.gmra.mxu0 %v11147_v28 }
 0x468   : > { %12713 = vst [vmem:[#allocation103_spill] sm:$0xff] %v11320_v33  ;;  %12714 = vst [vmem:[#allocation104_spill] sm:$0xff] %v11322_v6  ;;  %8179 = vmatpush3.bf16.msra.mxu0 %v8607_v19  ;;  %8134 = vmatprep.mubr.bf16.mxu0 %v11163_v63  ;;  %v8611_v19 = vld [vmem:[#allocation9 + $0x150] sm:$0xff]  }
 0x469   : > { %v11326_v38 = vpop.f32.mrf.mxu1  ;;  %5101 = vmatmul.mubr.bf16.gmra.mxu1 %v10986_v39  ;;  %v4301_v34 = vpop.f32.mrf.mxu0  ;;  %8180 = vmatprep.subr.bf16.mxu0 %v8609_v7 }
 0x46a   : > { %12715 = vst [vmem:[#allocation105_spill] sm:$0xff] %v11326_v38  ;;  %5108 = vmatprep.mubr.bf16.mxu1 %v11154_v59 }
 0x46b   : > { %v11330_v12 = vpop.f32.mrf.mxu1  ;;  %v11332_v42 = vpop.f32.mrf.mxu0 }
 0x46c   : > { %12716 = vst [vmem:[#allocation106_spill] sm:$0xff] %v11332_v42  ;;  %8181 = vmatpush3.bf16.msra.mxu0 %v8609_v7  ;;  %v8613_v7 = vld [vmem:[#allocation9 + $0x148] sm:$0xff]  }
 0x46d   : > { %v11334_v6 = vpop.f32.mrf.mxu1  ;;  %v4304_v55 = vpop.f32.mrf.mxu0  ;;  %8182 = vmatprep.subr.bf16.mxu0 %v8610_v15 }
 0x46e   : > { %12717 = vst [vmem:[#allocation107_spill] sm:$0xff] %v11334_v6 }
 0x46f   : > { %v11336_v33 = vpop.f32.mrf.mxu1  ;;  %v11338_v38 = vpop.f32.mrf.mxu0  ;;  %8135 = vmatmul.mubr.bf16.gmra.mxu0 %v11173_v60 }
 0x470   : > { %12718 = vst [vmem:[#allocation108_spill] sm:$0xff] %v11336_v33  ;;  %12719 = vst [vmem:[#allocation109_spill] sm:$0xff] %v11338_v38  ;;  %8183 = vmatpush3.bf16.msra.mxu0 %v8610_v15  ;;  %8138 = vmatprep.mubr.bf16.mxu0 %v11184_v48  ;;  %v8614_v15 = vld [vmem:[#allocation9 + $0x140] sm:$0xff]  }
 0x471   : > { %v11342_v34 = vpop.f32.mrf.mxu1  ;;  %5109 = vmatmul.mubr.bf16.gmra.mxu1 %v11031_v18  ;;  %v4309_v59 = vpop.f32.mrf.mxu0  ;;  %8184 = vmatprep.subr.bf16.mxu0 %v8611_v19 }
 0x472   : > { %12720 = vst [vmem:[#allocation110_spill] sm:$0xff] %v11342_v34  ;;  %5116 = vmatprep.mubr.bf16.mxu1 %v11275_v21 }
 0x473   : > { %v11346_v55 = vpop.f32.mrf.mxu1  ;;  %v11348_v42 = vpop.f32.mrf.mxu0 }
 0x474   : > { %12721 = vst [vmem:[#allocation111_spill] sm:$0xff] %v11348_v42  ;;  %8185 = vmatpush3.bf16.msra.mxu0 %v8611_v19  ;;  %v8615_v19 = vld [vmem:[#allocation9 + $0x238] sm:$0xff]  }
 0x475   : > { %v11350_v38 = vpop.f32.mrf.mxu1  ;;  %v4312_v6 = vpop.f32.mrf.mxu0  ;;  %8186 = vmatprep.subr.bf16.mxu0 %v8613_v7 }
 0x476   : > { %12722 = vst [vmem:[#allocation112_spill] sm:$0xff] %v11350_v38 }
 0x477   : > { %v11352_v33 = vpop.f32.mrf.mxu1  ;;  %v11354_v34 = vpop.f32.mrf.mxu0  ;;  %8139 = vmatmul.mubr.bf16.gmra.mxu0 %v11193_v27 }
 0x478   : > { %12723 = vst [vmem:[#allocation113_spill] sm:$0xff] %v11352_v33  ;;  %12724 = vst [vmem:[#allocation114_spill] sm:$0xff] %v11354_v34  ;;  %8187 = vmatpush3.bf16.msra.mxu0 %v8613_v7  ;;  %8190 = vmatprep.mubr.bf16.mxu0 %v11093_v52  ;;  %v8616_v7 = vld [vmem:[#allocation9 + $0x230] sm:$0xff]  }
 0x479   : > { %v11358_v59 = vpop.f32.mrf.mxu1  ;;  %5117 = vmatmul.mubr.bf16.gmra.mxu1 %v11036_v49  ;;  %v4317_v21 = vpop.f32.mrf.mxu0  ;;  %8188 = vmatprep.subr.bf16.mxu0 %v8614_v15 }
 0x47a   : > { %12725 = vst [vmem:[#allocation115_spill] sm:$0xff] %v11358_v59  ;;  %5575 = vmatprep.mubr.bf16.mxu1 %v10903_v35 }
 0x47b   : > { %v11362_v6 = vpop.f32.mrf.mxu1  ;;  %v11364_v42 = vpop.f32.mrf.mxu0 }
 0x47c   : > { %12726 = vst [vmem:[#allocation116_spill] sm:$0xff] %v11362_v6  ;;  %12727 = vst [vmem:[#allocation117_spill] sm:$0xff] %v11364_v42  ;;  %8189 = vmatpush3.bf16.msra.mxu0 %v8614_v15  ;;  %v8617_v15 = vld [vmem:[#allocation9 + $0x228] sm:$0xff]  }
 0x47d   : > { %v11366_v34 = vpop.f32.mrf.mxu1  ;;  %v4320_v38 = vpop.f32.mrf.mxu0  ;;  %8238 = vmatprep.subr.bf16.mxu0 %v8615_v19 }
 0x47e   : > { %12728 = vst [vmem:[#allocation118_spill] sm:$0xff] %v11366_v34 }
 0x47f   : > { %v11368_v33 = vpop.f32.mrf.mxu1  ;;  %v11370_v59 = vpop.f32.mrf.mxu0  ;;  %8191 = vmatmul.mubr.bf16.vlgmr.msra.gmra.mxu0 %v11117_v61 }
 0x480   : > { %12729 = vst [vmem:[#allocation119_spill] sm:$0xff] %v11368_v33  ;;  %12730 = vst [vmem:[#allocation120_spill] sm:$0xff] %v11370_v59  ;;  %8239 = vmatpush3.bf16.msra.mxu0 %v8615_v19  ;;  %8194 = vmatprep.mubr.bf16.mxu0 %v11131_v3  ;;  %v8618_v19 = vld [vmem:[#allocation9 + $0x220] sm:$0xff]  }
 0x481   : > { %v11374_v35 = vpop.f32.mrf.mxu1  ;;  %5576 = vmatmul.mubr.bf16.vlgmr.msra.gmra.mxu1 %v10947_v54  ;;  %v4325_v21 = vpop.f32.mrf.mxu0  ;;  %8240 = vmatprep.subr.bf16.mxu0 %v8616_v7 }
 0x482   : > { %12731 = vst [vmem:[#allocation121_spill] sm:$0xff] %v11374_v35  ;;  %5583 = vmatprep.mubr.bf16.mxu1 %v10974_v47 }
 0x483   : > { %v4936_v38 = vpop.f32.mrf.mxu1  ;;  %v11378_v42 = vpop.f32.mrf.mxu0 }
 0x484   : > { %8241 = vmatpush3.bf16.msra.mxu0 %v8616_v7  ;;  %v8619_v7 = vld [vmem:[#allocation9 + $0x218] sm:$0xff]  }
 0x485   : > { %v11380_v34 = vpop.f32.mrf.mxu1  ;;  %v4328_v59 = vpop.f32.mrf.mxu0  ;;  %8242 = vmatprep.subr.bf16.mxu0 %v8617_v15 }
 0x486   : > { %12732 = vst [vmem:[#allocation122_spill] sm:$0xff] %v11380_v34  ;;  %v8620_v34 = vld [vmem:[#allocation9 + $0x210] sm:$0xff]  }
 0x487   : > { %v4939_v33 = vpop.f32.mrf.mxu1  ;;  %v11382_v6 = vpop.f32.mrf.mxu0  ;;  %8195 = vmatmul.mubr.bf16.gmra.mxu0 %v11147_v28 }
 0x488   : > { %8198 = vmatprep.mubr.bf16.mxu0 %v11163_v63  ;;  %8243 = vmatpush3.bf16.msra.mxu0 %v8617_v15 }
 0x489   : > { %v11386_v54 = vpop.f32.mrf.mxu1  ;;  %5584 = vmatmul.mubr.bf16.gmra.mxu1 %v11020_v0  ;;  %v4333_v47 = vpop.f32.mrf.mxu0  ;;  %8244 = vmatprep.subr.bf16.mxu0 %v8618_v19 }
 0x48a   : > { %12733 = vst [vmem:[#allocation123_spill] sm:$0xff] %v11386_v54  ;;  %5591 = vmatprep.mubr.bf16.mxu1 %v11026_v58 }
 0x48b   : > { %v4944_v59 = vpop.f32.mrf.mxu1  ;;  %v11390_v21 = vpop.f32.mrf.mxu0 }
 0x48c   : > { %8245 = vmatpush3.bf16.msra.mxu0 %v8618_v19  ;;  %v8621_v19 = vld [vmem:[#allocation9 + $0x208] sm:$0xff]  }
 0x48d   : > { %v11392_v33 = vpop.f32.mrf.mxu1  ;;  %v4336_v38 = vpop.f32.mrf.mxu0  ;;  %8246 = vmatprep.subr.bf16.mxu0 %v8619_v7  ;;  %v12831_v2 = vld [vmem:[#allocation122_spill] sm:$0xff] }
 0x48e   : > { %12734 = vst [vmem:[#allocation124_spill] sm:$0xff] %v11392_v33  ;;  %v8622_v33 = vld [vmem:[#allocation9 + $0x200] sm:$0xff]  }
 0x48f   : > { %v4947_v35 = vpop.f32.mrf.mxu1  ;;  %v11394_v15 = vpop.f32.mrf.mxu0  ;;  %8199 = vmatmul.mubr.bf16.gmra.mxu0 %v11173_v60 }
 0x490   : > { %8202 = vmatprep.mubr.bf16.mxu0 %v11184_v48  ;;  %8247 = vmatpush3.bf16.msra.mxu0 %v8619_v7 }
 0x491   : > { %v11398_v0 = vpop.f32.mrf.mxu1  ;;  %5592 = vmatmul.mubr.bf16.gmra.mxu1 %v11065_v40  ;;  %v4341_v58 = vpop.f32.mrf.mxu0  ;;  %8248 = vmatprep.subr.bf16.mxu0 %v8620_v34 }
 0x492   : > { %12735 = vst [vmem:[#allocation125_spill] sm:$0xff] %v11398_v0  ;;  %5599 = vmatprep.mubr.bf16.mxu1 %v11068_v50 }
 0x493   : > { %v4952_v47 = vpop.f32.mrf.mxu1  ;;  %v11402_v59 = vpop.f32.mrf.mxu0 }
 0x494   : > { %12736 = vst [vmem:[#allocation126_spill] sm:$0xff] %v11402_v59  ;;  %8249 = vmatpush3.bf16.msra.mxu0 %v8620_v34 }
 0x495   : > { %v11404_v35 = vpop.f32.mrf.mxu1  ;;  %v4344_v38 = vpop.f32.mrf.mxu0  ;;  %8250 = vmatprep.subr.bf16.mxu0 %v8621_v19 }
 0x496   : > { %12737 = vst [vmem:[#allocation127_spill] sm:$0xff] %v11404_v35 }
 0x497   : > { %v4955_v54 = vpop.f32.mrf.mxu1  ;;  %v11406_v7 = vpop.f32.mrf.mxu0  ;;  %8203 = vmatmul.mubr.bf16.gmra.mxu0 %v11193_v27 }
 0x498   : > { %8206 = vmatprep.mubr.bf16.mxu0 %v10854_v30  ;;  %8251 = vmatpush3.bf16.msra.mxu0 %v8621_v19 }
 0x499   : > { %v11410_v40 = vpop.f32.mrf.mxu1  ;;  %5600 = vmatmul.mubr.bf16.gmra.mxu1 %v11093_v52  ;;  %v4349_v50 = vpop.f32.mrf.mxu0  ;;  %8252 = vmatprep.subr.bf16.mxu0 %v8622_v33 }
 0x49a   : > { %12738 = vst [vmem:[#allocation128_spill] sm:$0xff] %v11410_v40  ;;  %5607 = vmatprep.mubr.bf16.mxu1 %v11096_v16 }
 0x49b   : > { %v4960_v34 = vpop.f32.mrf.mxu1  ;;  %v11414_v58 = vpop.f32.mrf.mxu0 }
 0x49c   : > { %12739 = vst [vmem:[#allocation129_spill] sm:$0xff] %v11414_v58  ;;  %8253 = vmatpush3.bf16.msra.mxu0 %v8622_v33  ;;  %v11432_v58 = vld [vmem:[%s10844_s24 + $0x70] sm:$0xff]  }
 0x49d   : > { %v11416_v54 = vpop.f32.mrf.mxu1  ;;  %v4352_v47 = vpop.f32.mrf.mxu0 }
 0x49e   : > { %12740 = vst [vmem:[#allocation130_spill] sm:$0xff] %v11416_v54 }
 0x49f   : > { %v4963_v38 = vpop.f32.mrf.mxu1  ;;  %v4355_v35 = vpop.f32.mrf.mxu0  ;;  %8207 = vmatmul.mubr.bf16.gmra.mxu0 %v10879_v51 }
 0x4a0   : > { %8210 = vmatprep.mubr.bf16.mxu0 %v10882_v37  ;;  %v11424_v16 = vadd.f32 %v11259_v56, %v4355_v35 }
 0x4a1   : > { %v11420_v19 = vpop.f32.mrf.mxu1  ;;  %5608 = vmatmul.mubr.bf16.gmra.mxu1 %v11117_v61  ;;  %v4357_v50 = vpop.f32.mrf.mxu0 }
 0x4a2   : > { %12741 = vst [vmem:[#allocation131_spill] sm:$0xff] %v11420_v19  ;;  %5615 = vmatprep.mubr.bf16.mxu1 %v11120_v46  ;;  %v12426_v0 = vrot.slane %v11424_v16, 7 }
 0x4a3   : > { %v4968_v33 = vpop.f32.mrf.mxu1  ;;  %v4358_v34 = vpop.f32.mrf.mxu0 }
 0x4a4   : > { %v4584_v47 = vadd.f32 %v11263_v31, %v4358_v34 }
 0x4a5   : > { %v11428_v38 = vpop.f32.mrf.mxu1  ;;  %v4360_v54 = vpop.f32.mrf.mxu0 }
 0x4a6   : > { %v6010_v40 = vrot.slane %v4584_v47, 7 }
 0x4a7   : > { %v4971_v59 = vpop.f32.mrf.mxu1  ;;  %v4363_v19 = vpop.f32.mrf.mxu0  ;;  %8211 = vmatmul.mubr.bf16.gmra.mxu0 %v11432_v58 }
 0x4a8   : > { %v11439_v46 = vsel %vm3064_vm10, %v12426_v0, %v6010_v40  ;;  %v4589_v56 = vadd.f32 %v11255_v43, %v4363_v19  ;;  %8214 = vmatprep.mubr.bf16.mxu0 %v10906_v25 }
 0x4a9   : > { %12742 = vst [vmem:[#allocation132_spill] sm:$0xff] %v11439_v46  ;;  %v11443_v31 = vpop.f32.mrf.mxu1  ;;  %5616 = vmatmul.mubr.bf16.gmra.mxu1 %v11131_v3  ;;  %v4365_v59 = vpop.f32.mrf.mxu0 }
 0x4aa   : > { %v6011_v35 = vrot.slane %v4589_v56, 7  ;;  %5623 = vmatprep.mubr.bf16.mxu1 %v11134_v11 }
 0x4ab   : > { %v4976_v54 = vpop.f32.mrf.mxu1  ;;  %v4366_v50 = vpop.f32.mrf.mxu0 }
 0x4ac   : > { %v11449_v33 = vsel %vm3064_vm10, %v6010_v40, %v6011_v35  ;;  %v4592_v34 = vadd.f32 %v11261_v62, %v4366_v50 }
 0x4ad   : > { %v11452_v47 = vpop.f32.mrf.mxu1  ;;  %v4368_v43 = vpop.f32.mrf.mxu0 }
 0x4ae   : > { %v6012_v19 = vrot.slane %v4592_v34, 7 }
 0x4af   : > { %v4979_v0 = vpop.f32.mrf.mxu1  ;;  %v4371_v46 = vpop.f32.mrf.mxu0  ;;  %8215 = vmatmul.mubr.bf16.gmra.mxu0 %v10920_v32 }
 0x4b0   : > { %v11457_v56 = vsel %vm3064_vm10, %v6011_v35, %v6012_v19  ;;  %v4597_v11 = vadd.f32 %v11271_v29, %v4371_v46  ;;  %8218 = vmatprep.mubr.bf16.mxu0 %v10922_v17 }
 0x4b1   : > { %12743 = vst [vmem:[#allocation133_spill] sm:$0xff] %v11457_v56  ;;  %v11461_v40 = vpop.f32.mrf.mxu1  ;;  %5624 = vmatmul.mubr.bf16.gmra.mxu1 %v11147_v28  ;;  %v4373_v62 = vpop.f32.mrf.mxu0 }
 0x4b2   : > { %v6013_v59 = vrot.slane %v4597_v11, 7  ;;  %5631 = vmatprep.mubr.bf16.mxu1 %v11150_v24 }
 0x4b3   : > { %v4984_v0 = vpop.f32.mrf.mxu1  ;;  %v4374_v54 = vpop.f32.mrf.mxu0 }
 0x4b4   : > { %v11467_v50 = vsel %vm3064_vm10, %v6012_v19, %v6013_v59  ;;  %v4600_v35 = vadd.f32 %v11279_v5, %v4374_v54 }
 0x4b5   : > { %v11470_v34 = vpop.f32.mrf.mxu1  ;;  %v4376_v29 = vpop.f32.mrf.mxu0 }
 0x4b6   : > { %v6014_v46 = vrot.slane %v4600_v35, 7 }
 0x4b7   : > { %v4987_v43 = vpop.f32.mrf.mxu1  ;;  %v4379_v56 = vpop.f32.mrf.mxu0  ;;  %8219 = vmatmul.mubr.bf16.gmra.mxu0 %v10938_v10 }
 0x4b8   : > { %v11475_v11 = vsel %vm3064_vm10, %v6013_v59, %v6014_v46  ;;  %v4605_v24 = vadd.f32 %v11267_v4, %v4379_v56  ;;  %8222 = vmatprep.mubr.bf16.mxu0 %v10941_v44 }
 0x4b9   : > { %12744 = vst [vmem:[#allocation134_spill] sm:$0xff] %v11475_v11  ;;  %v11479_v19 = vpop.f32.mrf.mxu1  ;;  %5632 = vmatmul.mubr.bf16.gmra.mxu1 %v11163_v63  ;;  %v4381_v5 = vpop.f32.mrf.mxu0 }
 0x4ba   : > { %v6015_v62 = vrot.slane %v4605_v24, 7  ;;  %5639 = vmatprep.mubr.bf16.mxu1 %v11166_v1 }
 0x4bb   : > { %v4992_v0 = vpop.f32.mrf.mxu1  ;;  %v4382_v54 = vpop.f32.mrf.mxu0 }
 0x4bc   : > { %v11485_v35 = vsel %vm3064_vm10, %v6014_v46, %v6015_v62  ;;  %v4608_v59 = vadd.f32 %v11277_v41, %v4382_v54 }
 0x4bd   : > { %v11488_v29 = vpop.f32.mrf.mxu1  ;;  %v4384_v4 = vpop.f32.mrf.mxu0 }
 0x4be   : > { %v6016_v56 = vrot.slane %v4608_v59, 7 }
 0x4bf   : > { %v4995_v43 = vpop.f32.mrf.mxu1  ;;  %v4387_v11 = vpop.f32.mrf.mxu0  ;;  %8223 = vmatmul.mubr.bf16.gmra.mxu0 %v10982_v36 }
 0x4c0   : > { %v11493_v24 = vsel %vm3064_vm10, %v6015_v62, %v6016_v56  ;;  %v4613_v1 = vadd.f32 %v11287_v57, %v4387_v11  ;;  %8226 = vmatprep.mubr.bf16.mxu0 %v10986_v39 }
 0x4c1   : > { %12745 = vst [vmem:[#allocation135_spill] sm:$0xff] %v11493_v24  ;;  %v11497_v46 = vpop.f32.mrf.mxu1  ;;  %5640 = vmatmul.mubr.bf16.gmra.mxu1 %v11173_v60  ;;  %v4389_v41 = vpop.f32.mrf.mxu0 }
 0x4c2   : > { %v6017_v5 = vrot.slane %v4613_v1, 7  ;;  %5647 = vmatprep.mubr.bf16.mxu1 %v10978_v53 }
 0x4c3   : > { %v5000_v0 = vpop.f32.mrf.mxu1  ;;  %v4390_v54 = vpop.f32.mrf.mxu0 }
 0x4c4   : > { %v11503_v59 = vsel %vm3064_vm10, %v6016_v56, %v6017_v5  ;;  %v4616_v62 = vadd.f32 %v11291_v20, %v4390_v54 }
 0x4c5   : > { %12746 = vst [vmem:[#allocation136_spill] sm:$0xff] %v11503_v59  ;;  %v11506_v4 = vpop.f32.mrf.mxu1  ;;  %v4392_v57 = vpop.f32.mrf.mxu0 }
 0x4c6   : > { %v6018_v11 = vrot.slane %v4616_v62, 7 }
 0x4c7   : > { %v5003_v43 = vpop.f32.mrf.mxu1  ;;  %v4395_v24 = vpop.f32.mrf.mxu0  ;;  %8227 = vmatmul.mubr.bf16.gmra.mxu0 %v11031_v18 }
 0x4c8   : > { %v11511_v1 = vsel %vm3064_vm10, %v6017_v5, %v6018_v11  ;;  %v4621_v53 = vadd.f32 %v11283_v23, %v4395_v24  ;;  %8230 = vmatprep.mubr.bf16.mxu0 %v11036_v49 }
 0x4c9   : > { %12747 = vst [vmem:[#allocation137_spill] sm:$0xff] %v11511_v1  ;;  %v11515_v56 = vpop.f32.mrf.mxu1  ;;  %5648 = vmatmul.mubr.bf16.gmra.mxu1 %v11184_v48  ;;  %v4397_v20 = vpop.f32.mrf.mxu0 }
 0x4ca   : > { %v6019_v41 = vrot.slane %v4621_v53, 7  ;;  %5655 = vmatprep.mubr.bf16.mxu1 %v10857_v9 }
 0x4cb   : > { %v5008_v0 = vpop.f32.mrf.mxu1  ;;  %v4398_v54 = vpop.f32.mrf.mxu0 }
 0x4cc   : > { %v11521_v62 = vsel %vm3064_vm10, %v6018_v11, %v6019_v41  ;;  %v4624_v5 = vadd.f32 %v11289_v13, %v4398_v54 }
 0x4cd   : > { %12748 = vst [vmem:[#allocation138_spill] sm:$0xff] %v11521_v62  ;;  %v11524_v57 = vpop.f32.mrf.mxu1  ;;  %v4400_v23 = vpop.f32.mrf.mxu0  ;;  %v12752_v62 = vld [vmem:[#allocation87_spill] sm:$0xff] }
 0x4ce   : > { %v6020_v24 = vrot.slane %v4624_v5, 7 }
 0x4cf   : > { %v5011_v43 = vpop.f32.mrf.mxu1  ;;  %v4403_v1 = vpop.f32.mrf.mxu0  ;;  %8231 = vmatmul.mubr.bf16.gmra.mxu0 %v11073_v8 }
 0x4d0   : > { %v11529_v53 = vsel %vm3064_vm10, %v6019_v41, %v6020_v24  ;;  %v4629_v9 = vadd.f32 %v11299_v26, %v4403_v1  ;;  %8234 = vmatprep.mubr.bf16.mxu0 %v11077_v22  ;;  %v12751_v41 = vld [vmem:[#allocation98_spill] sm:$0xff] }
 0x4d1   : > { %12749 = vst [vmem:[#allocation139_spill] sm:$0xff] %v11529_v53  ;;  %v11533_v11 = vpop.f32.mrf.mxu1  ;;  %5656 = vmatmul.mubr.bf16.gmra.mxu1 %v11193_v27  ;;  %v4405_v13 = vpop.f32.mrf.mxu0 }
 0x4d2   : > { %v6021_v20 = vrot.slane %v4629_v9, 7  ;;  %5663 = vmatprep.mubr.bf16.mxu1 %v10867_v45  ;;  %v12754_v45 = vld [vmem:[#allocation96_spill] sm:$0xff] }
 0x4d3   : > { %v5016_v0 = vpop.f32.mrf.mxu1  ;;  %v4406_v54 = vpop.f32.mrf.mxu0 }
 0x4d4   : > { %v11539_v5 = vsel %vm3064_vm10, %v6020_v24, %v6021_v20  ;;  %v4632_v23 = vadd.f32 %v12751_v41, %v4406_v54  ;;  %v12755_v41 = vld [vmem:[#allocation91_spill] sm:$0xff] }
 0x4d5   : > { %12750 = vst [vmem:[#allocation140_spill] sm:$0xff] %v11539_v5  ;;  %v11542_v43 = vpop.f32.mrf.mxu1  ;;  %v4408_v26 = vpop.f32.mrf.mxu0 }
 0x4d6   : > { %v6022_v1 = vrot.slane %v4632_v23, 7 }
 0x4d7   : > { %v5019_v53 = vpop.f32.mrf.mxu1  ;;  %v4411_v59 = vpop.f32.mrf.mxu0  ;;  %8235 = vmatmul.mubr.bf16.gmra.mxu0 %v12752_v62 }
 0x4d8   : > { %v11547_v9 = vsel %vm3064_vm10, %v6021_v20, %v6022_v1  ;;  %v4637_v13 = vadd.f32 %v12754_v45, %v4411_v59  ;;  %8254 = vmatprep.mubr.bf16.mxu0 %v11093_v52  ;;  %v12757_v20 = vld [vmem:[#allocation97_spill] sm:$0xff] }
 0x4d9   : > { %12753 = vst [vmem:[#allocation98_spill] sm:$0xff] %v11547_v9  ;;  %v11551_v24 = vpop.f32.mrf.mxu1  ;;  %5664 = vmatmul.mubr.bf16.gmra.mxu1 %v10854_v30  ;;  %v4413_v0 = vpop.f32.mrf.mxu0 }
 0x4da   : > { %v6023_v54 = vrot.slane %v4637_v13, 7  ;;  %5671 = vmatprep.mubr.bf16.mxu1 %v12755_v41  ;;  %v12759_v41 = vld [vmem:[#allocation92_spill] sm:$0xff] }
 0x4db   : > { %v5024_v53 = vpop.f32.mrf.mxu1  ;;  %v4414_v23 = vpop.f32.mrf.mxu0 }
 0x4dc   : > { %v11557_v62 = vsel %vm3064_vm10, %v6022_v1, %v6023_v54  ;;  %v4640_v26 = vadd.f32 %v12757_v20, %v4414_v23  ;;  %v12760_v20 = vld [vmem:[#allocation83_spill] sm:$0xff] }
 0x4dd   : > { %12756 = vst [vmem:[#allocation87_spill] sm:$0xff] %v11557_v62  ;;  %v11560_v9 = vpop.f32.mrf.mxu1  ;;  %v4416_v59 = vpop.f32.mrf.mxu0 }
 0x4de   : > { %v6024_v52 = vrot.slane %v4640_v26, 7 }
 0x4df   : > { %v5027_v45 = vpop.f32.mrf.mxu1  ;;  %v4419_v5 = vpop.f32.mrf.mxu0  ;;  %8255 = vmatmul.mubr.bf16.vlgmr.msra.gmra.mxu0 %v11117_v61 }
 0x4e0   : > { %v11565_v13 = vsel %vm3064_vm10, %v6023_v54, %v6024_v52  ;;  %v4645_v0 = vadd.f32 %v11314_v14, %v4419_v5  ;;  %8258 = vmatprep.mubr.bf16.mxu0 %v11131_v3  ;;  %v12762_v54 = vld [vmem:[#allocation103_spill] sm:$0xff] }
 0x4e1   : > { %12758 = vst [vmem:[#allocation96_spill] sm:$0xff] %v11565_v13  ;;  %v11569_v1 = vpop.f32.mrf.mxu1  ;;  %5672 = vmatmul.mubr.bf16.gmra.mxu1 %v12759_v41  ;;  %v4421_v53 = vpop.f32.mrf.mxu0  ;;  %v12764_v41 = vld [vmem:[#allocation100_spill] sm:$0xff] }
 0x4e2   : > { %v6025_v23 = vrot.slane %v4645_v0, 7  ;;  %5679 = vmatprep.mubr.bf16.mxu1 %v12760_v20  ;;  %v12765_v20 = vld [vmem:[#allocation93_spill] sm:$0xff] }
 0x4e3   : > { %v5032_v26 = vpop.f32.mrf.mxu1  ;;  %v4422_v59 = vpop.f32.mrf.mxu0 }
 0x4e4   : > { %v11575_v61 = vsel %vm3064_vm10, %v6024_v52, %v6025_v23  ;;  %v4648_v45 = vadd.f32 %v12762_v54, %v4422_v59  ;;  %v12766_v54 = vld [vmem:[#allocation80_spill] sm:$0xff] }
 0x4e5   : > { %12761 = vst [vmem:[#allocation91_spill] sm:$0xff] %v11575_v61  ;;  %v11578_v13 = vpop.f32.mrf.mxu1  ;;  %v4424_v14 = vpop.f32.mrf.mxu0 }
 0x4e6   : > { %v6026_v3 = vrot.slane %v4648_v45, 7 }
 0x4e7   : > { %v5035_v5 = vpop.f32.mrf.mxu1  ;;  %v4427_v62 = vpop.f32.mrf.mxu0  ;;  %8259 = vmatmul.mubr.bf16.gmra.mxu0 %v11147_v28 }
 0x4e8   : > { %v11583_v0 = vsel %vm3064_vm10, %v6025_v23, %v6026_v3  ;;  %v4653_v53 = vadd.f32 %v12764_v41, %v4427_v62  ;;  %8262 = vmatprep.mubr.bf16.mxu0 %v11163_v63  ;;  %v12767_v23 = vld [vmem:[#allocation102_spill] sm:$0xff] }
 0x4e9   : > { %12763 = vst [vmem:[#allocation97_spill] sm:$0xff] %v11583_v0  ;;  %v11587_v52 = vpop.f32.mrf.mxu1  ;;  %5680 = vmatmul.mubr.bf16.gmra.mxu1 %v12765_v20  ;;  %v4429_v26 = vpop.f32.mrf.mxu0 }
 0x4ea   : > { %v6027_v59 = vrot.slane %v4653_v53, 7  ;;  %5687 = vmatprep.mubr.bf16.mxu1 %v12766_v54  ;;  %v12769_v26 = vld [vmem:[#allocation94_spill] sm:$0xff] }
 0x4eb   : > { %v5040_v45 = vpop.f32.mrf.mxu1  ;;  %v4430_v14 = vpop.f32.mrf.mxu0 }
 0x4ec   : > { %v11593_v28 = vsel %vm3064_vm10, %v6026_v3, %v6027_v59  ;;  %v4656_v5 = vadd.f32 %v12767_v23, %v4430_v14  ;;  %v12770_v14 = vld [vmem:[#allocation81_spill] sm:$0xff] }
 0x4ed   : > { %v11596_v0 = vpop.f32.mrf.mxu1  ;;  %v4432_v62 = vpop.f32.mrf.mxu0 }
 0x4ee   : > { %v6028_v63 = vrot.slane %v4656_v5, 7 }
 0x4ef   : > { %v5043_v41 = vpop.f32.mrf.mxu1  ;;  %v4435_v61 = vpop.f32.mrf.mxu0  ;;  %8263 = vmatmul.mubr.bf16.gmra.mxu0 %v11173_v60 }
 0x4f0   : > { %v11601_v53 = vsel %vm3064_vm10, %v6027_v59, %v6028_v63  ;;  %v4661_v20 = vadd.f32 %v11330_v12, %v4435_v61  ;;  %8266 = vmatprep.mubr.bf16.mxu0 %v11184_v48  ;;  %v12772_v59 = vld [vmem:[#allocation108_spill] sm:$0xff] }
 0x4f1   : > { %12768 = vst [vmem:[#allocation92_spill] sm:$0xff] %v11601_v53  ;;  %v11605_v3 = vpop.f32.mrf.mxu1  ;;  %5688 = vmatmul.mubr.bf16.gmra.mxu1 %v12769_v26  ;;  %v4437_v54 = vpop.f32.mrf.mxu0  ;;  %v12774_v26 = vld [vmem:[#allocation105_spill] sm:$0xff] }
 0x4f2   : > { %v6029_v45 = vrot.slane %v4661_v20, 7  ;;  %5695 = vmatprep.mubr.bf16.mxu1 %v12770_v14 }
 0x4f3   : > { %v5048_v23 = vpop.f32.mrf.mxu1  ;;  %v4438_v5 = vpop.f32.mrf.mxu0 }
 0x4f4   : > { %v11611_v60 = vsel %vm3064_vm10, %v6028_v63, %v6029_v45  ;;  %v4664_v62 = vadd.f32 %v12772_v59, %v4438_v5  ;;  %v12775_v5 = vld [vmem:[#allocation82_spill] sm:$0xff] }
 0x4f5   : > { %12771 = vst [vmem:[#allocation83_spill] sm:$0xff] %v11611_v60  ;;  %v11614_v41 = vpop.f32.mrf.mxu1  ;;  %v4440_v12 = vpop.f32.mrf.mxu0 }
 0x4f6   : > { %v6030_v48 = vrot.slane %v4664_v62, 7 }
 0x4f7   : > { %v5051_v61 = vpop.f32.mrf.mxu1  ;;  %v4443_v53 = vpop.f32.mrf.mxu0  ;;  %8267 = vmatmul.mubr.bf16.gmra.mxu0 %v11193_v27 }
 0x4f8   : > { %v11619_v20 = vsel %vm3064_vm10, %v6029_v45, %v6030_v48  ;;  %v4669_v54 = vadd.f32 %v12774_v26, %v4443_v53  ;;  %8270 = vmatprep.mubr.bf16.mxu0 %v10854_v30  ;;  %v12777_v45 = vld [vmem:[#allocation107_spill] sm:$0xff] }
 0x4f9   : > { %12773 = vst [vmem:[#allocation103_spill] sm:$0xff] %v11619_v20  ;;  %v11623_v63 = vpop.f32.mrf.mxu1  ;;  %5696 = vmatmul.mubr.bf16.gmra.mxu1 %v10906_v25  ;;  %v4445_v14 = vpop.f32.mrf.mxu0 }
 0x4fa   : > { %v6031_v23 = vrot.slane %v4669_v54, 7  ;;  %5703 = vmatprep.mubr.bf16.mxu1 %v12775_v5 }
 0x4fb   : > { %v5056_v59 = vpop.f32.mrf.mxu1  ;;  %v4446_v62 = vpop.f32.mrf.mxu0 }
 0x4fc   : > { %v11629_v27 = vsel %vm3064_vm10, %v6030_v48, %v6031_v23  ;;  %v4672_v12 = vadd.f32 %v12777_v45, %v4446_v62  ;;  %v12779_v62 = vld [vmem:[#allocation84_spill] sm:$0xff] }
 0x4fd   : > { %12776 = vst [vmem:[#allocation100_spill] sm:$0xff] %v11629_v27  ;;  %v11632_v61 = vpop.f32.mrf.mxu1  ;;  %v4448_v53 = vpop.f32.mrf.mxu0 }
 0x4fe   : > { %v6032_v30 = vrot.slane %v4672_v12, 7 }
 0x4ff   : > { %v5059_v26 = vpop.f32.mrf.mxu1  ;;  %v4451_v20 = vpop.f32.mrf.mxu0  ;;  %8271 = vmatmul.mubr.bf16.gmra.mxu0 %v10879_v51 }
 0x500   : > { %v11637_v54 = vsel %vm3064_vm10, %v6031_v23, %v6032_v30  ;;  %v4677_v14 = vadd.f32 %v11346_v55, %v4451_v20  ;;  %8274 = vmatprep.mubr.bf16.mxu0 %v10882_v37  ;;  %v12781_v23 = vld [vmem:[#allocation113_spill] sm:$0xff] }
 0x501   : > { %12778 = vst [vmem:[#allocation93_spill] sm:$0xff] %v11637_v54  ;;  %v11641_v48 = vpop.f32.mrf.mxu1  ;;  %5704 = vmatmul.mubr.bf16.gmra.mxu1 %v10920_v32  ;;  %v4453_v5 = vpop.f32.mrf.mxu0 }
 0x502   : > { %v6033_v59 = vrot.slane %v4677_v14, 7  ;;  %5711 = vmatprep.mubr.bf16.mxu1 %v12779_v62  ;;  %v12784_v5 = vld [vmem:[#allocation110_spill] sm:$0xff] }
 0x503   : > { %v5064_v45 = vpop.f32.mrf.mxu1  ;;  %v4454_v12 = vpop.f32.mrf.mxu0 }
 0x504   : > { %v11647_v51 = vsel %vm3064_vm10, %v6032_v30, %v6033_v59  ;;  %v4680_v53 = vadd.f32 %v12781_v23, %v4454_v12  ;;  %v12785_v23 = vld [vmem:[#allocation85_spill] sm:$0xff] }
 0x505   : > { %12780 = vst [vmem:[#allocation80_spill] sm:$0xff] %v11647_v51  ;;  %v11650_v26 = vpop.f32.mrf.mxu1  ;;  %v4456_v55 = vpop.f32.mrf.mxu0 }
 0x506   : > { %12782 = vst [vmem:[#allocation102_spill] sm:$0xff] %v11650_v26  ;;  %v6034_v37 = vrot.slane %v4680_v53, 7 }
 0x507   : > { %v5067_v20 = vpop.f32.mrf.mxu1  ;;  %v4459_v54 = vpop.f32.mrf.mxu0  ;;  %8275 = vmatmul.mubr.bf16.gmra.mxu0 %v11432_v58 }
 0x508   : > { %v11655_v14 = vsel %vm3064_vm10, %v6033_v59, %v6034_v37  ;;  %v4685_v62 = vadd.f32 %v12784_v5, %v4459_v54  ;;  %8278 = vmatprep.mubr.bf16.mxu0 %v10906_v25  ;;  %v12787_v59 = vld [vmem:[#allocation112_spill] sm:$0xff] }
 0x509   : > { %12783 = vst [vmem:[#allocation94_spill] sm:$0xff] %v11655_v14  ;;  %v11659_v30 = vpop.f32.mrf.mxu1  ;;  %5712 = vmatmul.mubr.bf16.gmra.mxu1 %v10922_v17  ;;  %v4461_v45 = vpop.f32.mrf.mxu0 }
 0x50a   : > { %v6035_v12 = vrot.slane %v4685_v62, 7  ;;  %5719 = vmatprep.mubr.bf16.mxu1 %v12785_v23  ;;  %v12789_v45 = vld [vmem:[#allocation116_spill] sm:$0xff] }
 0x50b   : > { %v5072_v53 = vpop.f32.mrf.mxu1  ;;  %v4462_v55 = vpop.f32.mrf.mxu0 }
 0x50c   : > { %v11665_v58 = vsel %vm3064_vm10, %v6034_v37, %v6035_v12  ;;  %v4688_v20 = vadd.f32 %v12787_v59, %v4462_v55  ;;  %v12791_v59 = vld [vmem:[#allocation86_spill] sm:$0xff] }
 0x50d   : > { %12786 = vst [vmem:[#allocation81_spill] sm:$0xff] %v11665_v58  ;;  %v11668_v14 = vpop.f32.mrf.mxu1  ;;  %v4464_v54 = vpop.f32.mrf.mxu0 }
 0x50e   : > { %v6036_v25 = vrot.slane %v4688_v20, 7 }
 0x50f   : > { %v5075_v5 = vpop.f32.mrf.mxu1  ;;  %v4467_v51 = vpop.f32.mrf.mxu0  ;;  %8279 = vmatmul.mubr.bf16.gmra.mxu0 %v10920_v32 }
 0x510   : > { %v11673_v62 = vsel %vm3064_vm10, %v6035_v12, %v6036_v25  ;;  %v4693_v23 = vadd.f32 %v12789_v45, %v4467_v51  ;;  %8282 = vmatprep.mubr.bf16.mxu0 %v10922_v17  ;;  %v12793_v12 = vld [vmem:[#allocation119_spill] sm:$0xff] }
 0x511   : > { %12788 = vst [vmem:[#allocation108_spill] sm:$0xff] %v11673_v62  ;;  %v11677_v37 = vpop.f32.mrf.mxu1  ;;  %5720 = vmatmul.mubr.bf16.gmra.mxu1 %v10938_v10  ;;  %v4469_v53 = vpop.f32.mrf.mxu0 }
 0x512   : > { %12790 = vst [vmem:[#allocation105_spill] sm:$0xff] %v11677_v37  ;;  %v6037_v55 = vrot.slane %v4693_v23, 7  ;;  %5727 = vmatprep.mubr.bf16.mxu1 %v12791_v59  ;;  %v12796_v53 = vld [vmem:[#allocation115_spill] sm:$0xff]  ;;  %v12809_v37 = vld [vmem:[#allocation101_spill] sm:$0xff] }
 0x513   : > { %v5080_v20 = vpop.f32.mrf.mxu1  ;;  %v4470_v54 = vpop.f32.mrf.mxu0 }
 0x514   : > { %v11683_v32 = vsel %vm3064_vm10, %v6036_v25, %v6037_v55  ;;  %v4696_v5 = vadd.f32 %v12793_v12, %v4470_v54  ;;  %v12798_v12 = vld [vmem:[#allocation88_spill] sm:$0xff] }
 0x515   : > { %12792 = vst [vmem:[#allocation82_spill] sm:$0xff] %v11683_v32  ;;  %v11686_v62 = vpop.f32.mrf.mxu1  ;;  %v4472_v51 = vpop.f32.mrf.mxu0 }
 0x516   : > { %12794 = vst [vmem:[#allocation107_spill] sm:$0xff] %v11686_v62  ;;  %v6038_v17 = vrot.slane %v4696_v5, 7 }
 0x517   : > { %v5083_v45 = vpop.f32.mrf.mxu1  ;;  %v4475_v58 = vpop.f32.mrf.mxu0  ;;  %8283 = vmatmul.mubr.bf16.gmra.mxu0 %v10938_v10 }
 0x518   : > { %v11691_v23 = vsel %vm3064_vm10, %v6037_v55, %v6038_v17  ;;  %v4701_v59 = vadd.f32 %v12796_v53, %v4475_v58  ;;  %8286 = vmatprep.mubr.bf16.mxu0 %v10941_v44  ;;  %v12800_v55 = vld [vmem:[#allocation118_spill] sm:$0xff] }
 0x519   : > { %12795 = vst [vmem:[#allocation84_spill] sm:$0xff] %v11691_v23  ;;  %v11695_v25 = vpop.f32.mrf.mxu1  ;;  %5728 = vmatmul.mubr.bf16.gmra.mxu1 %v10941_v44  ;;  %v4477_v20 = vpop.f32.mrf.mxu0 }
 0x51a   : > { %12797 = vst [vmem:[#allocation113_spill] sm:$0xff] %v11695_v25  ;;  %v6039_v54 = vrot.slane %v4701_v59, 7  ;;  %5735 = vmatprep.mubr.bf16.mxu1 %v12798_v12  ;;  %v12804_v20 = vld [vmem:[#allocation104_spill] sm:$0xff] }
 0x51b   : > { %v5088_v5 = vpop.f32.mrf.mxu1  ;;  %v4478_v51 = vpop.f32.mrf.mxu0 }
 0x51c   : > { %v11701_v10 = vsel %vm3064_vm10, %v6038_v17, %v6039_v54  ;;  %v4704_v45 = vadd.f32 %v12800_v55, %v4478_v51  ;;  %v12805_v5 = vld [vmem:[#allocation99_spill] sm:$0xff]  ;;  %v12806_v55 = vld [vmem:[#allocation89_spill] sm:$0xff] }
 0x51d   : > { %12799 = vst [vmem:[#allocation110_spill] sm:$0xff] %v11701_v10  ;;  %v11704_v23 = vpop.f32.mrf.mxu1  ;;  %v4480_v58 = vpop.f32.mrf.mxu0  ;;  %v12807_v10 = vld [vmem:[#allocation106_spill] sm:$0xff] }
 0x51e   : > { %12801 = vst [vmem:[#allocation85_spill] sm:$0xff] %v11704_v23  ;;  %v6040_v53 = vrot.slane %v4704_v45, 7 }
 0x51f   : > { %v5091_v32 = vpop.f32.mrf.mxu1  ;;  %v8128_v62 = vpop.f32.mrf.mxu0  ;;  %8287 = vmatmul.mubr.bf16.gmra.mxu0 %v10982_v36 }
 0x520   : > { %v11709_v44 = vsel %vm3064_vm10, %v6039_v54, %v6040_v53  ;;  %8290 = vmatprep.mubr.bf16.mxu0 %v10986_v39  ;;  %v4525_v12 = vadd.f32 %v8128_v62, %v12804_v20 }
 0x521   : > { %12802 = vst [vmem:[#allocation112_spill] sm:$0xff] %v11709_v44  ;;  %v11712_v59 = vpop.f32.mrf.mxu1  ;;  %5736 = vmatmul.mubr.bf16.gmra.mxu1 %v10982_v36  ;;  %v4516_v17 = vpop.f32.mrf.mxu0 }
 0x522   : > { %12803 = vst [vmem:[#allocation116_spill] sm:$0xff] %v11712_v59  ;;  %v4517_v51 = vadd.f32 %v4516_v17, %v12805_v5  ;;  %5743 = vmatprep.mubr.bf16.mxu1 %v12806_v55  ;;  %v5995_v60 = vrot.slane %v4525_v12, 7  ;;  %v12812_v55 = vld [vmem:[#allocation109_spill] sm:$0xff] }
 0x523   : > { %v5096_v32 = vpop.f32.mrf.mxu1  ;;  %v8129_v45 = vpop.f32.mrf.mxu0 }
 0x524   : > { %v5993_v58 = vrot.slane %v4517_v51, 7  ;;  %v4528_v23 = vadd.f32 %v8129_v45, %v12807_v10  ;;  %v12813_v45 = vld [vmem:[#allocation90_spill] sm:$0xff] }
 0x525   : > { %v11719_v54 = vpop.f32.mrf.mxu1  ;;  %v4519_v44 = vpop.f32.mrf.mxu0 }
 0x526   : > { %12808 = vst [vmem:[#allocation86_spill] sm:$0xff] %v11719_v54  ;;  %v11723_v59 = vsel %vm3064_vm10, %v6040_v53, %v5993_v58  ;;  %v5996_v36 = vrot.slane %v4528_v23, 7  ;;  %v4520_v62 = vadd.f32 %v4519_v44, %v12809_v37  ;;  %v12811_v44 = vld [vmem:[#allocation114_spill] sm:$0xff] }
 0x527   : > { %v5099_v20 = vpop.f32.mrf.mxu1  ;;  %v8132_v17 = vpop.f32.mrf.mxu0  ;;  %8291 = vmatmul.mubr.bf16.gmra.mxu0 %v11031_v18 }
 0x528   : > { %v11729_v5 = vsel %vm3064_vm10, %v5995_v60, %v5996_v36  ;;  %v5994_v10 = vrot.slane %v4520_v62, 7  ;;  %8294 = vmatprep.mubr.bf16.mxu0 %v11036_v49  ;;  %v4541_v12 = vadd.f32 %v8132_v17, %v12811_v44 }
 0x529   : > { %v11732_v51 = vpop.f32.mrf.mxu1  ;;  %5744 = vmatmul.mubr.bf16.gmra.mxu1 %v10986_v39  ;;  %v4532_v53 = vpop.f32.mrf.mxu0 }
 0x52a   : > { %12810 = vst [vmem:[#allocation119_spill] sm:$0xff] %v11732_v51  ;;  %v11737_v23 = vsel %vm3064_vm10, %v5994_v10, %v5995_v60  ;;  %v11741_v37 = vsel %vm3064_vm10, %v5993_v58, %v5994_v10  ;;  %v4533_v32 = vadd.f32 %v4532_v53, %v12812_v55  ;;  %5751 = vmatprep.mubr.bf16.mxu1 %v12813_v45  ;;  %v12814_v51 = vld [vmem:[#allocation117_spill] sm:$0xff]  ;;  %v5999_v60 = vrot.slane %v4541_v12, 7  ;;  %v12816_v10 = vld [vmem:[#allocation111_spill] sm:$0xff]  ;;  %v12818_v45 = vld [vmem:[#allocation120_spill] sm:$0xff] }
 0x52b   : > { %v5104_v62 = vpop.f32.mrf.mxu1  ;;  %v8133_v20 = vpop.f32.mrf.mxu0 }
 0x52c   : > { %v5997_v54 = vrot.slane %v4533_v32, 7  ;;  %v4544_v39 = vadd.f32 %v8133_v20, %v12814_v51  ;;  %v12819_v20 = vld [vmem:[#allocation95_spill] sm:$0xff] }
 0x52d   : > { %v11747_v27 = vpop.f32.mrf.mxu1  ;;  %v4535_v25 = vpop.f32.mrf.mxu0 }
 0x52e   : > { %12815 = vst [vmem:[#allocation115_spill] sm:$0xff] %v11747_v27  ;;  %v11751_v26 = vsel %vm3064_vm10, %v5996_v36, %v5997_v54  ;;  %v6000_v58 = vrot.slane %v4544_v39, 7  ;;  %v4536_v17 = vadd.f32 %v4535_v25, %v12816_v10 }
 0x52f   : > { %v5107_v44 = vpop.f32.mrf.mxu1  ;;  %v8136_v53 = vpop.f32.mrf.mxu0  ;;  %8295 = vmatmul.mubr.bf16.gmra.mxu0 %v11073_v8 }
 0x530   : > { %v11757_v55 = vsel %vm3064_vm10, %v5999_v60, %v6000_v58  ;;  %v5998_v51 = vrot.slane %v4536_v17, 7  ;;  %8298 = vmatprep.mubr.bf16.mxu0 %v11077_v22  ;;  %v4557_v8 = vadd.f32 %v8136_v53, %v11382_v6 }
 0x531   : > { %v11760_v32 = vpop.f32.mrf.mxu1  ;;  %5752 = vmatmul.mubr.bf16.gmra.mxu1 %v11031_v18  ;;  %v4548_v36 = vpop.f32.mrf.mxu0 }
 0x532   : > { %12817 = vst [vmem:[#allocation88_spill] sm:$0xff] %v11760_v32  ;;  %v11765_v12 = vsel %vm3064_vm10, %v5998_v51, %v5999_v60  ;;  %v11769_v25 = vsel %vm3064_vm10, %v5997_v54, %v5998_v51  ;;  %v4549_v62 = vadd.f32 %v4548_v36, %v12818_v45  ;;  %5759 = vmatprep.mubr.bf16.mxu1 %v12819_v20  ;;  %v6003_v44 = vrot.slane %v4557_v8, 7  ;;  %v8624_v45 = vld [vmem:[%s10844_s24 + $0x148] sm:$0xff]  }
 0x533   : > { %v5112_v22 = vpop.f32.mrf.mxu1  ;;  %v8137_v39 = vpop.f32.mrf.mxu0 }
 0x534   : > { %v6001_v10 = vrot.slane %v4549_v62, 7  ;;  %v4560_v18 = vadd.f32 %v8137_v39, %v11390_v21 }
 0x535   : > { %v11775_v17 = vpop.f32.mrf.mxu1  ;;  %v4551_v60 = vpop.f32.mrf.mxu0 }
 0x536   : > { %12820 = vst [vmem:[#allocation118_spill] sm:$0xff] %v11775_v17  ;;  %v11779_v54 = vsel %vm3064_vm10, %v6000_v58, %v6001_v10  ;;  %v6004_v51 = vrot.slane %v4560_v18, 7  ;;  %v4552_v6 = vadd.f32 %v4551_v60, %v11378_v42 }
 0x537   : > { %v5115_v53 = vpop.f32.mrf.mxu1  ;;  %v8140_v36 = vpop.f32.mrf.mxu0  ;;  %8299 = vmatmul.mubr.bf16.gmra.mxu0 %v8624_v45 }
 0x538   : > { %v11785_v62 = vsel %vm3064_vm10, %v6003_v44, %v6004_v51  ;;  %v6002_v21 = vrot.slane %v4552_v6, 7  ;;  %v4573_v22 = vadd.f32 %v8140_v36, %v11406_v7  ;;  %v12822_v6 = vld [vmem:[#allocation129_spill] sm:$0xff] }
 0x539   : > { %v11787_v20 = vpop.f32.mrf.mxu1  ;;  %5760 = vmatmul.mubr.bf16.gmra.mxu1 %v11036_v49  ;;  %v4564_v8 = vpop.f32.mrf.mxu0 }
 0x53a   : > { %12821 = vst [vmem:[#allocation104_spill] sm:$0xff] %v11787_v20  ;;  %v6079_v58 = vsel %vm3064_vm10, %v6002_v21, %v6003_v44  ;;  %v11794_v42 = vsel %vm3064_vm10, %v6001_v10, %v6002_v21  ;;  %v4565_v39 = vadd.f32 %v4564_v8, %v11394_v15  ;;  %v6007_v32 = vrot.slane %v4573_v22, 7  ;;  %v12823_v10 = vld [vmem:[#allocation126_spill] sm:$0xff] }
 0x53b   : > { %v5120_v18 = vpop.f32.mrf.mxu1  ;;  %v8141_v60 = vpop.f32.mrf.mxu0  ;;  %v12824_v15 = vrot.slane %v11424_v16, 7 }
 0x53c   : > { %v6005_v53 = vrot.slane %v4565_v39, 7  ;;  %v4576_v45 = vadd.f32 %v8141_v60, %v12822_v6  ;;  %v12825_v39 = vld [vmem:[#allocation123_spill] sm:$0xff] }
 0x53d   : > { %v11799_v17 = vpop.f32.mrf.mxu1  ;;  %v4567_v49 = vpop.f32.mrf.mxu0 }
 0x53e   : > { %v11803_v44 = vsel %vm3064_vm10, %v6004_v51, %v6005_v53  ;;  %v6008_v20 = vrot.slane %v4576_v45, 7  ;;  %v4568_v21 = vadd.f32 %v4567_v49, %v12823_v10  ;;  %v12827_v45 = vld [vmem:[#allocation121_spill] sm:$0xff] }
 0x53f   : > { %v5123_v27 = vpop.f32.mrf.mxu1  ;;  %v8192_v7 = vpop.f32.mrf.mxu0 }
 0x540   : > { %v11810_v36 = vsel %vm3064_vm10, %v6008_v20, %v12824_v15  ;;  %v11814_v8 = vsel %vm3064_vm10, %v6007_v32, %v6008_v20  ;;  %v6006_v22 = vrot.slane %v4568_v21, 7  ;;  %v5168_v18 = vadd.f32 %v8192_v7, %v12825_v39  ;;  %v12829_v7 = vld [vmem:[#allocation124_spill] sm:$0xff] }
 0x541   : > { %v11817_v51 = vpop.f32.mrf.mxu1  ;;  %v5159_v60 = vpop.f32.mrf.mxu0 }
 0x542   : > { %12826 = vst [vmem:[#allocation99_spill] sm:$0xff] %v11817_v51  ;;  %v6075_v27 = vsel %vm3064_vm10, %v6006_v22, %v6007_v32  ;;  %v6076_v16 = vsel %vm3064_vm10, %v6005_v53, %v6006_v22  ;;  %v11824_v6 = vadd.f32 %v11737_v23, %v5168_v18  ;;  %v5160_v49 = vadd.f32 %v5159_v60, %v12827_v45  ;;  %v12832_v60 = vld [vmem:[#allocation128_spill] sm:$0xff] }
 0x543   : > { %v5579_v10 = vpop.f32.mrf.mxu1  ;;  %v8193_v20 = vpop.f32.mrf.mxu0 }
 0x544   : > { %v11828_v21 = vadd.f32 %v11723_v59, %v5160_v49  ;;  %v5171_v15 = vadd.f32 %v8193_v20, %v12829_v7  ;;  %v12833_v20 = vld [vmem:[#allocation125_spill] sm:$0xff] }
 0x545   : > { %v11831_v39 = vpop.f32.mrf.mxu1  ;;  %v5162_v51 = vpop.f32.mrf.mxu0 }
 0x546   : > { %12828 = vst [vmem:[#allocation89_spill] sm:$0xff] %v11828_v21  ;;  %v11834_v32 = vadd.f32 %v11729_v5, %v5171_v15  ;;  %v5163_v53 = vadd.f32 %v5162_v51, %v12831_v2  ;;  %v12835_v2 = vld [vmem:[#allocation130_spill] sm:$0xff] }
 0x547   : > { %v5582_v22 = vpop.f32.mrf.mxu1  ;;  %v8196_v23 = vpop.f32.mrf.mxu0 }
 0x548   : > { %12830 = vst [vmem:[#allocation106_spill] sm:$0xff] %v11834_v32  ;;  %v11838_v18 = vadd.f32 %v11741_v37, %v5163_v53  ;;  %v5184_v45 = vadd.f32 %v8196_v23, %v12832_v60  ;;  %v12836_v23 = vld [vmem:[#allocation127_spill] sm:$0xff] }
 0x549   : > { %v11841_v10 = vpop.f32.mrf.mxu1  ;;  %v5175_v59 = vpop.f32.mrf.mxu0 }
 0x54a   : > { %v11844_v49 = vadd.f32 %v11765_v12, %v5184_v45  ;;  %v5176_v7 = vadd.f32 %v5175_v59, %v12833_v20 }
 0x54b   : > { %v5587_v21 = vpop.f32.mrf.mxu1  ;;  %v8197_v5 = vpop.f32.mrf.mxu0 }
 0x54c   : > { %v11848_v15 = vadd.f32 %v11751_v26, %v5176_v7  ;;  %v5187_v51 = vadd.f32 %v8197_v5, %v12835_v2  ;;  %v12837_v7 = vld [vmem:[#allocation131_spill] sm:$0xff] }
 0x54d   : > { %v11851_v22 = vpop.f32.mrf.mxu1  ;;  %v5178_v37 = vpop.f32.mrf.mxu0 }
 0x54e   : > { %12834 = vst [vmem:[#allocation101_spill] sm:$0xff] %v11848_v15  ;;  %v11854_v53 = vadd.f32 %v11757_v55, %v5187_v51  ;;  %v5179_v60 = vadd.f32 %v5178_v37, %v12836_v23 }
 0x54f   : > { %v5590_v32 = vpop.f32.mrf.mxu1  ;;  %v8200_v12 = vpop.f32.mrf.mxu0 }
 0x550   : > { %v11858_v45 = vadd.f32 %v11769_v25, %v5179_v60  ;;  %v5200_v21 = vadd.f32 %v8200_v12, %v11443_v31 }
 0x551   : > { %v11861_v59 = vpop.f32.mrf.mxu1  ;;  %v5191_v26 = vpop.f32.mrf.mxu0 }
 0x552   : > { %v11863_v20 = vadd.f32 %v6079_v58, %v5200_v21  ;;  %v5192_v5 = vadd.f32 %v5191_v26, %v12837_v7 }
 0x553   : > { %v5595_v2 = vpop.f32.mrf.mxu1  ;;  %v8201_v15 = vpop.f32.mrf.mxu0 }
 0x554   : > { %v11867_v55 = vadd.f32 %v11779_v54, %v5192_v5  ;;  %v5203_v32 = vadd.f32 %v8201_v15, %v11452_v47 }
 0x555   : > { %v11870_v51 = vpop.f32.mrf.mxu1  ;;  %v5194_v25 = vpop.f32.mrf.mxu0 }
 0x556   : > { %v11873_v37 = vadd.f32 %v11785_v62, %v5203_v32  ;;  %v5195_v31 = vadd.f32 %v5194_v25, %v11428_v38 }
 0x557   : > { %v5598_v23 = vpop.f32.mrf.mxu1  ;;  %v8204_v58 = vpop.f32.mrf.mxu0 }
 0x558   : > { %v11877_v60 = vadd.f32 %v11794_v42, %v5195_v31  ;;  %v5216_v12 = vadd.f32 %v8204_v58, %v11479_v19 }
 0x559   : > { %v11880_v21 = vpop.f32.mrf.mxu1  ;;  %v5207_v54 = vpop.f32.mrf.mxu0 }
 0x55a   : > { %v11882_v26 = vadd.f32 %v6075_v27, %v5216_v12  ;;  %v5208_v47 = vadd.f32 %v5207_v54, %v11461_v40 }
 0x55b   : > { %v5603_v15 = vpop.f32.mrf.mxu1  ;;  %v8205_v7 = vpop.f32.mrf.mxu0 }
 0x55c   : > { %v11886_v62 = vadd.f32 %v11803_v44, %v5208_v47  ;;  %v5219_v38 = vadd.f32 %v8205_v7, %v11488_v29  ;;  %v12838_v47 = vld [vmem:[#allocation133_spill] sm:$0xff] }
 0x55d   : > { %v11889_v5 = vpop.f32.mrf.mxu1  ;;  %v5210_v42 = vpop.f32.mrf.mxu0 }
 0x55e   : > { %v11892_v2 = vadd.f32 %v11814_v8, %v5219_v38  ;;  %v5211_v19 = vadd.f32 %v5210_v42, %v11470_v34  ;;  %v12839_v38 = vld [vmem:[#allocation132_spill] sm:$0xff] }
 0x55f   : > { %v5606_v32 = vpop.f32.mrf.mxu1  ;;  %v8208_v27 = vpop.f32.mrf.mxu0 }
 0x560   : > { %v11895_v25 = vadd.f32 %v6076_v16, %v5211_v19  ;;  %v5232_v40 = vadd.f32 %v8208_v27, %v11515_v56 }
 0x561   : > { %v11898_v31 = vpop.f32.mrf.mxu1  ;;  %v5223_v44 = vpop.f32.mrf.mxu0 }
 0x562   : > { %v11901_v23 = vadd.f32 %v11449_v33, %v5232_v40  ;;  %v5224_v29 = vadd.f32 %v5223_v44, %v11497_v46 }
 0x563   : > { %v5611_v58 = vpop.f32.mrf.mxu1  ;;  %v8209_v12 = vpop.f32.mrf.mxu0 }
 0x564   : > { %v11905_v8 = vadd.f32 %v11810_v36, %v5224_v29  ;;  %v5235_v34 = vadd.f32 %v8209_v12, %v11524_v57  ;;  %v12840_v12 = vld [vmem:[#allocation135_spill] sm:$0xff] }
 0x565   : > { %v11908_v54 = vpop.f32.mrf.mxu1  ;;  %v5226_v16 = vpop.f32.mrf.mxu0 }
 0x566   : > { %v11911_v56 = vadd.f32 %v12838_v47, %v5235_v34  ;;  %v5227_v15 = vadd.f32 %v5226_v16, %v11506_v4  ;;  %v12841_v47 = vld [vmem:[#allocation134_spill] sm:$0xff] }
 0x567   : > { %v5614_v7 = vpop.f32.mrf.mxu1  ;;  %v8212_v33 = vpop.f32.mrf.mxu0 }
 0x568   : > { %v11915_v42 = vadd.f32 %v12839_v38, %v5227_v15  ;;  %v5248_v46 = vadd.f32 %v8212_v33, %v11551_v24  ;;  %v12842_v33 = vld [vmem:[#allocation138_spill] sm:$0xff] }
 0x569   : > { %v11918_v19 = vpop.f32.mrf.mxu1  ;;  %v5239_v36 = vpop.f32.mrf.mxu0 }
 0x56a   : > { %v11921_v57 = vadd.f32 %v11485_v35, %v5248_v46  ;;  %v5240_v32 = vadd.f32 %v5239_v36, %v11533_v11 }
 0x56b   : > { %v5619_v27 = vpop.f32.mrf.mxu1  ;;  %v8213_v40 = vpop.f32.mrf.mxu0 }
 0x56c   : > { %v11925_v44 = vadd.f32 %v11467_v50, %v5240_v32  ;;  %v5251_v4 = vadd.f32 %v8213_v40, %v11560_v9  ;;  %v12844_v32 = vld [vmem:[#allocation136_spill] sm:$0xff] }
 0x56d   : > { %v11928_v29 = vpop.f32.mrf.mxu1  ;;  %v5242_v58 = vpop.f32.mrf.mxu0 }
 0x56e   : > { %v11931_v24 = vadd.f32 %v12840_v12, %v5251_v4  ;;  %v5243_v34 = vadd.f32 %v5242_v58, %v11542_v43  ;;  %v12846_v58 = vld [vmem:[#allocation139_spill] sm:$0xff] }
 0x56f   : > { %v5622_v16 = vpop.f32.mrf.mxu1  ;;  %v8216_v35 = vpop.f32.mrf.mxu0 }
 0x570   : > { %v11935_v15 = vadd.f32 %v12841_v47, %v5243_v34  ;;  %v5264_v11 = vadd.f32 %v8216_v35, %v11587_v52  ;;  %v12848_v35 = vld [vmem:[#allocation137_spill] sm:$0xff] }
 0x571   : > { %v11938_v7 = vpop.f32.mrf.mxu1  ;;  %v5255_v50 = vpop.f32.mrf.mxu0 }
 0x572   : > { %v11941_v9 = vadd.f32 %v12842_v33, %v5264_v11  ;;  %v5256_v38 = vadd.f32 %v5255_v50, %v11569_v1  ;;  %v12850_v33 = vld [vmem:[#allocation87_spill] sm:$0xff] }
 0x573   : > { %v5627_v46 = vpop.f32.mrf.mxu1  ;;  %v8217_v36 = vpop.f32.mrf.mxu0 }
 0x574   : > { %12843 = vst [vmem:[#allocation114_spill] sm:$0xff] %v11941_v9  ;;  %v11945_v27 = vadd.f32 %v12844_v32, %v5256_v38  ;;  %v5267_v43 = vadd.f32 %v8217_v36, %v11596_v0  ;;  %v12852_v32 = vld [vmem:[#allocation140_spill] sm:$0xff] }
 0x575   : > { %v11948_v40 = vpop.f32.mrf.mxu1  ;;  %v5258_v4 = vpop.f32.mrf.mxu0 }
 0x576   : > { %12845 = vst [vmem:[#allocation109_spill] sm:$0xff] %v11945_v27  ;;  %v11951_v52 = vadd.f32 %v12846_v58, %v5267_v43  ;;  %v5259_v12 = vadd.f32 %v5258_v4, %v11578_v13 }
 0x577   : > { %v5630_v34 = vpop.f32.mrf.mxu1  ;;  %v8220_v16 = vpop.f32.mrf.mxu0 }
 0x578   : > { %12847 = vst [vmem:[#allocation90_spill] sm:$0xff] %v11951_v52  ;;  %v11955_v47 = vadd.f32 %v12848_v35, %v5259_v12  ;;  %v5280_v1 = vadd.f32 %v8220_v16, %v11623_v63  ;;  %v12854_v12 = vld [vmem:[#allocation96_spill] sm:$0xff] }
 0x579   : > { %v11958_v11 = vpop.f32.mrf.mxu1  ;;  %v5271_v50 = vpop.f32.mrf.mxu0 }
 0x57a   : > { %12849 = vst [vmem:[#allocation117_spill] sm:$0xff] %v11955_v47  ;;  %v11961_v0 = vadd.f32 %v12850_v33, %v5280_v1  ;;  %v5272_v38 = vadd.f32 %v5271_v50, %v11605_v3  ;;  %v12856_v1 = vld [vmem:[#allocation98_spill] sm:$0xff] }
 0x57b   : > { %v5635_v46 = vpop.f32.mrf.mxu1  ;;  %v8221_v36 = vpop.f32.mrf.mxu0 }
 0x57c   : > { %12851 = vst [vmem:[#allocation111_spill] sm:$0xff] %v11961_v0  ;;  %v11965_v43 = vadd.f32 %v12852_v32, %v5272_v38  ;;  %v5283_v13 = vadd.f32 %v8221_v36, %v11632_v61 }
 0x57d   : > { %v11968_v4 = vpop.f32.mrf.mxu1  ;;  %v5274_v58 = vpop.f32.mrf.mxu0 }
 0x57e   : > { %12853 = vst [vmem:[#allocation120_spill] sm:$0xff] %v11965_v43  ;;  %v11971_v63 = vadd.f32 %v12854_v12, %v5283_v13  ;;  %v5275_v34 = vadd.f32 %v5274_v58, %v11614_v41  ;;  %v12859_v13 = vld [vmem:[#allocation91_spill] sm:$0xff] }
 0x57f   : > { %v5638_v16 = vpop.f32.mrf.mxu1  ;;  %v8224_v35 = vpop.f32.mrf.mxu0 }
 0x580   : > { %12855 = vst [vmem:[#allocation95_spill] sm:$0xff] %v11971_v63  ;;  %v11975_v33 = vadd.f32 %v12856_v1, %v5275_v34  ;;  %v5296_v3 = vadd.f32 %v8224_v35, %v11659_v30  ;;  %v12861_v16 = vld [vmem:[#allocation92_spill] sm:$0xff]  ;;  %v12863_v35 = vld [vmem:[#allocation102_spill] sm:$0xff] }
 0x581   : > { %v11978_v50 = vpop.f32.mrf.mxu1  ;;  %v5287_v38 = vpop.f32.mrf.mxu0 }
 0x582   : > { %12857 = vst [vmem:[#allocation129_spill] sm:$0xff] %v11975_v33  ;;  %v11981_v61 = vadd.f32 %v11593_v28, %v5296_v3  ;;  %v5288_v46 = vadd.f32 %v5287_v38, %v11641_v48  ;;  %v12864_v3 = vld [vmem:[#allocation97_spill] sm:$0xff] }
 0x583   : > { %v5643_v36 = vpop.f32.mrf.mxu1  ;;  %v8225_v32 = vpop.f32.mrf.mxu0  ;;  %v12866_v48 = vld [vmem:[#allocation113_spill] sm:$0xff] }
 0x584   : > { %12858 = vst [vmem:[#allocation126_spill] sm:$0xff] %v11981_v61  ;;  %v11985_v12 = vadd.f32 %v12859_v13, %v5288_v46  ;;  %v5299_v41 = vadd.f32 %v8225_v32, %v11668_v14  ;;  %v12867_v13 = vld [vmem:[#allocation100_spill] sm:$0xff]  ;;  %v12869_v32 = vld [vmem:[#allocation105_spill] sm:$0xff] }
 0x585   : > { %v11988_v58 = vpop.f32.mrf.mxu1  ;;  %v5290_v34 = vpop.f32.mrf.mxu0 }
 0x586   : > { %12860 = vst [vmem:[#allocation123_spill] sm:$0xff] %v11985_v12  ;;  %v11991_v30 = vadd.f32 %v12861_v16, %v5299_v41  ;;  %v5291_v1 = vadd.f32 %v5290_v34, %v12863_v35  ;;  %v12870_v16 = vld [vmem:[#allocation83_spill] sm:$0xff] }
 0x587   : > { %v5646_v63 = vpop.f32.mrf.mxu1  ;;  %v8228_v28 = vpop.f32.mrf.mxu0 }
 0x588   : > { %12862 = vst [vmem:[#allocation121_spill] sm:$0xff] %v11991_v30  ;;  %v11995_v61 = vadd.f32 %v12864_v3, %v5291_v1  ;;  %v5312_v38 = vadd.f32 %v8228_v28, %v12866_v48  ;;  %v12872_v63 = vld [vmem:[#allocation85_spill] sm:$0xff]  ;;  %v12875_v48 = vld [vmem:[#allocation107_spill] sm:$0xff] }
 0x589   : > { %v11998_v36 = vpop.f32.mrf.mxu1  ;;  %v5303_v46 = vpop.f32.mrf.mxu0  ;;  %v12873_v3 = vld [vmem:[#allocation93_spill] sm:$0xff] }
 0x58a   : > { %12865 = vst [vmem:[#allocation124_spill] sm:$0xff] %v11995_v61  ;;  %v12001_v14 = vadd.f32 %v12867_v13, %v5312_v38  ;;  %v5304_v12 = vadd.f32 %v5303_v46, %v12869_v32  ;;  %v12876_v13 = vld [vmem:[#allocation103_spill] sm:$0xff] }
 0x58b   : > { %v5651_v33 = vpop.f32.mrf.mxu1  ;;  %v8229_v41 = vpop.f32.mrf.mxu0 }
 0x58c   : > { %12868 = vst [vmem:[#allocation122_spill] sm:$0xff] %v12001_v14  ;;  %v12005_v30 = vadd.f32 %v12870_v16, %v5304_v12  ;;  %v5315_v34 = vadd.f32 %v8229_v41, %v12872_v63  ;;  %v12878_v33 = vld [vmem:[#allocation119_spill] sm:$0xff]  ;;  %v12879_v16 = vld [vmem:[#allocation81_spill] sm:$0xff]  ;;  %v12881_v63 = vld [vmem:[#allocation116_spill] sm:$0xff] }
 0x58d   : > { %v12008_v35 = vpop.f32.mrf.mxu1  ;;  %v5306_v1 = vpop.f32.mrf.mxu0 }
 0x58e   : > { %12871 = vst [vmem:[#allocation128_spill] sm:$0xff] %v12005_v30  ;;  %v12011_v28 = vadd.f32 %v12873_v3, %v5315_v34  ;;  %v5307_v61 = vadd.f32 %v5306_v1, %v12875_v48  ;;  %v12882_v3 = vld [vmem:[#allocation80_spill] sm:$0xff] }
 0x58f   : > { %v5654_v43 = vpop.f32.mrf.mxu1  ;;  %v8232_v38 = vpop.f32.mrf.mxu0 }
 0x590   : > { %12874 = vst [vmem:[#allocation125_spill] sm:$0xff] %v12011_v28  ;;  %v12015_v14 = vadd.f32 %v12876_v13, %v5307_v61  ;;  %v5328_v46 = vadd.f32 %v8232_v38, %v12878_v33  ;;  %v12884_v43 = vld [vmem:[#allocation115_spill] sm:$0xff]  ;;  %v12885_v13 = vld [vmem:[#allocation108_spill] sm:$0xff]  ;;  %v12887_v33 = vld [vmem:[#allocation86_spill] sm:$0xff] }
 0x591   : > { %v12018_v32 = vpop.f32.mrf.mxu1  ;;  %v5319_v12 = vpop.f32.mrf.mxu0 }
 0x592   : > { %12877 = vst [vmem:[#allocation130_spill] sm:$0xff] %v12015_v14  ;;  %v12021_v41 = vadd.f32 %v12879_v16, %v5328_v46  ;;  %v5320_v30 = vadd.f32 %v5319_v12, %v12881_v63  ;;  %v12888_v16 = vld [vmem:[#allocation94_spill] sm:$0xff] }
 0x593   : > { %v5659_v0 = vpop.f32.mrf.mxu1  ;;  %v8233_v34 = vpop.f32.mrf.mxu0 }
 0x594   : > { %12880 = vst [vmem:[#allocation127_spill] sm:$0xff] %v12021_v41  ;;  %v12025_v28 = vadd.f32 %v12882_v3, %v5320_v30  ;;  %v5331_v1 = vadd.f32 %v8233_v34, %v12884_v43  ;;  %v12890_v0 = vld [vmem:[#allocation104_spill] sm:$0xff]  ;;  %v12891_v3 = vld [vmem:[#allocation110_spill] sm:$0xff] }
 0x595   : > { %v12028_v48 = vpop.f32.mrf.mxu1  ;;  %v5322_v61 = vpop.f32.mrf.mxu0  ;;  %v12893_v43 = vld [vmem:[#allocation88_spill] sm:$0xff] }
 0x596   : > { %12883 = vst [vmem:[#allocation131_spill] sm:$0xff] %v12025_v28  ;;  %v12031_v38 = vadd.f32 %v12885_v13, %v5331_v1  ;;  %v5323_v14 = vadd.f32 %v5322_v61, %v12887_v33  ;;  %v12894_v13 = vld [vmem:[#allocation82_spill] sm:$0xff]  ;;  %v12896_v33 = vld [vmem:[#allocation112_spill] sm:$0xff] }
 0x597   : > { %v5662_v52 = vpop.f32.mrf.mxu1  ;;  %v8236_v46 = vpop.f32.mrf.mxu0 }
 0x598   : > { %12886 = vst [vmem:[#allocation133_spill] sm:$0xff] %v12031_v38  ;;  %v12035_v41 = vadd.f32 %v12888_v16, %v5323_v14  ;;  %v5344_v12 = vadd.f32 %v8236_v46, %v12890_v0  ;;  %v12898_v16 = vld [vmem:[#allocation118_spill] sm:$0xff] }
 0x599   : > { %v12038_v63 = vpop.f32.mrf.mxu1  ;;  %v5335_v30 = vpop.f32.mrf.mxu0 }
 0x59a   : > { %12889 = vst [vmem:[#allocation132_spill] sm:$0xff] %v12035_v41  ;;  %v12041_v34 = vadd.f32 %v12891_v3, %v5344_v12  ;;  %v5336_v28 = vadd.f32 %v5335_v30, %v12893_v43  ;;  %v12899_v3 = vld [vmem:[#allocation84_spill] sm:$0xff] }
 0x59b   : > { %v5667_v47 = vpop.f32.mrf.mxu1  ;;  %v8237_v1 = vpop.f32.mrf.mxu0 }
 0x59c   : > { %12892 = vst [vmem:[#allocation135_spill] sm:$0xff] %v12041_v34  ;;  %v12045_v38 = vadd.f32 %v12894_v13, %v5336_v28  ;;  %v5347_v52 = vadd.f32 %v8237_v1, %v11799_v17  ;;  %v12901_v1 = vld [vmem:[#allocation99_spill] sm:$0xff] }
 0x59d   : > { %v12048_v61 = vpop.f32.mrf.mxu1  ;;  %v5338_v14 = vpop.f32.mrf.mxu0 }
 0x59e   : > { %12895 = vst [vmem:[#allocation134_spill] sm:$0xff] %v12045_v38  ;;  %v12051_v46 = vadd.f32 %v12896_v33, %v5347_v52  ;;  %v5339_v0 = vadd.f32 %v5338_v14, %v12898_v16 }
 0x59f   : > { %v5670_v41 = vpop.f32.mrf.mxu1  ;;  %v8256_v12 = vpop.f32.mrf.mxu0 }
 0x5a0   : > { %12897 = vst [vmem:[#allocation138_spill] sm:$0xff] %v12051_v46  ;;  %v12055_v34 = vadd.f32 %v12899_v3, %v5339_v0  ;;  %v5811_v28 = vadd.f32 %v8256_v12, %v11841_v10 }
 0x5a1   : > { %v12057_v47 = vpop.f32.mrf.mxu1  ;;  %v5802_v30 = vpop.f32.mrf.mxu0 }
 0x5a2   : > { %12900 = vst [vmem:[#allocation136_spill] sm:$0xff] %v12055_v34  ;;  %v12061_v13 = vadd.f32 %v5802_v30, %v12901_v1  ;;  %v6140_v41 = vrot.slane %v5811_v28, 1 }
 0x5a3   : > { %v5675_v43 = vpop.f32.mrf.mxu1  ;;  %v8257_v17 = vpop.f32.mrf.mxu0 }
 0x5a4   : > { %12902 = vst [vmem:[#allocation139_spill] sm:$0xff] %v12061_v13  ;;  %v5814_v52 = vadd.f32 %v8257_v17, %v11851_v22  ;;  %v12431_v38 = vrot.slane %v12061_v13, 1 }
 0x5a5   : > { %v12064_v33 = vpop.f32.mrf.mxu1  ;;  %v5805_v14 = vpop.f32.mrf.mxu0 }
 0x5a6   : > { %v6141_v16 = vrot.slane %v5814_v52, 1  ;;  %v5806_v0 = vadd.f32 %v5805_v14, %v11831_v39  ;;  %v12904_v52 = vld [vmem:[#allocation89_spill] sm:$0xff] }
 0x5a7   : > { %v5678_v3 = vpop.f32.mrf.mxu1  ;;  %v8260_v34 = vpop.f32.mrf.mxu0 }
 0x5a8   : > { %v6231_v10 = vsel %vm3209_vm11, %v6140_v41, %v6141_v16  ;;  %v6139_v12 = vrot.slane %v5806_v0, 1  ;;  %v5827_v39 = vadd.f32 %v8260_v34, %v11880_v21 }
 0x5a9   : > { %v12070_v43 = vpop.f32.mrf.mxu1  ;;  %v5818_v30 = vpop.f32.mrf.mxu0  ;;  %v6237_v1 = vadd.f32 %v6231_v10, %v11824_v6 }
 0x5aa   : > { %v6232_v22 = vsel %vm3209_vm11, %v6139_v12, %v6140_v41  ;;  %v6233_v28 = vsel %vm3209_vm11, %v12431_v38, %v6139_v12  ;;  %v5819_v17 = vadd.f32 %v5818_v30, %v11861_v59  ;;  %v12086_v41 = vld [vmem:[%s12386_s4] ss:$0 sm:$0xff]  ;;  %v6144_v10 = vrot.slane %v5827_v39, 1 }
 0x5ab   : > { %v6235_v14 = vadd.f32 %v6233_v28, %v12904_v52  ;;  %v6236_v0 = vadd.f32 %v6232_v22, %v11838_v18  ;;  %v5683_v3 = vpop.f32.mrf.mxu1  ;;  %v8261_v27 = vpop.f32.mrf.mxu0  ;;  %v6292_v28 = vadd.f32 %v12086_v41, %v6237_v1 }
 0x5ac   : > { %v6142_v13 = vrot.slane %v5819_v17, 1  ;;  %v5830_v12 = vadd.f32 %v8261_v27, %v11889_v5  ;;  %v12905_v3 = vld [vmem:[#allocation106_spill] sm:$0xff] }
 0x5ad   : > { %v6290_v21 = vadd.f32 %v12086_v41, %v6235_v14  ;;  %v6291_v59 = vadd.f32 %v12086_v41, %v6236_v0  ;;  %v12091_v34 = vpop.f32.mrf.mxu1  ;;  %v5821_v6 = vpop.f32.mrf.mxu0 }
 0x5ae   : > { %v6230_v18 = vsel %vm3209_vm11, %v6141_v16, %v6142_v13  ;;  %v6145_v30 = vrot.slane %v5830_v12, 1  ;;  %v5822_v22 = vadd.f32 %v5821_v6, %v11870_v51 }
 0x5af   : > { %v6338_v52 = vmax.f32 %v6290_v21, 0.0  ;;  %v6339_v17 = vmax.f32 %v6291_v59, 0.0  ;;  %v6238_v5 = vadd.f32 %v6230_v18, %v12905_v3  ;;  %v5686_v27 = vpop.f32.mrf.mxu1  ;;  %v8264_v14 = vpop.f32.mrf.mxu0  ;;  %v6340_v18 = vmax.f32 %v6292_v28, 0.0 }
 0x5b0   : > { %v6227_v0 = vsel %vm3209_vm11, %v6144_v10, %v6145_v30  ;;  %v6143_v38 = vrot.slane %v5822_v22, 1  ;;  %v5843_v59 = vadd.f32 %v8264_v14, %v11918_v19  ;;  %v12906_v22 = vld [vmem:[#allocation101_spill] sm:$0xff] }
 0x5b1   : > { %v7541_v39 = vpack.c.bf16 %v6339_v17, %v6338_v52  ;;  %v6293_v9 = vadd.f32 %v12086_v41, %v6238_v5  ;;  %v6241_v16 = vadd.f32 %v6227_v0, %v11844_v49  ;;  %v12102_v12 = vpop.f32.mrf.mxu1  ;;  %v5834_v51 = vpop.f32.mrf.mxu0 }
 0x5b2   : > { %v6228_v1 = vsel %vm3209_vm11, %v6143_v38, %v6144_v10  ;;  %v6229_v21 = vsel %vm3209_vm11, %v6142_v13, %v6143_v38  ;;  %v5835_v6 = vadd.f32 %v5834_v51, %v11898_v31  ;;  %v6148_v14 = vrot.slane %v5843_v59, 1 }
 0x5b3   : > { %7542 = vst [vmem:[%s12112_s29] sm:$0xff] %v7541_v39   ;;  %v6341_v49 = vmax.f32 %v6293_v9, 0.0  ;;  %v6239_v52 = vadd.f32 %v6229_v21, %v12906_v22  ;;  %v6240_v17 = vadd.f32 %v6228_v1, %v11858_v45  ;;  %v5691_v10 = vpop.f32.mrf.mxu1  ;;  %v8265_v3 = vpop.f32.mrf.mxu0  ;;  %v6296_v31 = vadd.f32 %v12086_v41, %v6241_v16 }
 0x5b4   : > { %v6146_v5 = vrot.slane %v5835_v6, 1  ;;  %v5846_v38 = vadd.f32 %v8265_v3, %v11928_v29 }
 0x5b5   : > { %v7546_v19 = vpack.c.bf16 %v6341_v49, %v6340_v18  ;;  %v6294_v13 = vadd.f32 %v12086_v41, %v6239_v52  ;;  %v6295_v28 = vadd.f32 %v12086_v41, %v6240_v17  ;;  %v12121_v27 = vpop.f32.mrf.mxu1  ;;  %v5837_v9 = vpop.f32.mrf.mxu0  ;;  %v6344_v49 = vmax.f32 %v6296_v31, 0.0 }
 0x5b6   : > { %v6226_v0 = vsel %vm3209_vm11, %v6145_v30, %v6146_v5  ;;  %v6149_v45 = vrot.slane %v5846_v38, 1  ;;  %v5838_v39 = vadd.f32 %v5837_v9, %v11908_v54 }
 0x5b7   : > { %7703 = vst [vmem:[%s12112_s29 + $0x8] sm:$0xff] %v7546_v19   ;;  %v6342_v51 = vmax.f32 %v6294_v13, 0.0  ;;  %v6343_v29 = vmax.f32 %v6295_v28, 0.0  ;;  %v6242_v16 = vadd.f32 %v6226_v0, %v11854_v53  ;;  %v5694_v1 = vpop.f32.mrf.mxu1  ;;  %v8268_v21 = vpop.f32.mrf.mxu0 }
 0x5b8   : > { %v6223_v6 = vsel %vm3209_vm11, %v6148_v14, %v6149_v45  ;;  %v6147_v18 = vrot.slane %v5838_v39, 1  ;;  %v5859_v53 = vadd.f32 %v8268_v21, %v11958_v11 }
 0x5b9   : > { %v7551_v59 = vpack.c.bf16 %v6343_v29, %v6342_v51  ;;  %v6297_v22 = vadd.f32 %v12086_v41, %v6242_v16  ;;  %v12131_v30 = vpop.f32.mrf.mxu1  ;;  %v5850_v52 = vpop.f32.mrf.mxu0  ;;  %v6245_v38 = vadd.f32 %v6223_v6, %v11863_v20 }
 0x5ba   : > { %v6224_v54 = vsel %vm3209_vm11, %v6147_v18, %v6148_v14  ;;  %v6225_v17 = vsel %vm3209_vm11, %v6146_v5, %v6147_v18  ;;  %v5851_v10 = vadd.f32 %v5850_v52, %v11938_v7  ;;  %v6152_v51 = vrot.slane %v5859_v53, 1 }
 0x5bb   : > { %7704 = vst [vmem:[%s12112_s29 + $0x10] sm:$0xff] %v7551_v59   ;;  %v6345_v3 = vmax.f32 %v6297_v22, 0.0  ;;  %v6243_v19 = vadd.f32 %v6225_v17, %v11867_v55  ;;  %v6244_v31 = vadd.f32 %v6224_v54, %v11877_v60  ;;  %v5699_v13 = vpop.f32.mrf.mxu1  ;;  %v8269_v28 = vpop.f32.mrf.mxu0  ;;  %v6300_v29 = vadd.f32 %v12086_v41, %v6245_v38 }
 0x5bc   : > { %v6150_v9 = vrot.slane %v5851_v10, 1  ;;  %v5862_v14 = vadd.f32 %v8269_v28, %v11968_v4 }
 0x5bd   : > { %v7556_v0 = vpack.c.bf16 %v6345_v3, %v6344_v49  ;;  %v6298_v5 = vadd.f32 %v12086_v41, %v6243_v19  ;;  %v6299_v11 = vadd.f32 %v12086_v41, %v6244_v31  ;;  %v12146_v7 = vpop.f32.mrf.mxu1  ;;  %v5853_v39 = vpop.f32.mrf.mxu0  ;;  %v6348_v10 = vmax.f32 %v6300_v29, 0.0 }
 0x5be   : > { %v6222_v20 = vsel %vm3209_vm11, %v6149_v45, %v6150_v9  ;;  %v6153_v55 = vrot.slane %v5862_v14, 1  ;;  %v5854_v60 = vadd.f32 %v5853_v39, %v11948_v40 }
 0x5bf   : > { %7705 = vst [vmem:[%s12112_s29 + $0x18] sm:$0xff] %v7556_v0   ;;  %v6346_v16 = vmax.f32 %v6298_v5, 0.0  ;;  %v6347_v4 = vmax.f32 %v6299_v11, 0.0  ;;  %v6246_v1 = vadd.f32 %v6222_v20, %v11873_v37  ;;  %v5702_v21 = vpop.f32.mrf.mxu1  ;;  %v8272_v6 = vpop.f32.mrf.mxu0 }
 0x5c0   : > { %v6219_v18 = vsel %vm3209_vm11, %v6152_v51, %v6153_v55  ;;  %v6151_v49 = vrot.slane %v5854_v60, 1  ;;  %v5875_v17 = vadd.f32 %v8272_v6, %v11998_v36 }
 0x5c1   : > { %v7561_v59 = vpack.c.bf16 %v6347_v4, %v6346_v16  ;;  %v6301_v45 = vadd.f32 %v12086_v41, %v6246_v1  ;;  %v6249_v22 = vadd.f32 %v6219_v18, %v11882_v26  ;;  %v12158_v40 = vpop.f32.mrf.mxu1  ;;  %v5866_v52 = vpop.f32.mrf.mxu0 }
 0x5c2   : > { %v6220_v54 = vsel %vm3209_vm11, %v6151_v49, %v6152_v51  ;;  %v6221_v37 = vsel %vm3209_vm11, %v6150_v9, %v6151_v49  ;;  %v5867_v53 = vadd.f32 %v5866_v52, %v11978_v50  ;;  %v6156_v5 = vrot.slane %v5875_v17, 1 }
 0x5c3   : > { %7706 = vst [vmem:[%s12112_s29 + $0x20] sm:$0xff] %v7561_v59   ;;  %v6349_v3 = vmax.f32 %v6301_v45, 0.0  ;;  %v6247_v38 = vadd.f32 %v6221_v37, %v11886_v62  ;;  %v6248_v26 = vadd.f32 %v6220_v54, %v11895_v25  ;;  %v5707_v19 = vpop.f32.mrf.mxu1  ;;  %v8273_v31 = vpop.f32.mrf.mxu0  ;;  %v6304_v39 = vadd.f32 %v12086_v41, %v6249_v22 }
 0x5c4   : > { %v6154_v13 = vrot.slane %v5867_v53, 1  ;;  %v5878_v28 = vadd.f32 %v8273_v31, %v12008_v35 }
 0x5c5   : > { %v7566_v14 = vpack.c.bf16 %v6349_v3, %v6348_v10  ;;  %v6302_v9 = vadd.f32 %v12086_v41, %v6247_v38  ;;  %v6303_v36 = vadd.f32 %v12086_v41, %v6248_v26  ;;  %v12172_v0 = vpop.f32.mrf.mxu1  ;;  %v5869_v50 = vpop.f32.mrf.mxu0  ;;  %v6352_v45 = vmax.f32 %v6304_v39, 0.0 }
 0x5c6   : > { %v6218_v11 = vsel %vm3209_vm11, %v6153_v55, %v6154_v13  ;;  %v6157_v62 = vrot.slane %v5878_v28, 1  ;;  %v5870_v25 = vadd.f32 %v5869_v50, %v11988_v58 }
 0x5c7   : > { %7707 = vst [vmem:[%s12112_s29 + $0x28] sm:$0xff] %v7566_v14   ;;  %v6350_v51 = vmax.f32 %v6302_v9, 0.0  ;;  %v6351_v35 = vmax.f32 %v6303_v36, 0.0  ;;  %v6250_v20 = vadd.f32 %v6218_v11, %v11892_v2  ;;  %v5710_v60 = vpop.f32.mrf.mxu1  ;;  %v8276_v29 = vpop.f32.mrf.mxu0 }
 0x5c8   : > { %v6215_v16 = vsel %vm3209_vm11, %v6156_v5, %v6157_v62  ;;  %v6155_v4 = vrot.slane %v5870_v25, 1  ;;  %v5891_v49 = vadd.f32 %v8276_v29, %v12038_v63 }
 0x5c9   : > { %v7571_v1 = vpack.c.bf16 %v6351_v35, %v6350_v51  ;;  %v6305_v55 = vadd.f32 %v12086_v41, %v6250_v20  ;;  %v6253_v21 = vadd.f32 %v6215_v16, %v11901_v23  ;;  %v12184_v58 = vpop.f32.mrf.mxu1  ;;  %v5882_v6 = vpop.f32.mrf.mxu0 }
 0x5ca   : > { %v6216_v18 = vsel %vm3209_vm11, %v6155_v4, %v6156_v5  ;;  %v6217_v2 = vsel %vm3209_vm11, %v6154_v13, %v6155_v4  ;;  %v5883_v59 = vadd.f32 %v5882_v6, %v12018_v32  ;;  %v6160_v19 = vrot.slane %v5891_v49, 1 }
 0x5cb   : > { %7708 = vst [vmem:[%s12112_s29 + $0x30] sm:$0xff] %v7571_v1   ;;  %v6353_v22 = vmax.f32 %v6305_v55, 0.0  ;;  %v6251_v52 = vadd.f32 %v6217_v2, %v11905_v8  ;;  %v6252_v23 = vadd.f32 %v6216_v18, %v11915_v42  ;;  %v5715_v54 = vpop.f32.mrf.mxu1  ;;  %v8277_v37 = vpop.f32.mrf.mxu0  ;;  %v6308_v3 = vadd.f32 %v12086_v41, %v6253_v21 }
 0x5cc   : > { %v6158_v17 = vrot.slane %v5883_v59, 1  ;;  %v5894_v53 = vadd.f32 %v8277_v37, %v12048_v61 }
 0x5cd   : > { %v7576_v10 = vpack.c.bf16 %v6353_v22, %v6352_v45  ;;  %v6306_v63 = vadd.f32 %v12086_v41, %v6251_v52  ;;  %v6307_v32 = vadd.f32 %v12086_v41, %v6252_v23  ;;  %v12199_v38 = vpop.f32.mrf.mxu1  ;;  %v5885_v26 = vpop.f32.mrf.mxu0  ;;  %v6356_v5 = vmax.f32 %v6308_v3, 0.0 }
 0x5ce   : > { %v6214_v8 = vsel %vm3209_vm11, %v6157_v62, %v6158_v17  ;;  %v6161_v42 = vrot.slane %v5894_v53, 1  ;;  %v5886_v31 = vadd.f32 %v5885_v26, %v12028_v48 }
 0x5cf   : > { %7709 = vst [vmem:[%s12112_s29 + $0x38] sm:$0xff] %v7576_v10   ;;  %v6354_v13 = vmax.f32 %v6306_v63, 0.0  ;;  %v6355_v61 = vmax.f32 %v6307_v32, 0.0  ;;  %v6254_v28 = vadd.f32 %v6214_v8, %v11911_v56  ;;  %v5718_v14 = vpop.f32.mrf.mxu1  ;;  %v8280_v9 = vpop.f32.mrf.mxu0  ;;  %v12907_v10 = vld [vmem:[#allocation114_spill] sm:$0xff] }
 0x5d0   : > { %v6211_v36 = vsel %vm3209_vm11, %v6160_v19, %v6161_v42  ;;  %v6159_v50 = vrot.slane %v5886_v31, 1  ;;  %v5907_v56 = vadd.f32 %v8280_v9, %v12070_v43  ;;  %v12908_v31 = vld [vmem:[#allocation109_spill] sm:$0xff] }
 0x5d1   : > { %v7581_v11 = vpack.c.bf16 %v6355_v61, %v6354_v13  ;;  %v6309_v25 = vadd.f32 %v12086_v41, %v6254_v28  ;;  %v12209_v62 = vpop.f32.mrf.mxu1  ;;  %v5898_v39 = vpop.f32.mrf.mxu0  ;;  %v6257_v60 = vadd.f32 %v6211_v36, %v11921_v57  ;;  %v12909_v61 = vld [vmem:[#allocation117_spill] sm:$0xff] }
 0x5d2   : > { %v6212_v48 = vsel %vm3209_vm11, %v6159_v50, %v6160_v19  ;;  %v6213_v51 = vsel %vm3209_vm11, %v6158_v17, %v6159_v50  ;;  %v5899_v35 = vadd.f32 %v5898_v39, %v12057_v47  ;;  %v6164_v49 = vrot.slane %v5907_v56, 1 }
 0x5d3   : > { %7710 = vst [vmem:[%s12112_s29 + $0x40] sm:$0xff] %v7581_v11   ;;  %v6357_v20 = vmax.f32 %v6309_v25, 0.0  ;;  %v6255_v29 = vadd.f32 %v6213_v51, %v11925_v44  ;;  %v6256_v16 = vadd.f32 %v6212_v48, %v11935_v15  ;;  %v5723_v4 = vpop.f32.mrf.mxu1  ;;  %v8281_v1 = vpop.f32.mrf.mxu0  ;;  %v6312_v59 = vadd.f32 %v12086_v41, %v6257_v60  ;;  %v12910_v60 = vld [vmem:[#allocation90_spill] sm:$0xff] }
 0x5d4   : > { %v6162_v55 = vrot.slane %v5899_v35, 1  ;;  %v5910_v21 = vadd.f32 %v8281_v1, %v12091_v34 }
 0x5d5   : > { %v7586_v6 = vpack.c.bf16 %v6357_v20, %v6356_v5  ;;  %v6310_v18 = vadd.f32 %v12086_v41, %v6255_v29  ;;  %v6311_v43 = vadd.f32 %v12086_v41, %v6256_v16  ;;  %v12224_v47 = vpop.f32.mrf.mxu1  ;;  %v5901_v2 = vpop.f32.mrf.mxu0  ;;  %v6360_v8 = vmax.f32 %v6312_v59, 0.0  ;;  %v12911_v59 = vld [vmem:[#allocation111_spill] sm:$0xff] }
 0x5d6   : > { %v6210_v57 = vsel %vm3209_vm11, %v6161_v42, %v6162_v55  ;;  %v6165_v44 = vrot.slane %v5910_v21, 1  ;;  %v5902_v15 = vadd.f32 %v5901_v2, %v12064_v33 }
 0x5d7   : > { %7711 = vst [vmem:[%s12112_s29 + $0x48] sm:$0xff] %v7586_v6   ;;  %v6358_v45 = vmax.f32 %v6310_v18, 0.0  ;;  %v6359_v34 = vmax.f32 %v6311_v43, 0.0  ;;  %v6258_v22 = vadd.f32 %v6210_v57, %v11931_v24  ;;  %v5726_v52 = vpop.f32.mrf.mxu1  ;;  %v8284_v23 = vpop.f32.mrf.mxu0 }
 0x5d8   : > { %v6207_v54 = vsel %vm3209_vm11, %v6164_v49, %v6165_v44  ;;  %v6163_v37 = vrot.slane %v5902_v15, 1  ;;  %v5923_v26 = vadd.f32 %v8284_v23, %v12131_v30  ;;  %v12913_v52 = vld [vmem:[#allocation129_spill] sm:$0xff] }
 0x5d9   : > { %v7591_v17 = vpack.c.bf16 %v6359_v34, %v6358_v45  ;;  %v6313_v53 = vadd.f32 %v12086_v41, %v6258_v22  ;;  %v6261_v3 = vadd.f32 %v6207_v54, %v12907_v10  ;;  %v12236_v33 = vpop.f32.mrf.mxu1  ;;  %v5914_v63 = vpop.f32.mrf.mxu0  ;;  %v12912_v34 = vld [vmem:[#allocation120_spill] sm:$0xff] }
 0x5da   : > { %v6208_v32 = vsel %vm3209_vm11, %v6163_v37, %v6164_v49  ;;  %v6209_v24 = vsel %vm3209_vm11, %v6162_v55, %v6163_v37  ;;  %v5915_v19 = vadd.f32 %v5914_v63, %v12102_v12  ;;  %v6168_v48 = vrot.slane %v5923_v26, 1 }
 0x5db   : > { %7712 = vst [vmem:[%s12112_s29 + $0x50] sm:$0xff] %v7591_v17   ;;  %v6361_v42 = vmax.f32 %v6313_v53, 0.0  ;;  %v6259_v13 = vadd.f32 %v6209_v24, %v12908_v31  ;;  %v6260_v28 = vadd.f32 %v6208_v32, %v12909_v61  ;;  %v5731_v14 = vpop.f32.mrf.mxu1  ;;  %v8285_v9 = vpop.f32.mrf.mxu0  ;;  %v6316_v11 = vadd.f32 %v12086_v41, %v6261_v3  ;;  %v12914_v31 = vld [vmem:[#allocation95_spill] sm:$0xff] }
 0x5dc   : > { %v6166_v36 = vrot.slane %v5915_v19, 1  ;;  %v5926_v50 = vadd.f32 %v8285_v9, %v12146_v7 }
 0x5dd   : > { %v7596_v5 = vpack.c.bf16 %v6361_v42, %v6360_v8  ;;  %v6314_v30 = vadd.f32 %v12086_v41, %v6259_v13  ;;  %v6315_v12 = vadd.f32 %v12086_v41, %v6260_v28  ;;  %v12251_v25 = vpop.f32.mrf.mxu1  ;;  %v5917_v39 = vpop.f32.mrf.mxu0  ;;  %v6364_v21 = vmax.f32 %v6316_v11, 0.0 }
 0x5de   : > { %v6206_v51 = vsel %vm3209_vm11, %v6165_v44, %v6166_v36  ;;  %v6169_v56 = vrot.slane %v5926_v50, 1  ;;  %v5918_v35 = vadd.f32 %v5917_v39, %v12121_v27 }
 0x5df   : > { %7713 = vst [vmem:[%s12112_s29 + $0x58] sm:$0xff] %v7596_v5   ;;  %v6362_v20 = vmax.f32 %v6314_v30, 0.0  ;;  %v6363_v7 = vmax.f32 %v6315_v12, 0.0  ;;  %v6262_v29 = vadd.f32 %v6206_v51, %v12910_v60  ;;  %v5734_v16 = vpop.f32.mrf.mxu1  ;;  %v8288_v4 = vpop.f32.mrf.mxu0  ;;  %v12915_v5 = vld [vmem:[#allocation126_spill] sm:$0xff]  ;;  %v12917_v60 = vld [vmem:[#allocation124_spill] sm:$0xff] }
 0x5e0   : > { %v6203_v1 = vsel %vm3209_vm11, %v6168_v48, %v6169_v56  ;;  %v6167_v55 = vrot.slane %v5918_v35, 1  ;;  %v5939_v57 = vadd.f32 %v8288_v4, %v12184_v58 }
 0x5e1   : > { %v7601_v6 = vpack.c.bf16 %v6363_v7, %v6362_v20  ;;  %v6317_v18 = vadd.f32 %v12086_v41, %v6262_v29  ;;  %v12261_v43 = vpop.f32.mrf.mxu1  ;;  %v5930_v2 = vpop.f32.mrf.mxu0  ;;  %v6265_v45 = vadd.f32 %v6203_v1, %v12911_v59  ;;  %v12916_v20 = vld [vmem:[#allocation123_spill] sm:$0xff]  ;;  %v12918_v59 = vld [vmem:[#allocation121_spill] sm:$0xff] }
 0x5e2   : > { %v6204_v27 = vsel %vm3209_vm11, %v6167_v55, %v6168_v48  ;;  %v6205_v49 = vsel %vm3209_vm11, %v6166_v36, %v6167_v55  ;;  %v5931_v44 = vadd.f32 %v5930_v2, %v12158_v40  ;;  %v6172_v32 = vrot.slane %v5939_v57, 1 }
 0x5e3   : > { %7714 = vst [vmem:[%s12112_s29 + $0xc0] sm:$0xff] %v7601_v6   ;;  %v6365_v15 = vmax.f32 %v6317_v18, 0.0  ;;  %v6263_v22 = vadd.f32 %v6205_v49, %v12912_v34  ;;  %v6264_v23 = vadd.f32 %v6204_v27, %v12913_v52  ;;  %v5739_v54 = vpop.f32.mrf.mxu1  ;;  %v8289_v37 = vpop.f32.mrf.mxu0  ;;  %v6320_v8 = vadd.f32 %v12086_v41, %v6265_v45 }
 0x5e4   : > { %v6170_v17 = vrot.slane %v5931_v44, 1  ;;  %v5942_v53 = vadd.f32 %v8289_v37, %v12199_v38 }
 0x5e5   : > { %v7606_v10 = vpack.c.bf16 %v6365_v15, %v6364_v21  ;;  %v6318_v3 = vadd.f32 %v12086_v41, %v6263_v22  ;;  %v6319_v58 = vadd.f32 %v12086_v41, %v6264_v23  ;;  %v12276_v40 = vpop.f32.mrf.mxu1  ;;  %v5933_v63 = vpop.f32.mrf.mxu0 }
 0x5e6   : > { %v6202_v24 = vsel %vm3209_vm11, %v6169_v56, %v6170_v17  ;;  %v6173_v26 = vrot.slane %v5942_v53, 1  ;;  %v5934_v19 = vadd.f32 %v5933_v63, %v12172_v0  ;;  %v6368_v56 = vmax.f32 %v6320_v8, 0.0 }
 0x5e7   : > { %7715 = vst [vmem:[%s12112_s29 + $0xc8] sm:$0xff] %v7606_v10   ;;  %v6366_v42 = vmax.f32 %v6318_v3, 0.0  ;;  %v6367_v38 = vmax.f32 %v6319_v58, 0.0  ;;  %v6266_v13 = vadd.f32 %v6202_v24, %v12914_v31  ;;  %v5742_v61 = vpop.f32.mrf.mxu1  ;;  %v8292_v28 = vpop.f32.mrf.mxu0  ;;  %v12919_v24 = vld [vmem:[#allocation122_spill] sm:$0xff] }
 0x5e8   : > { %v6199_v14 = vsel %vm3209_vm11, %v6172_v32, %v6173_v26  ;;  %v6171_v9 = vrot.slane %v5934_v19, 1  ;;  %v5955_v48 = vadd.f32 %v8292_v28, %v12236_v33  ;;  %v12920_v19 = vld [vmem:[#allocation128_spill] sm:$0xff] }
 0x5e9   : > { %v7611_v36 = vpack.c.bf16 %v6367_v38, %v6366_v42  ;;  %v6321_v50 = vadd.f32 %v12086_v41, %v6266_v13  ;;  %v6269_v11 = vadd.f32 %v6199_v14, %v12915_v5  ;;  %v5745_v0 = vpop.f32.mrf.mxu1  ;;  %v5946_v30 = vpop.f32.mrf.mxu0  ;;  %v12921_v42 = vld [vmem:[#allocation130_spill] sm:$0xff] }
 0x5ea   : > { %v6200_v12 = vsel %vm3209_vm11, %v6171_v9, %v6172_v32  ;;  %v6201_v39 = vsel %vm3209_vm11, %v6170_v17, %v6171_v9  ;;  %v5947_v51 = vadd.f32 %v5946_v30, %v12209_v62  ;;  %v6176_v27 = vrot.slane %v5955_v48, 1 }
 0x5eb   : > { %7716 = vst [vmem:[%s12112_s29 + $0xd0] sm:$0xff] %v7611_v36   ;;  %v6369_v35 = vmax.f32 %v6321_v50, 0.0  ;;  %v6267_v7 = vadd.f32 %v6201_v39, %v12916_v20  ;;  %v6268_v29 = vadd.f32 %v6200_v12, %v12917_v60  ;;  %v5747_v16 = vpop.f32.mrf.mxu1  ;;  %v8293_v4 = vpop.f32.mrf.mxu0  ;;  %v6324_v6 = vadd.f32 %v12086_v41, %v6269_v11 }
 0x5ec   : > { %v6174_v1 = vrot.slane %v5947_v51, 1  ;;  %v5958_v55 = vadd.f32 %v8293_v4, %v12251_v25  ;;  %v12922_v51 = vld [vmem:[#allocation125_spill] sm:$0xff]  ;;  %v12923_v4 = vld [vmem:[#allocation127_spill] sm:$0xff] }
 0x5ed   : > { %v7616_v21 = vpack.c.bf16 %v6369_v35, %v6368_v56  ;;  %v6322_v33 = vadd.f32 %v12086_v41, %v6267_v7  ;;  %v6323_v62 = vadd.f32 %v12086_v41, %v6268_v29  ;;  %v5748_v18 = vpop.f32.mrf.mxu1  ;;  %v5949_v2 = vpop.f32.mrf.mxu0  ;;  %v6372_v54 = vmax.f32 %v6324_v6, 0.0 }
 0x5ee   : > { %v6198_v49 = vsel %vm3209_vm11, %v6173_v26, %v6174_v1  ;;  %v6177_v57 = vrot.slane %v5958_v55, 1  ;;  %v5950_v44 = vadd.f32 %v5949_v2, %v12224_v47  ;;  %v12924_v2 = vld [vmem:[#allocation131_spill] sm:$0xff] }
 0x5ef   : > { %7717 = vst [vmem:[%s12112_s29 + $0xd8] sm:$0xff] %v7616_v21   ;;  %v6370_v15 = vmax.f32 %v6322_v33, 0.0  ;;  %v6371_v25 = vmax.f32 %v6323_v62, 0.0  ;;  %v6270_v45 = vadd.f32 %v6198_v49, %v12918_v59  ;;  %v5750_v34 = vpop.f32.mrf.mxu1  ;;  %v8296_v22 = vpop.f32.mrf.mxu0  ;;  %v12925_v49 = vld [vmem:[#allocation132_spill] sm:$0xff] }
 0x5f0   : > { %v6195_v52 = vsel %vm3209_vm11, %v6176_v27, %v6177_v57  ;;  %v6175_v23 = vrot.slane %v5950_v44, 1  ;;  %v5971_v58 = vadd.f32 %v8296_v22, %v5745_v0 }
 0x5f1   : > { %v7621_v37 = vpack.c.bf16 %v6371_v25, %v6370_v15  ;;  %v6325_v17 = vadd.f32 %v12086_v41, %v6270_v45  ;;  %v5753_v53 = vpop.f32.mrf.mxu1  ;;  %v5962_v10 = vpop.f32.mrf.mxu0  ;;  %v6273_v26 = vadd.f32 %v6195_v52, %v12919_v24 }
 0x5f2   : > { %v6196_v47 = vsel %vm3209_vm11, %v6175_v23, %v6176_v27  ;;  %v6197_v3 = vsel %vm3209_vm11, %v6174_v1, %v6175_v23  ;;  %v5963_v63 = vadd.f32 %v5962_v10, %v12261_v43  ;;  %v6180_v5 = vrot.slane %v5971_v58, 1 }
 0x5f3   : > { %7718 = vst [vmem:[%s12112_s29 + $0xe0] sm:$0xff] %v7621_v37   ;;  %v6373_v32 = vmax.f32 %v6325_v17, 0.0  ;;  %v6271_v8 = vadd.f32 %v6197_v3, %v12920_v19  ;;  %v6272_v38 = vadd.f32 %v6196_v47, %v12921_v42  ;;  %v5755_v31 = vpop.f32.mrf.mxu1  ;;  %v8297_v13 = vpop.f32.mrf.mxu0  ;;  %v6328_v12 = vadd.f32 %v12086_v41, %v6273_v26  ;;  %v12926_v3 = vld [vmem:[#allocation133_spill] sm:$0xff] }
 0x5f4   : > { %v6178_v61 = vrot.slane %v5963_v63, 1  ;;  %v5974_v28 = vadd.f32 %v8297_v13, %v5748_v18  ;;  %v12927_v31 = vld [vmem:[#allocation139_spill] sm:$0xff] }
 0x5f5   : > { %v7626_v14 = vpack.c.bf16 %v6373_v32, %v6372_v54  ;;  %v6326_v9 = vadd.f32 %v12086_v41, %v6271_v8  ;;  %v6327_v36 = vadd.f32 %v12086_v41, %v6272_v38  ;;  %v5756_v50 = vpop.f32.mrf.mxu1  ;;  %v5965_v43 = vpop.f32.mrf.mxu0  ;;  %v6376_v62 = vmax.f32 %v6328_v12, 0.0 }
 0x5f6   : > { %v6194_v11 = vsel %vm3209_vm11, %v6177_v57, %v6178_v61  ;;  %v6181_v0 = vrot.slane %v5974_v28, 1  ;;  %v5966_v30 = vadd.f32 %v5965_v43, %v12276_v40  ;;  %v12928_v13 = vrot.slane %v12927_v31, 1  ;;  %v12930_v43 = vld [vmem:[#allocation138_spill] sm:$0xff] }
 0x5f7   : > { %7719 = vst [vmem:[%s12112_s29 + $0xe8] sm:$0xff] %v7626_v14   ;;  %v6374_v39 = vmax.f32 %v6326_v9, 0.0  ;;  %v6375_v48 = vmax.f32 %v6327_v36, 0.0  ;;  %v6274_v56 = vadd.f32 %v6194_v11, %v12922_v51  ;;  %v5758_v35 = vpop.f32.mrf.mxu1  ;;  %v8300_v20 = vpop.f32.mrf.mxu0  ;;  %v12929_v36 = vld [vmem:[#allocation135_spill] sm:$0xff]  ;;  %v12931_v11 = vld [vmem:[#allocation134_spill] sm:$0xff] }
 0x5f8   : > { %v6191_v7 = vsel %vm3209_vm11, %v6180_v5, %v6181_v0  ;;  %v6179_v60 = vrot.slane %v5966_v30, 1  ;;  %v12932_v30 = vld [vmem:[#allocation136_spill] sm:$0xff] }
 0x5f9   : > { %v7631_v29 = vpack.c.bf16 %v6375_v48, %v6374_v39  ;;  %v6329_v16 = vadd.f32 %v12086_v41, %v6274_v56  ;;  %v6277_v1 = vadd.f32 %v6191_v7, %v12923_v4  ;;  %v5761_v40 = vpop.f32.mrf.mxu1  ;;  %v5978_v55 = vpop.f32.mrf.mxu0 }
 0x5fa   : > { %v6192_v21 = vsel %vm3209_vm11, %v6179_v60, %v6180_v5  ;;  %v6193_v6 = vsel %vm3209_vm11, %v6178_v61, %v6179_v60  ;;  %v5979_v33 = vadd.f32 %v5978_v55, %v5753_v53  ;;  %v5987_v25 = vadd.f32 %v8300_v20, %v5761_v40 }
 0x5fb   : > { %7720 = vst [vmem:[%s12112_s29 + $0xf0] sm:$0xff] %v7631_v29   ;;  %v6377_v18 = vmax.f32 %v6329_v16, 0.0  ;;  %v6275_v27 = vadd.f32 %v6193_v6, %v12924_v2  ;;  %v6276_v57 = vadd.f32 %v6192_v21, %v12925_v49  ;;  %v5763_v44 = vpop.f32.mrf.mxu1  ;;  %v8301_v15 = vpop.f32.mrf.mxu0  ;;  %v6332_v34 = vadd.f32 %v12086_v41, %v6277_v1 }
 0x5fc   : > { %v6182_v59 = vrot.slane %v5979_v33, 1  ;;  %v6184_v32 = vrot.slane %v5987_v25, 1 }
 0x5fd   : > { %v7636_v45 = vpack.c.bf16 %v6377_v18, %v6376_v62  ;;  %v6330_v22 = vadd.f32 %v12086_v41, %v6275_v27  ;;  %v6331_v52 = vadd.f32 %v12086_v41, %v6276_v57  ;;  %v5764_v23 = vpop.f32.mrf.mxu1  ;;  %v5981_v54 = vpop.f32.mrf.mxu0  ;;  %v6380_v19 = vmax.f32 %v6332_v34, 0.0 }
 0x5fe   : > { %v6190_v37 = vsel %vm3209_vm11, %v6181_v0, %v6182_v59  ;;  %v5990_v17 = vadd.f32 %v8301_v15, %v5764_v23  ;;  %v5982_v53 = vadd.f32 %v5981_v54, %v5756_v50 }
 0x5ff   : > { %7721 = vst [vmem:[%s12112_s29 + $0xf8] sm:$0xff] %v7636_v45   ;;  %v6378_v10 = vmax.f32 %v6330_v22, 0.0  ;;  %v6379_v47 = vmax.f32 %v6331_v52, 0.0  ;;  %v6278_v58 = vadd.f32 %v6190_v37, %v12926_v3  ;;  %v5766_v63 = vpop.f32.mrf.mxu1 }
 0x600   : > { %v6185_v24 = vrot.slane %v5990_v17, 1  ;;  %v6183_v26 = vrot.slane %v5982_v53, 1 }
 0x601   : > { %v7641_v8 = vpack.c.bf16 %v6379_v47, %v6378_v10  ;;  %v6333_v42 = vadd.f32 %v12086_v41, %v6278_v58 }
 0x602   : > { %v6187_v38 = vsel %vm3209_vm11, %v6184_v32, %v6185_v24  ;;  %v6234_v61 = vsel %vm3209_vm11, %v6185_v24, %v12928_v13  ;;  %v6188_v28 = vsel %vm3209_vm11, %v6183_v26, %v6184_v32  ;;  %v6189_v14 = vsel %vm3209_vm11, %v6182_v59, %v6183_v26 }
 0x603   : > { %7722 = vst [vmem:[%s12112_s29 + $0x100] sm:$0xff] %v7641_v8   ;;  %v6381_v9 = vmax.f32 %v6333_v42, 0.0  ;;  %v6281_v50 = vadd.f32 %v6187_v38, %v12929_v36  ;;  %v6282_v5 = vadd.f32 %v6234_v61, %v12930_v43  ;;  %v6279_v0 = vadd.f32 %v6189_v14, %v12931_v11 }
 0x604   : > { %v6280_v12 = vadd.f32 %v6188_v28, %v12932_v30 }
 0x605   : > { %v7646_v39 = vpack.c.bf16 %v6381_v9, %v6380_v19  ;;  %v6336_v48 = vadd.f32 %v12086_v41, %v6281_v50  ;;  %v6337_v51 = vadd.f32 %v12086_v41, %v6282_v5  ;;  %v6334_v46 = vadd.f32 %v12086_v41, %v6279_v0 }
 0x606   : > { %v6335_v56 = vadd.f32 %v12086_v41, %v6280_v12 }
 0x607   : > { %7723 = vst [vmem:[%s12112_s29 + $0x108] sm:$0xff] %v7646_v39   ;;  %v6384_v35 = vmax.f32 %v6336_v48, 0.0  ;;  %v6385_v20 = vmax.f32 %v6337_v51, 0.0  ;;  %v6382_v7 = vmax.f32 %v6334_v46, 0.0 }
 0x608   : > { %v6383_v60 = vmax.f32 %v6335_v56, 0.0  ;;  %3771 = sbr.rel (!%p3769_p3) target bundleno = 862 (0x35e), region = 117 }
 0x609   : > { %v7656_v29 = vpack.c.bf16 %v6385_v20, %v6384_v35 }
 0x60a   : > { %v7651_v16 = vpack.c.bf16 %v6383_v60, %v6382_v7 }
 0x60b   : > { %7725 = vst [vmem:[%s12112_s29 + $0x118] sm:$0xff] %v7656_v29  }
 0x60c   : > { %7724 = vst [vmem:[%s12112_s29 + $0x110] sm:$0xff] %v7651_v16  }
 0x60d   :  { %8696 = shalt.err (!%p8693_p8)
}
 0x60e   :  { %6655 = dma.vmem_to_hbm [thread:$0]  %s6650_s7, 6144, %s12387_s5, [#allocation6], %s8759_s26, %s8759_s26, %s8760_s27  }
 0x60f   :  { %s8705_s4 = scalar_lea.vmem %s6662_s9, 6144  ;;  %p8710_p10 = scmp.lt.s32.totalorder %s6662_s9, %s6662_s9 }
 0x610   :  { %p8706_p9 = scmp.ne.s32.totalorder %s6662_s9, %s8705_s4  ;;  %p8711_p11 = scmp.lt.s32.totalorder %s8705_s4, %s8705_s4 }
 0x612   :  { %p8712_p12 = por %p8711_p11, %p8710_p10 }
 0x614   :  { %p8713_p13 = pnand %p8712_p12, %p8706_p9 }
 0x616   :  { %8716 = shalt.err (!%p8713_p13)
}
 0x617   :  { %6667 = dma.vmem_to_hbm [thread:$0]  %s6662_s9, 6144, %s12388_s6, [#allocation12], %s8759_s26, %s8759_s26, %s8760_s27  }
 0x618   :  { %8741 = dma.done.wait [#allocation6], 6144  }
 0x619   :  { %8742 = vsyncadd [#allocation6], 4294961152 }
 0x61a   :  { %8743 = dma.done.wait [#allocation12], 6144  }
 0x61b   :  { %8744 = vsyncadd [#allocation12], 4294961152 }
 0x61c   :  { %6674 = vsyncpa [#allocation5], 1 }
 0x61d   :  { %6675 = vsyncpa [#allocation8], 1 }
 0x61e   :  { %6676 = vsyncpa [#allocation6], 1 }
 0x61f   :  { %6677 = vsyncpa [#allocation12], 1 }

</bundles_post_ra>
